<compile_context>
chip_gen: v6e
topology: v6e:2x2x1
jax: 0.10.0
libtpu: 0.0.40
codegen_flags: <defaults>
</compile_context>

<pallas_src>
import functools

import jax
import jax.numpy as jnp
from jax.experimental import pallas as pl
from jax.experimental.pallas import tpu as pltpu

_VMEM_LIMIT = 48 * 1024 * 1024
_BF16 = jnp.bfloat16
_F32 = jnp.float32


def _relu(x):
    return jnp.maximum(x, 0.0)


def _const(shape, grid_rank):
    """BlockSpec for a batch-shared (grid-constant) full-array operand."""
    zeros = (0,) * len(shape)
    if grid_rank == 1:
        return pl.BlockSpec(shape, lambda i: zeros)
    return pl.BlockSpec(shape, lambda i, j: zeros)


def _pick_tile(total, candidates):
    for t in candidates:
        if total >= t and total % t == 0:
            return t
    return total


# ---------------------------------------------------------------------------
# Kernel 1: encoder1 -> global code only (local feature of encoder1 is unused).
# Grid: (batch ["parallel"], point-tile ["arbitrary" reduction, running max]).
# ---------------------------------------------------------------------------

def encoder_global_kernel(x_ref, w1, b1, w2, b2, w3, b3, x1_ref, m_ref):
    t = pl.program_id(1)

    @pl.when(t == 0)
    def _init():
        m_ref[...] = jnp.full(m_ref.shape, -jnp.inf, dtype=m_ref.dtype)

    x = x_ref[0].astype(_BF16)                                              # (3, tn)
    h1 = _relu(jnp.dot(w1[...], x, preferred_element_type=_F32) + b1[...])  # (64, tn)
    h2 = _relu(jnp.dot(w2[...], h1.astype(_BF16),
                       preferred_element_type=_F32) + b2[...])              # (128, tn)
    # Layer 3 in transposed orientation (contract h2 dim 0 with w3 dim 0) so the
    # per-batch max-pool is a sublane reduction landing lane-dense as (1, 1024).
    # bf16 x bf16 with f32 accumulation keeps the MXU on its fast path.
    h3t = jax.lax.dot_general(h2.astype(_BF16), w3[...],
                              (((0,), (0,)), ((), ())),
                              preferred_element_type=_F32) + b3[...]        # (tn, 1024)
    m_ref[...] = jnp.maximum(m_ref[...], jnp.max(h3t, axis=0, keepdims=True))

    @pl.when(t == pl.num_programs(1) - 1)
    def _finalize():
        x1_ref[0] = m_ref[...]


def encoder_global_apply(x, p):
    B, _, n = x.shape
    tn = _pick_tile(n, (512, 256, 128))
    nt = n // tn
    out = pl.pallas_call(
        encoder_global_kernel,
        grid=(B, nt),
        in_specs=[
            pl.BlockSpec((1, 3, tn), lambda b, t: (b, 0, t)),
            _const((64, 3), 2), _const((64, 1), 2),
            _const((128, 64), 2), _const((128, 1), 2),
            _const((128, 1024), 2), _const((1, 1024), 2),
        ],
        out_specs=pl.BlockSpec((1, 1, 1024), lambda b, t: (b, 0, 0)),
        out_shape=jax.ShapeDtypeStruct((B, 1, 1024), _F32),
        scratch_shapes=[pltpu.VMEM((1, 1024), _F32)],
        compiler_params=pltpu.CompilerParams(
            dimension_semantics=("parallel", "arbitrary"),
            vmem_limit_bytes=_VMEM_LIMIT),
    )(x, p["w1"], p["b1"], p["w2"], p["b2"], p["w3"], p["b3"])
    return out.reshape(B, 1024)


# ---------------------------------------------------------------------------
# Kernel 2: decoder as one batched FC chain (B is the MXU M dim, no batch grid).
# Grid tiles only the 3n output columns; h2 is computed once into VMEM scratch.
# ---------------------------------------------------------------------------

def decoder_kernel(z_ref, w1, b1, w2, b2, w3, b3, out_ref, h2_ref):
    @pl.when(pl.program_id(0) == 0)
    def _head():
        z = z_ref[...].astype(_BF16)                                         # (B, 1024)
        h1 = _relu(jnp.dot(z, w1[...], preferred_element_type=_F32) + b1[...])
        h2 = _relu(jnp.dot(h1.astype(_BF16), w2[...],
                           preferred_element_type=_F32) + b2[...])           # (B, 512)
        h2_ref[...] = h2.astype(_BF16)

    out_ref[...] = jnp.dot(h2_ref[...], w3[...],
                           preferred_element_type=_F32) + b3[...]            # (B, tc)


def decoder_apply(x1, p, n):
    B = x1.shape[0]
    m = 3 * n
    tc = _pick_tile(m, (1536, 768, 384))
    nt = m // tc
    return pl.pallas_call(
        decoder_kernel,
        grid=(nt,),
        in_specs=[
            _const((B, 1024), 1),
            _const((1024, 512), 1), _const((1, 512), 1),
            _const((512, 512), 1), _const((1, 512), 1),
            pl.BlockSpec((512, tc), lambda j: (0, j)),
            pl.BlockSpec((1, tc), lambda j: (0, j)),
        ],
        out_specs=pl.BlockSpec((B, tc), lambda j: (0, j)),
        out_shape=jax.ShapeDtypeStruct((B, m), _F32),
        scratch_shapes=[pltpu.VMEM((B, 512), _BF16)],
        compiler_params=pltpu.CompilerParams(
            dimension_semantics=("arbitrary",),
            vmem_limit_bytes=_VMEM_LIMIT),
    )(x1, p["w1"], p["b1"], p["w2"], p["b2"], p["w3"], p["b3"])


# ---------------------------------------------------------------------------
# Kernel 3: fused encoder2 + segmenter, channel-major (C, N) throughout.
# local / global features and the 1088-channel concat stay in VMEM.
# ---------------------------------------------------------------------------

def enc2_segmenter_kernel(pts_ref, w1, b1, w2, b2, w3, b3,
                          w1g, w1l, b1s, w2s, b2s, w3s, b3s, labels_ref):
    p = pts_ref[0].astype(_BF16)                                             # (3, n)
    h1 = _relu(jnp.dot(w1[...], p, preferred_element_type=_F32) + b1[...])   # (64, n) local
    h1b = h1.astype(_BF16)
    h2 = _relu(jnp.dot(w2[...], h1b, preferred_element_type=_F32) + b2[...])  # (128, n)
    h3 = jnp.dot(w3[...], h2.astype(_BF16),
                 preferred_element_type=_F32) + b3[...]                      # (1024, n)
    g = jnp.max(h3, axis=1, keepdims=True)                                   # (1024, 1) global

    # cat((global.repeat(1,1,n), local), dim=1) fused with conv1 of the segmenter:
    # W1 @ [g_rep ; local] == (W1g @ g) broadcast over lanes + W1l @ local.
    s1 = _relu(jnp.dot(w1l[...], h1b, preferred_element_type=_F32)
               + jnp.dot(w1g[...], g.astype(_BF16), preferred_element_type=_F32)
               + b1s[...])                                                   # (256, n)
    s2 = _relu(jnp.dot(w2s[...], s1.astype(_BF16),
                       preferred_element_type=_F32) + b2s[...])              # (128, n)
    labels_ref[0] = jnp.dot(w3s[...], s2.astype(_BF16),
                            preferred_element_type=_F32) + b3s[...]          # (c, n)


def enc2_segmenter_apply(points, pe, ps, c):
    B, _, n = points.shape
    return pl.pallas_call(
        enc2_segmenter_kernel,
        grid=(B,),
        in_specs=[
            pl.BlockSpec((1, 3, n), lambda b: (b, 0, 0)),
            _const((64, 3), 1), _const((64, 1), 1),
            _const((128, 64), 1), _const((128, 1), 1),
            _const((1024, 128), 1), _const((1024, 1), 1),
            _const((256, 1024), 1), _const((256, 64), 1), _const((256, 1), 1),
            _const((128, 256), 1), _const((128, 1), 1),
            _const((c, 128), 1), _const((c, 1), 1),
        ],
        out_specs=pl.BlockSpec((1, c, n), lambda b: (b, 0, 0)),
        out_shape=jax.ShapeDtypeStruct((B, c, n), _F32),
        compiler_params=pltpu.CompilerParams(
            dimension_semantics=("parallel",),
            vmem_limit_bytes=_VMEM_LIMIT),
    )(points, pe["w1"], pe["b1"], pe["w2"], pe["b2"], pe["w3"], pe["b3"],
      ps["w1g"], ps["w1l"], ps["b1"], ps["w2"], ps["b2"], ps["w3"], ps["b3"])


# ---------------------------------------------------------------------------
# Full module forward (glue in plain JAX, hot path in Pallas kernels).
# ---------------------------------------------------------------------------

def labelled_pointnet_ae(x, params, *, n, c):
    B = x.shape[0]
    x1 = encoder_global_apply(x, params["enc1"])               # (B, 1024)
    pts_flat = decoder_apply(x1, params["dec"], n)             # (B, 3n)
    points = pts_flat.reshape(B, 3, n)                         # torch reshape semantics
    labels = enc2_segmenter_apply(points, params["enc2"], params["seg"], c)  # (B, c, n)
    return points, labels, x1


# ---------------------------------------------------------------------------
# Deterministic parameter initialization (bf16 weights, f32 biases).
# ---------------------------------------------------------------------------

def init_params(key, n, c):
    keys = iter(jax.random.split(key, 32))

    def w(shape, fan_in):
        return (jax.random.normal(next(keys), shape, _F32)
                / jnp.sqrt(jnp.float32(fan_in))).astype(_BF16)

    def b(shape):
        return jax.random.normal(next(keys), shape, _F32) * 0.01

    # encoder1: w3 stored (C_in, C_out) = (128, 1024) for the transposed layer-3
    # matmul; encoder2: conv orientation (C_out, C_in).
    enc1 = dict(w1=w((64, 3), 3), b1=b((64, 1)),
                w2=w((128, 64), 64), b2=b((128, 1)),
                w3=w((128, 1024), 128), b3=b((1, 1024)))
    enc2 = dict(w1=w((64, 3), 3), b1=b((64, 1)),
                w2=w((128, 64), 64), b2=b((128, 1)),
                w3=w((1024, 128), 128), b3=b((1024, 1)))
    dec = dict(w1=w((1024, 512), 1024), b1=b((1, 512)),
               w2=w((512, 512), 512), b2=b((1, 512)),
               w3=w((512, 3 * n), 512), b3=b((1, 3 * n)))
    seg = dict(w1g=w((256, 1024), 1088), w1l=w((256, 64), 1088), b1=b((256, 1)),
               w2=w((128, 256), 256), b2=b((128, 1)),
               w3=w((c, 128), 128), b3=b((c, 1)))
    return dict(enc1=enc1, enc2=enc2, dec=dec, seg=seg)


if __name__ == "__main__":
    n, c, B = 64, 4, 2
    key = jax.random.PRNGKey(0)
    pkey, xkey = jax.random.split(key)

    params = init_params(pkey, n, c)
    x = jax.random.normal(xkey, (B, 3, n), _F32)     # torch layout (B, C=3, N=n)

    fwd = jax.jit(functools.partial(labelled_pointnet_ae, n=n, c=c))
    points, labels, x1 = fwd(x, params)
    jax.block_until_ready((points, labels, x1))

    assert points.shape == (B, 3, n)
    assert labels.shape == (B, c, n)
    assert x1.shape == (B, 1024)
    print("KERNEL_OK")
</pallas_src>

<mosaic_0001>
module attributes {stable_mosaic.version = 11 : i64} {
  func.func @enc2_segmenter_kernel(%arg0: i32, %arg1: memref<1x3x64xf32, #tpu.memory_space<vmem>>, %arg2: memref<64x3xbf16, #tpu.memory_space<vmem>>, %arg3: memref<64x1xf32, #tpu.memory_space<vmem>>, %arg4: memref<128x64xbf16, #tpu.memory_space<vmem>>, %arg5: memref<128x1xf32, #tpu.memory_space<vmem>>, %arg6: memref<1024x128xbf16, #tpu.memory_space<vmem>>, %arg7: memref<1024x1xf32, #tpu.memory_space<vmem>>, %arg8: memref<256x1024xbf16, #tpu.memory_space<vmem>>, %arg9: memref<256x64xbf16, #tpu.memory_space<vmem>>, %arg10: memref<256x1xf32, #tpu.memory_space<vmem>>, %arg11: memref<128x256xbf16, #tpu.memory_space<vmem>>, %arg12: memref<128x1xf32, #tpu.memory_space<vmem>>, %arg13: memref<4x128xbf16, #tpu.memory_space<vmem>>, %arg14: memref<4x1xf32, #tpu.memory_space<vmem>>, %arg15: memref<1x4x64xf32, #tpu.memory_space<vmem>>) attributes {dimension_semantics = [#tpu.dimension_semantics<parallel>], iteration_bounds = array<i64: 2>, scalar_prefetch = 0 : i64, scratch_operands = 0 : i64, tpu.core_type = #tpu.core_type<tc>, window_params = [{transform_indices = @transform_0, window_bounds = array<i64: 1, 3, 64>}, {pipeline_mode = #tpu.pipeline_mode<synchronous>, transform_indices = @transform_1, window_bounds = array<i64: 64, 3>}, {pipeline_mode = #tpu.pipeline_mode<synchronous>, transform_indices = @transform_2, window_bounds = array<i64: 64, 1>}, {pipeline_mode = #tpu.pipeline_mode<synchronous>, transform_indices = @transform_3, window_bounds = array<i64: 128, 64>}, {pipeline_mode = #tpu.pipeline_mode<synchronous>, transform_indices = @transform_4, window_bounds = array<i64: 128, 1>}, {pipeline_mode = #tpu.pipeline_mode<synchronous>, transform_indices = @transform_5, window_bounds = array<i64: 1024, 128>}, {pipeline_mode = #tpu.pipeline_mode<synchronous>, transform_indices = @transform_6, window_bounds = array<i64: 1024, 1>}, {pipeline_mode = #tpu.pipeline_mode<synchronous>, transform_indices = @transform_7, window_bounds = array<i64: 256, 1024>}, {pipeline_mode = #tpu.pipeline_mode<synchronous>, transform_indices = @transform_8, window_bounds = array<i64: 256, 64>}, {pipeline_mode = #tpu.pipeline_mode<synchronous>, transform_indices = @transform_9, window_bounds = array<i64: 256, 1>}, {pipeline_mode = #tpu.pipeline_mode<synchronous>, transform_indices = @transform_10, window_bounds = array<i64: 128, 256>}, {pipeline_mode = #tpu.pipeline_mode<synchronous>, transform_indices = @transform_11, window_bounds = array<i64: 128, 1>}, {pipeline_mode = #tpu.pipeline_mode<synchronous>, transform_indices = @transform_12, window_bounds = array<i64: 4, 128>}, {pipeline_mode = #tpu.pipeline_mode<synchronous>, transform_indices = @transform_13, window_bounds = array<i64: 4, 1>}, {transform_indices = @transform_14, window_bounds = array<i64: 1, 4, 64>}]} {
    %c0 = arith.constant 0 : index
    %c0_0 = arith.constant 0 : index
    %c0_1 = arith.constant 0 : index
    %0 = vector.load %arg1[%c0, %c0_0, %c0_1] : memref<1x3x64xf32, #tpu.memory_space<vmem>>, vector<1x3x64xf32>
    %1 = vector.shape_cast %0 : vector<1x3x64xf32> to vector<3x64xf32>
    %2 = arith.truncf %1 : vector<3x64xf32> to vector<3x64xbf16>
    %c0_2 = arith.constant 0 : index
    %c0_3 = arith.constant 0 : index
    %3 = vector.load %arg2[%c0_2, %c0_3] : memref<64x3xbf16, #tpu.memory_space<vmem>>, vector<64x3xbf16>
    %cst = arith.constant dense<0.000000e+00> : vector<64x64xf32>
    %4 = tpu.matmul %3, %2, %cst {dimension_numbers = #tpu.dot_dimension_numbers<[1], [0], [0], [1], [0, 0, 1, 1], [], []>} : vector<64x3xbf16>, vector<3x64xbf16>, vector<64x64xf32> -> vector<64x64xf32>
    %c0_4 = arith.constant 0 : index
    %c0_5 = arith.constant 0 : index
    %5 = vector.load %arg3[%c0_4, %c0_5] : memref<64x1xf32, #tpu.memory_space<vmem>>, vector<64x1xf32>
    %6 = vector.broadcast %5 : vector<64x1xf32> to vector<64x64xf32>
    %7 = arith.addf %4, %6 : vector<64x64xf32>
    %cst_6 = arith.constant 0.000000e+00 : f32
    %8 = vector.broadcast %cst_6 : f32 to vector<64x64xf32>
    %9 = arith.maximumf %7, %8 : vector<64x64xf32>
    %10 = arith.truncf %9 : vector<64x64xf32> to vector<64x64xbf16>
    %c0_7 = arith.constant 0 : index
    %c0_8 = arith.constant 0 : index
    %11 = vector.load %arg4[%c0_7, %c0_8] : memref<128x64xbf16, #tpu.memory_space<vmem>>, vector<128x64xbf16>
    %cst_9 = arith.constant dense<0.000000e+00> : vector<128x64xf32>
    %12 = tpu.matmul %11, %10, %cst_9 {dimension_numbers = #tpu.dot_dimension_numbers<[1], [0], [0], [1], [0, 0, 1, 1], [], []>} : vector<128x64xbf16>, vector<64x64xbf16>, vector<128x64xf32> -> vector<128x64xf32>
    %c0_10 = arith.constant 0 : index
    %c0_11 = arith.constant 0 : index
    %13 = vector.load %arg5[%c0_10, %c0_11] : memref<128x1xf32, #tpu.memory_space<vmem>>, vector<128x1xf32>
    %14 = vector.broadcast %13 : vector<128x1xf32> to vector<128x64xf32>
    %15 = arith.addf %12, %14 : vector<128x64xf32>
    %cst_12 = arith.constant 0.000000e+00 : f32
    %16 = vector.broadcast %cst_12 : f32 to vector<128x64xf32>
    %17 = arith.maximumf %15, %16 : vector<128x64xf32>
    %c0_13 = arith.constant 0 : index
    %c0_14 = arith.constant 0 : index
    %18 = vector.load %arg6[%c0_13, %c0_14] : memref<1024x128xbf16, #tpu.memory_space<vmem>>, vector<1024x128xbf16>
    %19 = arith.truncf %17 : vector<128x64xf32> to vector<128x64xbf16>
    %cst_15 = arith.constant dense<0.000000e+00> : vector<1024x64xf32>
    %20 = tpu.matmul %18, %19, %cst_15 {dimension_numbers = #tpu.dot_dimension_numbers<[1], [0], [0], [1], [0, 0, 1, 1], [], []>} : vector<1024x128xbf16>, vector<128x64xbf16>, vector<1024x64xf32> -> vector<1024x64xf32>
    %c0_16 = arith.constant 0 : index
    %c0_17 = arith.constant 0 : index
    %21 = vector.load %arg7[%c0_16, %c0_17] : memref<1024x1xf32, #tpu.memory_space<vmem>>, vector<1024x1xf32>
    %22 = vector.broadcast %21 : vector<1024x1xf32> to vector<1024x64xf32>
    %23 = arith.addf %20, %22 : vector<1024x64xf32>
    %cst_18 = arith.constant dense<0xFF800000> : vector<1024xf32>
    %24 = vector.multi_reduction <maximumf>, %23, %cst_18 [1] : vector<1024x64xf32> to vector<1024xf32>
    %25 = vector.shape_cast %24 : vector<1024xf32> to vector<1024x1xf32>
    %c0_19 = arith.constant 0 : index
    %c0_20 = arith.constant 0 : index
    %26 = vector.load %arg9[%c0_19, %c0_20] : memref<256x64xbf16, #tpu.memory_space<vmem>>, vector<256x64xbf16>
    %cst_21 = arith.constant dense<0.000000e+00> : vector<256x64xf32>
    %27 = tpu.matmul %26, %10, %cst_21 {dimension_numbers = #tpu.dot_dimension_numbers<[1], [0], [0], [1], [0, 0, 1, 1], [], []>} : vector<256x64xbf16>, vector<64x64xbf16>, vector<256x64xf32> -> vector<256x64xf32>
    %c0_22 = arith.constant 0 : index
    %c0_23 = arith.constant 0 : index
    %28 = vector.load %arg8[%c0_22, %c0_23] : memref<256x1024xbf16, #tpu.memory_space<vmem>>, vector<256x1024xbf16>
    %29 = arith.truncf %25 : vector<1024x1xf32> to vector<1024x1xbf16>
    %cst_24 = arith.constant dense<0.000000e+00> : vector<256x1xf32>
    %30 = tpu.matmul %28, %29, %cst_24 {dimension_numbers = #tpu.dot_dimension_numbers<[1], [0], [0], [1], [0, 0, 1, 1], [], []>} : vector<256x1024xbf16>, vector<1024x1xbf16>, vector<256x1xf32> -> vector<256x1xf32>
    %31 = vector.broadcast %30 : vector<256x1xf32> to vector<256x64xf32>
    %32 = arith.addf %27, %31 : vector<256x64xf32>
    %c0_25 = arith.constant 0 : index
    %c0_26 = arith.constant 0 : index
    %33 = vector.load %arg10[%c0_25, %c0_26] : memref<256x1xf32, #tpu.memory_space<vmem>>, vector<256x1xf32>
    %34 = vector.broadcast %33 : vector<256x1xf32> to vector<256x64xf32>
    %35 = arith.addf %32, %34 : vector<256x64xf32>
    %cst_27 = arith.constant 0.000000e+00 : f32
    %36 = vector.broadcast %cst_27 : f32 to vector<256x64xf32>
    %37 = arith.maximumf %35, %36 : vector<256x64xf32>
    %c0_28 = arith.constant 0 : index
    %c0_29 = arith.constant 0 : index
    %38 = vector.load %arg11[%c0_28, %c0_29] : memref<128x256xbf16, #tpu.memory_space<vmem>>, vector<128x256xbf16>
    %39 = arith.truncf %37 : vector<256x64xf32> to vector<256x64xbf16>
    %cst_30 = arith.constant dense<0.000000e+00> : vector<128x64xf32>
    %40 = tpu.matmul %38, %39, %cst_30 {dimension_numbers = #tpu.dot_dimension_numbers<[1], [0], [0], [1], [0, 0, 1, 1], [], []>} : vector<128x256xbf16>, vector<256x64xbf16>, vector<128x64xf32> -> vector<128x64xf32>
    %c0_31 = arith.constant 0 : index
    %c0_32 = arith.constant 0 : index
    %41 = vector.load %arg12[%c0_31, %c0_32] : memref<128x1xf32, #tpu.memory_space<vmem>>, vector<128x1xf32>
    %42 = vector.broadcast %41 : vector<128x1xf32> to vector<128x64xf32>
    %43 = arith.addf %40, %42 : vector<128x64xf32>
    %cst_33 = arith.constant 0.000000e+00 : f32
    %44 = vector.broadcast %cst_33 : f32 to vector<128x64xf32>
    %45 = arith.maximumf %43, %44 : vector<128x64xf32>
    %c0_34 = arith.constant 0 : index
    %c0_35 = arith.constant 0 : index
    %46 = vector.load %arg13[%c0_34, %c0_35] : memref<4x128xbf16, #tpu.memory_space<vmem>>, vector<4x128xbf16>
    %47 = arith.truncf %45 : vector<128x64xf32> to vector<128x64xbf16>
    %cst_36 = arith.constant dense<0.000000e+00> : vector<4x64xf32>
    %48 = tpu.matmul %46, %47, %cst_36 {dimension_numbers = #tpu.dot_dimension_numbers<[1], [0], [0], [1], [0, 0, 1, 1], [], []>} : vector<4x128xbf16>, vector<128x64xbf16>, vector<4x64xf32> -> vector<4x64xf32>
    %c0_37 = arith.constant 0 : index
    %c0_38 = arith.constant 0 : index
    %49 = vector.load %arg14[%c0_37, %c0_38] : memref<4x1xf32, #tpu.memory_space<vmem>>, vector<4x1xf32>
    %50 = vector.broadcast %49 : vector<4x1xf32> to vector<4x64xf32>
    %51 = arith.addf %48, %50 : vector<4x64xf32>
    %c0_39 = arith.constant 0 : index
    %c0_40 = arith.constant 0 : index
    %c0_41 = arith.constant 0 : index
    %52 = vector.load %arg15[%c0_39, %c0_40, %c0_41] : memref<1x4x64xf32, #tpu.memory_space<vmem>>, vector<1x4x64xf32>
    %53 = vector.shape_cast %52 : vector<1x4x64xf32> to vector<4x64xf32>
    %54 = vector.shape_cast %51 : vector<4x64xf32> to vector<1x4x64xf32>
    tpu.vector_store %arg15[%c0_39, %c0_40, %c0_41], %54 {strides = array<i32>} : memref<1x4x64xf32, #tpu.memory_space<vmem>>, vector<1x4x64xf32>,
    return
  }
  func.func @transform_0(%arg0: i32) -> (i32, i32, i32) {
    %c0_i32 = arith.constant 0 : i32
    %c0_i32_0 = arith.constant 0 : i32
    %c0_i32_1 = arith.constant 0 : i32
    return %arg0, %c0_i32, %c0_i32_0 : i32, i32, i32
  }
  func.func @transform_1(%arg0: i32) -> (i32, i32) {
    %c0_i32 = arith.constant 0 : i32
    %c0_i32_0 = arith.constant 0 : i32
    %c0_i32_1 = arith.constant 0 : i32
    return %c0_i32, %c0_i32_0 : i32, i32
  }
  func.func @transform_2(%arg0: i32) -> (i32, i32) {
    %c0_i32 = arith.constant 0 : i32
    %c0_i32_0 = arith.constant 0 : i32
    %c0_i32_1 = arith.constant 0 : i32
    return %c0_i32, %c0_i32_0 : i32, i32
  }
  func.func @transform_3(%arg0: i32) -> (i32, i32) {
    %c0_i32 = arith.constant 0 : i32
    %c0_i32_0 = arith.constant 0 : i32
    %c0_i32_1 = arith.constant 0 : i32
    return %c0_i32, %c0_i32_0 : i32, i32
  }
  func.func @transform_4(%arg0: i32) -> (i32, i32) {
    %c0_i32 = arith.constant 0 : i32
    %c0_i32_0 = arith.constant 0 : i32
    %c0_i32_1 = arith.constant 0 : i32
    return %c0_i32, %c0_i32_0 : i32, i32
  }
  func.func @transform_5(%arg0: i32) -> (i32, i32) {
    %c0_i32 = arith.constant 0 : i32
    %c0_i32_0 = arith.constant 0 : i32
    %c0_i32_1 = arith.constant 0 : i32
    return %c0_i32, %c0_i32_0 : i32, i32
  }
  func.func @transform_6(%arg0: i32) -> (i32, i32) {
    %c0_i32 = arith.constant 0 : i32
    %c0_i32_0 = arith.constant 0 : i32
    %c0_i32_1 = arith.constant 0 : i32
    return %c0_i32, %c0_i32_0 : i32, i32
  }
  func.func @transform_7(%arg0: i32) -> (i32, i32) {
    %c0_i32 = arith.constant 0 : i32
    %c0_i32_0 = arith.constant 0 : i32
    %c0_i32_1 = arith.constant 0 : i32
    return %c0_i32, %c0_i32_0 : i32, i32
  }
  func.func @transform_8(%arg0: i32) -> (i32, i32) {
    %c0_i32 = arith.constant 0 : i32
    %c0_i32_0 = arith.constant 0 : i32
    %c0_i32_1 = arith.constant 0 : i32
    return %c0_i32, %c0_i32_0 : i32, i32
  }
  func.func @transform_9(%arg0: i32) -> (i32, i32) {
    %c0_i32 = arith.constant 0 : i32
    %c0_i32_0 = arith.constant 0 : i32
    %c0_i32_1 = arith.constant 0 : i32
    return %c0_i32, %c0_i32_0 : i32, i32
  }
  func.func @transform_10(%arg0: i32) -> (i32, i32) {
    %c0_i32 = arith.constant 0 : i32
    %c0_i32_0 = arith.constant 0 : i32
    %c0_i32_1 = arith.constant 0 : i32
    return %c0_i32, %c0_i32_0 : i32, i32
  }
  func.func @transform_11(%arg0: i32) -> (i32, i32) {
    %c0_i32 = arith.constant 0 : i32
    %c0_i32_0 = arith.constant 0 : i32
    %c0_i32_1 = arith.constant 0 : i32
    return %c0_i32, %c0_i32_0 : i32, i32
  }
  func.func @transform_12(%arg0: i32) -> (i32, i32) {
    %c0_i32 = arith.constant 0 : i32
    %c0_i32_0 = arith.constant 0 : i32
    %c0_i32_1 = arith.constant 0 : i32
    return %c0_i32, %c0_i32_0 : i32, i32
  }
  func.func @transform_13(%arg0: i32) -> (i32, i32) {
    %c0_i32 = arith.constant 0 : i32
    %c0_i32_0 = arith.constant 0 : i32
    %c0_i32_1 = arith.constant 0 : i32
    return %c0_i32, %c0_i32_0 : i32, i32
  }
  func.func @transform_14(%arg0: i32) -> (i32, i32, i32) {
    %c0_i32 = arith.constant 0 : i32
    %c0_i32_0 = arith.constant 0 : i32
    %c0_i32_1 = arith.constant 0 : i32
    return %arg0, %c0_i32, %c0_i32_0 : i32, i32, i32
  }
}

module attributes {stable_mosaic.version = 11 : i64} {
  func.func @decoder_kernel(%arg0: i32, %arg1: memref<2x1024xf32, #tpu.memory_space<vmem>>, %arg2: memref<1024x512xbf16, #tpu.memory_space<vmem>>, %arg3: memref<1x512xf32, #tpu.memory_space<vmem>>, %arg4: memref<512x512xbf16, #tpu.memory_space<vmem>>, %arg5: memref<1x512xf32, #tpu.memory_space<vmem>>, %arg6: memref<512x192xbf16, #tpu.memory_space<vmem>>, %arg7: memref<1x192xf32, #tpu.memory_space<vmem>>, %arg8: memref<2x192xf32, #tpu.memory_space<vmem>>, %arg9: memref<2x512xbf16, #tpu.memory_space<vmem>>) attributes {dimension_semantics = [#tpu.dimension_semantics<arbitrary>], iteration_bounds = array<i64: 1>, scalar_prefetch = 0 : i64, scratch_operands = 1 : i64, tpu.core_type = #tpu.core_type<tc>, window_params = [{pipeline_mode = #tpu.pipeline_mode<synchronous>, transform_indices = @transform_0, window_bounds = array<i64: 2, 1024>}, {pipeline_mode = #tpu.pipeline_mode<synchronous>, transform_indices = @transform_1, window_bounds = array<i64: 1024, 512>}, {pipeline_mode = #tpu.pipeline_mode<synchronous>, transform_indices = @transform_2, window_bounds = array<i64: 1, 512>}, {pipeline_mode = #tpu.pipeline_mode<synchronous>, transform_indices = @transform_3, window_bounds = array<i64: 512, 512>}, {pipeline_mode = #tpu.pipeline_mode<synchronous>, transform_indices = @transform_4, window_bounds = array<i64: 1, 512>}, {transform_indices = @transform_5, window_bounds = array<i64: 512, 192>}, {transform_indices = @transform_6, window_bounds = array<i64: 1, 192>}, {transform_indices = @transform_7, window_bounds = array<i64: 2, 192>}]} {
    %c0_i32 = arith.constant 0 : i32
    %0 = arith.cmpi eq, %arg0, %c0_i32 : i32
    %1 = arith.extui %0 : i1 to i32
    %c0_i32_0 = arith.constant 0 : i32
    %2 = arith.cmpi ne, %1, %c0_i32_0 : i32
    scf.if %2 {
      %c0_8 = arith.constant 0 : index
      %c0_9 = arith.constant 0 : index
      %10 = vector.load %arg1[%c0_8, %c0_9] : memref<2x1024xf32, #tpu.memory_space<vmem>>, vector<2x1024xf32>
      %11 = arith.truncf %10 : vector<2x1024xf32> to vector<2x1024xbf16>
      %c0_10 = arith.constant 0 : index
      %c0_11 = arith.constant 0 : index
      %12 = vector.load %arg2[%c0_10, %c0_11] : memref<1024x512xbf16, #tpu.memory_space<vmem>>, vector<1024x512xbf16>
      %cst_12 = arith.constant dense<0.000000e+00> : vector<2x512xf32>
      %13 = tpu.matmul %11, %12, %cst_12 {dimension_numbers = #tpu.dot_dimension_numbers<[1], [0], [0], [1], [0, 0, 1, 1], [], []>} : vector<2x1024xbf16>, vector<1024x512xbf16>, vector<2x512xf32> -> vector<2x512xf32>
      %c0_13 = arith.constant 0 : index
      %c0_14 = arith.constant 0 : index
      %14 = vector.load %arg3[%c0_13, %c0_14] : memref<1x512xf32, #tpu.memory_space<vmem>>, vector<1x512xf32>
      %15 = vector.broadcast %14 : vector<1x512xf32> to vector<2x512xf32>
      %16 = arith.addf %13, %15 : vector<2x512xf32>
      %cst_15 = arith.constant 0.000000e+00 : f32
      %17 = vector.broadcast %cst_15 : f32 to vector<2x512xf32>
      %18 = arith.maximumf %16, %17 : vector<2x512xf32>
      %19 = arith.truncf %18 : vector<2x512xf32> to vector<2x512xbf16>
      %c0_16 = arith.constant 0 : index
      %c0_17 = arith.constant 0 : index
      %20 = vector.load %arg4[%c0_16, %c0_17] : memref<512x512xbf16, #tpu.memory_space<vmem>>, vector<512x512xbf16>
      %cst_18 = arith.constant dense<0.000000e+00> : vector<2x512xf32>
      %21 = tpu.matmul %19, %20, %cst_18 {dimension_numbers = #tpu.dot_dimension_numbers<[1], [0], [0], [1], [0, 0, 1, 1], [], []>} : vector<2x512xbf16>, vector<512x512xbf16>, vector<2x512xf32> -> vector<2x512xf32>
      %c0_19 = arith.constant 0 : index
      %c0_20 = arith.constant 0 : index
      %22 = vector.load %arg5[%c0_19, %c0_20] : memref<1x512xf32, #tpu.memory_space<vmem>>, vector<1x512xf32>
      %23 = vector.broadcast %22 : vector<1x512xf32> to vector<2x512xf32>
      %24 = arith.addf %21, %23 : vector<2x512xf32>
      %cst_21 = arith.constant 0.000000e+00 : f32
      %25 = vector.broadcast %cst_21 : f32 to vector<2x512xf32>
      %26 = arith.maximumf %24, %25 : vector<2x512xf32>
      %27 = arith.truncf %26 : vector<2x512xf32> to vector<2x512xbf16>
      %c0_22 = arith.constant 0 : index
      %c0_23 = arith.constant 0 : index
      %28 = vector.load %arg9[%c0_22, %c0_23] : memref<2x512xbf16, #tpu.memory_space<vmem>>, vector<2x512xbf16>
      tpu.vector_store %arg9[%c0_22, %c0_23], %27 {strides = array<i32>} : memref<2x512xbf16, #tpu.memory_space<vmem>>, vector<2x512xbf16>,
    } else {
    }
    %c0 = arith.constant 0 : index
    %c0_1 = arith.constant 0 : index
    %3 = vector.load %arg9[%c0, %c0_1] : memref<2x512xbf16, #tpu.memory_space<vmem>>, vector<2x512xbf16>
    %c0_2 = arith.constant 0 : index
    %c0_3 = arith.constant 0 : index
    %4 = vector.load %arg6[%c0_2, %c0_3] : memref<512x192xbf16, #tpu.memory_space<vmem>>, vector<512x192xbf16>
    %cst = arith.constant dense<0.000000e+00> : vector<2x192xf32>
    %5 = tpu.matmul %3, %4, %cst {dimension_numbers = #tpu.dot_dimension_numbers<[1], [0], [0], [1], [0, 0, 1, 1], [], []>} : vector<2x512xbf16>, vector<512x192xbf16>, vector<2x192xf32> -> vector<2x192xf32>
    %c0_4 = arith.constant 0 : index
    %c0_5 = arith.constant 0 : index
    %6 = vector.load %arg7[%c0_4, %c0_5] : memref<1x192xf32, #tpu.memory_space<vmem>>, vector<1x192xf32>
    %7 = vector.broadcast %6 : vector<1x192xf32> to vector<2x192xf32>
    %8 = arith.addf %5, %7 : vector<2x192xf32>
    %c0_6 = arith.constant 0 : index
    %c0_7 = arith.constant 0 : index
    %9 = vector.load %arg8[%c0_6, %c0_7] : memref<2x192xf32, #tpu.memory_space<vmem>>, vector<2x192xf32>
    tpu.vector_store %arg8[%c0_6, %c0_7], %8 {strides = array<i32>} : memref<2x192xf32, #tpu.memory_space<vmem>>, vector<2x192xf32>,
    return
  }
  func.func @transform_0(%arg0: i32) -> (i32, i32) {
    %c0_i32 = arith.constant 0 : i32
    %c0_i32_0 = arith.constant 0 : i32
    %c0_i32_1 = arith.constant 0 : i32
    return %c0_i32, %c0_i32_0 : i32, i32
  }
  func.func @transform_1(%arg0: i32) -> (i32, i32) {
    %c0_i32 = arith.constant 0 : i32
    %c0_i32_0 = arith.constant 0 : i32
    %c0_i32_1 = arith.constant 0 : i32
    return %c0_i32, %c0_i32_0 : i32, i32
  }
  func.func @transform_2(%arg0: i32) -> (i32, i32) {
    %c0_i32 = arith.constant 0 : i32
    %c0_i32_0 = arith.constant 0 : i32
    %c0_i32_1 = arith.constant 0 : i32
    return %c0_i32, %c0_i32_0 : i32, i32
  }
  func.func @transform_3(%arg0: i32) -> (i32, i32) {
    %c0_i32 = arith.constant 0 : i32
    %c0_i32_0 = arith.constant 0 : i32
    %c0_i32_1 = arith.constant 0 : i32
    return %c0_i32, %c0_i32_0 : i32, i32
  }
  func.func @transform_4(%arg0: i32) -> (i32, i32) {
    %c0_i32 = arith.constant 0 : i32
    %c0_i32_0 = arith.constant 0 : i32
    %c0_i32_1 = arith.constant 0 : i32
    return %c0_i32, %c0_i32_0 : i32, i32
  }
  func.func @transform_5(%arg0: i32) -> (i32, i32) {
    %c0_i32 = arith.constant 0 : i32
    %c0_i32_0 = arith.constant 0 : i32
    return %c0_i32, %arg0 : i32, i32
  }
  func.func @transform_6(%arg0: i32) -> (i32, i32) {
    %c0_i32 = arith.constant 0 : i32
    %c0_i32_0 = arith.constant 0 : i32
    return %c0_i32, %arg0 : i32, i32
  }
  func.func @transform_7(%arg0: i32) -> (i32, i32) {
    %c0_i32 = arith.constant 0 : i32
    %c0_i32_0 = arith.constant 0 : i32
    return %c0_i32, %arg0 : i32, i32
  }
}

module attributes {stable_mosaic.version = 11 : i64} {
  func.func @encoder_global_kernel(%arg0: i32, %arg1: i32, %arg2: memref<1x3x64xf32, #tpu.memory_space<vmem>>, %arg3: memref<64x3xbf16, #tpu.memory_space<vmem>>, %arg4: memref<64x1xf32, #tpu.memory_space<vmem>>, %arg5: memref<128x64xbf16, #tpu.memory_space<vmem>>, %arg6: memref<128x1xf32, #tpu.memory_space<vmem>>, %arg7: memref<128x1024xbf16, #tpu.memory_space<vmem>>, %arg8: memref<1x1024xf32, #tpu.memory_space<vmem>>, %arg9: memref<1x1x1024xf32, #tpu.memory_space<vmem>>, %arg10: memref<1x1024xf32, #tpu.memory_space<vmem>>) attributes {dimension_semantics = [#tpu.dimension_semantics<parallel>, #tpu.dimension_semantics<arbitrary>], iteration_bounds = array<i64: 2, 1>, scalar_prefetch = 0 : i64, scratch_operands = 1 : i64, tpu.core_type = #tpu.core_type<tc>, window_params = [{transform_indices = @transform_0, window_bounds = array<i64: 1, 3, 64>}, {pipeline_mode = #tpu.pipeline_mode<synchronous>, transform_indices = @transform_1, window_bounds = array<i64: 64, 3>}, {pipeline_mode = #tpu.pipeline_mode<synchronous>, transform_indices = @transform_2, window_bounds = array<i64: 64, 1>}, {pipeline_mode = #tpu.pipeline_mode<synchronous>, transform_indices = @transform_3, window_bounds = array<i64: 128, 64>}, {pipeline_mode = #tpu.pipeline_mode<synchronous>, transform_indices = @transform_4, window_bounds = array<i64: 128, 1>}, {pipeline_mode = #tpu.pipeline_mode<synchronous>, transform_indices = @transform_5, window_bounds = array<i64: 128, 1024>}, {pipeline_mode = #tpu.pipeline_mode<synchronous>, transform_indices = @transform_6, window_bounds = array<i64: 1, 1024>}, {transform_indices = @transform_7, window_bounds = array<i64: 1, 1, 1024>}]} {
    %c0_i32 = arith.constant 0 : i32
    %0 = arith.cmpi eq, %arg1, %c0_i32 : i32
    %1 = arith.extui %0 : i1 to i32
    %c0_i32_0 = arith.constant 0 : i32
    %2 = arith.cmpi ne, %1, %c0_i32_0 : i32
    scf.if %2 {
      %cst_26 = arith.constant 0xFF800000 : f32
      %35 = vector.broadcast %cst_26 : f32 to vector<1x1024xf32>
      %c0_27 = arith.constant 0 : index
      %c0_28 = arith.constant 0 : index
      %36 = vector.load %arg10[%c0_27, %c0_28] : memref<1x1024xf32, #tpu.memory_space<vmem>>, vector<1x1024xf32>
      tpu.vector_store %arg10[%c0_27, %c0_28], %35 {strides = array<i32>} : memref<1x1024xf32, #tpu.memory_space<vmem>>, vector<1x1024xf32>,
    } else {
    }
    %c0 = arith.constant 0 : index
    %c0_1 = arith.constant 0 : index
    %c0_2 = arith.constant 0 : index
    %3 = vector.load %arg2[%c0, %c0_1, %c0_2] : memref<1x3x64xf32, #tpu.memory_space<vmem>>, vector<1x3x64xf32>
    %4 = vector.shape_cast %3 : vector<1x3x64xf32> to vector<3x64xf32>
    %5 = arith.truncf %4 : vector<3x64xf32> to vector<3x64xbf16>
    %c0_3 = arith.constant 0 : index
    %c0_4 = arith.constant 0 : index
    %6 = vector.load %arg3[%c0_3, %c0_4] : memref<64x3xbf16, #tpu.memory_space<vmem>>, vector<64x3xbf16>
    %cst = arith.constant dense<0.000000e+00> : vector<64x64xf32>
    %7 = tpu.matmul %6, %5, %cst {dimension_numbers = #tpu.dot_dimension_numbers<[1], [0], [0], [1], [0, 0, 1, 1], [], []>} : vector<64x3xbf16>, vector<3x64xbf16>, vector<64x64xf32> -> vector<64x64xf32>
    %c0_5 = arith.constant 0 : index
    %c0_6 = arith.constant 0 : index
    %8 = vector.load %arg4[%c0_5, %c0_6] : memref<64x1xf32, #tpu.memory_space<vmem>>, vector<64x1xf32>
    %9 = vector.broadcast %8 : vector<64x1xf32> to vector<64x64xf32>
    %10 = arith.addf %7, %9 : vector<64x64xf32>
    %cst_7 = arith.constant 0.000000e+00 : f32
    %11 = vector.broadcast %cst_7 : f32 to vector<64x64xf32>
    %12 = arith.maximumf %10, %11 : vector<64x64xf32>
    %c0_8 = arith.constant 0 : index
    %c0_9 = arith.constant 0 : index
    %13 = vector.load %arg5[%c0_8, %c0_9] : memref<128x64xbf16, #tpu.memory_space<vmem>>, vector<128x64xbf16>
    %14 = arith.truncf %12 : vector<64x64xf32> to vector<64x64xbf16>
    %cst_10 = arith.constant dense<0.000000e+00> : vector<128x64xf32>
    %15 = tpu.matmul %13, %14, %cst_10 {dimension_numbers = #tpu.dot_dimension_numbers<[1], [0], [0], [1], [0, 0, 1, 1], [], []>} : vector<128x64xbf16>, vector<64x64xbf16>, vector<128x64xf32> -> vector<128x64xf32>
    %c0_11 = arith.constant 0 : index
    %c0_12 = arith.constant 0 : index
    %16 = vector.load %arg6[%c0_11, %c0_12] : memref<128x1xf32, #tpu.memory_space<vmem>>, vector<128x1xf32>
    %17 = vector.broadcast %16 : vector<128x1xf32> to vector<128x64xf32>
    %18 = arith.addf %15, %17 : vector<128x64xf32>
    %cst_13 = arith.constant 0.000000e+00 : f32
    %19 = vector.broadcast %cst_13 : f32 to vector<128x64xf32>
    %20 = arith.maximumf %18, %19 : vector<128x64xf32>
    %21 = arith.truncf %20 : vector<128x64xf32> to vector<128x64xbf16>
    %c0_14 = arith.constant 0 : index
    %c0_15 = arith.constant 0 : index
    %22 = vector.load %arg7[%c0_14, %c0_15] : memref<128x1024xbf16, #tpu.memory_space<vmem>>, vector<128x1024xbf16>
    %cst_16 = arith.constant dense<0.000000e+00> : vector<64x1024xf32>
    %23 = tpu.matmul %21, %22, %cst_16 {dimension_numbers = #tpu.dot_dimension_numbers<[0], [0], [1], [1], [0, 1, 1, 1], [], []>} : vector<128x64xbf16>, vector<128x1024xbf16>, vector<64x1024xf32> -> vector<64x1024xf32>
    %c0_17 = arith.constant 0 : index
    %c0_18 = arith.constant 0 : index
    %24 = vector.load %arg8[%c0_17, %c0_18] : memref<1x1024xf32, #tpu.memory_space<vmem>>, vector<1x1024xf32>
    %25 = vector.broadcast %24 : vector<1x1024xf32> to vector<64x1024xf32>
    %26 = arith.addf %23, %25 : vector<64x1024xf32>
    %c0_19 = arith.constant 0 : index
    %c0_20 = arith.constant 0 : index
    %27 = vector.load %arg10[%c0_19, %c0_20] : memref<1x1024xf32, #tpu.memory_space<vmem>>, vector<1x1024xf32>
    %cst_21 = arith.constant dense<0xFF800000> : vector<1024xf32>
    %28 = vector.multi_reduction <maximumf>, %26, %cst_21 [0] : vector<64x1024xf32> to vector<1024xf32>
    %29 = vector.shape_cast %28 : vector<1024xf32> to vector<1x1024xf32>
    %30 = arith.maximumf %27, %29 : vector<1x1024xf32>
    %c0_22 = arith.constant 0 : index
    %c0_23 = arith.constant 0 : index
    %31 = vector.load %arg10[%c0_22, %c0_23] : memref<1x1024xf32, #tpu.memory_space<vmem>>, vector<1x1024xf32>
    tpu.vector_store %arg10[%c0_22, %c0_23], %30 {strides = array<i32>} : memref<1x1024xf32, #tpu.memory_space<vmem>>, vector<1x1024xf32>,
    %c0_i32_24 = arith.constant 0 : i32
    %32 = arith.cmpi eq, %arg1, %c0_i32_24 : i32
    %33 = arith.extui %32 : i1 to i32
    %c0_i32_25 = arith.constant 0 : i32
    %34 = arith.cmpi ne, %33, %c0_i32_25 : i32
    scf.if %34 {
      %c0_26 = arith.constant 0 : index
      %c0_27 = arith.constant 0 : index
      %35 = vector.load %arg10[%c0_26, %c0_27] : memref<1x1024xf32, #tpu.memory_space<vmem>>, vector<1x1024xf32>
      %c0_28 = arith.constant 0 : index
      %c0_29 = arith.constant 0 : index
      %c0_30 = arith.constant 0 : index
      %36 = vector.load %arg9[%c0_28, %c0_29, %c0_30] : memref<1x1x1024xf32, #tpu.memory_space<vmem>>, vector<1x1x1024xf32>
      %37 = vector.shape_cast %36 : vector<1x1x1024xf32> to vector<1x1024xf32>
      %38 = vector.shape_cast %35 : vector<1x1024xf32> to vector<1x1x1024xf32>
      tpu.vector_store %arg9[%c0_28, %c0_29, %c0_30], %38 {strides = array<i32>} : memref<1x1x1024xf32, #tpu.memory_space<vmem>>, vector<1x1x1024xf32>,
    } else {
    }
    return
  }
  func.func @transform_0(%arg0: i32, %arg1: i32) -> (i32, i32, i32) {
    %c0_i32 = arith.constant 0 : i32
    %c0_i32_0 = arith.constant 0 : i32
    return %arg0, %c0_i32, %arg1 : i32, i32, i32
  }
  func.func @transform_1(%arg0: i32, %arg1: i32) -> (i32, i32) {
    %c0_i32 = arith.constant 0 : i32
    %c0_i32_0 = arith.constant 0 : i32
    %c0_i32_1 = arith.constant 0 : i32
    return %c0_i32, %c0_i32_0 : i32, i32
  }
  func.func @transform_2(%arg0: i32, %arg1: i32) -> (i32, i32) {
    %c0_i32 = arith.constant 0 : i32
    %c0_i32_0 = arith.constant 0 : i32
    %c0_i32_1 = arith.constant 0 : i32
    return %c0_i32, %c0_i32_0 : i32, i32
  }
  func.func @transform_3(%arg0: i32, %arg1: i32) -> (i32, i32) {
    %c0_i32 = arith.constant 0 : i32
    %c0_i32_0 = arith.constant 0 : i32
    %c0_i32_1 = arith.constant 0 : i32
    return %c0_i32, %c0_i32_0 : i32, i32
  }
  func.func @transform_4(%arg0: i32, %arg1: i32) -> (i32, i32) {
    %c0_i32 = arith.constant 0 : i32
    %c0_i32_0 = arith.constant 0 : i32
    %c0_i32_1 = arith.constant 0 : i32
    return %c0_i32, %c0_i32_0 : i32, i32
  }
  func.func @transform_5(%arg0: i32, %arg1: i32) -> (i32, i32) {
    %c0_i32 = arith.constant 0 : i32
    %c0_i32_0 = arith.constant 0 : i32
    %c0_i32_1 = arith.constant 0 : i32
    return %c0_i32, %c0_i32_0 : i32, i32
  }
  func.func @transform_6(%arg0: i32, %arg1: i32) -> (i32, i32) {
    %c0_i32 = arith.constant 0 : i32
    %c0_i32_0 = arith.constant 0 : i32
    %c0_i32_1 = arith.constant 0 : i32
    return %c0_i32, %c0_i32_0 : i32, i32
  }
  func.func @transform_7(%arg0: i32, %arg1: i32) -> (i32, i32, i32) {
    %c0_i32 = arith.constant 0 : i32
    %c0_i32_0 = arith.constant 0 : i32
    %c0_i32_1 = arith.constant 0 : i32
    return %arg0, %c0_i32, %c0_i32_0 : i32, i32, i32
  }
}

</mosaic_0001>

<bundles_post_ra>
// kernel: labelled_pointnet_ae.3
= control target key start
LH: loop header
LB: loop body
LE: loop exit
PB: predicated region body
PF: predicated region fallthrough
CT: control target
= control target key end

     0   :  { %12 = vsyncpa [#allocation4], 0  ;;  %s2076_s24 = smov 0   ;;  %s2078_s25 = smov 0   ;;  %s2431_s0 = inlined_call_operand.vmem [shape: f32[2,3,64], index: 0, kind: input, shape index: {}]   ;;  %s2432_s1 = inlined_call_operand.vmem [shape: bf16[64,3], index: 1, kind: input, shape index: {}]   ;;  %s2433_s2 = inlined_call_operand.vmem [shape: f32[64,1], index: 2, kind: input, shape index: {}]   ;;  %s2434_s3 = inlined_call_operand.vmem [shape: bf16[128,64], index: 3, kind: input, shape index: {}]   ;;  %s2435_s4 = inlined_call_operand.vmem [shape: f32[128,1], index: 4, kind: input, shape index: {}]   ;;  %s2436_s5 = inlined_call_operand.hbm [shape: bf16[128,1024], index: 5, kind: input, shape index: {}]   ;;  %s2437_s6 = inlined_call_operand.vmem [shape: f32[1,1024], index: 6, kind: input, shape index: {}]   ;;  %s2438_s7 = inlined_call_operand.vmem [shape: f32[2,1,1024], index: 7, kind: output, shape index: {}]  }
   0x1   :  { %s2080_s26 = smov 0  }
   0x2 LB: > { %s1772_s27 = sadd.s32 4294967295, %s2028_s26   ;;  %s30_s28 = sadd.s32 1, %s2024_s25  ;;  %s2028_s26 = sphi %s2080_s26, %s18_s26   ;;  %s2024_s25 = sphi %s2078_s25, %s2442_s25   ;;  %s2020_s24 = sphi %s2076_s24, %s2441_s24  }
   0x3   : > { %p32_p0 = scmp.ge.s32.totalorder %s30_s28, 2  ;;  %p1774_p1 = scmp.ge.s32.totalorder %s2028_s26, 1 }
   0x4   : > { %p215_p2 = scmp.lt.s32.totalorder %s2028_s26, 3  ;;  %p2101_p4 = scmp.eq.s32.totalorder %s1772_s27, 0 }
   0x5   : > { %s2444_s28 = smov (%p32_p0, %s30_s28), 0  ;;  %s2030_s8 = smov [#allocation3]  }
   0x6   : > { %p2097_p3 = pnand %p1774_p1, %p215_p2  ;;  %s239_s9 = sshll.u32 %s2030_s8, 4  ;;  %s240_s9 = int_to_ptr.vmem [resolvable:$true] %s239_s9 }
   0x7   : > { %s1987_s10 = scalar_lea.vmem %s240_s9, 8192  ;;  %p1995_p11 = scmp.lt.s32.totalorder %s240_s9, %s240_s9 }
   0x8   : > { %p1926_p5 = pneg %p2097_p3  ;;  %p1988_p8 = scmp.ne.s32.totalorder %s240_s9, %s1987_s10 }
   0x9   : > { %p1996_p12 = scmp.lt.s32.totalorder %s1987_s10, %s1987_s10 }
   0xa   : > { %p1927_p6 = pnand %p2101_p4, %p1926_p5 }
   0xb   : > { %p1997_p13 = por %p1996_p12, %p1995_p11 }
   0xc   : > { %p1978_p7 = pneg %p1927_p6 }
   0xe   : > { %p1990_p9 = pnand %p1988_p8, %p1978_p7 }
  0x10   : > { %p1991_p10 = pneg %p1990_p9 }
  0x12   : > { %p1998_p0 = pnand %p1997_p13, %p1991_p10 }
  0x14   : > { %2001 = shalt.err (!%p1998_p0)
}
  0x15   : > { %s2031_s11 = smov 512   ;;  %s2032_s12 = smov 32  }
  0x16   : > { %1929 = dma.hbm_to_vmem [thread:$0]  (!%p1927_p6), %s2436_s5, 8192, %s240_s9, [#allocation4], %s2031_s11, %s2031_s11, %s2032_s12  }
  0x17   : > { %268 = sbr.rel (%p2097_p3) target bundleno = 856 (0x358), region = 48 }
  0x1c   : > { %2015 = dma.done.wait (%p2101_p4), [#allocation4], 8192  }
  0x1d   : > { %2017 = vsyncadd (%p2101_p4), [#allocation4], 4294959104  ;;  %p301_p1 = scmp.lt.s32.totalorder %s2020_s24, 1  ;;  %vm409_vm0 = vcmask 1040384   ;;  %v2033_v0 = vmov 0   ;;  %vm410_vm1 = vcmask 1041408  }
  0x1e   : > { %1962 = vset.pattern.permute.xlu0 %v2033_v0  ;;  %1963 = vset.pattern.permute.xlu1 %v2033_v0  ;;  %v2034_v1 = vmov 65535   ;;  %vm396_vm2 = vcmask 23552   ;;  %v1964_v6 = vld [vmem:[%s2432_s1] sm:$0xff]   ;;  %v334_v8 = vld [vmem:[%s2433_s2 + $0x30] sm:$0xff]  ;;  %v1965_v9 = vld [vmem:[%s2432_s1 + $0x8] sm:$0xff]   ;;  %vm645_vm3 = vcmask 523264  }
  0x1f   : > { %s2446_s24 = smov (!%p301_p1, %s2020_s24), 1  ;;  %v411_v2 = vsel %vm409_vm0, 4294967295, %v2034_v1  ;;  %1890 = vmatprep.mubr.msk.bf16.mxu0 %vm396_vm2, %v1964_v6  ;;  %368 = vperm.xlu0 %1962, %v334_v8   ;;  %v332_v10 = vld [vmem:[%s2433_s2 + $0x20] sm:$0xff]  ;;  %v1966_v11 = vld [vmem:[%s2432_s1 + $0x10] sm:$0xff]   ;;  %v335_v12 = vld [vmem:[%s2433_s2 + $0x38] sm:$0xff] }
  0x20   : > { %s1779_s15 = sshll.u32 %s2446_s24, 2  ;;  %v412_v3 = vsel %vm410_vm1, %v411_v2, 0  ;;  %358 = vperm.xlu1 %1963, %v332_v10   ;;  %v333_v13 = vld [vmem:[%s2433_s2 + $0x28] sm:$0xff]  ;;  %v330_v14 = vld [vmem:[%s2433_s2 + $0x10] sm:$0xff]  ;;  %v1967_v15 = vld [vmem:[%s2432_s1 + $0x18] sm:$0xff]   ;;  %s1780_s17 = sshll.u32 %s2446_s24, 3 }
  0x21   : > { %s307_s18 = scalar_lea.vmem %s2431_s0, %s1779_s15  ;;  %v331_v16 = vld [vmem:[%s2433_s2 + $0x18] sm:$0xff]  ;;  %v328_v17 = vld [vmem:[%s2433_s2] sm:$0xff]  ;;  %v329_v18 = vld [vmem:[%s2433_s2 + $0x8] sm:$0xff]  ;;  %s311_s20 = scalar_lea.vmem %s2438_s7, %s1780_s17 }
  0x22   : > { %v318_v4 = vld [vmem:[%s307_s18] sm:$0x7]  ;;  %v510_v20 = vld [vmem:[%s2435_s4 + $0x8] sm:$0xff]  ;;  %v511_v21 = vld [vmem:[%s2435_s4 + $0x10] sm:$0xff] }
  0x23   : > { %v319_v5 = vpack.c.bf16 %v318_v4, %v318_v4  ;;  %373 = vperm.xlu0 %1962, %v335_v12   ;;  %v509_v19 = vld [vmem:[%s2435_s4] sm:$0xff]  ;;  %v512_v22 = vld [vmem:[%s2435_s4 + $0x18] sm:$0xff]  ;;  %v514_v24 = vld [vmem:[%s2435_s4 + $0x28] sm:$0xff] }
  0x24   : > { %363 = vperm.xlu1 %1963, %v333_v13   ;;  %v513_v23 = vld [vmem:[%s2435_s4 + $0x20] sm:$0xff]  ;;  %v515_v25 = vld [vmem:[%s2435_s4 + $0x30] sm:$0xff]  ;;  %v516_v26 = vld [vmem:[%s2435_s4 + $0x38] sm:$0xff] }
  0x25   : > { %v414_v7 = vand.u32 %v412_v3, %v319_v5  ;;  %v517_v27 = vld [vmem:[%s2435_s4 + $0x40] sm:$0xff]  ;;  %v518_v28 = vld [vmem:[%s2435_s4 + $0x48] sm:$0xff]  ;;  %v519_v29 = vld [vmem:[%s2435_s4 + $0x50] sm:$0xff] }
  0x26   : > { %v520_v30 = vld [vmem:[%s2435_s4 + $0x58] sm:$0xff]  ;;  %v521_v31 = vld [vmem:[%s2435_s4 + $0x60] sm:$0xff]  ;;  %v522_v32 = vld [vmem:[%s2435_s4 + $0x68] sm:$0xff] }
  0x27   : > { %1888 = vmatprep.subr.bf16.mxu0 %v414_v7  ;;  %348 = vperm.xlu0 %1962, %v330_v14   ;;  %v523_v33 = vld [vmem:[%s2435_s4 + $0x70] sm:$0xff]  ;;  %v524_v34 = vld [vmem:[%s2435_s4 + $0x78] sm:$0xff]  ;;  %v1968_v35 = vld [vmem:[%s2434_s3] sm:$0xff]  }
  0x28   : > { %1889 = vmatpush3.bf16.msra.mxu0 %v414_v7  ;;  %353 = vperm.xlu1 %1963, %v331_v16   ;;  %v1970_v10 = vld [vmem:[%s2434_s3 + $0x10] sm:$0xff]   ;;  %v1972_v12 = vld [vmem:[%s2434_s3 + $0x20] sm:$0xff]   ;;  %v1973_v13 = vld [vmem:[%s2434_s3 + $0x28] sm:$0xff]  }
  0x29   : > { %1906 = vmatprep.mubr.msk.bf16.mxu1 %vm645_vm3, %v1968_v35  ;;  %v1974_v14 = vld [vmem:[%s2434_s3 + $0x30] sm:$0xff]   ;;  %v847_v16 = vld [vmem:[#allocation3 + $0x1c0] sm:$0xff] }
  0x2b   : > { %1891 = vmatmul.mubr.msk.bf16.vlgmr.msra.gmra.mxu0 %vm396_vm2, %v1965_v9  ;;  %338 = vperm.xlu0 %1962, %v328_v17   ;;  %v1969_v9 = vld [vmem:[%s2434_s3 + $0x8] sm:$0xff]   ;;  %v851_v17 = vld [vmem:[#allocation3 + $0x1e0] sm:$0xff] }
  0x2c   : > { %1894 = vmatprep.mubr.msk.bf16.mxu0 %vm396_vm2, %v1966_v11  ;;  %343 = vperm.xlu1 %1963, %v329_v18   ;;  %v1971_v11 = vld [vmem:[%s2434_s3 + $0x18] sm:$0xff]   ;;  %v848_v18 = vld [vmem:[#allocation3 + $0x1c8] sm:$0xff] }
  0x2f   : > { %527 = vperm.xlu0 %1962, %v509_v19   ;;  %v1861_v19 = vcombine.low %v847_v16, %v851_v17 }
  0x30   : > { %532 = vperm.xlu1 %1963, %v510_v20   ;;  %v1862_v20 = vcombine.high %v847_v16, %v851_v17  ;;  %v796_v16 = vld [vmem:[#allocation3 + $0x28] sm:$0xff] }
  0x32   : > { %1233 = vmatprep.subr.bf16.mxu0 %v1862_v20 }
  0x33   : > { %1895 = vmatmul.mubr.msk.bf16.gmra.mxu0 %vm396_vm2, %v1967_v15  ;;  %537 = vperm.xlu0 %1962, %v511_v21   ;;  %v1975_v15 = vld [vmem:[%s2434_s3 + $0x38] sm:$0xff]   ;;  %v852_v21 = vld [vmem:[#allocation3 + $0x1e8] sm:$0xff] }
  0x34   : > { %1265 = vmatprep.mubr.bf16.mxu0 %v2033_v0  ;;  %542 = vperm.xlu1 %1963, %v512_v22   ;;  %v839_v22 = vld [vmem:[#allocation3 + $0x180] sm:$0xff] }
  0x35   : > { %1234 = vmatpush1.bf16.msra.mxu0 %v1861_v19 }
  0x37   : > { %547 = vperm.xlu0 %1962, %v513_v23   ;;  %v843_v23 = vld [vmem:[#allocation3 + $0x1a0] sm:$0xff] }
  0x38   : > { %552 = vperm.xlu1 %1963, %v514_v24   ;;  %v1863_v24 = vcombine.low %v848_v18, %v852_v21 }
  0x3b   : > { %557 = vperm.xlu0 %1962, %v515_v25   ;;  %v1864_v25 = vcombine.high %v848_v18, %v852_v21 }
  0x3c   : > { %562 = vperm.xlu1 %1963, %v516_v26   ;;  %v1854_v26 = vcombine.high %v839_v22, %v843_v23 }
  0x3e   : > { %1235 = vmatprep.subr.bf16.mxu0 %v1854_v26 }
  0x3f   : > { %567 = vperm.xlu0 %1962, %v517_v27   ;;  %v840_v27 = vld [vmem:[#allocation3 + $0x188] sm:$0xff] }
  0x40   : > { %572 = vperm.xlu1 %1963, %v518_v28   ;;  %v844_v28 = vld [vmem:[#allocation3 + $0x1a8] sm:$0xff] }
  0x41   : > { %v1855_v35 = vcombine.low %v840_v27, %v844_v28 }
  0x43   : > { %577 = vperm.xlu0 %1962, %v519_v29   ;;  %v831_v29 = vld [vmem:[#allocation3 + $0x140] sm:$0xff] }
  0x44   : > { %582 = vperm.xlu1 %1963, %v520_v30   ;;  %v1856_v30 = vcombine.high %v840_v27, %v844_v28 }
  0x47   : > { %587 = vperm.xlu0 %1962, %v521_v31   ;;  %v835_v31 = vld [vmem:[#allocation3 + $0x160] sm:$0xff] }
  0x48   : > { %592 = vperm.xlu1 %1963, %v522_v32   ;;  %v832_v32 = vld [vmem:[#allocation3 + $0x148] sm:$0xff] }
  0x4b   : > { %597 = vperm.xlu0 %1962, %v523_v33   ;;  %v836_v33 = vld [vmem:[#allocation3 + $0x168] sm:$0xff] }
  0x4c   : > { %602 = vperm.xlu1 %1963, %v524_v34   ;;  %v1853_v34 = vcombine.low %v839_v22, %v843_v23 }
  0x4e   : > { %1236 = vmatpush1.bf16.msra.mxu0 %v1853_v34 }
  0x9a   : > { %v369_v38 = vpop.permute.xlu0 %368 }
  0x9b   : > { %v359_v36 = vpop.permute.xlu1 %358 }
  0x9e   : > { %v374_v43 = vpop.permute.xlu0 %373 }
  0x9f   : > { %v364_v41 = vpop.permute.xlu1 %363 }
  0xa2   : > { %v349_v51 = vpop.permute.xlu0 %348 }
  0xa3   : > { %v354_v47 = vpop.permute.xlu1 %353 }
  0xa6   : > { %v339_v2 = vpop.permute.xlu0 %338 }
  0xa7   : > { %v344_v61 = vpop.permute.xlu1 %343 }
  0xaa   : > { %v528_v26 = vpop.permute.xlu0 %527 }
  0xae   : > { %v538_v28 = vpop.permute.xlu0 %537 }
  0xeb   : > { %v1892_v37 = vpop.f32.mrf.mxu0 }
  0xec   : > { %v459_v57 = vadd.f32 %v1892_v37, %v349_v51  ;;  %v1848_v37 = vcombine.high %v832_v32, %v836_v33  ;;  %v2252_v51 = vld [vmem:[#allocation3 + $0x1f0] sm:$0xff] }
  0xed   : > { %v450_v39 = vpop.f32.mrf.mxu0 }
  0xee   : > { %v483_v3 = vmax.f32 %v459_v57, 0.0  ;;  %v451_v4 = vadd.f32 %v450_v39, %v339_v2  ;;  %v827_v39 = vld [vmem:[#allocation3 + $0x120] sm:$0xff] }
  0xef   : > { %v1893_v40 = vpop.f32.mrf.mxu0 }
  0xf0   : > { %v462_v53 = vadd.f32 %v1893_v40, %v354_v47  ;;  %v481_v7 = vmax.f32 %v451_v4, 0.0  ;;  %v824_v40 = vld [vmem:[#allocation3 + $0x108] sm:$0xff] }
  0xf1   : > { %v453_v42 = vpop.f32.mrf.mxu0 }
  0xf2   : > { %v484_v62 = vmax.f32 %v462_v53, 0.0  ;;  %v454_v63 = vadd.f32 %v453_v42, %v344_v61  ;;  %v1845_v42 = vcombine.low %v831_v29, %v835_v31  ;;  %v2256_v53 = vld [vmem:[#allocation3 + $0x1f8] sm:$0xff]  ;;  %v811_v61 = vld [vmem:[#allocation3 + $0xa0] sm:$0xff] }
  0xf3   : > { %v1896_v44 = vpop.f32.mrf.mxu0 }
  0xf4   : > { %v475_v46 = vadd.f32 %v1896_v44, %v369_v38  ;;  %v506_v5 = vpack.c.bf16 %v484_v62, %v483_v3  ;;  %v482_v6 = vmax.f32 %v454_v63, 0.0  ;;  %v823_v38 = vld [vmem:[#allocation3 + $0x100] sm:$0xff]  ;;  %v808_v62 = vld [vmem:[#allocation3 + $0x88] sm:$0xff] }
  0xf5   : > { %v466_v45 = vpop.f32.mrf.mxu0  ;;  %v1838_v44 = vcombine.high %v823_v38, %v827_v39  ;;  %v812_v63 = vld [vmem:[#allocation3 + $0xa8] sm:$0xff] }
  0xf6   : > { %v467_v49 = vadd.f32 %v466_v45, %v359_v36  ;;  %v487_v54 = vmax.f32 %v475_v46, 0.0  ;;  %v505_v8 = vpack.c.bf16 %v482_v6, %v481_v7  ;;  %v1846_v36 = vcombine.high %v831_v29, %v835_v31  ;;  %v815_v45 = vld [vmem:[#allocation3 + $0xc0] sm:$0xff]  ;;  %v800_v7 = vld [vmem:[#allocation3 + $0x48] sm:$0xff]  ;;  %v548_v31 = vpop.permute.xlu0 %547 }
  0xf7   : > { %v1897_v48 = vpop.f32.mrf.mxu0  ;;  %v819_v46 = vld [vmem:[#allocation3 + $0xe0] sm:$0xff]  ;;  %v1824_v4 = vcombine.high %v808_v62, %v812_v63 }
  0xf8   : > { %v478_v50 = vadd.f32 %v1897_v48, %v374_v43  ;;  %v485_v58 = vmax.f32 %v467_v49, 0.0  ;;  %1237 = vmatprep.subr.bf16.mxu0 %v1846_v36  ;;  %v1847_v43 = vcombine.low %v832_v32, %v836_v33  ;;  %v816_v48 = vld [vmem:[#allocation3 + $0xc8] sm:$0xff]  ;;  %v803_v6 = vld [vmem:[#allocation3 + $0x60] sm:$0xff] }
  0xf9   : > { %v469_v52 = vpop.f32.mrf.mxu0  ;;  %v820_v49 = vld [vmem:[#allocation3 + $0xe8] sm:$0xff]  ;;  %1238 = vmatpush1.bf16.msra.mxu0 %v1845_v42 }
  0xfa   : > { %v488_v55 = vmax.f32 %v478_v50, 0.0  ;;  %v470_v56 = vadd.f32 %v469_v52, %v364_v41  ;;  %v828_v41 = vld [vmem:[#allocation3 + $0x128] sm:$0xff]  ;;  %v2250_v50 = vld [vmem:[#allocation3 + $0x1d0] sm:$0xff]  ;;  %v2254_v52 = vld [vmem:[#allocation3 + $0x1d8] sm:$0xff]  ;;  %1239 = vmatprep.subr.bf16.mxu0 %v1838_v44  ;;  %v1831_v2 = vcombine.low %v816_v48, %v820_v49 }
  0xfb   : > { %v1840_v47 = vcombine.high %v824_v40, %v828_v41  ;;  %v1839_v57 = vcombine.low %v824_v40, %v828_v41  ;;  %v1866_v23 = vcombine.high %v2250_v50, %v2252_v51 }
  0xfc   : > { %v486_v59 = vmax.f32 %v470_v56, 0.0  ;;  %v508_v60 = vpack.c.bf16 %v488_v55, %v487_v54  ;;  %v1837_v54 = vcombine.low %v823_v38, %v827_v39  ;;  %v1865_v55 = vcombine.low %v2250_v50, %v2252_v51  ;;  %v558_v39 = vpop.permute.xlu0 %557 }
  0xfd   : > { %v1867_v56 = vcombine.low %v2254_v52, %v2256_v53 }
  0xfe   : > { %v507_v1 = vpack.c.bf16 %v486_v59, %v485_v58  ;;  %1898 = vmatprep.subr.bf16.mxu1 %v508_v60  ;;  %v1830_v58 = vcombine.high %v815_v45, %v819_v46  ;;  %v1832_v59 = vcombine.high %v816_v48, %v820_v49  ;;  %1240 = vmatpush1.bf16.msra.mxu0 %v1837_v54 }
  0xff   : > { %1899 = vmatpush3.bf16.msra.mxu1 %v508_v60  ;;  %v807_v60 = vld [vmem:[#allocation3 + $0x80] sm:$0xff] }
 0x100   : > { %1900 = vmatprep.subr.bf16.mxu1 %v507_v1  ;;  %1241 = vmatprep.subr.bf16.mxu0 %v1830_v58  ;;  %v1822_v3 = vcombine.high %v807_v60, %v811_v61 }
 0x103   : > { %1901 = vmatpush3.bf16.msra.mxu1 %v507_v1  ;;  %v1829_v1 = vcombine.low %v815_v45, %v819_v46 }
 0x104   : > { %1902 = vmatprep.subr.bf16.mxu1 %v506_v5 }
 0x105   : > { %1242 = vmatpush1.bf16.msra.mxu0 %v1829_v1 }
 0x106   : > { %1243 = vmatprep.subr.bf16.mxu0 %v1822_v3 }
 0x107   : > { %1903 = vmatpush3.bf16.msra.mxu1 %v506_v5  ;;  %v799_v5 = vld [vmem:[#allocation3 + $0x40] sm:$0xff] }
 0x108   : > { %1904 = vmatprep.subr.bf16.mxu1 %v505_v8  ;;  %v1813_v17 = vcombine.low %v799_v5, %v803_v6 }
 0x10b   : > { %1905 = vmatpush3.bf16.msra.mxu1 %v505_v8  ;;  %v804_v8 = vld [vmem:[#allocation3 + $0x68] sm:$0xff] }
 0x10c   : > { %1306 = vmatprep.subr.bf16.mxu1 %v1864_v25  ;;  %v1815_v18 = vcombine.low %v800_v7, %v804_v8  ;;  %v533_v25 = vpop.permute.xlu1 %532 }
 0x10e   : > { %1907 = vmatmul.mubr.msk.bf16.vlgmr.msra.gmra.mxu1 %vm645_vm3, %v1969_v9  ;;  %v1821_v9 = vcombine.low %v807_v60, %v811_v61 }
 0x10f   : > { %1910 = vmatprep.mubr.msk.bf16.mxu1 %vm645_vm3, %v1970_v10  ;;  %1307 = vmatpush1.bf16.msra.mxu1 %v1863_v24  ;;  %v1823_v10 = vcombine.low %v808_v62, %v812_v63  ;;  %v1868_v24 = vcombine.high %v2254_v52, %v2256_v53 }
 0x110   : > { %1308 = vmatprep.subr.bf16.mxu1 %v1856_v30  ;;  %1244 = vmatpush1.bf16.msra.mxu0 %v1821_v9  ;;  %v543_v27 = vpop.permute.xlu1 %542 }
 0x113   : > { %1309 = vmatpush1.bf16.msra.mxu1 %v1855_v35 }
 0x114   : > { %1310 = vmatprep.subr.bf16.mxu1 %v1848_v37  ;;  %v553_v29 = vpop.permute.xlu1 %552 }
 0x116   : > { %1911 = vmatmul.mubr.msk.bf16.gmra.mxu1 %vm645_vm3, %v1971_v11  ;;  %v1814_v11 = vcombine.high %v799_v5, %v803_v6 }
 0x117   : > { %1914 = vmatprep.mubr.msk.bf16.mxu1 %vm645_vm3, %v1972_v12  ;;  %1311 = vmatpush1.bf16.msra.mxu1 %v1847_v43  ;;  %v1816_v12 = vcombine.high %v800_v7, %v804_v8 }
 0x118   : > { %1312 = vmatprep.subr.bf16.mxu1 %v1840_v47  ;;  %1245 = vmatprep.subr.bf16.mxu0 %v1814_v11  ;;  %v563_v35 = vpop.permute.xlu1 %562 }
 0x119   : > { %1246 = vmatpush1.bf16.msra.mxu0 %v1813_v17 }
 0x11b   : > { %1313 = vmatpush1.bf16.msra.mxu1 %v1839_v57  ;;  %v568_v57 = vpop.permute.xlu0 %567 }
 0x11c   : > { %1314 = vmatprep.subr.bf16.mxu1 %v1832_v59  ;;  %v573_v47 = vpop.permute.xlu1 %572 }
 0x11e   : > { %1915 = vmatmul.mubr.msk.bf16.gmra.mxu1 %vm645_vm3, %v1973_v13  ;;  %v791_v13 = vld [vmem:[#allocation3] sm:$0xff] }
 0x11f   : > { %1918 = vmatprep.mubr.msk.bf16.mxu1 %vm645_vm3, %v1974_v14  ;;  %1315 = vmatpush1.bf16.msra.mxu1 %v1831_v2  ;;  %v795_v14 = vld [vmem:[#allocation3 + $0x20] sm:$0xff]  ;;  %v578_v7 = vpop.permute.xlu0 %577 }
 0x120   : > { %1316 = vmatprep.subr.bf16.mxu1 %v1824_v4  ;;  %v1806_v19 = vcombine.high %v791_v13, %v795_v14  ;;  %v1805_v21 = vcombine.low %v791_v13, %v795_v14  ;;  %v583_v3 = vpop.permute.xlu1 %582 }
 0x122   : > { %1247 = vmatprep.subr.bf16.mxu0 %v1806_v19 }
 0x123   : > { %1317 = vmatpush1.bf16.msra.mxu1 %v1823_v10  ;;  %1248 = vmatpush1.bf16.msra.mxu0 %v1805_v21 }
 0x124   : > { %1318 = vmatprep.subr.bf16.mxu1 %v1816_v12  ;;  %1379 = vmatprep.subr.bf16.mxu0 %v1866_v23 }
 0x126   : > { %1919 = vmatmul.mubr.msk.bf16.gmra.mxu1 %vm645_vm3, %v1975_v15  ;;  %v792_v15 = vld [vmem:[#allocation3 + $0x8] sm:$0xff] }
 0x127   : > { %1338 = vmatprep.mubr.bf16.mxu1 %v2033_v0  ;;  %v1808_v20 = vcombine.high %v792_v15, %v796_v16  ;;  %1319 = vmatpush1.bf16.msra.mxu1 %v1815_v18  ;;  %v1807_v22 = vcombine.low %v792_v15, %v796_v16  ;;  %v593_v15 = vpop.permute.xlu1 %592 }
 0x129   : > { %1320 = vmatprep.subr.bf16.mxu1 %v1808_v20  ;;  %v588_v20 = vpop.permute.xlu0 %587 }
 0x12b   : > { %1321 = vmatpush1.bf16.msra.mxu1 %v1807_v22 }
 0x12c   : > { %1452 = vmatprep.subr.bf16.mxu1 %v1868_v24 }
 0x1ce   : > { %v1908_v30 = vpop.f32.mrf.mxu1 }
 0x1cf   : > { %v713_v41 = vadd.f32 %v1908_v30, %v538_v28 }
 0x1d0   : > { %v704_v32 = vpop.f32.mrf.mxu1 }
 0x1d1   : > { %v705_v34 = vadd.f32 %v704_v32, %v528_v26  ;;  %v769_v49 = vmax.f32 %v713_v41, 0.0  ;;  %v598_v32 = vpop.permute.xlu0 %597  ;;  %v845_v41 = vld [vmem:[#allocation3 + $0x1b0] sm:$0xff] }
 0x1d2   : > { %v1909_v33 = vpop.f32.mrf.mxu1 }
 0x1d3   : > { %v716_v37 = vadd.f32 %v1909_v33, %v543_v27  ;;  %v767_v42 = vmax.f32 %v705_v34, 0.0  ;;  %v603_v27 = vpop.permute.xlu1 %602 }
 0x1d4   : > { %v707_v36 = vpop.f32.mrf.mxu1 }
 0x1d5   : > { %v708_v38 = vadd.f32 %v707_v36, %v533_v25  ;;  %v770_v45 = vmax.f32 %v716_v37, 0.0 }
 0x1d6   : > { %v1912_v40 = vpop.f32.mrf.mxu1 }
 0x1d7   : > { %v768_v43 = vmax.f32 %v708_v38, 0.0  ;;  %v784_v59 = vpack.c.bf16 %v770_v45, %v769_v49  ;;  %v729_v63 = vadd.f32 %v1912_v40, %v558_v39  ;;  %v841_v40 = vld [vmem:[#allocation3 + $0x190] sm:$0xff]  ;;  %v834_v49 = vld [vmem:[#allocation3 + $0x158] sm:$0xff] }
 0x1d8   : > { %v720_v44 = vpop.f32.mrf.mxu1 }
 0x1d9   : > { %v783_v46 = vpack.c.bf16 %v768_v43, %v767_v42  ;;  %v721_v54 = vadd.f32 %v720_v44, %v548_v31  ;;  %v773_v9 = vmax.f32 %v729_v63, 0.0  ;;  %v842_v42 = vld [vmem:[#allocation3 + $0x198] sm:$0xff]  ;;  %v1858_v44 = vcombine.high %v841_v40, %v845_v41 }
 0x1da   : > { %v1913_v48 = vpop.f32.mrf.mxu1  ;;  %v846_v43 = vld [vmem:[#allocation3 + $0x1b8] sm:$0xff] }
 0x1db   : > { %897 = vxpose.xlu0.c.b16.start [1/8] (narrow) %v783_v46, 64  ;;  %v732_v60 = vadd.f32 %v1913_v48, %v563_v35  ;;  %v771_v1 = vmax.f32 %v721_v54, 0.0  ;;  %v1860_v45 = vcombine.high %v842_v42, %v846_v43  ;;  %v833_v46 = vld [vmem:[#allocation3 + $0x150] sm:$0xff]  ;;  %v838_v54 = vld [vmem:[#allocation3 + $0x178] sm:$0xff] }
 0x1dc   : > { %v723_v58 = vpop.f32.mrf.mxu1  ;;  %v837_v48 = vld [vmem:[#allocation3 + $0x170] sm:$0xff]  ;;  %v826_v63 = vld [vmem:[#allocation3 + $0x118] sm:$0xff]  ;;  %v1851_v51 = vcombine.low %v834_v49, %v838_v54 }
 0x1dd   : > { %v724_v61 = vadd.f32 %v723_v58, %v553_v29  ;;  %v774_v5 = vmax.f32 %v732_v60, 0.0  ;;  %v1859_v58 = vcombine.low %v842_v42, %v846_v43  ;;  %v1852_v60 = vcombine.high %v834_v49, %v838_v54 }
 0x1de   : > { %v1916_v62 = vpop.f32.mrf.mxu1  ;;  %v1849_v50 = vcombine.low %v833_v46, %v837_v48 }
 0x1df   : > { %v772_v2 = vmax.f32 %v724_v61, 0.0  ;;  %898 = vxpose.xlu0.c.b16.cont [2/8] (narrow) %v784_v59, 64  ;;  %v786_v12 = vpack.c.bf16 %v774_v5, %v773_v9  ;;  %v745_v17 = vadd.f32 %v1916_v62, %v578_v7  ;;  %v1850_v59 = vcombine.high %v833_v46, %v837_v48  ;;  %v825_v61 = vld [vmem:[#allocation3 + $0x110] sm:$0xff] }
 0x1e0   : > { %v736_v4 = vpop.f32.mrf.mxu1  ;;  %v829_v62 = vld [vmem:[#allocation3 + $0x130] sm:$0xff] }
 0x1e1   : > { %v785_v6 = vpack.c.bf16 %v772_v2, %v771_v1  ;;  %v737_v10 = vadd.f32 %v736_v4, %v568_v57  ;;  %v777_v25 = vmax.f32 %v745_v17, 0.0  ;;  %v1857_v57 = vcombine.low %v841_v40, %v845_v41  ;;  %v830_v1 = vld [vmem:[#allocation3 + $0x138] sm:$0xff]  ;;  %v821_v2 = vld [vmem:[#allocation3 + $0xf0] sm:$0xff] }
 0x1e2   : > { %v1917_v8 = vpop.f32.mrf.mxu1  ;;  %v1842_v53 = vcombine.high %v825_v61, %v829_v62  ;;  %v822_v4 = vld [vmem:[#allocation3 + $0xf8] sm:$0xff]  ;;  %v1841_v5 = vcombine.low %v825_v61, %v829_v62  ;;  %v809_v9 = vld [vmem:[#allocation3 + $0x90] sm:$0xff] }
 0x1e3   : > { %899 = vxpose.xlu0.c.b16.cont [3/8] (narrow) %v785_v6, 64  ;;  %v748_v13 = vadd.f32 %v1917_v8, %v583_v3  ;;  %v775_v18 = vmax.f32 %v737_v10, 0.0  ;;  %v818_v3 = vld [vmem:[#allocation3 + $0xd8] sm:$0xff]  ;;  %v1843_v6 = vcombine.low %v826_v63, %v830_v1  ;;  %v813_v10 = vld [vmem:[#allocation3 + $0xb0] sm:$0xff] }
 0x1e4   : > { %v739_v11 = vpop.f32.mrf.mxu1  ;;  %v1836_v8 = vcombine.high %v818_v3, %v822_v4 }
 0x1e5   : > { %v740_v14 = vadd.f32 %v739_v11, %v573_v47  ;;  %v778_v22 = vmax.f32 %v748_v13, 0.0  ;;  %v810_v11 = vld [vmem:[#allocation3 + $0x98] sm:$0xff] }
 0x1e6   : > { %v1920_v16 = vpop.f32.mrf.mxu1 }
 0x1e7   : > { %v776_v19 = vmax.f32 %v740_v14, 0.0  ;;  %900 = vxpose.xlu0.c.b16.cont [4/8] (narrow) %v786_v12, 64  ;;  %v788_v29 = vpack.c.bf16 %v778_v22, %v777_v25  ;;  %v761_v33 = vadd.f32 %v1920_v16, %v598_v32  ;;  %v814_v12 = vld [vmem:[#allocation3 + $0xb8] sm:$0xff]  ;;  %v1835_v14 = vcombine.low %v818_v3, %v822_v4 }
 0x1e8   : > { %v752_v21 = vpop.f32.mrf.mxu1  ;;  %v1826_v16 = vcombine.high %v809_v9, %v813_v10  ;;  %v1828_v17 = vcombine.high %v810_v11, %v814_v12  ;;  %v1825_v22 = vcombine.low %v809_v9, %v813_v10 }
 0x1e9   : > { %v787_v23 = vpack.c.bf16 %v776_v19, %v775_v18  ;;  %v753_v26 = vadd.f32 %v752_v21, %v588_v20  ;;  %v781_v38 = vmax.f32 %v761_v33, 0.0  ;;  %v801_v18 = vld [vmem:[#allocation3 + $0x50] sm:$0xff]  ;;  %v802_v20 = vld [vmem:[#allocation3 + $0x58] sm:$0xff] }
 0x1ea   : > { %v1921_v24 = vpop.f32.mrf.mxu1  ;;  %v805_v19 = vld [vmem:[#allocation3 + $0x70] sm:$0xff]  ;;  %v806_v21 = vld [vmem:[#allocation3 + $0x78] sm:$0xff] }
 0x1eb   : > { %901 = vxpose.xlu0.c.b16.cont [5/8] (narrow) %v787_v23, 64  ;;  %v764_v30 = vadd.f32 %v1921_v24, %v603_v27  ;;  %v779_v34 = vmax.f32 %v753_v26, 0.0  ;;  %v1827_v23 = vcombine.low %v810_v11, %v814_v12  ;;  %v1818_v24 = vcombine.high %v801_v18, %v805_v19  ;;  %v793_v26 = vld [vmem:[#allocation3 + $0x10] sm:$0xff] }
 0x1ec   : > { %v755_v28 = vpop.f32.mrf.mxu1  ;;  %v1820_v25 = vcombine.high %v802_v20, %v806_v21  ;;  %v797_v27 = vld [vmem:[#allocation3 + $0x30] sm:$0xff] }
 0x1ed   : > { %v756_v31 = vadd.f32 %v755_v28, %v593_v15  ;;  %v782_v36 = vmax.f32 %v764_v30, 0.0  ;;  %v794_v28 = vld [vmem:[#allocation3 + $0x18] sm:$0xff]  ;;  %v1817_v30 = vcombine.low %v801_v18, %v805_v19  ;;  %v1810_v33 = vcombine.high %v793_v26, %v797_v27 }
 0x1ef   : > { %v780_v35 = vmax.f32 %v756_v31, 0.0  ;;  %902 = vxpose.xlu0.c.b16.cont [6/8] (narrow) %v788_v29, 64  ;;  %v790_v39 = vpack.c.bf16 %v782_v36, %v781_v38  ;;  %v798_v29 = vld [vmem:[#allocation3 + $0x38] sm:$0xff]  ;;  %v1819_v31 = vcombine.low %v802_v20, %v806_v21 }
 0x1f0   : > { %v1811_v36 = vcombine.low %v794_v28, %v798_v29 }
 0x1f1   : > { %v789_v37 = vpack.c.bf16 %v780_v35, %v779_v34  ;;  %v1812_v34 = vcombine.high %v794_v28, %v798_v29  ;;  %v1809_v35 = vcombine.low %v793_v26, %v797_v27 }
 0x1f3   : > { %903 = vxpose.xlu0.c.b16.cont [7/8] (narrow) %v789_v37, 64 }
 0x1f7   : > { %904 = vxpose.xlu0.c.b16.end [8/8] (narrow) %v790_v39, 64 }
 0x23d   : > { %v2266_v47 = vpop.trf.xlu0 }
 0x23e   : > { %1266 = vmatmul.mubr.bf16.vlgmr.msra.gmra.mxu0 %v2266_v47  ;;  %1339 = vmatmul.mubr.bf16.vlgmr.msra.gmra.mxu1 %v2266_v47 }
 0x23f   : > { %1380 = vmatpush1.bf16.msra.mxu0 %v1865_v55  ;;  %1453 = vmatpush1.bf16.msra.mxu1 %v1867_v56  ;;  %v1844_v55 = vcombine.high %v826_v63, %v830_v1  ;;  %v817_v56 = vld [vmem:[#allocation3 + $0xd0] sm:$0xff]  ;;  %v2307_v1 = vld [vmem:[%s2437_s6] sm:$0xff] }
 0x240   : > { %1381 = vmatprep.subr.bf16.mxu0 %v1858_v44  ;;  %1454 = vmatprep.subr.bf16.mxu1 %v1860_v45  ;;  %v1834_v7 = vcombine.high %v817_v56, %v821_v2  ;;  %v1833_v13 = vcombine.low %v817_v56, %v821_v2  ;;  %v857_v45 = vlaneseq }
 0x241   : > { %1275 = vmatprep.mubr.bf16.mxu0 %v2033_v0  ;;  %1348 = vmatprep.mubr.bf16.mxu1 %v2033_v0  ;;  %v2278_v52 = vpop.trf.xlu0 }
 0x242   : > { %v2298_v54 = vshrl.u32 %v857_v45, 7 }
 0x243   : > { %1382 = vmatpush1.bf16.msra.mxu0 %v1857_v57  ;;  %1455 = vmatpush1.bf16.msra.mxu1 %v1859_v58 }
 0x244   : > { %1383 = vmatprep.subr.bf16.mxu0 %v1850_v59  ;;  %1456 = vmatprep.subr.bf16.mxu1 %v1852_v60  ;;  %v871_v59 = vsub.s32 3, %v2298_v54  ;;  %v859_v62 = vsub.s32 0, %v2298_v54  ;;  %v867_v63 = vsub.s32 2, %v2298_v54 }
 0x245   : > { %v907_v15 = vpop.trf.xlu0 }
 0x246   : > { %1276 = vmatmul.mubr.bf16.gmra.mxu0 %v2278_v52  ;;  %1349 = vmatmul.mubr.bf16.gmra.mxu1 %v2278_v52  ;;  %v2316_v2 = vrot.slane %v2307_v1, %v859_v62  ;;  %v2319_v3 = vrot.slane %v2307_v1, %v867_v63 }
 0x247   : > { %1384 = vmatpush1.bf16.msra.mxu0 %v1849_v50  ;;  %1457 = vmatpush1.bf16.msra.mxu1 %v1851_v51 }
 0x248   : > { %1385 = vmatprep.subr.bf16.mxu0 %v1842_v53  ;;  %1458 = vmatprep.subr.bf16.mxu1 %v1844_v55  ;;  %v2313_v53 = vrot.slane %v2307_v1, %v871_v59 }
 0x249   : > { %1285 = vmatprep.mubr.bf16.mxu0 %v2033_v0  ;;  %1358 = vmatprep.mubr.bf16.mxu1 %v2033_v0  ;;  %v908_v32 = vpop.trf.xlu0 }
 0x24b   : > { %1386 = vmatpush1.bf16.msra.mxu0 %v1841_v5  ;;  %1459 = vmatpush1.bf16.msra.mxu1 %v1843_v6 }
 0x24c   : > { %1387 = vmatprep.subr.bf16.mxu0 %v1834_v7  ;;  %1460 = vmatprep.subr.bf16.mxu1 %v1836_v8 }
 0x24e   : > { %1286 = vmatmul.mubr.bf16.gmra.mxu0 %v907_v15  ;;  %1359 = vmatmul.mubr.bf16.gmra.mxu1 %v907_v15 }
 0x24f   : > { %1388 = vmatpush1.bf16.msra.mxu0 %v1833_v13  ;;  %1461 = vmatpush1.bf16.msra.mxu1 %v1835_v14 }
 0x250   : > { %1389 = vmatprep.subr.bf16.mxu0 %v1826_v16  ;;  %1462 = vmatprep.subr.bf16.mxu1 %v1828_v17 }
 0x251   : > { %1295 = vmatprep.mubr.bf16.mxu0 %v2033_v0  ;;  %1368 = vmatprep.mubr.bf16.mxu1 %v2033_v0 }
 0x253   : > { %1390 = vmatpush1.bf16.msra.mxu0 %v1825_v22  ;;  %1463 = vmatpush1.bf16.msra.mxu1 %v1827_v23 }
 0x254   : > { %1391 = vmatprep.subr.bf16.mxu0 %v1818_v24  ;;  %1464 = vmatprep.subr.bf16.mxu1 %v1820_v25 }
 0x256   : > { %1296 = vmatmul.mubr.bf16.gmra.mxu0 %v908_v32  ;;  %1369 = vmatmul.mubr.bf16.gmra.mxu1 %v908_v32 }
 0x257   : > { %1392 = vmatpush1.bf16.msra.mxu0 %v1817_v30  ;;  %1465 = vmatpush1.bf16.msra.mxu1 %v1819_v31 }
 0x258   : > { %1393 = vmatprep.subr.bf16.mxu0 %v1810_v33  ;;  %1466 = vmatprep.subr.bf16.mxu1 %v1812_v34 }
 0x259   : > { %1411 = vmatprep.mubr.bf16.mxu0 %v2033_v0  ;;  %1484 = vmatprep.mubr.bf16.mxu1 %v2033_v0 }
 0x25b   : > { %1394 = vmatpush1.bf16.msra.mxu0 %v1809_v35  ;;  %1467 = vmatpush1.bf16.msra.mxu1 %v1811_v36 }
 0x25e   : > { %1412 = vmatmul.mubr.bf16.vlgmr.msra.gmra.mxu0 %v2266_v47  ;;  %1485 = vmatmul.mubr.bf16.vlgmr.msra.gmra.mxu1 %v2266_v47 }
 0x25f   : > { %1421 = vmatprep.mubr.bf16.mxu0 %v2033_v0  ;;  %1494 = vmatprep.mubr.bf16.mxu1 %v2033_v0 }
 0x266   : > { %1422 = vmatmul.mubr.bf16.gmra.mxu0 %v2278_v52  ;;  %1495 = vmatmul.mubr.bf16.gmra.mxu1 %v2278_v52 }
 0x267   : > { %1431 = vmatprep.mubr.bf16.mxu0 %v2033_v0  ;;  %1504 = vmatprep.mubr.bf16.mxu1 %v2033_v0 }
 0x26e   : > { %1432 = vmatmul.mubr.bf16.gmra.mxu0 %v907_v15  ;;  %1505 = vmatmul.mubr.bf16.gmra.mxu1 %v907_v15 }
 0x26f   : > { %1441 = vmatprep.mubr.bf16.mxu0 %v2033_v0  ;;  %1514 = vmatprep.mubr.bf16.mxu1 %v2033_v0  ;;  %v863_v0 = vsub.s32 1, %v2298_v54 }
 0x271   : > { %v2310_v52 = vrot.slane %v2307_v1, %v863_v0 }
 0x276   : > { %1442 = vmatmul.mubr.bf16.gmra.mxu0 %v908_v32  ;;  %1515 = vmatmul.mubr.bf16.gmra.mxu1 %v908_v32 }
 0x2fe   : > { %v1267_v37 = vpop.f32.mrf.mxu0  ;;  %v1340_v38 = vpop.f32.mrf.mxu1 }
 0x2ff   : > { %v1268_v16 = vadd.f32 %v1267_v37, %v2316_v2  ;;  %v1341_v17 = vadd.f32 %v1340_v38, %v2319_v3 }
 0x300   : > { %v1269_v39 = vpop.f32.mrf.mxu0  ;;  %v1342_v40 = vpop.f32.mrf.mxu1 }
 0x301   : > { %v1270_v8 = vadd.f32 %v1269_v39, %v2310_v52  ;;  %v1343_v9 = vadd.f32 %v1342_v40, %v2313_v53 }
 0x302   : > { %v1271_v41 = vpop.f32.mrf.mxu0  ;;  %v1344_v42 = vpop.f32.mrf.mxu1 }
 0x303   : > { %v1272_v10 = vadd.f32 %v1271_v41, %v2316_v2  ;;  %v1345_v11 = vadd.f32 %v1344_v42, %v2319_v3 }
 0x304   : > { %v1273_v43 = vpop.f32.mrf.mxu0  ;;  %v1346_v44 = vpop.f32.mrf.mxu1 }
 0x305   : > { %v1274_v4 = vadd.f32 %v1273_v43, %v2310_v52  ;;  %v1347_v5 = vadd.f32 %v1346_v44, %v2313_v53  ;;  %v1526_v26 = vmax.f32 %v1268_v16, %v1272_v10  ;;  %v1552_v27 = vmax.f32 %v1341_v17, %v1345_v11 }
 0x306   : > { %v1277_v46 = vpop.f32.mrf.mxu0  ;;  %v1350_v47 = vpop.f32.mrf.mxu1 }
 0x307   : > { %v1539_v18 = vmax.f32 %v1270_v8, %v1274_v4  ;;  %v1565_v19 = vmax.f32 %v1343_v9, %v1347_v5  ;;  %v1278_v20 = vadd.f32 %v1277_v46, %v2316_v2  ;;  %v1351_v21 = vadd.f32 %v1350_v47, %v2319_v3 }
 0x308   : > { %v1279_v48 = vpop.f32.mrf.mxu0  ;;  %v1352_v49 = vpop.f32.mrf.mxu1 }
 0x309   : > { %v1280_v12 = vadd.f32 %v1279_v48, %v2310_v52  ;;  %v1353_v13 = vadd.f32 %v1352_v49, %v2313_v53  ;;  %v1527_v36 = vmax.f32 %v1526_v26, %v1278_v20  ;;  %v1553_v37 = vmax.f32 %v1552_v27, %v1351_v21 }
 0x30a   : > { %v1281_v57 = vpop.f32.mrf.mxu0  ;;  %v1354_v58 = vpop.f32.mrf.mxu1 }
 0x30b   : > { %v1540_v28 = vmax.f32 %v1539_v18, %v1280_v12  ;;  %v1566_v29 = vmax.f32 %v1565_v19, %v1353_v13  ;;  %v1282_v30 = vadd.f32 %v1281_v57, %v2316_v2  ;;  %v1355_v31 = vadd.f32 %v1354_v58, %v2319_v3 }
 0x30c   : > { %v1283_v60 = vpop.f32.mrf.mxu0  ;;  %v1356_v61 = vpop.f32.mrf.mxu1 }
 0x30d   : > { %v1284_v22 = vadd.f32 %v1283_v60, %v2310_v52  ;;  %v1357_v23 = vadd.f32 %v1356_v61, %v2313_v53  ;;  %v1528_v46 = vmax.f32 %v1527_v36, %v1282_v30  ;;  %v1554_v47 = vmax.f32 %v1553_v37, %v1355_v31 }
 0x30e   : > { %v1287_v50 = vpop.f32.mrf.mxu0  ;;  %v1360_v51 = vpop.f32.mrf.mxu1 }
 0x30f   : > { %v1541_v38 = vmax.f32 %v1540_v28, %v1284_v22  ;;  %v1567_v39 = vmax.f32 %v1566_v29, %v1357_v23  ;;  %v1288_v42 = vadd.f32 %v1287_v50, %v2316_v2  ;;  %v1361_v43 = vadd.f32 %v1360_v51, %v2319_v3 }
 0x310   : > { %v1289_v55 = vpop.f32.mrf.mxu0  ;;  %v1362_v56 = vpop.f32.mrf.mxu1  ;;  %v883_v23 = vsub.s32 6, %v2298_v54 }
 0x311   : > { %v1290_v34 = vadd.f32 %v1289_v55, %v2310_v52  ;;  %v1363_v35 = vadd.f32 %v1362_v56, %v2313_v53  ;;  %v1529_v50 = vmax.f32 %v1528_v46, %v1288_v42  ;;  %v1555_v51 = vmax.f32 %v1554_v47, %v1361_v43 }
 0x312   : > { %v1291_v6 = vpop.f32.mrf.mxu0  ;;  %v1364_v7 = vpop.f32.mrf.mxu1 }
 0x313   : > { %v1542_v57 = vmax.f32 %v1541_v38, %v1290_v34  ;;  %v1568_v58 = vmax.f32 %v1567_v39, %v1363_v35  ;;  %v1292_v0 = vadd.f32 %v1291_v6, %v2316_v2  ;;  %v1365_v59 = vadd.f32 %v1364_v7, %v2319_v3 }
 0x314   : > { %v1293_v14 = vpop.f32.mrf.mxu0  ;;  %v1366_v15 = vpop.f32.mrf.mxu1 }
 0x315   : > { %v1294_v44 = vadd.f32 %v1293_v14, %v2310_v52  ;;  %v1367_v45 = vadd.f32 %v1366_v15, %v2313_v53  ;;  %v1530_v10 = vmax.f32 %v1529_v50, %v1292_v0  ;;  %v1556_v11 = vmax.f32 %v1555_v51, %v1365_v59 }
 0x316   : > { %v1297_v24 = vpop.f32.mrf.mxu0  ;;  %v1370_v25 = vpop.f32.mrf.mxu1 }
 0x317   : > { %v1543_v55 = vmax.f32 %v1542_v57, %v1294_v44  ;;  %v1569_v56 = vmax.f32 %v1568_v58, %v1367_v45  ;;  %v1298_v4 = vadd.f32 %v1297_v24, %v2316_v2  ;;  %v1371_v5 = vadd.f32 %v1370_v25, %v2319_v3 }
 0x318   : > { %v1299_v32 = vpop.f32.mrf.mxu0  ;;  %v1372_v33 = vpop.f32.mrf.mxu1 }
 0x319   : > { %v1300_v60 = vadd.f32 %v1299_v32, %v2310_v52  ;;  %v1373_v61 = vadd.f32 %v1372_v33, %v2313_v53  ;;  %v1531_v18 = vmax.f32 %v1530_v10, %v1298_v4  ;;  %v1557_v19 = vmax.f32 %v1556_v11, %v1371_v5 }
 0x31a   : > { %v1301_v40 = vpop.f32.mrf.mxu0  ;;  %v1374_v41 = vpop.f32.mrf.mxu1  ;;  %v2361_v33 = vrot.slane %v2307_v1, %v883_v23 }
 0x31b   : > { %v1544_v12 = vmax.f32 %v1543_v55, %v1300_v60  ;;  %v1570_v13 = vmax.f32 %v1569_v56, %v1373_v61  ;;  %v1302_v14 = vadd.f32 %v1301_v40, %v2316_v2  ;;  %v1375_v15 = vadd.f32 %v1374_v41, %v2319_v3 }
 0x31c   : > { %v1303_v48 = vpop.f32.mrf.mxu0  ;;  %v1376_v49 = vpop.f32.mrf.mxu1  ;;  %v879_v2 = vsub.s32 5, %v2298_v54  ;;  %v887_v3 = vsub.s32 7, %v2298_v54 }
 0x31d   : > { %v1304_v8 = vadd.f32 %v1303_v48, %v2310_v52  ;;  %v1377_v6 = vadd.f32 %v1376_v49, %v2313_v53  ;;  %v875_v53 = vsub.s32 4, %v2298_v54  ;;  %v1532_v24 = vmax.f32 %v1531_v18, %v1302_v14 }
 0x31e   : > { %v1413_v62 = vpop.f32.mrf.mxu0  ;;  %v1486_v63 = vpop.f32.mrf.mxu1  ;;  %v1558_v25 = vmax.f32 %v1557_v19, %v1375_v15  ;;  %v2364_v38 = vrot.slane %v2307_v1, %v879_v2  ;;  %v2367_v39 = vrot.slane %v2307_v1, %v887_v3 }
 0x31f   : > { %v1545_v20 = vmax.f32 %v1544_v12, %v1304_v8  ;;  %v1571_v21 = vmax.f32 %v1570_v13, %v1377_v6  ;;  %v2358_v32 = vrot.slane %v2307_v1, %v875_v53  ;;  %v1533_v34 = vrot.slane %v1532_v24, 4 }
 0x320   : > { %v1415_v9 = vpop.f32.mrf.mxu0  ;;  %v1488_v7 = vpop.f32.mrf.mxu1  ;;  %v1559_v35 = vrot.slane %v1558_v25, 4  ;;  %v1487_v45 = vadd.f32 %v1486_v63, %v2361_v33 }
 0x321   : > { %v1546_v28 = vrot.slane %v1545_v20, 4  ;;  %v1572_v29 = vrot.slane %v1571_v21, 4  ;;  %v1414_v44 = vadd.f32 %v1413_v62, %v2358_v32  ;;  %v2377_v48 = vmax.f32 %v1532_v24, %v1533_v34 }
 0x322   : > { %v1417_v16 = vpop.f32.mrf.mxu0  ;;  %v1490_v17 = vpop.f32.mrf.mxu1  ;;  %v2379_v49 = vmax.f32 %v1558_v25, %v1559_v35  ;;  %v1416_v59 = vadd.f32 %v1415_v9, %v2364_v38  ;;  %v1489_v60 = vadd.f32 %v1488_v7, %v2367_v39 }
 0x323   : > { %v2369_v40 = vmax.f32 %v1545_v20, %v1546_v28  ;;  %v2371_v41 = vmax.f32 %v1571_v21, %v1572_v29  ;;  %v1418_v46 = vadd.f32 %v1417_v16, %v2358_v32  ;;  %v1491_v47 = vadd.f32 %v1490_v17, %v2361_v33 }
 0x324   : > { %v1419_v22 = vpop.f32.mrf.mxu0  ;;  %v1492_v52 = vpop.f32.mrf.mxu1 }
 0x325   : > { %v1420_v1 = vadd.f32 %v1419_v22, %v2364_v38  ;;  %v1493_v57 = vadd.f32 %v1492_v52, %v2367_v39  ;;  %v1548_v63 = vrot.slane %v2369_v40, 2  ;;  %v1574_v50 = vrot.slane %v2371_v41, 2 }
 0x326   : > { %v1423_v26 = vpop.f32.mrf.mxu0  ;;  %v1496_v27 = vpop.f32.mrf.mxu1  ;;  %v1578_v5 = vmax.f32 %v1414_v44, %v1418_v46  ;;  %v1604_v8 = vmax.f32 %v1487_v45, %v1491_v47 }
 0x327   : > { %v1424_v61 = vadd.f32 %v1423_v26, %v2358_v32  ;;  %v1497_v62 = vadd.f32 %v1496_v27, %v2361_v33  ;;  %v1591_v7 = vmax.f32 %v1416_v59, %v1420_v1  ;;  %v1617_v10 = vmax.f32 %v1489_v60, %v1493_v57 }
 0x328   : > { %v1425_v30 = vpop.f32.mrf.mxu0  ;;  %v1498_v31 = vpop.f32.mrf.mxu1  ;;  %v1575_v59 = vmax.f32 %v2371_v41, %v1574_v50 }
 0x329   : > { %v1426_v51 = vadd.f32 %v1425_v30, %v2364_v38  ;;  %v1499_v55 = vadd.f32 %v1498_v31, %v2367_v39  ;;  %v1579_v15 = vmax.f32 %v1578_v5, %v1424_v61  ;;  %v1605_v16 = vmax.f32 %v1604_v8, %v1497_v62 }
 0x32a   : > { %v1427_v36 = vpop.f32.mrf.mxu0  ;;  %v1500_v37 = vpop.f32.mrf.mxu1 }
 0x32b   : > { %v1428_v6 = vadd.f32 %v1427_v36, %v2358_v32  ;;  %v1501_v9 = vadd.f32 %v1500_v37, %v2361_v33  ;;  %v1592_v19 = vmax.f32 %v1591_v7, %v1426_v51  ;;  %v1618_v20 = vmax.f32 %v1617_v10, %v1499_v55 }
 0x32c   : > { %v1429_v42 = vpop.f32.mrf.mxu0  ;;  %v1502_v43 = vpop.f32.mrf.mxu1  ;;  %v1535_v37 = vrot.slane %v2377_v48, 2 }
 0x32d   : > { %v1430_v11 = vadd.f32 %v1429_v42, %v2364_v38  ;;  %v1503_v12 = vadd.f32 %v1502_v43, %v2367_v39  ;;  %v1580_v23 = vmax.f32 %v1579_v15, %v1428_v6  ;;  %v1606_v24 = vmax.f32 %v1605_v16, %v1501_v9 }
 0x32e   : > { %v1433_v58 = vpop.f32.mrf.mxu0  ;;  %v1506_v0 = vpop.f32.mrf.mxu1  ;;  %v1561_v42 = vrot.slane %v2379_v49, 2  ;;  %v1536_v8 = vmax.f32 %v2377_v48, %v1535_v37 }
 0x32f   : > { %v1434_v17 = vadd.f32 %v1433_v58, %v2358_v32  ;;  %v1507_v18 = vadd.f32 %v1506_v0, %v2361_v33  ;;  %v1593_v27 = vmax.f32 %v1592_v19, %v1430_v11  ;;  %v1619_v2 = vmax.f32 %v1618_v20, %v1503_v12 }
 0x330   : > { %v1435_v56 = vpop.f32.mrf.mxu0  ;;  %v1508_v4 = vpop.f32.mrf.mxu1  ;;  %v1549_v0 = vmax.f32 %v2369_v40, %v1548_v63  ;;  %v1562_v6 = vmax.f32 %v2379_v49, %v1561_v42 }
 0x331   : > { %v1436_v21 = vadd.f32 %v1435_v56, %v2364_v38  ;;  %v1509_v22 = vadd.f32 %v1508_v4, %v2367_v39  ;;  %v1581_v31 = vmax.f32 %v1580_v23, %v1434_v17  ;;  %v1607_v34 = vmax.f32 %v1606_v24, %v1507_v18 }
 0x332   : > { %v1437_v13 = vpop.f32.mrf.mxu0  ;;  %v1510_v14 = vpop.f32.mrf.mxu1  ;;  %v1550_v12 = vrot.slane %v1549_v0, 1  ;;  %v1537_v17 = vrot.slane %v1536_v8, 1  ;;  %v1563_v49 = vrot.slane %v1562_v6, 1 }
 0x333   : > { %v1438_v25 = vadd.f32 %v1437_v13, %v2358_v32  ;;  %v1511_v26 = vadd.f32 %v1510_v14, %v2361_v33  ;;  %v1594_v43 = vmax.f32 %v1593_v27, %v1436_v21  ;;  %v1620_v44 = vmax.f32 %v1619_v2, %v1509_v22 }
 0x334   : > { %v1439_v52 = vpop.f32.mrf.mxu0  ;;  %v1512_v53 = vpop.f32.mrf.mxu1  ;;  %v2035_v13 = vmov 1966171168   ;;  %v1551_v22 = vmax.f32 %v1549_v0, %v1550_v12 }
 0x335   : > { %v1440_v3 = vadd.f32 %v1439_v52, %v2364_v38  ;;  %v1513_v28 = vadd.f32 %v1512_v53, %v2367_v39  ;;  %v1582_v47 = vmax.f32 %v1581_v31, %v1438_v25  ;;  %v1608_v1 = vmax.f32 %v1607_v34, %v1511_v26 }
 0x336   : > { %v1443_v29 = vpop.f32.mrf.mxu0  ;;  %v1516_v30 = vpop.f32.mrf.mxu1  ;;  %v1643_v14 = vunpack.c.l.s4 %v2035_v13  ;;  %v1538_v25 = vmax.f32 %v1536_v8, %v1537_v17  ;;  %v1564_v26 = vmax.f32 %v1562_v6, %v1563_v49 }
 0x337   : > { %v1444_v35 = vadd.f32 %v1443_v29, %v2358_v32  ;;  %v1517_v36 = vadd.f32 %v1516_v30, %v2361_v33  ;;  %v1595_v60 = vmax.f32 %v1594_v43, %v1440_v3  ;;  %v1621_v61 = vmax.f32 %v1620_v44, %v1513_v28 }
 0x338   : > { %v1445_v45 = vpop.f32.mrf.mxu0  ;;  %v1518_v46 = vpop.f32.mrf.mxu1  ;;  %v1644_v52 = vunpack.c.0.s8 %v1643_v14  ;;  %v1638_v29 = vcombine.low %v1538_v25, %v1551_v22 }
 0x339   : > { %v1446_v57 = vadd.f32 %v1445_v45, %v2364_v38  ;;  %v1519_v58 = vadd.f32 %v1518_v46, %v2367_v39  ;;  %v1583_v55 = vmax.f32 %v1582_v47, %v1444_v35  ;;  %v1609_v56 = vmax.f32 %v1608_v1, %v1517_v36 }
 0x33a   : > { %v1447_v62 = vpop.f32.mrf.mxu0  ;;  %v1520_v51 = vpop.f32.mrf.mxu1  ;;  %v1647_v30 = vsub.s32 %v1644_v52, %v2298_v54 }
 0x33b   : > { %v1448_v4 = vadd.f32 %v1447_v62, %v2358_v32  ;;  %v1521_v5 = vadd.f32 %v1520_v51, %v2361_v33  ;;  %v1596_v9 = vmax.f32 %v1595_v60, %v1446_v57  ;;  %v1622_v7 = vmax.f32 %v1621_v61, %v1519_v58 }
 0x33c   : > { %v1449_v10 = vpop.f32.mrf.mxu0  ;;  %v1522_v40 = vpop.f32.mrf.mxu1  ;;  %v1576_v32 = vrot.slane %v1575_v59, 1  ;;  %v1648_v44 = vrot.slane %v1638_v29, %v1647_v30 }
 0x33d   : > { %v1584_v63 = vmax.f32 %v1583_v55, %v1448_v4  ;;  %v1610_v41 = vmax.f32 %v1609_v56, %v1521_v5  ;;  %v1450_v50 = vadd.f32 %v1449_v10, %v2364_v38  ;;  %v1523_v11 = vadd.f32 %v1522_v40, %v2367_v39 }
 0x33e   : > { %v1577_v53 = vmax.f32 %v1575_v59, %v1576_v32 }
 0x33f   : > { %v1585_v15 = vrot.slane %v1584_v63, 4  ;;  %v1611_v33 = vrot.slane %v1610_v41, 4  ;;  %v1597_v16 = vmax.f32 %v1596_v9, %v1450_v50  ;;  %v1623_v48 = vmax.f32 %v1622_v7, %v1523_v11 }
 0x340   : > { %v1639_v31 = vcombine.low %v1564_v26, %v1577_v53 }
 0x341   : > { %v1586_v18 = vmax.f32 %v1584_v63, %v1585_v15  ;;  %v1612_v19 = vmax.f32 %v1610_v41, %v1611_v33  ;;  %v1598_v20 = vrot.slane %v1597_v16, 4  ;;  %v1624_v21 = vrot.slane %v1623_v48, 4 }
 0x342   : > { %v1655_v45 = vrot.slane %v1639_v31, %v1647_v30 }
 0x343   : > { %v1587_v38 = vrot.slane %v1586_v18, 2  ;;  %v1613_v23 = vrot.slane %v1612_v19, 2  ;;  %v1599_v39 = vmax.f32 %v1597_v16, %v1598_v20  ;;  %v1625_v24 = vmax.f32 %v1623_v48, %v1624_v21 }
 0x344   : > { %v1670_v59 = vcombine.low %v1648_v44, %v1655_v45 }
 0x345   : > { %v1588_v27 = vmax.f32 %v1586_v18, %v1587_v38  ;;  %v1614_v2 = vmax.f32 %v1612_v19, %v1613_v23  ;;  %v1600_v3 = vrot.slane %v1599_v39, 2  ;;  %v1626_v28 = vrot.slane %v1625_v24, 2 }
 0x346   : > { %v1678_v62 = vrot.slane %v1670_v59, %v1647_v30 }
 0x347   : > { %v1589_v34 = vrot.slane %v1588_v27, 1  ;;  %v1615_v35 = vrot.slane %v1614_v2, 1  ;;  %v1601_v36 = vmax.f32 %v1599_v39, %v1600_v3  ;;  %v1627_v37 = vmax.f32 %v1625_v24, %v1626_v28 }
 0x349   : > { %v1602_v42 = vrot.slane %v1601_v36, 1  ;;  %v1628_v43 = vrot.slane %v1627_v37, 1  ;;  %v1590_v46 = vmax.f32 %v1588_v27, %v1589_v34  ;;  %v1616_v47 = vmax.f32 %v1614_v2, %v1615_v35 }
 0x34b   : > { %v1603_v1 = vmax.f32 %v1601_v36, %v1602_v42  ;;  %v1629_v57 = vmax.f32 %v1627_v37, %v1628_v43 }
 0x34d   : > { %v1640_v58 = vcombine.low %v1590_v46, %v1603_v1  ;;  %v1641_v0 = vcombine.low %v1616_v47, %v1629_v57 }
 0x34f   : > { %v1662_v60 = vrot.slane %v1640_v58, %v1647_v30  ;;  %v1669_v61 = vrot.slane %v1641_v0, %v1647_v30 }
 0x351   : > { %v1671_v54 = vcombine.low %v1662_v60, %v1669_v61 }
 0x353   : > { %v1685_v51 = vrot.slane %v1671_v54, %v1647_v30 }
 0x355   : > { %v1686_v55 = vcombine.low %v1678_v62, %v1685_v51 }
 0x357   : > { %1694 = vst [vmem:[%s311_s20] sm:$0xff] %v1686_v55 }
 0x358 PF: > { %s18_s26 = sadd.s32 1, %s2028_s26   ;;  %s2441_s24 = smov %s2024_s25 }
 0x359   : > { %p15_p2 = scmp.ge.s32.totalorder %s18_s26, 4   ;;  %s2442_s25 = smov %s2444_s28 }
 0x35b   :  { %17 = sbr.rel (!%p15_p2) target bundleno = 2 (0x2), region = 91 }
 0x360   :  { %1714 = vsyncpa [#allocation4], 1 }
 0x361   :  { %1716 = vsyncpa [#allocation4 + $0x1], 1 }

// kernel: labelled_pointnet_ae.4
= control target key start
LH: loop header
LB: loop body
LE: loop exit
PB: predicated region body
PF: predicated region fallthrough
CT: control target
= control target key end

     0   :  { %12 = vsyncpa [#allocation4], 0  ;;  %s4665_s24 = smov [#allocation3]   ;;  %s5806_s0 = inlined_call_operand.vmem [shape: f32[2,1024], index: 0, kind: input, shape index: {}]   ;;  %s5807_s1 = inlined_call_operand.vmem [shape: bf16[1024,512], index: 1, kind: input, shape index: {}]   ;;  %s5808_s2 = inlined_call_operand.vmem [shape: f32[1,512], index: 2, kind: input, shape index: {}]   ;;  %s5809_s3 = inlined_call_operand.hbm [shape: bf16[512,512], index: 3, kind: input, shape index: {}]   ;;  %s5810_s4 = inlined_call_operand.vmem [shape: f32[1,512], index: 4, kind: input, shape index: {}]   ;;  %s5811_s5 = inlined_call_operand.vmem [shape: bf16[512,192], index: 5, kind: input, shape index: {}]   ;;  %s5812_s6 = inlined_call_operand.vmem [shape: f32[1,192], index: 6, kind: input, shape index: {}]   ;;  %s5813_s7 = inlined_call_operand.vmem [shape: f32[2,192], index: 7, kind: output, shape index: {}]  }
   0x1   :  { %s24_s25 = sshll.u32 %s4665_s24, 4  ;;  %s25_s25 = int_to_ptr.vmem [resolvable:$true] %s24_s25 }
   0x2   :  { %s4651_s26 = scalar_lea.vmem %s25_s25, 16384  ;;  %p4656_p1 = scmp.lt.s32.totalorder %s25_s25, %s25_s25 }
   0x3   :  { %p4652_p0 = scmp.ne.s32.totalorder %s25_s25, %s4651_s26  ;;  %p4657_p2 = scmp.lt.s32.totalorder %s4651_s26, %s4651_s26 }
   0x5   :  { %p4658_p3 = por %p4657_p2, %p4656_p1 }
   0x7   :  { %p4659_p4 = pnand %p4658_p3, %p4652_p0 }
   0x9   :  { %4662 = shalt.err (!%p4659_p4)
}
   0xa   :  { %s4666_s27 = smov 256   ;;  %s4667_s28 = smov 16  }
   0xb   :  { %30 = dma.hbm_to_vmem [thread:$0]  %s5809_s3, 16384, %s25_s25, [#allocation4], %s4666_s27, %s4666_s27, %s4667_s28  }
   0xc   :  { %4663 = dma.done.wait [#allocation4], 16384  }
   0xd   :  { %4664 = vsyncadd [#allocation4], 4294950912  ;;  %v3969_v0 = vld [vmem:[%s5807_s1 + $0xe4] ss:$16 sps:$4 sm:$0xff]   ;;  %v3973_v2 = vld [vmem:[%s5807_s1 + $0xe0] ss:$16 sps:$4 sm:$0xff]   ;;  %v52_v38 = vlaneseq }
   0xe   :  { %v3971_v1 = vld [vmem:[%s5807_s1 + $0x2e4] ss:$16 sps:$4 sm:$0xff]   ;;  %1656 = vmatprep.subr.bf16.mxu0 %v3969_v0  ;;  %v3974_v3 = vld [vmem:[%s5807_s1 + $0x2e0] ss:$16 sps:$4 sm:$0xff]   ;;  %v4668_v36 = vmov 1983009808  }
   0xf   :  { %1697 = vmatprep.subr.bf16.mxu1 %v3971_v1  ;;  %v3975_v4 = vld [vmem:[%s5807_s1 + $0xc4] ss:$16 sps:$4 sm:$0xff]   ;;  %1657 = vmatpush1.bf16.msra.mxu0 %v3973_v2  ;;  %v3979_v6 = vld [vmem:[%s5807_s1 + $0xc0] ss:$16 sps:$4 sm:$0xff]   ;;  %v50_v37 = vunpack.c.l.s4 %v4668_v36  ;;  %v4830_v43 = vshrl.u32 %v52_v38, 7  ;;  %vm3503_vm0 = vcmask 1041408  }
  0x10   :  { %1698 = vmatpush1.bf16.msra.mxu1 %v3974_v3  ;;  %v3977_v5 = vld [vmem:[%s5807_s1 + $0x2c4] ss:$16 sps:$4 sm:$0xff]   ;;  %1658 = vmatprep.subr.bf16.mxu0 %v3975_v4  ;;  %v3980_v7 = vld [vmem:[%s5807_s1 + $0x2c0] ss:$16 sps:$4 sm:$0xff]   ;;  %vm3504_vm1 = vcmask 519170  }
  0x11   :  { %1699 = vmatprep.subr.bf16.mxu1 %v3977_v5  ;;  %v3981_v8 = vld [vmem:[%s5807_s1 + $0xa4] ss:$16 sps:$4 sm:$0xff]   ;;  %v3985_v10 = vld [vmem:[%s5807_s1 + $0xa0] ss:$16 sps:$4 sm:$0xff]   ;;  %v51_v42 = vunpack.c.0.s8 %v50_v37  ;;  %vm3505_vm2 = vmor %vm3504_vm1, %vm3503_vm0 }
  0x12   :  { %v3983_v9 = vld [vmem:[%s5807_s1 + $0x2a4] ss:$16 sps:$4 sm:$0xff]   ;;  %v3986_v11 = vld [vmem:[%s5807_s1 + $0x2a0] ss:$16 sps:$4 sm:$0xff]  }
  0x13   :  { %1659 = vmatpush1.bf16.msra.mxu0 %v3979_v6  ;;  %v3987_v12 = vld [vmem:[%s5807_s1 + $0x84] ss:$16 sps:$4 sm:$0xff]   ;;  %v3991_v14 = vld [vmem:[%s5807_s1 + $0x80] ss:$16 sps:$4 sm:$0xff]   ;;  %v4848_v49 = vsub.s32 %v51_v42, %v4830_v43  ;;  %v45_v42 = vld [vmem:[%s5806_s0 + $0x8] sm:$0xff] }
  0x14   :  { %1700 = vmatpush1.bf16.msra.mxu1 %v3980_v7  ;;  %1660 = vmatprep.subr.bf16.mxu0 %v3981_v8  ;;  %v3989_v13 = vld [vmem:[%s5807_s1 + $0x284] ss:$16 sps:$4 sm:$0xff]   ;;  %v3992_v15 = vld [vmem:[%s5807_s1 + $0x280] ss:$16 sps:$4 sm:$0xff]  }
  0x15   :  { %1701 = vmatprep.subr.bf16.mxu1 %v3983_v9  ;;  %v3993_v16 = vld [vmem:[%s5807_s1 + $0x64] ss:$16 sps:$4 sm:$0xff]   ;;  %v3997_v18 = vld [vmem:[%s5807_s1 + $0x60] ss:$16 sps:$4 sm:$0xff]  }
  0x16   :  { %v3995_v17 = vld [vmem:[%s5807_s1 + $0x264] ss:$16 sps:$4 sm:$0xff]   ;;  %v3998_v19 = vld [vmem:[%s5807_s1 + $0x260] ss:$16 sps:$4 sm:$0xff]  }
  0x17   :  { %1661 = vmatpush1.bf16.msra.mxu0 %v3985_v10  ;;  %v3999_v20 = vld [vmem:[%s5807_s1 + $0x44] ss:$16 sps:$4 sm:$0xff]   ;;  %v4003_v22 = vld [vmem:[%s5807_s1 + $0x40] ss:$16 sps:$4 sm:$0xff]  }
  0x18   :  { %1702 = vmatpush1.bf16.msra.mxu1 %v3986_v11  ;;  %1662 = vmatprep.subr.bf16.mxu0 %v3987_v12  ;;  %v4001_v21 = vld [vmem:[%s5807_s1 + $0x244] ss:$16 sps:$4 sm:$0xff]   ;;  %v4004_v23 = vld [vmem:[%s5807_s1 + $0x240] ss:$16 sps:$4 sm:$0xff]  }
  0x19   :  { %1703 = vmatprep.subr.bf16.mxu1 %v3989_v13  ;;  %v4005_v24 = vld [vmem:[%s5807_s1 + $0x24] ss:$16 sps:$4 sm:$0xff]   ;;  %v4009_v26 = vld [vmem:[%s5807_s1 + $0x20] ss:$16 sps:$4 sm:$0xff]  }
  0x1a   :  { %v4007_v25 = vld [vmem:[%s5807_s1 + $0x224] ss:$16 sps:$4 sm:$0xff]   ;;  %v4010_v27 = vld [vmem:[%s5807_s1 + $0x220] ss:$16 sps:$4 sm:$0xff]  }
  0x1b   :  { %1663 = vmatpush1.bf16.msra.mxu0 %v3991_v14  ;;  %v4011_v28 = vld [vmem:[%s5807_s1 + $0x4] ss:$16 sps:$4 sm:$0xff]   ;;  %v4015_v30 = vld [vmem:[%s5807_s1] ss:$16 sps:$4 sm:$0xff]  }
  0x1c   :  { %1704 = vmatpush1.bf16.msra.mxu1 %v3992_v15  ;;  %1664 = vmatprep.subr.bf16.mxu0 %v3993_v16  ;;  %v4013_v29 = vld [vmem:[%s5807_s1 + $0x204] ss:$16 sps:$4 sm:$0xff]   ;;  %v4016_v31 = vld [vmem:[%s5807_s1 + $0x200] ss:$16 sps:$4 sm:$0xff]  }
  0x1d   :  { %1705 = vmatprep.subr.bf16.mxu1 %v3995_v17  ;;  %v4017_v32 = vld [vmem:[%s5807_s1 + $0x1e4] ss:$16 sps:$4 sm:$0xff]   ;;  %v4021_v34 = vld [vmem:[%s5807_s1 + $0x1e0] ss:$16 sps:$4 sm:$0xff]  }
  0x1e   :  { %v4019_v33 = vld [vmem:[%s5807_s1 + $0x3e4] ss:$16 sps:$4 sm:$0xff]   ;;  %v4022_v35 = vld [vmem:[%s5807_s1 + $0x3e0] ss:$16 sps:$4 sm:$0xff]  }
  0x1f   :  { %1665 = vmatpush1.bf16.msra.mxu0 %v3997_v18  ;;  %v4023_v39 = vld [vmem:[%s5807_s1 + $0x1c4] ss:$16 sps:$4 sm:$0xff]   ;;  %v4027_v41 = vld [vmem:[%s5807_s1 + $0x1c0] ss:$16 sps:$4 sm:$0xff]  }
  0x20   :  { %1706 = vmatpush1.bf16.msra.mxu1 %v3998_v19  ;;  %1666 = vmatprep.subr.bf16.mxu0 %v3999_v20  ;;  %v4025_v40 = vld [vmem:[%s5807_s1 + $0x3c4] ss:$16 sps:$4 sm:$0xff]   ;;  %v4028_v44 = vld [vmem:[%s5807_s1 + $0x3c0] ss:$16 sps:$4 sm:$0xff]  }
  0x21   :  { %1707 = vmatprep.subr.bf16.mxu1 %v4001_v21  ;;  %v4029_v45 = vld [vmem:[%s5807_s1 + $0x1a4] ss:$16 sps:$4 sm:$0xff]   ;;  %v4033_v47 = vld [vmem:[%s5807_s1 + $0x1a0] ss:$16 sps:$4 sm:$0xff]  }
  0x22   :  { %v4031_v46 = vld [vmem:[%s5807_s1 + $0x3a4] ss:$16 sps:$4 sm:$0xff]   ;;  %v4034_v48 = vld [vmem:[%s5807_s1 + $0x3a0] ss:$16 sps:$4 sm:$0xff]  }
  0x23   :  { %1667 = vmatpush1.bf16.msra.mxu0 %v4003_v22  ;;  %v4035_v50 = vld [vmem:[%s5807_s1 + $0x184] ss:$16 sps:$4 sm:$0xff]   ;;  %v4039_v53 = vld [vmem:[%s5807_s1 + $0x180] ss:$16 sps:$4 sm:$0xff]  }
  0x24   :  { %1708 = vmatpush1.bf16.msra.mxu1 %v4004_v23  ;;  %1668 = vmatprep.subr.bf16.mxu0 %v4005_v24  ;;  %v4037_v51 = vld [vmem:[%s5807_s1 + $0x384] ss:$16 sps:$4 sm:$0xff]   ;;  %v4040_v56 = vld [vmem:[%s5807_s1 + $0x380] ss:$16 sps:$4 sm:$0xff]  }
  0x25   :  { %1709 = vmatprep.subr.bf16.mxu1 %v4007_v25  ;;  %v44_v52 = vld [vmem:[%s5806_s0] sm:$0xff] }
  0x26   :  { %v55_v54 = vrot.slane %v44_v52, %v4848_v49  ;;  %v48_v55 = vcombine.high %v44_v52, %v44_v52  ;;  %v4041_v57 = vld [vmem:[%s5807_s1 + $0x164] ss:$16 sps:$4 sm:$0xff]   ;;  %v4045_v61 = vld [vmem:[%s5807_s1 + $0x160] ss:$16 sps:$4 sm:$0xff]  }
  0x27   :  { %1669 = vmatpush1.bf16.msra.mxu0 %v4009_v26  ;;  %v4043_v58 = vld [vmem:[%s5807_s1 + $0x364] ss:$16 sps:$4 sm:$0xff]   ;;  %v4046_v0 = vld [vmem:[%s5807_s1 + $0x360] ss:$16 sps:$4 sm:$0xff]  }
  0x28   :  { %1710 = vmatpush1.bf16.msra.mxu1 %v4010_v27  ;;  %1670 = vmatprep.subr.bf16.mxu0 %v4011_v28  ;;  %v63_v59 = vcombine.high %v55_v54, %v55_v54  ;;  %v62_v60 = vrot.slane %v48_v55, %v4848_v49  ;;  %v4047_v1 = vld [vmem:[%s5807_s1 + $0x144] ss:$16 sps:$4 sm:$0xff]   ;;  %v4051_v4 = vld [vmem:[%s5807_s1 + $0x140] ss:$16 sps:$4 sm:$0xff]   ;;  %v4927_v16 = vpack.c.bf16 %v55_v54, %v55_v54 }
  0x29   :  { %1711 = vmatprep.subr.bf16.mxu1 %v4013_v29  ;;  %v4049_v2 = vld [vmem:[%s5807_s1 + $0x344] ss:$16 sps:$4 sm:$0xff]   ;;  %v4052_v5 = vld [vmem:[%s5807_s1 + $0x340] ss:$16 sps:$4 sm:$0xff]  }
  0x2a   :  { %v4876_v62 = vpack.c.bf16 %v63_v59, %v63_v59  ;;  %v64_v63 = vcombine.high %v62_v60, %v62_v60  ;;  %v4053_v6 = vld [vmem:[%s5807_s1 + $0x124] ss:$16 sps:$4 sm:$0xff]   ;;  %v4057_v8 = vld [vmem:[%s5807_s1 + $0x120] ss:$16 sps:$4 sm:$0xff]   ;;  %v4929_v17 = vpack.c.bf16 %v62_v60, %v62_v60 }
  0x2b   :  { %1671 = vmatpush1.bf16.msra.mxu0 %v4015_v30  ;;  %v4055_v7 = vld [vmem:[%s5807_s1 + $0x324] ss:$16 sps:$4 sm:$0xff]   ;;  %v4058_v9 = vld [vmem:[%s5807_s1 + $0x320] ss:$16 sps:$4 sm:$0xff]  }
  0x2c   :  { %1712 = vmatpush1.bf16.msra.mxu1 %v4016_v31  ;;  %1672 = vmatprep.subr.bf16.mxu0 %v4017_v32  ;;  %v4887_v3 = vpack.c.bf16 %v64_v63, %v64_v63  ;;  %v4059_v10 = vld [vmem:[%s5807_s1 + $0x104] ss:$16 sps:$4 sm:$0xff]   ;;  %v4063_v12 = vld [vmem:[%s5807_s1 + $0x100] ss:$16 sps:$4 sm:$0xff]  }
  0x2d   :  { %1713 = vmatprep.subr.bf16.mxu1 %v4019_v33  ;;  %1688 = vmatprep.mubr.bf16.mxu0 %v4876_v62  ;;  %v4061_v11 = vld [vmem:[%s5807_s1 + $0x304] ss:$16 sps:$4 sm:$0xff]   ;;  %v4064_v13 = vld [vmem:[%s5807_s1 + $0x300] ss:$16 sps:$4 sm:$0xff]  }
  0x2e   :  { %1729 = vmatprep.mubr.bf16.mxu1 %v4887_v3  ;;  %v4068_v14 = vld [vmem:[%s5807_s1 + $0x4e4] ss:$16 sps:$4 sm:$0xff]   ;;  %v4066_v18 = vld [vmem:[%s5807_s1 + $0x4e0] ss:$16 sps:$4 sm:$0xff]  }
  0x2f   :  { %1673 = vmatpush2.bf16.msra.mxu0 %v4021_v34  ;;  %v4071_v15 = vld [vmem:[%s5807_s1 + $0x6e4] ss:$16 sps:$4 sm:$0xff]   ;;  %v4069_v19 = vld [vmem:[%s5807_s1 + $0x6e0] ss:$16 sps:$4 sm:$0xff]  }
  0x30   :  { %1714 = vmatpush2.bf16.msra.mxu1 %v4022_v35  ;;  %1674 = vmatprep.subr.bf16.mxu0 %v4023_v39  ;;  %v4074_v20 = vld [vmem:[%s5807_s1 + $0x4c4] ss:$16 sps:$4 sm:$0xff]   ;;  %v4072_v22 = vld [vmem:[%s5807_s1 + $0x4c0] ss:$16 sps:$4 sm:$0xff]  }
  0x31   :  { %1715 = vmatprep.subr.bf16.mxu1 %v4025_v40  ;;  %v4077_v21 = vld [vmem:[%s5807_s1 + $0x6c4] ss:$16 sps:$4 sm:$0xff]   ;;  %v4075_v23 = vld [vmem:[%s5807_s1 + $0x6c0] ss:$16 sps:$4 sm:$0xff]  }
  0x32   :  { %v4080_v24 = vld [vmem:[%s5807_s1 + $0x4a4] ss:$16 sps:$4 sm:$0xff]   ;;  %v4078_v26 = vld [vmem:[%s5807_s1 + $0x4a0] ss:$16 sps:$4 sm:$0xff]  }
  0x33   :  { %1675 = vmatpush2.bf16.msra.mxu0 %v4027_v41  ;;  %v4083_v25 = vld [vmem:[%s5807_s1 + $0x6a4] ss:$16 sps:$4 sm:$0xff]   ;;  %v4081_v27 = vld [vmem:[%s5807_s1 + $0x6a0] ss:$16 sps:$4 sm:$0xff]  }
  0x34   :  { %1716 = vmatpush2.bf16.msra.mxu1 %v4028_v44  ;;  %1676 = vmatprep.subr.bf16.mxu0 %v4029_v45  ;;  %v4086_v28 = vld [vmem:[%s5807_s1 + $0x484] ss:$16 sps:$4 sm:$0xff]   ;;  %v4084_v30 = vld [vmem:[%s5807_s1 + $0x480] ss:$16 sps:$4 sm:$0xff]   ;;  %v5009_v44 = vrot.slane %v45_v42, %v4848_v49  ;;  %v65_v45 = vcombine.high %v45_v42, %v45_v42  ;;  %v4175_v42 = vld [vmem:[%s5807_s1 + $0xa8] ss:$16 sps:$4 sm:$0xff]  }
  0x35   :  { %1717 = vmatprep.subr.bf16.mxu1 %v4031_v46  ;;  %v4089_v29 = vld [vmem:[%s5807_s1 + $0x684] ss:$16 sps:$4 sm:$0xff]   ;;  %v4087_v31 = vld [vmem:[%s5807_s1 + $0x680] ss:$16 sps:$4 sm:$0xff]  }
  0x36   :  { %v4092_v32 = vld [vmem:[%s5807_s1 + $0x464] ss:$16 sps:$4 sm:$0xff]   ;;  %v4090_v34 = vld [vmem:[%s5807_s1 + $0x460] ss:$16 sps:$4 sm:$0xff]  }
  0x37   :  { %1677 = vmatpush2.bf16.msra.mxu0 %v4033_v47  ;;  %v4095_v33 = vld [vmem:[%s5807_s1 + $0x664] ss:$16 sps:$4 sm:$0xff]   ;;  %v4093_v35 = vld [vmem:[%s5807_s1 + $0x660] ss:$16 sps:$4 sm:$0xff]  }
  0x38   :  { %1718 = vmatpush2.bf16.msra.mxu1 %v4034_v48  ;;  %1678 = vmatprep.subr.bf16.mxu0 %v4035_v50  ;;  %v4098_v36 = vld [vmem:[%s5807_s1 + $0x444] ss:$16 sps:$4 sm:$0xff]   ;;  %v4096_v38 = vld [vmem:[%s5807_s1 + $0x440] ss:$16 sps:$4 sm:$0xff]   ;;  %v80_v48 = vcombine.high %v5009_v44, %v5009_v44  ;;  %v5020_v50 = vrot.slane %v65_v45, %v4848_v49  ;;  %v4183_v45 = vld [vmem:[%s5807_s1 + $0x8c] ss:$16 sps:$4 sm:$0xff]  }
  0x39   :  { %1719 = vmatprep.subr.bf16.mxu1 %v4037_v51  ;;  %v4101_v37 = vld [vmem:[%s5807_s1 + $0x644] ss:$16 sps:$4 sm:$0xff]   ;;  %v4099_v39 = vld [vmem:[%s5807_s1 + $0x640] ss:$16 sps:$4 sm:$0xff]  }
  0x3a   :  { %v4104_v40 = vld [vmem:[%s5807_s1 + $0x424] ss:$16 sps:$4 sm:$0xff]   ;;  %v4102_v46 = vld [vmem:[%s5807_s1 + $0x420] ss:$16 sps:$4 sm:$0xff]   ;;  %v81_v54 = vcombine.high %v5020_v50, %v5020_v50 }
  0x3b   :  { %1679 = vmatpush2.bf16.msra.mxu0 %v4039_v53  ;;  %v4107_v41 = vld [vmem:[%s5807_s1 + $0x624] ss:$16 sps:$4 sm:$0xff]   ;;  %v4105_v47 = vld [vmem:[%s5807_s1 + $0x620] ss:$16 sps:$4 sm:$0xff]   ;;  %v5028_v53 = vpack.c.bf16 %v80_v48, %v80_v48  ;;  %v4192_v48 = vld [vmem:[%s5807_s1 + $0x26c] ss:$16 sps:$4 sm:$0xff]  }
  0x3c   :  { %1720 = vmatpush2.bf16.msra.mxu1 %v4040_v56  ;;  %1680 = vmatprep.subr.bf16.mxu0 %v4041_v57  ;;  %v4110_v51 = vld [vmem:[%s5807_s1 + $0x404] ss:$16 sps:$4 sm:$0xff]   ;;  %v4108_v55 = vld [vmem:[%s5807_s1 + $0x400] ss:$16 sps:$4 sm:$0xff]   ;;  %v5038_v57 = vpack.c.bf16 %v81_v54, %v81_v54  ;;  %v4198_v54 = vld [vmem:[%s5807_s1 + $0x24c] ss:$16 sps:$4 sm:$0xff]  }
  0x3d   :  { %1721 = vmatprep.subr.bf16.mxu1 %v4043_v58  ;;  %v4113_v52 = vld [vmem:[%s5807_s1 + $0x604] ss:$16 sps:$4 sm:$0xff]   ;;  %v4111_v56 = vld [vmem:[%s5807_s1 + $0x600] ss:$16 sps:$4 sm:$0xff]  }
  0x3e   :  { %v4116_v58 = vld [vmem:[%s5807_s1 + $0x5e4] ss:$16 sps:$4 sm:$0xff]   ;;  %v4114_v60 = vld [vmem:[%s5807_s1 + $0x5e0] ss:$16 sps:$4 sm:$0xff]  }
  0x3f   :  { %1681 = vmatpush2.bf16.msra.mxu0 %v4045_v61  ;;  %v4119_v59 = vld [vmem:[%s5807_s1 + $0x7e4] ss:$16 sps:$4 sm:$0xff]   ;;  %v4117_v61 = vld [vmem:[%s5807_s1 + $0x7e0] ss:$16 sps:$4 sm:$0xff]  }
  0x40   :  { %1722 = vmatpush2.bf16.msra.mxu1 %v4046_v0  ;;  %1682 = vmatprep.subr.bf16.mxu0 %v4047_v1  ;;  %v4122_v63 = vld [vmem:[%s5807_s1 + $0x5c4] ss:$16 sps:$4 sm:$0xff]   ;;  %v4120_v1 = vld [vmem:[%s5807_s1 + $0x5c0] ss:$16 sps:$4 sm:$0xff]  }
  0x41   :  { %1723 = vmatprep.subr.bf16.mxu1 %v4049_v2  ;;  %v4125_v0 = vld [vmem:[%s5807_s1 + $0x7c4] ss:$16 sps:$4 sm:$0xff]   ;;  %v4123_v2 = vld [vmem:[%s5807_s1 + $0x7c0] ss:$16 sps:$4 sm:$0xff]  }
  0x43   :  { %1683 = vmatpush2.bf16.msra.mxu0 %v4051_v4  ;;  %v4128_v4 = vld [vmem:[%s5807_s1 + $0x5a4] ss:$16 sps:$4 sm:$0xff]  }
  0x44   :  { %1724 = vmatpush2.bf16.msra.mxu1 %v4052_v5  ;;  %1684 = vmatprep.subr.bf16.mxu0 %v4053_v6  ;;  %v4131_v5 = vld [vmem:[%s5807_s1 + $0x7a4] ss:$16 sps:$4 sm:$0xff]   ;;  %v4126_v6 = vld [vmem:[%s5807_s1 + $0x5a0] ss:$16 sps:$4 sm:$0xff]  }
  0x45   :  { %1725 = vmatprep.subr.bf16.mxu1 %v4055_v7  ;;  %v4129_v7 = vld [vmem:[%s5807_s1 + $0x7a0] ss:$16 sps:$4 sm:$0xff]  }
  0x47   :  { %1685 = vmatpush2.bf16.msra.mxu0 %v4057_v8  ;;  %v4134_v8 = vld [vmem:[%s5807_s1 + $0x584] ss:$16 sps:$4 sm:$0xff]  }
  0x48   :  { %1726 = vmatpush2.bf16.msra.mxu1 %v4058_v9  ;;  %1686 = vmatprep.subr.bf16.mxu0 %v4059_v10  ;;  %v4137_v9 = vld [vmem:[%s5807_s1 + $0x784] ss:$16 sps:$4 sm:$0xff]   ;;  %v4132_v10 = vld [vmem:[%s5807_s1 + $0x580] ss:$16 sps:$4 sm:$0xff]  }
  0x49   :  { %1727 = vmatprep.subr.bf16.mxu1 %v4061_v11  ;;  %v4135_v11 = vld [vmem:[%s5807_s1 + $0x780] ss:$16 sps:$4 sm:$0xff]  }
  0x4b   :  { %1687 = vmatpush2.bf16.msra.mxu0 %v4063_v12  ;;  %v4140_v12 = vld [vmem:[%s5807_s1 + $0x564] ss:$16 sps:$4 sm:$0xff]  }
  0x4c   :  { %1728 = vmatpush2.bf16.msra.mxu1 %v4064_v13  ;;  %1738 = vmatprep.subr.bf16.mxu0 %v4068_v14  ;;  %v4143_v13 = vld [vmem:[%s5807_s1 + $0x764] ss:$16 sps:$4 sm:$0xff]   ;;  %v4138_v14 = vld [vmem:[%s5807_s1 + $0x560] ss:$16 sps:$4 sm:$0xff]  }
  0x4d   :  { %1779 = vmatprep.subr.bf16.mxu1 %v4071_v15  ;;  %v4141_v15 = vld [vmem:[%s5807_s1 + $0x760] ss:$16 sps:$4 sm:$0xff]  }
  0x4e   :  { %1689 = vmatmul.mubr.bf16.vlgmr.msra.gmra.mxu0 %v4927_v16 }
  0x4f   :  { %1730 = vmatmul.mubr.bf16.vlgmr.msra.gmra.mxu1 %v4929_v17  ;;  %1739 = vmatpush1.bf16.msra.mxu0 %v4066_v18  ;;  %v4146_v18 = vld [vmem:[%s5807_s1 + $0x544] ss:$16 sps:$4 sm:$0xff]  }
  0x50   :  { %1780 = vmatpush1.bf16.msra.mxu1 %v4069_v19  ;;  %1740 = vmatprep.subr.bf16.mxu0 %v4074_v20  ;;  %v4149_v19 = vld [vmem:[%s5807_s1 + $0x744] ss:$16 sps:$4 sm:$0xff]   ;;  %v4144_v20 = vld [vmem:[%s5807_s1 + $0x540] ss:$16 sps:$4 sm:$0xff]  }
  0x51   :  { %1781 = vmatprep.subr.bf16.mxu1 %v4077_v21  ;;  %1770 = vmatprep.mubr.bf16.mxu0 %v5028_v53  ;;  %v4147_v21 = vld [vmem:[%s5807_s1 + $0x740] ss:$16 sps:$4 sm:$0xff]  }
  0x52   :  { %1811 = vmatprep.mubr.bf16.mxu1 %v5038_v57 }
  0x53   :  { %1741 = vmatpush1.bf16.msra.mxu0 %v4072_v22  ;;  %v4152_v22 = vld [vmem:[%s5807_s1 + $0x524] ss:$16 sps:$4 sm:$0xff]  }
  0x54   :  { %1782 = vmatpush1.bf16.msra.mxu1 %v4075_v23  ;;  %1742 = vmatprep.subr.bf16.mxu0 %v4080_v24  ;;  %v4155_v23 = vld [vmem:[%s5807_s1 + $0x724] ss:$16 sps:$4 sm:$0xff]   ;;  %v4150_v24 = vld [vmem:[%s5807_s1 + $0x520] ss:$16 sps:$4 sm:$0xff]  }
  0x55   :  { %1783 = vmatprep.subr.bf16.mxu1 %v4083_v25  ;;  %v4153_v25 = vld [vmem:[%s5807_s1 + $0x720] ss:$16 sps:$4 sm:$0xff]  }
  0x57   :  { %1743 = vmatpush1.bf16.msra.mxu0 %v4078_v26  ;;  %v4158_v26 = vld [vmem:[%s5807_s1 + $0x504] ss:$16 sps:$4 sm:$0xff]  }
  0x58   :  { %1784 = vmatpush1.bf16.msra.mxu1 %v4081_v27  ;;  %1744 = vmatprep.subr.bf16.mxu0 %v4086_v28  ;;  %v4161_v27 = vld [vmem:[%s5807_s1 + $0x704] ss:$16 sps:$4 sm:$0xff]   ;;  %v4156_v28 = vld [vmem:[%s5807_s1 + $0x500] ss:$16 sps:$4 sm:$0xff]  }
  0x59   :  { %1785 = vmatprep.subr.bf16.mxu1 %v4089_v29  ;;  %v4159_v29 = vld [vmem:[%s5807_s1 + $0x700] ss:$16 sps:$4 sm:$0xff]  }
  0x5b   :  { %1745 = vmatpush1.bf16.msra.mxu0 %v4084_v30  ;;  %v4165_v30 = vld [vmem:[%s5807_s1 + $0xec] ss:$16 sps:$4 sm:$0xff]  }
  0x5c   :  { %1786 = vmatpush1.bf16.msra.mxu1 %v4087_v31  ;;  %1746 = vmatprep.subr.bf16.mxu0 %v4092_v32  ;;  %v4168_v31 = vld [vmem:[%s5807_s1 + $0x2ec] ss:$16 sps:$4 sm:$0xff]   ;;  %v5146_v32 = vpack.c.bf16 %v5009_v44, %v5009_v44  ;;  %v4178_v44 = vld [vmem:[%s5807_s1 + $0x2a8] ss:$16 sps:$4 sm:$0xff]  }
  0x5d   :  { %1787 = vmatprep.subr.bf16.mxu1 %v4095_v33  ;;  %v5150_v33 = vpack.c.bf16 %v5020_v50, %v5020_v50  ;;  %v4187_v50 = vld [vmem:[%s5807_s1 + $0x68] ss:$16 sps:$4 sm:$0xff]  }
  0x5f   :  { %1747 = vmatpush1.bf16.msra.mxu0 %v4090_v34  ;;  %v4163_v34 = vld [vmem:[%s5807_s1 + $0xe8] ss:$16 sps:$4 sm:$0xff]  }
  0x60   :  { %1788 = vmatpush1.bf16.msra.mxu1 %v4093_v35  ;;  %1748 = vmatprep.subr.bf16.mxu0 %v4098_v36  ;;  %v4166_v35 = vld [vmem:[%s5807_s1 + $0x2e8] ss:$16 sps:$4 sm:$0xff]   ;;  %v4171_v36 = vld [vmem:[%s5807_s1 + $0xcc] ss:$16 sps:$4 sm:$0xff]  }
  0x61   :  { %1789 = vmatprep.subr.bf16.mxu1 %v4101_v37  ;;  %v4174_v37 = vld [vmem:[%s5807_s1 + $0x2cc] ss:$16 sps:$4 sm:$0xff]  }
  0x63   :  { %1749 = vmatpush1.bf16.msra.mxu0 %v4096_v38  ;;  %v4169_v38 = vld [vmem:[%s5807_s1 + $0xc8] ss:$16 sps:$4 sm:$0xff]  }
  0x64   :  { %1790 = vmatpush1.bf16.msra.mxu1 %v4099_v39  ;;  %1750 = vmatprep.subr.bf16.mxu0 %v4104_v40  ;;  %v4172_v39 = vld [vmem:[%s5807_s1 + $0x2c8] ss:$16 sps:$4 sm:$0xff]   ;;  %v4177_v40 = vld [vmem:[%s5807_s1 + $0xac] ss:$16 sps:$4 sm:$0xff]  }
  0x65   :  { %1791 = vmatprep.subr.bf16.mxu1 %v4107_v41  ;;  %v4180_v41 = vld [vmem:[%s5807_s1 + $0x2ac] ss:$16 sps:$4 sm:$0xff]  }
  0x67   :  { %1751 = vmatpush1.bf16.msra.mxu0 %v4102_v46  ;;  %v4184_v46 = vld [vmem:[%s5807_s1 + $0x288] ss:$16 sps:$4 sm:$0xff]  }
  0x68   :  { %1792 = vmatpush1.bf16.msra.mxu1 %v4105_v47  ;;  %1752 = vmatprep.subr.bf16.mxu0 %v4110_v51  ;;  %v4189_v47 = vld [vmem:[%s5807_s1 + $0x6c] ss:$16 sps:$4 sm:$0xff]   ;;  %v4190_v51 = vld [vmem:[%s5807_s1 + $0x268] ss:$16 sps:$4 sm:$0xff]  }
  0x69   :  { %1793 = vmatprep.subr.bf16.mxu1 %v4113_v52  ;;  %v4195_v52 = vld [vmem:[%s5807_s1 + $0x4c] ss:$16 sps:$4 sm:$0xff]  }
  0x6b   :  { %1753 = vmatpush1.bf16.msra.mxu0 %v4108_v55  ;;  %v4193_v55 = vld [vmem:[%s5807_s1 + $0x48] ss:$16 sps:$4 sm:$0xff]  }
  0x6c   :  { %1794 = vmatpush1.bf16.msra.mxu1 %v4111_v56  ;;  %1754 = vmatprep.subr.bf16.mxu0 %v4116_v58  ;;  %v4196_v56 = vld [vmem:[%s5807_s1 + $0x248] ss:$16 sps:$4 sm:$0xff]   ;;  %v4201_v58 = vld [vmem:[%s5807_s1 + $0x2c] ss:$16 sps:$4 sm:$0xff]  }
  0x6d   :  { %1795 = vmatprep.subr.bf16.mxu1 %v4119_v59  ;;  %v4204_v59 = vld [vmem:[%s5807_s1 + $0x22c] ss:$16 sps:$4 sm:$0xff]  }
  0x6f   :  { %1755 = vmatpush2.bf16.msra.mxu0 %v4114_v60  ;;  %v4199_v60 = vld [vmem:[%s5807_s1 + $0x28] ss:$16 sps:$4 sm:$0xff]  }
  0x70   :  { %1796 = vmatpush2.bf16.msra.mxu1 %v4117_v61  ;;  %1756 = vmatprep.subr.bf16.mxu0 %v4122_v63  ;;  %v4202_v61 = vld [vmem:[%s5807_s1 + $0x228] ss:$16 sps:$4 sm:$0xff]   ;;  %v4207_v63 = vld [vmem:[%s5807_s1 + $0xc] ss:$16 sps:$4 sm:$0xff]  }
  0x71   :  { %1797 = vmatprep.subr.bf16.mxu1 %v4125_v0  ;;  %v4210_v0 = vld [vmem:[%s5807_s1 + $0x20c] ss:$16 sps:$4 sm:$0xff]  }
  0x73   :  { %1757 = vmatpush2.bf16.msra.mxu0 %v4120_v1  ;;  %v4205_v1 = vld [vmem:[%s5807_s1 + $0x8] ss:$16 sps:$4 sm:$0xff]  }
  0x74   :  { %1798 = vmatpush2.bf16.msra.mxu1 %v4123_v2  ;;  %1758 = vmatprep.subr.bf16.mxu0 %v4128_v4  ;;  %v4208_v2 = vld [vmem:[%s5807_s1 + $0x208] ss:$16 sps:$4 sm:$0xff]   ;;  %v4213_v4 = vld [vmem:[%s5807_s1 + $0x1ec] ss:$16 sps:$4 sm:$0xff]  }
  0x75   :  { %1799 = vmatprep.subr.bf16.mxu1 %v4131_v5  ;;  %v4216_v5 = vld [vmem:[%s5807_s1 + $0x3ec] ss:$16 sps:$4 sm:$0xff]  }
  0x77   :  { %1759 = vmatpush2.bf16.msra.mxu0 %v4126_v6  ;;  %v4211_v6 = vld [vmem:[%s5807_s1 + $0x1e8] ss:$16 sps:$4 sm:$0xff]  }
  0x78   :  { %1800 = vmatpush2.bf16.msra.mxu1 %v4129_v7  ;;  %1760 = vmatprep.subr.bf16.mxu0 %v4134_v8  ;;  %v4214_v7 = vld [vmem:[%s5807_s1 + $0x3e8] ss:$16 sps:$4 sm:$0xff]   ;;  %v4219_v8 = vld [vmem:[%s5807_s1 + $0x1cc] ss:$16 sps:$4 sm:$0xff]  }
  0x79   :  { %1801 = vmatprep.subr.bf16.mxu1 %v4137_v9  ;;  %v4222_v9 = vld [vmem:[%s5807_s1 + $0x3cc] ss:$16 sps:$4 sm:$0xff]  }
  0x7b   :  { %1761 = vmatpush2.bf16.msra.mxu0 %v4132_v10  ;;  %v4217_v10 = vld [vmem:[%s5807_s1 + $0x1c8] ss:$16 sps:$4 sm:$0xff]  }
  0x7c   :  { %1802 = vmatpush2.bf16.msra.mxu1 %v4135_v11  ;;  %1762 = vmatprep.subr.bf16.mxu0 %v4140_v12  ;;  %v4220_v11 = vld [vmem:[%s5807_s1 + $0x3c8] ss:$16 sps:$4 sm:$0xff]   ;;  %v4225_v12 = vld [vmem:[%s5807_s1 + $0x1ac] ss:$16 sps:$4 sm:$0xff]  }
  0x7d   :  { %1803 = vmatprep.subr.bf16.mxu1 %v4143_v13  ;;  %v4228_v13 = vld [vmem:[%s5807_s1 + $0x3ac] ss:$16 sps:$4 sm:$0xff]  }
  0x7f   :  { %1763 = vmatpush2.bf16.msra.mxu0 %v4138_v14  ;;  %v4223_v14 = vld [vmem:[%s5807_s1 + $0x1a8] ss:$16 sps:$4 sm:$0xff]  }
  0x80   :  { %1804 = vmatpush2.bf16.msra.mxu1 %v4141_v15  ;;  %1764 = vmatprep.subr.bf16.mxu0 %v4146_v18  ;;  %v4226_v15 = vld [vmem:[%s5807_s1 + $0x3a8] ss:$16 sps:$4 sm:$0xff]   ;;  %v4231_v18 = vld [vmem:[%s5807_s1 + $0x18c] ss:$16 sps:$4 sm:$0xff]  }
  0x81   :  { %1805 = vmatprep.subr.bf16.mxu1 %v4149_v19  ;;  %v4234_v19 = vld [vmem:[%s5807_s1 + $0x38c] ss:$16 sps:$4 sm:$0xff]  }
  0x83   :  { %1765 = vmatpush2.bf16.msra.mxu0 %v4144_v20  ;;  %v4229_v20 = vld [vmem:[%s5807_s1 + $0x188] ss:$16 sps:$4 sm:$0xff]  }
  0x84   :  { %1806 = vmatpush2.bf16.msra.mxu1 %v4147_v21  ;;  %1766 = vmatprep.subr.bf16.mxu0 %v4152_v22  ;;  %v4232_v21 = vld [vmem:[%s5807_s1 + $0x388] ss:$16 sps:$4 sm:$0xff]   ;;  %v4237_v22 = vld [vmem:[%s5807_s1 + $0x16c] ss:$16 sps:$4 sm:$0xff]  }
  0x85   :  { %1807 = vmatprep.subr.bf16.mxu1 %v4155_v23  ;;  %v4240_v23 = vld [vmem:[%s5807_s1 + $0x36c] ss:$16 sps:$4 sm:$0xff]  }
  0x87   :  { %1767 = vmatpush2.bf16.msra.mxu0 %v4150_v24  ;;  %v4235_v24 = vld [vmem:[%s5807_s1 + $0x168] ss:$16 sps:$4 sm:$0xff]  }
  0x88   :  { %1808 = vmatpush2.bf16.msra.mxu1 %v4153_v25  ;;  %1768 = vmatprep.subr.bf16.mxu0 %v4158_v26  ;;  %v4238_v25 = vld [vmem:[%s5807_s1 + $0x368] ss:$16 sps:$4 sm:$0xff]   ;;  %v4243_v26 = vld [vmem:[%s5807_s1 + $0x14c] ss:$16 sps:$4 sm:$0xff]  }
  0x89   :  { %1809 = vmatprep.subr.bf16.mxu1 %v4161_v27  ;;  %v4246_v27 = vld [vmem:[%s5807_s1 + $0x34c] ss:$16 sps:$4 sm:$0xff]  }
  0x8b   :  { %1769 = vmatpush2.bf16.msra.mxu0 %v4156_v28  ;;  %v4241_v28 = vld [vmem:[%s5807_s1 + $0x148] ss:$16 sps:$4 sm:$0xff]  }
  0x8c   :  { %1810 = vmatpush2.bf16.msra.mxu1 %v4159_v29  ;;  %1820 = vmatprep.subr.bf16.mxu0 %v4165_v30  ;;  %v4244_v29 = vld [vmem:[%s5807_s1 + $0x348] ss:$16 sps:$4 sm:$0xff]   ;;  %v4249_v30 = vld [vmem:[%s5807_s1 + $0x12c] ss:$16 sps:$4 sm:$0xff]  }
  0x8d   :  { %1861 = vmatprep.subr.bf16.mxu1 %v4168_v31  ;;  %v4252_v31 = vld [vmem:[%s5807_s1 + $0x32c] ss:$16 sps:$4 sm:$0xff]  }
  0x8e   :  { %1771 = vmatmul.mubr.bf16.vlgmr.msra.gmra.mxu0 %v5146_v32 }
  0x8f   :  { %1812 = vmatmul.mubr.bf16.vlgmr.msra.gmra.mxu1 %v5150_v33  ;;  %1821 = vmatpush1.bf16.msra.mxu0 %v4163_v34  ;;  %v4247_v34 = vld [vmem:[%s5807_s1 + $0x128] ss:$16 sps:$4 sm:$0xff]  }
  0x90   :  { %1862 = vmatpush1.bf16.msra.mxu1 %v4166_v35  ;;  %1822 = vmatprep.subr.bf16.mxu0 %v4171_v36  ;;  %v4250_v35 = vld [vmem:[%s5807_s1 + $0x328] ss:$16 sps:$4 sm:$0xff]   ;;  %v4255_v36 = vld [vmem:[%s5807_s1 + $0x10c] ss:$16 sps:$4 sm:$0xff]  }
  0x91   :  { %1863 = vmatprep.subr.bf16.mxu1 %v4174_v37  ;;  %1852 = vmatprep.mubr.bf16.mxu0 %v4876_v62  ;;  %v4186_v62 = vld [vmem:[%s5807_s1 + $0x28c] ss:$16 sps:$4 sm:$0xff]  }
  0x92   :  { %1893 = vmatprep.mubr.bf16.mxu1 %v4887_v3  ;;  %v4181_v3 = vld [vmem:[%s5807_s1 + $0x88] ss:$16 sps:$4 sm:$0xff]   ;;  %v4258_v37 = vld [vmem:[%s5807_s1 + $0x30c] ss:$16 sps:$4 sm:$0xff]  }
  0x93   :  { %1823 = vmatpush1.bf16.msra.mxu0 %v4169_v38  ;;  %v4253_v38 = vld [vmem:[%s5807_s1 + $0x108] ss:$16 sps:$4 sm:$0xff]  }
  0x94   :  { %1864 = vmatpush1.bf16.msra.mxu1 %v4172_v39  ;;  %1824 = vmatprep.subr.bf16.mxu0 %v4177_v40  ;;  %v4256_v39 = vld [vmem:[%s5807_s1 + $0x308] ss:$16 sps:$4 sm:$0xff]   ;;  %v4261_v40 = vld [vmem:[%s5807_s1 + $0x4ec] ss:$16 sps:$4 sm:$0xff]  }
  0x95   :  { %1865 = vmatprep.subr.bf16.mxu1 %v4180_v41  ;;  %v4264_v41 = vld [vmem:[%s5807_s1 + $0x6ec] ss:$16 sps:$4 sm:$0xff]  }
  0x97   :  { %1825 = vmatpush1.bf16.msra.mxu0 %v4175_v42  ;;  %v4259_v42 = vld [vmem:[%s5807_s1 + $0x4e8] ss:$16 sps:$4 sm:$0xff]  }
  0x98   :  { %1866 = vmatpush1.bf16.msra.mxu1 %v4178_v44  ;;  %1826 = vmatprep.subr.bf16.mxu0 %v4183_v45  ;;  %v4262_v44 = vld [vmem:[%s5807_s1 + $0x6e8] ss:$16 sps:$4 sm:$0xff]   ;;  %v4267_v45 = vld [vmem:[%s5807_s1 + $0x4cc] ss:$16 sps:$4 sm:$0xff]  }
  0x99   :  { %1867 = vmatprep.subr.bf16.mxu1 %v4186_v62  ;;  %v4270_v62 = vld [vmem:[%s5807_s1 + $0x6cc] ss:$16 sps:$4 sm:$0xff]  }
  0x9b   :  { %1827 = vmatpush1.bf16.msra.mxu0 %v4181_v3  ;;  %v4265_v3 = vld [vmem:[%s5807_s1 + $0x4c8] ss:$16 sps:$4 sm:$0xff]  }
  0x9c   :  { %1868 = vmatpush1.bf16.msra.mxu1 %v4184_v46  ;;  %1828 = vmatprep.subr.bf16.mxu0 %v4189_v47  ;;  %v4268_v46 = vld [vmem:[%s5807_s1 + $0x6c8] ss:$16 sps:$4 sm:$0xff]   ;;  %v4273_v47 = vld [vmem:[%s5807_s1 + $0x4ac] ss:$16 sps:$4 sm:$0xff]  }
  0x9d   :  { %1869 = vmatprep.subr.bf16.mxu1 %v4192_v48  ;;  %v4276_v48 = vld [vmem:[%s5807_s1 + $0x6ac] ss:$16 sps:$4 sm:$0xff]  }
  0x9f   :  { %1829 = vmatpush1.bf16.msra.mxu0 %v4187_v50  ;;  %v4271_v50 = vld [vmem:[%s5807_s1 + $0x4a8] ss:$16 sps:$4 sm:$0xff]  }
  0xa0   :  { %1870 = vmatpush1.bf16.msra.mxu1 %v4190_v51  ;;  %1830 = vmatprep.subr.bf16.mxu0 %v4195_v52  ;;  %v4282_v51 = vld [vmem:[%s5807_s1 + $0x68c] ss:$16 sps:$4 sm:$0xff]   ;;  %v4277_v52 = vld [vmem:[%s5807_s1 + $0x488] ss:$16 sps:$4 sm:$0xff]  }
  0xa1   :  { %1871 = vmatprep.subr.bf16.mxu1 %v4198_v54  ;;  %v4288_v54 = vld [vmem:[%s5807_s1 + $0x66c] ss:$16 sps:$4 sm:$0xff]  }
  0xa3   :  { %1831 = vmatpush1.bf16.msra.mxu0 %v4193_v55  ;;  %v4283_v55 = vld [vmem:[%s5807_s1 + $0x468] ss:$16 sps:$4 sm:$0xff]  }
  0xa4   :  { %1872 = vmatpush1.bf16.msra.mxu1 %v4196_v56  ;;  %1832 = vmatprep.subr.bf16.mxu0 %v4201_v58  ;;  %v4286_v56 = vld [vmem:[%s5807_s1 + $0x668] ss:$16 sps:$4 sm:$0xff]   ;;  %v4291_v58 = vld [vmem:[%s5807_s1 + $0x44c] ss:$16 sps:$4 sm:$0xff]  }
  0xa5   :  { %1873 = vmatprep.subr.bf16.mxu1 %v4204_v59  ;;  %v4294_v59 = vld [vmem:[%s5807_s1 + $0x64c] ss:$16 sps:$4 sm:$0xff]  }
  0xa7   :  { %1833 = vmatpush1.bf16.msra.mxu0 %v4199_v60  ;;  %v4289_v60 = vld [vmem:[%s5807_s1 + $0x448] ss:$16 sps:$4 sm:$0xff]  }
  0xa8   :  { %1874 = vmatpush1.bf16.msra.mxu1 %v4202_v61  ;;  %1834 = vmatprep.subr.bf16.mxu0 %v4207_v63  ;;  %v4292_v61 = vld [vmem:[%s5807_s1 + $0x648] ss:$16 sps:$4 sm:$0xff]   ;;  %v4297_v63 = vld [vmem:[%s5807_s1 + $0x42c] ss:$16 sps:$4 sm:$0xff]  }
  0xa9   :  { %1875 = vmatprep.subr.bf16.mxu1 %v4210_v0  ;;  %v4300_v0 = vld [vmem:[%s5807_s1 + $0x62c] ss:$16 sps:$4 sm:$0xff]  }
  0xab   :  { %1835 = vmatpush1.bf16.msra.mxu0 %v4205_v1  ;;  %v4295_v1 = vld [vmem:[%s5807_s1 + $0x428] ss:$16 sps:$4 sm:$0xff]  }
  0xac   :  { %1876 = vmatpush1.bf16.msra.mxu1 %v4208_v2  ;;  %1836 = vmatprep.subr.bf16.mxu0 %v4213_v4  ;;  %v4298_v2 = vld [vmem:[%s5807_s1 + $0x628] ss:$16 sps:$4 sm:$0xff]   ;;  %v4303_v4 = vld [vmem:[%s5807_s1 + $0x40c] ss:$16 sps:$4 sm:$0xff]  }
  0xad   :  { %1877 = vmatprep.subr.bf16.mxu1 %v4216_v5  ;;  %v4306_v5 = vld [vmem:[%s5807_s1 + $0x60c] ss:$16 sps:$4 sm:$0xff]  }
  0xaf   :  { %1837 = vmatpush2.bf16.msra.mxu0 %v4211_v6  ;;  %v4301_v6 = vld [vmem:[%s5807_s1 + $0x408] ss:$16 sps:$4 sm:$0xff]  }
  0xb0   :  { %1878 = vmatpush2.bf16.msra.mxu1 %v4214_v7  ;;  %1838 = vmatprep.subr.bf16.mxu0 %v4219_v8  ;;  %v4304_v7 = vld [vmem:[%s5807_s1 + $0x608] ss:$16 sps:$4 sm:$0xff]   ;;  %v4309_v8 = vld [vmem:[%s5807_s1 + $0x5ec] ss:$16 sps:$4 sm:$0xff]  }
  0xb1   :  { %1879 = vmatprep.subr.bf16.mxu1 %v4222_v9  ;;  %v4312_v9 = vld [vmem:[%s5807_s1 + $0x7ec] ss:$16 sps:$4 sm:$0xff]  }
  0xb3   :  { %1839 = vmatpush2.bf16.msra.mxu0 %v4217_v10  ;;  %v4307_v10 = vld [vmem:[%s5807_s1 + $0x5e8] ss:$16 sps:$4 sm:$0xff]  }
  0xb4   :  { %1880 = vmatpush2.bf16.msra.mxu1 %v4220_v11  ;;  %1840 = vmatprep.subr.bf16.mxu0 %v4225_v12  ;;  %v4310_v11 = vld [vmem:[%s5807_s1 + $0x7e8] ss:$16 sps:$4 sm:$0xff]   ;;  %v4315_v12 = vld [vmem:[%s5807_s1 + $0x5cc] ss:$16 sps:$4 sm:$0xff]  }
  0xb5   :  { %1881 = vmatprep.subr.bf16.mxu1 %v4228_v13  ;;  %v4318_v13 = vld [vmem:[%s5807_s1 + $0x7cc] ss:$16 sps:$4 sm:$0xff]  }
  0xb7   :  { %1841 = vmatpush2.bf16.msra.mxu0 %v4223_v14  ;;  %v4313_v14 = vld [vmem:[%s5807_s1 + $0x5c8] ss:$16 sps:$4 sm:$0xff]  }
  0xb8   :  { %1882 = vmatpush2.bf16.msra.mxu1 %v4226_v15  ;;  %1842 = vmatprep.subr.bf16.mxu0 %v4231_v18  ;;  %v4316_v15 = vld [vmem:[%s5807_s1 + $0x7c8] ss:$16 sps:$4 sm:$0xff]   ;;  %v4321_v18 = vld [vmem:[%s5807_s1 + $0x5ac] ss:$16 sps:$4 sm:$0xff]  }
  0xb9   :  { %1883 = vmatprep.subr.bf16.mxu1 %v4234_v19  ;;  %v4324_v19 = vld [vmem:[%s5807_s1 + $0x7ac] ss:$16 sps:$4 sm:$0xff]  }
  0xbb   :  { %1843 = vmatpush2.bf16.msra.mxu0 %v4229_v20  ;;  %v4319_v20 = vld [vmem:[%s5807_s1 + $0x5a8] ss:$16 sps:$4 sm:$0xff]  }
  0xbc   :  { %1884 = vmatpush2.bf16.msra.mxu1 %v4232_v21  ;;  %1844 = vmatprep.subr.bf16.mxu0 %v4237_v22  ;;  %v4322_v21 = vld [vmem:[%s5807_s1 + $0x7a8] ss:$16 sps:$4 sm:$0xff]   ;;  %v4327_v22 = vld [vmem:[%s5807_s1 + $0x58c] ss:$16 sps:$4 sm:$0xff]  }
  0xbd   :  { %1885 = vmatprep.subr.bf16.mxu1 %v4240_v23  ;;  %v4330_v23 = vld [vmem:[%s5807_s1 + $0x78c] ss:$16 sps:$4 sm:$0xff]  }
  0xbf   :  { %1845 = vmatpush2.bf16.msra.mxu0 %v4235_v24  ;;  %v4325_v24 = vld [vmem:[%s5807_s1 + $0x588] ss:$16 sps:$4 sm:$0xff]  }
  0xc0   :  { %1886 = vmatpush2.bf16.msra.mxu1 %v4238_v25  ;;  %1846 = vmatprep.subr.bf16.mxu0 %v4243_v26  ;;  %v4328_v25 = vld [vmem:[%s5807_s1 + $0x788] ss:$16 sps:$4 sm:$0xff]   ;;  %v4333_v26 = vld [vmem:[%s5807_s1 + $0x56c] ss:$16 sps:$4 sm:$0xff]  }
  0xc1   :  { %1887 = vmatprep.subr.bf16.mxu1 %v4246_v27  ;;  %v4336_v27 = vld [vmem:[%s5807_s1 + $0x76c] ss:$16 sps:$4 sm:$0xff]  }
  0xc3   :  { %1847 = vmatpush2.bf16.msra.mxu0 %v4241_v28  ;;  %v4331_v28 = vld [vmem:[%s5807_s1 + $0x568] ss:$16 sps:$4 sm:$0xff]  }
  0xc4   :  { %1888 = vmatpush2.bf16.msra.mxu1 %v4244_v29  ;;  %1848 = vmatprep.subr.bf16.mxu0 %v4249_v30  ;;  %v4334_v29 = vld [vmem:[%s5807_s1 + $0x768] ss:$16 sps:$4 sm:$0xff]   ;;  %v4339_v30 = vld [vmem:[%s5807_s1 + $0x54c] ss:$16 sps:$4 sm:$0xff]  }
  0xc5   :  { %1889 = vmatprep.subr.bf16.mxu1 %v4252_v31  ;;  %v4342_v31 = vld [vmem:[%s5807_s1 + $0x74c] ss:$16 sps:$4 sm:$0xff]  }
  0xc7   :  { %1849 = vmatpush2.bf16.msra.mxu0 %v4247_v34  ;;  %v4337_v34 = vld [vmem:[%s5807_s1 + $0x548] ss:$16 sps:$4 sm:$0xff]  }
  0xc8   :  { %1890 = vmatpush2.bf16.msra.mxu1 %v4250_v35  ;;  %1850 = vmatprep.subr.bf16.mxu0 %v4255_v36  ;;  %v4340_v35 = vld [vmem:[%s5807_s1 + $0x748] ss:$16 sps:$4 sm:$0xff]   ;;  %v4345_v36 = vld [vmem:[%s5807_s1 + $0x52c] ss:$16 sps:$4 sm:$0xff]  }
  0xc9   :  { %1891 = vmatprep.subr.bf16.mxu1 %v4258_v37  ;;  %v4348_v37 = vld [vmem:[%s5807_s1 + $0x72c] ss:$16 sps:$4 sm:$0xff]  }
  0xcb   :  { %1851 = vmatpush2.bf16.msra.mxu0 %v4253_v38  ;;  %v4343_v38 = vld [vmem:[%s5807_s1 + $0x528] ss:$16 sps:$4 sm:$0xff]  }
  0xcc   :  { %1892 = vmatpush2.bf16.msra.mxu1 %v4256_v39  ;;  %1902 = vmatprep.subr.bf16.mxu0 %v4261_v40  ;;  %v4346_v39 = vld [vmem:[%s5807_s1 + $0x728] ss:$16 sps:$4 sm:$0xff]   ;;  %v4351_v40 = vld [vmem:[%s5807_s1 + $0x50c] ss:$16 sps:$4 sm:$0xff]  }
  0xcd   :  { %1943 = vmatprep.subr.bf16.mxu1 %v4264_v41  ;;  %v4354_v41 = vld [vmem:[%s5807_s1 + $0x70c] ss:$16 sps:$4 sm:$0xff]  }
  0xce   :  { %1853 = vmatmul.mubr.bf16.vlgmr.msra.gmra.mxu0 %v4927_v16  ;;  %v4274_v16 = vld [vmem:[%s5807_s1 + $0x6a8] ss:$16 sps:$4 sm:$0xff]  }
  0xcf   :  { %1894 = vmatmul.mubr.bf16.vlgmr.msra.gmra.mxu1 %v4929_v17  ;;  %1903 = vmatpush1.bf16.msra.mxu0 %v4259_v42  ;;  %v4279_v17 = vld [vmem:[%s5807_s1 + $0x48c] ss:$16 sps:$4 sm:$0xff]   ;;  %v4349_v42 = vld [vmem:[%s5807_s1 + $0x508] ss:$16 sps:$4 sm:$0xff]  }
  0xd0   :  { %1944 = vmatpush1.bf16.msra.mxu1 %v4262_v44  ;;  %1904 = vmatprep.subr.bf16.mxu0 %v4267_v45  ;;  %v4352_v44 = vld [vmem:[%s5807_s1 + $0x708] ss:$16 sps:$4 sm:$0xff]  }
  0xd1   :  { %1945 = vmatprep.subr.bf16.mxu1 %v4270_v62  ;;  %1934 = vmatprep.mubr.bf16.mxu0 %v5028_v53  ;;  %v4280_v53 = vld [vmem:[%s5807_s1 + $0x688] ss:$16 sps:$4 sm:$0xff]   ;;  %v4355_v62 = vld [vmem:[#allocation3 + $0xe0] ss:$16 sps:$4 sm:$0xff]  }
  0xd2   :  { %1975 = vmatprep.mubr.bf16.mxu1 %v5038_v57  ;;  %v4285_v57 = vld [vmem:[%s5807_s1 + $0x46c] ss:$16 sps:$4 sm:$0xff]   ;;  %v4357_v45 = vld [vmem:[#allocation3 + $0xe4] ss:$16 sps:$4 sm:$0xff]  }
  0xd3   :  { %1905 = vmatpush1.bf16.msra.mxu0 %v4265_v3  ;;  %v4360_v3 = vld [vmem:[#allocation3 + $0xc4] ss:$16 sps:$4 sm:$0xff]  }
  0xd4   :  { %1946 = vmatpush1.bf16.msra.mxu1 %v4268_v46  ;;  %1906 = vmatprep.subr.bf16.mxu0 %v4273_v47 }
  0xd5   :  { %1947 = vmatprep.subr.bf16.mxu1 %v4276_v48  ;;  %v4358_v48 = vld [vmem:[#allocation3 + $0xc0] ss:$16 sps:$4 sm:$0xff]  }
  0xd7   :  { %1907 = vmatpush1.bf16.msra.mxu0 %v4271_v50 }
  0xd8   :  { %1948 = vmatpush1.bf16.msra.mxu1 %v4274_v16  ;;  %1908 = vmatprep.subr.bf16.mxu0 %v4279_v17  ;;  %v4363_v17 = vld [vmem:[#allocation3 + $0xa4] ss:$16 sps:$4 sm:$0xff]  }
  0xd9   :  { %1949 = vmatprep.subr.bf16.mxu1 %v4282_v51 }
  0xdb   :  { %1909 = vmatpush1.bf16.msra.mxu0 %v4277_v52 }
  0xdc   :  { %1950 = vmatpush1.bf16.msra.mxu1 %v4280_v53  ;;  %1910 = vmatprep.subr.bf16.mxu0 %v4285_v57  ;;  %v4361_v53 = vld [vmem:[#allocation3 + $0xa0] ss:$16 sps:$4 sm:$0xff]  }
  0xdd   :  { %1951 = vmatprep.subr.bf16.mxu1 %v4288_v54 }
  0xdf   :  { %1911 = vmatpush1.bf16.msra.mxu0 %v4283_v55  ;;  %v4366_v55 = vld [vmem:[#allocation3 + $0x84] ss:$16 sps:$4 sm:$0xff]  }
  0xe0   :  { %1952 = vmatpush1.bf16.msra.mxu1 %v4286_v56  ;;  %1912 = vmatprep.subr.bf16.mxu0 %v4291_v58  ;;  %v4451_v56 = vld [vmem:[#allocation3 + $0x2e0] ss:$16 sps:$4 sm:$0xff]   ;;  %v4369_v58 = vld [vmem:[#allocation3 + $0x64] ss:$16 sps:$4 sm:$0xff]  }
  0xe1   :  { %1953 = vmatprep.subr.bf16.mxu1 %v4294_v59  ;;  %v4454_v59 = vld [vmem:[#allocation3 + $0x2c0] ss:$16 sps:$4 sm:$0xff]  }
  0xe3   :  { %1913 = vmatpush1.bf16.msra.mxu0 %v4289_v60  ;;  %v4456_v60 = vld [vmem:[#allocation3 + $0x2c4] ss:$16 sps:$4 sm:$0xff]  }
  0xe4   :  { %1954 = vmatpush1.bf16.msra.mxu1 %v4292_v61  ;;  %1914 = vmatprep.subr.bf16.mxu0 %v4297_v63  ;;  %v4367_v61 = vld [vmem:[#allocation3 + $0x60] ss:$16 sps:$4 sm:$0xff]   ;;  %v4459_v63 = vld [vmem:[#allocation3 + $0x2a4] ss:$16 sps:$4 sm:$0xff]  }
  0xe5   :  { %1955 = vmatprep.subr.bf16.mxu1 %v4300_v0  ;;  %v4372_v0 = vld [vmem:[#allocation3 + $0x44] ss:$16 sps:$4 sm:$0xff]  }
  0xe7   :  { %1915 = vmatpush1.bf16.msra.mxu0 %v4295_v1  ;;  %v4457_v1 = vld [vmem:[#allocation3 + $0x2a0] ss:$16 sps:$4 sm:$0xff]  }
  0xe8   :  { %1956 = vmatpush1.bf16.msra.mxu1 %v4298_v2  ;;  %1916 = vmatprep.subr.bf16.mxu0 %v4303_v4  ;;  %v4370_v2 = vld [vmem:[#allocation3 + $0x40] ss:$16 sps:$4 sm:$0xff]   ;;  %v4462_v4 = vld [vmem:[#allocation3 + $0x284] ss:$16 sps:$4 sm:$0xff]  }
  0xe9   :  { %1957 = vmatprep.subr.bf16.mxu1 %v4306_v5  ;;  %v4375_v5 = vld [vmem:[#allocation3 + $0x24] ss:$16 sps:$4 sm:$0xff]  }
  0xeb   :  { %1917 = vmatpush1.bf16.msra.mxu0 %v4301_v6  ;;  %v4460_v6 = vld [vmem:[#allocation3 + $0x280] ss:$16 sps:$4 sm:$0xff]  }
  0xec   :  { %1958 = vmatpush1.bf16.msra.mxu1 %v4304_v7  ;;  %1918 = vmatprep.subr.bf16.mxu0 %v4309_v8  ;;  %v4373_v7 = vld [vmem:[#allocation3 + $0x20] ss:$16 sps:$4 sm:$0xff]   ;;  %v4465_v8 = vld [vmem:[#allocation3 + $0x264] ss:$16 sps:$4 sm:$0xff]  }
  0xed   :  { %1959 = vmatprep.subr.bf16.mxu1 %v4312_v9  ;;  %v4378_v9 = vld [vmem:[#allocation3 + $0x4] ss:$16 sps:$4 sm:$0xff]  }
  0xef   :  { %1919 = vmatpush2.bf16.msra.mxu0 %v4307_v10  ;;  %v4463_v10 = vld [vmem:[#allocation3 + $0x260] ss:$16 sps:$4 sm:$0xff]  }
  0xf0   :  { %1960 = vmatpush2.bf16.msra.mxu1 %v4310_v11  ;;  %1920 = vmatprep.subr.bf16.mxu0 %v4315_v12  ;;  %v4376_v11 = vld [vmem:[#allocation3] ss:$16 sps:$4 sm:$0xff]   ;;  %v4468_v12 = vld [vmem:[#allocation3 + $0x244] ss:$16 sps:$4 sm:$0xff]  }
  0xf1   :  { %1961 = vmatprep.subr.bf16.mxu1 %v4318_v13  ;;  %v4381_v13 = vld [vmem:[#allocation3 + $0x1e4] ss:$16 sps:$4 sm:$0xff]  }
  0xf3   :  { %1921 = vmatpush2.bf16.msra.mxu0 %v4313_v14  ;;  %v4466_v14 = vld [vmem:[#allocation3 + $0x240] ss:$16 sps:$4 sm:$0xff]  }
  0xf4   :  { %1962 = vmatpush2.bf16.msra.mxu1 %v4316_v15  ;;  %1922 = vmatprep.subr.bf16.mxu0 %v4321_v18  ;;  %v4379_v15 = vld [vmem:[#allocation3 + $0x1e0] ss:$16 sps:$4 sm:$0xff]   ;;  %v4471_v18 = vld [vmem:[#allocation3 + $0x224] ss:$16 sps:$4 sm:$0xff]  }
  0xf5   :  { %1963 = vmatprep.subr.bf16.mxu1 %v4324_v19  ;;  %v4384_v19 = vld [vmem:[#allocation3 + $0x1c4] ss:$16 sps:$4 sm:$0xff]  }
  0xf7   :  { %1923 = vmatpush2.bf16.msra.mxu0 %v4319_v20  ;;  %v4469_v20 = vld [vmem:[#allocation3 + $0x220] ss:$16 sps:$4 sm:$0xff]  }
  0xf8   :  { %1964 = vmatpush2.bf16.msra.mxu1 %v4322_v21  ;;  %1924 = vmatprep.subr.bf16.mxu0 %v4327_v22  ;;  %v4382_v21 = vld [vmem:[#allocation3 + $0x1c0] ss:$16 sps:$4 sm:$0xff]   ;;  %v4474_v22 = vld [vmem:[#allocation3 + $0x204] ss:$16 sps:$4 sm:$0xff]  }
  0xf9   :  { %1965 = vmatprep.subr.bf16.mxu1 %v4330_v23  ;;  %v4387_v23 = vld [vmem:[#allocation3 + $0x1a4] ss:$16 sps:$4 sm:$0xff]  }
  0xfb   :  { %1925 = vmatpush2.bf16.msra.mxu0 %v4325_v24  ;;  %v4472_v24 = vld [vmem:[#allocation3 + $0x200] ss:$16 sps:$4 sm:$0xff]  }
  0xfc   :  { %1966 = vmatpush2.bf16.msra.mxu1 %v4328_v25  ;;  %1926 = vmatprep.subr.bf16.mxu0 %v4333_v26  ;;  %v4385_v25 = vld [vmem:[#allocation3 + $0x1a0] ss:$16 sps:$4 sm:$0xff]   ;;  %v4477_v26 = vld [vmem:[#allocation3 + $0x3e4] ss:$16 sps:$4 sm:$0xff]  }
  0xfd   :  { %1967 = vmatprep.subr.bf16.mxu1 %v4336_v27  ;;  %v4390_v27 = vld [vmem:[#allocation3 + $0x184] ss:$16 sps:$4 sm:$0xff]  }
  0xff   :  { %1927 = vmatpush2.bf16.msra.mxu0 %v4331_v28  ;;  %v4475_v28 = vld [vmem:[#allocation3 + $0x3e0] ss:$16 sps:$4 sm:$0xff]  }
 0x100   :  { %1968 = vmatpush2.bf16.msra.mxu1 %v4334_v29  ;;  %1928 = vmatprep.subr.bf16.mxu0 %v4339_v30  ;;  %v4388_v29 = vld [vmem:[#allocation3 + $0x180] ss:$16 sps:$4 sm:$0xff]   ;;  %v4480_v30 = vld [vmem:[#allocation3 + $0x3c4] ss:$16 sps:$4 sm:$0xff]  }
 0x101   :  { %1969 = vmatprep.subr.bf16.mxu1 %v4342_v31  ;;  %v4393_v31 = vld [vmem:[#allocation3 + $0x164] ss:$16 sps:$4 sm:$0xff]  }
 0x103   :  { %1929 = vmatpush2.bf16.msra.mxu0 %v4337_v34  ;;  %v4478_v34 = vld [vmem:[#allocation3 + $0x3c0] ss:$16 sps:$4 sm:$0xff]  }
 0x104   :  { %1970 = vmatpush2.bf16.msra.mxu1 %v4340_v35  ;;  %1930 = vmatprep.subr.bf16.mxu0 %v4345_v36  ;;  %v4391_v35 = vld [vmem:[#allocation3 + $0x160] ss:$16 sps:$4 sm:$0xff]   ;;  %v4483_v36 = vld [vmem:[#allocation3 + $0x3a4] ss:$16 sps:$4 sm:$0xff]  }
 0x105   :  { %1971 = vmatprep.subr.bf16.mxu1 %v4348_v37  ;;  %v4396_v37 = vld [vmem:[#allocation3 + $0x144] ss:$16 sps:$4 sm:$0xff]  }
 0x107   :  { %1931 = vmatpush2.bf16.msra.mxu0 %v4343_v38  ;;  %v4481_v38 = vld [vmem:[#allocation3 + $0x3a0] ss:$16 sps:$4 sm:$0xff]  }
 0x108   :  { %1972 = vmatpush2.bf16.msra.mxu1 %v4346_v39  ;;  %1932 = vmatprep.subr.bf16.mxu0 %v4351_v40  ;;  %v4394_v39 = vld [vmem:[#allocation3 + $0x140] ss:$16 sps:$4 sm:$0xff]   ;;  %v4486_v40 = vld [vmem:[#allocation3 + $0x384] ss:$16 sps:$4 sm:$0xff]  }
 0x109   :  { %1973 = vmatprep.subr.bf16.mxu1 %v4354_v41  ;;  %v4399_v41 = vld [vmem:[#allocation3 + $0x124] ss:$16 sps:$4 sm:$0xff]  }
 0x10b   :  { %1933 = vmatpush2.bf16.msra.mxu0 %v4349_v42  ;;  %v5549_v42 = vsub.s32 0, %v4830_v43 }
 0x10c   :  { %1974 = vmatpush2.bf16.msra.mxu1 %v4352_v44  ;;  %2782 = vmatprep.subr.bf16.mxu0 %v4357_v45  ;;  %v5554_v44 = vld [vmem:[%s5808_s2] sm:$0xf]  ;;  %v4484_v45 = vld [vmem:[#allocation3 + $0x380] ss:$16 sps:$4 sm:$0xff]  }
 0x10e   :  { %v5538_v46 = vpop.f32.mrf.mxu0  ;;  %1935 = vmatmul.mubr.bf16.vlgmr.msra.gmra.mxu0 %v5146_v32  ;;  %v4364_v32 = vld [vmem:[#allocation3 + $0x80] ss:$16 sps:$4 sm:$0xff]  }
 0x10f   :  { %v5540_v47 = vpop.f32.mrf.mxu1  ;;  %1976 = vmatmul.mubr.bf16.vlgmr.msra.gmra.mxu1 %v5150_v33  ;;  %2783 = vmatpush1.bf16.msra.mxu0 %v4355_v62  ;;  %v4453_v33 = vld [vmem:[#allocation3 + $0x2e4] ss:$16 sps:$4 sm:$0xff]   ;;  %v5557_v62 = vsub.s32 1, %v4830_v43 }
 0x110   :  { %v5544_v50 = vpop.f32.mrf.mxu0  ;;  %2784 = vmatprep.subr.bf16.mxu0 %v4360_v3  ;;  %2823 = vmatprep.subr.bf16.mxu1 %v4453_v33  ;;  %v4397_v3 = vld [vmem:[#allocation3 + $0x120] ss:$16 sps:$4 sm:$0xff]  }
 0x111   :  { %v5546_v16 = vpop.f32.mrf.mxu1  ;;  %2824 = vmatpush1.bf16.msra.mxu1 %v4451_v56  ;;  %v4490_v56 = vld [vmem:[#allocation3 + $0x340] ss:$16 sps:$4 sm:$0xff]  }
 0x112   :  { %v1694_v51 = vpop.f32.mrf.mxu0  ;;  %2825 = vmatprep.subr.bf16.mxu1 %v4456_v60 }
 0x113   :  { %v1735_v52 = vpop.f32.mrf.mxu1  ;;  %2785 = vmatpush1.bf16.msra.mxu0 %v4358_v48  ;;  %v4489_v48 = vld [vmem:[#allocation3 + $0x364] ss:$16 sps:$4 sm:$0xff]   ;;  %v359_v51 = vrot.slane %v5554_v44, %v5549_v42 }
 0x114   :  { %v1695_v57 = vpop.f32.mrf.mxu0  ;;  %2786 = vmatprep.subr.bf16.mxu0 %v4363_v17  ;;  %v4402_v17 = vld [vmem:[#allocation3 + $0x104] ss:$16 sps:$4 sm:$0xff]   ;;  %v4487_v52 = vld [vmem:[#allocation3 + $0x360] ss:$16 sps:$4 sm:$0xff]  }
 0x115   :  { %v1736_v54 = vpop.f32.mrf.mxu1  ;;  %2826 = vmatpush1.bf16.msra.mxu1 %v4454_v59  ;;  %v4400_v57 = vld [vmem:[#allocation3 + $0x100] ss:$16 sps:$4 sm:$0xff]  }
 0x116   :  { %2827 = vmatprep.subr.bf16.mxu1 %v4459_v63  ;;  %v4492_v54 = vld [vmem:[#allocation3 + $0x344] ss:$16 sps:$4 sm:$0xff]  }
 0x117   :  { %2787 = vmatpush1.bf16.msra.mxu0 %v4361_v53  ;;  %v363_v53 = vrot.slane %v5554_v44, %v5557_v62 }
 0x118   :  { %2788 = vmatprep.subr.bf16.mxu0 %v4366_v55  ;;  %v4405_v55 = vld [vmem:[#allocation3 + $0xec] ss:$16 sps:$4 sm:$0xff]  }
 0x119   :  { %2828 = vmatpush1.bf16.msra.mxu1 %v4457_v1  ;;  %v1693_v33 = vadd.f32 %v5544_v50, %v363_v53 }
 0x11a   :  { %2829 = vmatprep.subr.bf16.mxu1 %v4462_v4 }
 0x11b   :  { %2789 = vmatpush1.bf16.msra.mxu0 %v4364_v32  ;;  %v1691_v32 = vadd.f32 %v5538_v46, %v359_v51  ;;  %v4447_v51 = vld [vmem:[#allocation3 + $0x12c] ss:$16 sps:$4 sm:$0xff]  }
 0x11c   :  { %2790 = vmatprep.subr.bf16.mxu0 %v4369_v58 }
 0x11d   :  { %2830 = vmatpush1.bf16.msra.mxu1 %v4460_v6  ;;  %v1732_v58 = vadd.f32 %v5540_v47, %v1691_v32  ;;  %v4450_v32 = vld [vmem:[#allocation3 + $0x10c] ss:$16 sps:$4 sm:$0xff]  }
 0x11e   :  { %2831 = vmatprep.subr.bf16.mxu1 %v4465_v8 }
 0x11f   :  { %2791 = vmatpush1.bf16.msra.mxu0 %v4367_v61  ;;  %v1734_v61 = vadd.f32 %v5546_v16, %v1693_v33 }
 0x120   :  { %2792 = vmatprep.subr.bf16.mxu0 %v4372_v0 }
 0x121   :  { %2832 = vmatpush1.bf16.msra.mxu1 %v4463_v10  ;;  %v4498_v10 = vld [vmem:[#allocation3 + $0x304] ss:$16 sps:$4 sm:$0xff]  }
 0x122   :  { %2833 = vmatprep.subr.bf16.mxu1 %v4468_v12  ;;  %v4496_v12 = vld [vmem:[#allocation3 + $0x300] ss:$16 sps:$4 sm:$0xff]  }
 0x123   :  { %2793 = vmatpush1.bf16.msra.mxu0 %v4370_v2  ;;  %v4495_v2 = vld [vmem:[#allocation3 + $0x324] ss:$16 sps:$4 sm:$0xff]  }
 0x124   :  { %2794 = vmatprep.subr.bf16.mxu0 %v4375_v5  ;;  %v4493_v5 = vld [vmem:[#allocation3 + $0x320] ss:$16 sps:$4 sm:$0xff]  }
 0x125   :  { %2834 = vmatpush1.bf16.msra.mxu1 %v4466_v14 }
 0x126   :  { %2835 = vmatprep.subr.bf16.mxu1 %v4471_v18  ;;  %v4501_v18 = vld [vmem:[#allocation3 + $0x2ec] ss:$16 sps:$4 sm:$0xff]  }
 0x127   :  { %2795 = vmatpush1.bf16.msra.mxu0 %v4373_v7 }
 0x128   :  { %2796 = vmatprep.subr.bf16.mxu0 %v4378_v9 }
 0x129   :  { %2836 = vmatpush1.bf16.msra.mxu1 %v4469_v20  ;;  %v4411_v20 = vld [vmem:[#allocation3 + $0xac] ss:$16 sps:$4 sm:$0xff]  }
 0x12a   :  { %2837 = vmatprep.subr.bf16.mxu1 %v4474_v22  ;;  %v4414_v22 = vld [vmem:[#allocation3 + $0x8c] ss:$16 sps:$4 sm:$0xff]  }
 0x12b   :  { %2797 = vmatpush1.bf16.msra.mxu0 %v4376_v11 }
 0x12c   :  { %2798 = vmatprep.subr.bf16.mxu0 %v4381_v13  ;;  %v4403_v13 = vld [vmem:[#allocation3 + $0xe8] ss:$16 sps:$4 sm:$0xff]  }
 0x12d   :  { %2838 = vmatpush1.bf16.msra.mxu1 %v4472_v24  ;;  %v4417_v24 = vld [vmem:[#allocation3 + $0x6c] ss:$16 sps:$4 sm:$0xff]  }
 0x12e   :  { %2839 = vmatprep.subr.bf16.mxu1 %v4477_v26  ;;  %v4420_v26 = vld [vmem:[#allocation3 + $0x4c] ss:$16 sps:$4 sm:$0xff]  }
 0x12f   :  { %2799 = vmatpush2.bf16.msra.mxu0 %v4379_v15  ;;  %v4408_v15 = vld [vmem:[#allocation3 + $0xcc] ss:$16 sps:$4 sm:$0xff]  }
 0x130   :  { %2800 = vmatprep.subr.bf16.mxu0 %v4384_v19  ;;  %v4406_v19 = vld [vmem:[#allocation3 + $0xc8] ss:$16 sps:$4 sm:$0xff]  }
 0x131   :  { %2840 = vmatpush2.bf16.msra.mxu1 %v4475_v28  ;;  %v4423_v28 = vld [vmem:[#allocation3 + $0x2c] ss:$16 sps:$4 sm:$0xff]  }
 0x132   :  { %2841 = vmatprep.subr.bf16.mxu1 %v4480_v30  ;;  %v4426_v30 = vld [vmem:[#allocation3 + $0xc] ss:$16 sps:$4 sm:$0xff]  }
 0x133   :  { %2801 = vmatpush2.bf16.msra.mxu0 %v4382_v21  ;;  %v4409_v21 = vld [vmem:[#allocation3 + $0xa8] ss:$16 sps:$4 sm:$0xff]  }
 0x134   :  { %2802 = vmatprep.subr.bf16.mxu0 %v4387_v23  ;;  %v4412_v23 = vld [vmem:[#allocation3 + $0x88] ss:$16 sps:$4 sm:$0xff]  }
 0x135   :  { %2842 = vmatpush2.bf16.msra.mxu1 %v4478_v34  ;;  %v4429_v34 = vld [vmem:[#allocation3 + $0x1ec] ss:$16 sps:$4 sm:$0xff]  }
 0x136   :  { %2843 = vmatprep.subr.bf16.mxu1 %v4483_v36  ;;  %v4432_v36 = vld [vmem:[#allocation3 + $0x1cc] ss:$16 sps:$4 sm:$0xff]  }
 0x137   :  { %2803 = vmatpush2.bf16.msra.mxu0 %v4385_v25  ;;  %v4415_v25 = vld [vmem:[#allocation3 + $0x68] ss:$16 sps:$4 sm:$0xff]  }
 0x138   :  { %2804 = vmatprep.subr.bf16.mxu0 %v4390_v27  ;;  %v4418_v27 = vld [vmem:[#allocation3 + $0x48] ss:$16 sps:$4 sm:$0xff]  }
 0x139   :  { %2844 = vmatpush2.bf16.msra.mxu1 %v4481_v38  ;;  %v4435_v38 = vld [vmem:[#allocation3 + $0x1ac] ss:$16 sps:$4 sm:$0xff]  }
 0x13a   :  { %2845 = vmatprep.subr.bf16.mxu1 %v4486_v40  ;;  %v4438_v40 = vld [vmem:[#allocation3 + $0x18c] ss:$16 sps:$4 sm:$0xff]  }
 0x13b   :  { %2805 = vmatpush2.bf16.msra.mxu0 %v4388_v29  ;;  %v4421_v29 = vld [vmem:[#allocation3 + $0x28] ss:$16 sps:$4 sm:$0xff]  }
 0x13c   :  { %2806 = vmatprep.subr.bf16.mxu0 %v4393_v31  ;;  %v4424_v31 = vld [vmem:[#allocation3 + $0x8] ss:$16 sps:$4 sm:$0xff]  }
 0x13d   :  { %2846 = vmatpush2.bf16.msra.mxu1 %v4484_v45  ;;  %v4441_v45 = vld [vmem:[#allocation3 + $0x16c] ss:$16 sps:$4 sm:$0xff]  }
 0x13e   :  { %2847 = vmatprep.subr.bf16.mxu1 %v4489_v48  ;;  %v4444_v48 = vld [vmem:[#allocation3 + $0x14c] ss:$16 sps:$4 sm:$0xff]  }
 0x13f   :  { %2807 = vmatpush2.bf16.msra.mxu0 %v4391_v35  ;;  %v4427_v35 = vld [vmem:[#allocation3 + $0x1e8] ss:$16 sps:$4 sm:$0xff]  }
 0x140   :  { %2808 = vmatprep.subr.bf16.mxu0 %v4396_v37  ;;  %v4430_v37 = vld [vmem:[#allocation3 + $0x1c8] ss:$16 sps:$4 sm:$0xff]  }
 0x141   :  { %2848 = vmatpush2.bf16.msra.mxu1 %v4487_v52 }
 0x142   :  { %2849 = vmatprep.subr.bf16.mxu1 %v4492_v54 }
 0x143   :  { %2809 = vmatpush2.bf16.msra.mxu0 %v4394_v39  ;;  %v4433_v39 = vld [vmem:[#allocation3 + $0x1a8] ss:$16 sps:$4 sm:$0xff]  }
 0x144   :  { %2810 = vmatprep.subr.bf16.mxu0 %v4399_v41  ;;  %v4436_v41 = vld [vmem:[#allocation3 + $0x188] ss:$16 sps:$4 sm:$0xff]  }
 0x145   :  { %2850 = vmatpush2.bf16.msra.mxu1 %v4490_v56 }
 0x146   :  { %2851 = vmatprep.subr.bf16.mxu1 %v4495_v2 }
 0x147   :  { %2811 = vmatpush2.bf16.msra.mxu0 %v4397_v3  ;;  %v4439_v3 = vld [vmem:[#allocation3 + $0x168] ss:$16 sps:$4 sm:$0xff]  }
 0x148   :  { %2812 = vmatprep.subr.bf16.mxu0 %v4402_v17  ;;  %v4442_v17 = vld [vmem:[#allocation3 + $0x148] ss:$16 sps:$4 sm:$0xff]  }
 0x149   :  { %2852 = vmatpush2.bf16.msra.mxu1 %v4493_v5 }
 0x14a   :  { %2853 = vmatprep.subr.bf16.mxu1 %v4498_v10 }
 0x14b   :  { %2813 = vmatpush2.bf16.msra.mxu0 %v4400_v57  ;;  %v4445_v57 = vld [vmem:[#allocation3 + $0x128] ss:$16 sps:$4 sm:$0xff]  }
 0x14c   :  { %2864 = vmatprep.subr.bf16.mxu0 %v4405_v55 }
 0x14d   :  { %2854 = vmatpush2.bf16.msra.mxu1 %v4496_v12 }
 0x14e   :  { %v1772_v59 = vpop.f32.mrf.mxu0  ;;  %2905 = vmatprep.subr.bf16.mxu1 %v4501_v18 }
 0x14f   :  { %v1813_v60 = vpop.f32.mrf.mxu1  ;;  %v1773_v63 = vadd.f32 %v1772_v59, %v1732_v58  ;;  %v4448_v58 = vld [vmem:[#allocation3 + $0x108] ss:$16 sps:$4 sm:$0xff]  }
 0x150   :  { %v1774_v0 = vpop.f32.mrf.mxu0 }
 0x151   :  { %v1815_v1 = vpop.f32.mrf.mxu1  ;;  %v1814_v4 = vadd.f32 %v1813_v60, %v1773_v63  ;;  %v1775_v46 = vadd.f32 %v1774_v0, %v1734_v61  ;;  %v366_v61 = vsub.s32 2, %v4830_v43  ;;  %v370_v63 = vsub.s32 3, %v4830_v43 }
 0x152   :  { %v1776_v6 = vpop.f32.mrf.mxu0 }
 0x153   :  { %v1817_v7 = vpop.f32.mrf.mxu1  ;;  %v1816_v50 = vadd.f32 %v1815_v1, %v1775_v46  ;;  %v1984_v8 = vmax.f32 %v1814_v4, 0.0  ;;  %v367_v0 = vrot.slane %v5554_v44, %v366_v61  ;;  %v371_v1 = vrot.slane %v5554_v44, %v370_v63  ;;  %v4499_v44 = vld [vmem:[#allocation3 + $0x2e8] ss:$16 sps:$4 sm:$0xff]  }
 0x154   :  { %v1777_v9 = vpop.f32.mrf.mxu0 }
 0x155   :  { %v1818_v47 = vpop.f32.mrf.mxu1  ;;  %v1985_v11 = vmax.f32 %v1816_v50, 0.0  ;;  %v5567_v14 = vpack.c.bf16 %v1984_v8, %v1984_v8 }
 0x157   :  { %v1989_v16 = vpack.c.bf16 %v1985_v11, %v1985_v11 }
 0x159   :  { %2814 = vmatprep.mubr.bf16.mxu0 %v1989_v16 }
 0x15a   :  { %2815 = vmatmul.mubr.bf16.vlgmr.msra.gmra.mxu0 %v5567_v14 }
 0x15b   :  { %2865 = vmatpush1.bf16.msra.mxu0 %v4403_v13  ;;  %2896 = vmatprep.mubr.bf16.mxu0 %v1989_v16 }
 0x15c   :  { %2866 = vmatprep.subr.bf16.mxu0 %v4408_v15 }
 0x15f   :  { %2867 = vmatpush1.bf16.msra.mxu0 %v4406_v19 }
 0x160   :  { %2868 = vmatprep.subr.bf16.mxu0 %v4411_v20 }
 0x163   :  { %2869 = vmatpush1.bf16.msra.mxu0 %v4409_v21  ;;  %v4504_v21 = vld [vmem:[#allocation3 + $0x2cc] ss:$16 sps:$4 sm:$0xff]  }
 0x164   :  { %2870 = vmatprep.subr.bf16.mxu0 %v4414_v22  ;;  %v4502_v22 = vld [vmem:[#allocation3 + $0x2c8] ss:$16 sps:$4 sm:$0xff]  }
 0x167   :  { %2871 = vmatpush1.bf16.msra.mxu0 %v4412_v23  ;;  %v4507_v23 = vld [vmem:[#allocation3 + $0x2ac] ss:$16 sps:$4 sm:$0xff]  }
 0x168   :  { %2872 = vmatprep.subr.bf16.mxu0 %v4417_v24  ;;  %v4505_v24 = vld [vmem:[#allocation3 + $0x2a8] ss:$16 sps:$4 sm:$0xff]  }
 0x16b   :  { %2873 = vmatpush1.bf16.msra.mxu0 %v4415_v25  ;;  %v4510_v25 = vld [vmem:[#allocation3 + $0x28c] ss:$16 sps:$4 sm:$0xff]  }
 0x16c   :  { %2874 = vmatprep.subr.bf16.mxu0 %v4420_v26  ;;  %v4508_v26 = vld [vmem:[#allocation3 + $0x288] ss:$16 sps:$4 sm:$0xff]  }
 0x16f   :  { %2875 = vmatpush1.bf16.msra.mxu0 %v4418_v27  ;;  %v4513_v27 = vld [vmem:[#allocation3 + $0x26c] ss:$16 sps:$4 sm:$0xff]  }
 0x170   :  { %2876 = vmatprep.subr.bf16.mxu0 %v4423_v28  ;;  %v4511_v28 = vld [vmem:[#allocation3 + $0x268] ss:$16 sps:$4 sm:$0xff]  }
 0x173   :  { %2877 = vmatpush1.bf16.msra.mxu0 %v4421_v29  ;;  %v4516_v29 = vld [vmem:[#allocation3 + $0x24c] ss:$16 sps:$4 sm:$0xff]  }
 0x174   :  { %2878 = vmatprep.subr.bf16.mxu0 %v4426_v30  ;;  %v4514_v30 = vld [vmem:[#allocation3 + $0x248] ss:$16 sps:$4 sm:$0xff]  }
 0x177   :  { %2879 = vmatpush1.bf16.msra.mxu0 %v4424_v31  ;;  %v4519_v31 = vld [vmem:[#allocation3 + $0x22c] ss:$16 sps:$4 sm:$0xff]  }
 0x178   :  { %2880 = vmatprep.subr.bf16.mxu0 %v4429_v34  ;;  %v4517_v34 = vld [vmem:[#allocation3 + $0x228] ss:$16 sps:$4 sm:$0xff]  }
 0x17b   :  { %2881 = vmatpush2.bf16.msra.mxu0 %v4427_v35  ;;  %v4522_v35 = vld [vmem:[#allocation3 + $0x20c] ss:$16 sps:$4 sm:$0xff]  }
 0x17c   :  { %2882 = vmatprep.subr.bf16.mxu0 %v4432_v36  ;;  %v4520_v36 = vld [vmem:[#allocation3 + $0x208] ss:$16 sps:$4 sm:$0xff]  }
 0x17f   :  { %2883 = vmatpush2.bf16.msra.mxu0 %v4430_v37  ;;  %v4525_v37 = vld [vmem:[#allocation3 + $0x3ec] ss:$16 sps:$4 sm:$0xff]  }
 0x180   :  { %2884 = vmatprep.subr.bf16.mxu0 %v4435_v38  ;;  %v4523_v38 = vld [vmem:[#allocation3 + $0x3e8] ss:$16 sps:$4 sm:$0xff]  }
 0x183   :  { %2885 = vmatpush2.bf16.msra.mxu0 %v4433_v39  ;;  %v4528_v39 = vld [vmem:[#allocation3 + $0x3cc] ss:$16 sps:$4 sm:$0xff]  }
 0x184   :  { %2886 = vmatprep.subr.bf16.mxu0 %v4438_v40  ;;  %v4526_v40 = vld [vmem:[#allocation3 + $0x3c8] ss:$16 sps:$4 sm:$0xff]  }
 0x187   :  { %2887 = vmatpush2.bf16.msra.mxu0 %v4436_v41  ;;  %v4531_v41 = vld [vmem:[#allocation3 + $0x3ac] ss:$16 sps:$4 sm:$0xff]  }
 0x188   :  { %2888 = vmatprep.subr.bf16.mxu0 %v4441_v45  ;;  %v4529_v45 = vld [vmem:[#allocation3 + $0x3a8] ss:$16 sps:$4 sm:$0xff]  }
 0x18b   :  { %2889 = vmatpush2.bf16.msra.mxu0 %v4439_v3  ;;  %v4534_v3 = vld [vmem:[#allocation3 + $0x38c] ss:$16 sps:$4 sm:$0xff]  }
 0x18c   :  { %2890 = vmatprep.subr.bf16.mxu0 %v4444_v48  ;;  %v4532_v48 = vld [vmem:[#allocation3 + $0x388] ss:$16 sps:$4 sm:$0xff]  }
 0x18e   :  { %v1854_v52 = vpop.f32.mrf.mxu0 }
 0x18f   :  { %v1895_v53 = vpop.f32.mrf.mxu1  ;;  %2891 = vmatpush2.bf16.msra.mxu0 %v4442_v17  ;;  %v1855_v2 = vadd.f32 %v1854_v52, %v367_v0  ;;  %v4537_v17 = vld [vmem:[#allocation3 + $0x36c] ss:$16 sps:$4 sm:$0xff]   ;;  %v4549_v0 = vld [vmem:[%s5811_s5 + $0x74] ss:$8 sps:$4 sm:$0xff]  }
 0x190   :  { %v1856_v54 = vpop.f32.mrf.mxu0  ;;  %2892 = vmatprep.subr.bf16.mxu0 %v4447_v51  ;;  %v4535_v51 = vld [vmem:[#allocation3 + $0x368] ss:$16 sps:$4 sm:$0xff]   ;;  %v4540_v52 = vld [vmem:[#allocation3 + $0x34c] ss:$16 sps:$4 sm:$0xff]  }
 0x191   :  { %v1897_v55 = vpop.f32.mrf.mxu1  ;;  %v1857_v4 = vadd.f32 %v1856_v54, %v371_v1  ;;  %v1896_v46 = vadd.f32 %v1895_v53, %v1855_v2  ;;  %v4538_v53 = vld [vmem:[#allocation3 + $0x348] ss:$16 sps:$4 sm:$0xff]   ;;  %v4550_v1 = vld [vmem:[%s5811_s5 + $0x170] ss:$8 sps:$4 sm:$0xff]  }
 0x192   :  { %v1858_v56 = vpop.f32.mrf.mxu0  ;;  %v4541_v54 = vld [vmem:[#allocation3 + $0x328] ss:$16 sps:$4 sm:$0xff]  }
 0x193   :  { %v1899_v33 = vpop.f32.mrf.mxu1  ;;  %2893 = vmatpush2.bf16.msra.mxu0 %v4445_v57  ;;  %v1898_v7 = vadd.f32 %v1897_v55, %v1857_v4  ;;  %v4543_v57 = vld [vmem:[#allocation3 + $0x32c] ss:$16 sps:$4 sm:$0xff]   ;;  %v4552_v2 = vld [vmem:[%s5811_s5 + $0x174] ss:$8 sps:$4 sm:$0xff]   ;;  %v4555_v4 = vld [vmem:[%s5811_s5 + $0x64] ss:$8 sps:$4 sm:$0xff]  }
 0x194   :  { %v1859_v59 = vpop.f32.mrf.mxu0  ;;  %2894 = vmatprep.subr.bf16.mxu0 %v4450_v32  ;;  %v4546_v55 = vld [vmem:[#allocation3 + $0x30c] ss:$16 sps:$4 sm:$0xff]   ;;  %v4544_v32 = vld [vmem:[#allocation3 + $0x308] ss:$16 sps:$4 sm:$0xff]  }
 0x195   :  { %v1900_v60 = vpop.f32.mrf.mxu1 }
 0x196   :  { %v4547_v60 = vld [vmem:[%s5811_s5 + $0x70] ss:$8 sps:$4 sm:$0xff]  }
 0x197   :  { %2895 = vmatpush2.bf16.msra.mxu0 %v4448_v58 }
 0x198   :  { %3410 = vmatprep.subr.bf16.mxu0 %v4549_v0  ;;  %v4625_v0 = vld [vmem:[%s5811_s5 + $0xa0] ss:$8 sps:$4 sm:$0xff]  }
 0x19a   :  { %2897 = vmatmul.mubr.bf16.vlgmr.msra.gmra.mxu0 %v5567_v14 }
 0x19b   :  { %3411 = vmatpush1.bf16.msra.mxu0 %v4547_v60  ;;  %v4627_v60 = vld [vmem:[%s5811_s5 + $0xa4] ss:$8 sps:$4 sm:$0xff]  }
 0x19c   :  { %3412 = vmatprep.subr.bf16.mxu0 %v4555_v4  ;;  %v4633_v4 = vld [vmem:[%s5811_s5 + $0x94] ss:$8 sps:$4 sm:$0xff]  }
 0x1ce   :  { %v1936_v5 = vpop.f32.mrf.mxu0 }
 0x1cf   :  { %v1977_v6 = vpop.f32.mrf.mxu1  ;;  %v1937_v50 = vadd.f32 %v1936_v5, %v1896_v46  ;;  %v4558_v46 = vld [vmem:[%s5811_s5 + $0x164] ss:$8 sps:$4 sm:$0xff]   ;;  %v4553_v5 = vld [vmem:[%s5811_s5 + $0x60] ss:$8 sps:$4 sm:$0xff]  }
 0x1d0   :  { %v1938_v8 = vpop.f32.mrf.mxu0  ;;  %3413 = vmatpush1.bf16.msra.mxu0 %v4553_v5  ;;  %v4636_v5 = vld [vmem:[%s5811_s5 + $0x194] ss:$8 sps:$4 sm:$0xff]  }
 0x1d1   :  { %v1979_v9 = vpop.f32.mrf.mxu1  ;;  %v1978_v47 = vadd.f32 %v1977_v6, %v1937_v50  ;;  %v1939_v10 = vadd.f32 %v1938_v8, %v1898_v7  ;;  %v4556_v6 = vld [vmem:[%s5811_s5 + $0x160] ss:$8 sps:$4 sm:$0xff]   ;;  %v4561_v7 = vld [vmem:[%s5811_s5 + $0x54] ss:$8 sps:$4 sm:$0xff]   ;;  %v4559_v8 = vld [vmem:[%s5811_s5 + $0x50] ss:$8 sps:$4 sm:$0xff]  }
 0x1d2   :  { %v1940_v11 = vpop.f32.mrf.mxu0  ;;  %v4564_v50 = vld [vmem:[%s5811_s5 + $0x154] ss:$8 sps:$4 sm:$0xff]   ;;  %3414 = vmatprep.subr.bf16.mxu0 %v4561_v7  ;;  %v4634_v7 = vld [vmem:[%s5811_s5 + $0x190] ss:$8 sps:$4 sm:$0xff]  }
 0x1d3   :  { %v1981_v12 = vpop.f32.mrf.mxu1  ;;  %v1980_v16 = vadd.f32 %v1979_v9, %v1939_v10  ;;  %v1986_v13 = vmax.f32 %v1978_v47, 0.0  ;;  %v4562_v9 = vld [vmem:[%s5811_s5 + $0x150] ss:$8 sps:$4 sm:$0xff]   ;;  %v4567_v47 = vld [vmem:[%s5811_s5 + $0x44] ss:$8 sps:$4 sm:$0xff]  }
 0x1d4   :  { %v1941_v14 = vpop.f32.mrf.mxu0  ;;  %v4570_v10 = vld [vmem:[%s5811_s5 + $0x144] ss:$8 sps:$4 sm:$0xff]   ;;  %3415 = vmatpush1.bf16.msra.mxu0 %v4559_v8  ;;  %v4565_v11 = vld [vmem:[%s5811_s5 + $0x40] ss:$8 sps:$4 sm:$0xff]  }
 0x1d5   :  { %v1982_v15 = vpop.f32.mrf.mxu1  ;;  %v1987_v18 = vmax.f32 %v1980_v16, 0.0  ;;  %v5579_v20 = vpack.c.bf16 %v1986_v13, %v1986_v13  ;;  %3416 = vmatprep.subr.bf16.mxu0 %v4567_v47  ;;  %v4568_v12 = vld [vmem:[%s5811_s5 + $0x140] ss:$8 sps:$4 sm:$0xff]   ;;  %v4573_v16 = vld [vmem:[%s5811_s5 + $0x34] ss:$8 sps:$4 sm:$0xff]  }
 0x1d6   :  { %v4576_v13 = vld [vmem:[%s5811_s5 + $0x134] ss:$8 sps:$4 sm:$0xff]   ;;  %v4571_v14 = vld [vmem:[%s5811_s5 + $0x30] ss:$8 sps:$4 sm:$0xff]   ;;  %v4637_v8 = vld [vmem:[%s5811_s5 + $0x80] ss:$8 sps:$4 sm:$0xff]  }
 0x1d7   :  { %v1991_v19 = vpack.c.bf16 %v1987_v18, %v1987_v18  ;;  %v4574_v15 = vld [vmem:[%s5811_s5 + $0x130] ss:$8 sps:$4 sm:$0xff]   ;;  %v4579_v18 = vld [vmem:[%s5811_s5 + $0x24] ss:$8 sps:$4 sm:$0xff]   ;;  %v2120_v47 = vld [vmem:[%s5810_s4] sm:$0xf] }
 0x1d8   :  { %3417 = vmatpush1.bf16.msra.mxu0 %v4565_v11  ;;  %v2129_v11 = vrot.slane %v2120_v47, %v5557_v62 }
 0x1d9   :  { %2855 = vmatprep.mubr.bf16.mxu1 %v1991_v19  ;;  %3418 = vmatprep.subr.bf16.mxu0 %v4573_v16 }
 0x1da   :  { %2856 = vmatmul.mubr.bf16.vlgmr.msra.gmra.mxu1 %v5579_v20 }
 0x1db   :  { %2906 = vmatpush1.bf16.msra.mxu1 %v4499_v44  ;;  %2937 = vmatprep.mubr.bf16.mxu1 %v1991_v19  ;;  %v4582_v19 = vld [vmem:[%s5811_s5 + $0x124] ss:$8 sps:$4 sm:$0xff]   ;;  %v4577_v44 = vld [vmem:[%s5811_s5 + $0x20] ss:$8 sps:$4 sm:$0xff]  }
 0x1dc   :  { %2907 = vmatprep.subr.bf16.mxu1 %v4504_v21  ;;  %3419 = vmatpush1.bf16.msra.mxu0 %v4571_v14  ;;  %v4585_v21 = vld [vmem:[%s5811_s5 + $0x14] ss:$8 sps:$4 sm:$0xff]  }
 0x1dd   :  { %3420 = vmatprep.subr.bf16.mxu0 %v4579_v18 }
 0x1df   :  { %2908 = vmatpush1.bf16.msra.mxu1 %v4502_v22  ;;  %v4588_v22 = vld [vmem:[%s5811_s5 + $0x114] ss:$8 sps:$4 sm:$0xff]  }
 0x1e0   :  { %2909 = vmatprep.subr.bf16.mxu1 %v4507_v23  ;;  %3421 = vmatpush1.bf16.msra.mxu0 %v4577_v44  ;;  %v4583_v23 = vld [vmem:[%s5811_s5 + $0x10] ss:$8 sps:$4 sm:$0xff]  }
 0x1e1   :  { %3422 = vmatprep.subr.bf16.mxu0 %v4585_v21 }
 0x1e3   :  { %2910 = vmatpush1.bf16.msra.mxu1 %v4505_v24  ;;  %v4586_v24 = vld [vmem:[%s5811_s5 + $0x110] ss:$8 sps:$4 sm:$0xff]  }
 0x1e4   :  { %2911 = vmatprep.subr.bf16.mxu1 %v4510_v25  ;;  %v4591_v25 = vld [vmem:[%s5811_s5 + $0x4] ss:$8 sps:$4 sm:$0xff]   ;;  %3423 = vmatpush1.bf16.msra.mxu0 %v4583_v23  ;;  %v2133_v23 = vrot.slane %v2120_v47, %v366_v61 }
 0x1e5   :  { %3424 = vmatprep.subr.bf16.mxu0 %v4591_v25  ;;  %v4669_v25 = vmov 1966171168  }
 0x1e7   :  { %2912 = vmatpush1.bf16.msra.mxu1 %v4508_v26  ;;  %v4594_v26 = vld [vmem:[%s5811_s5 + $0x104] ss:$8 sps:$4 sm:$0xff]  }
 0x1e8   :  { %2913 = vmatprep.subr.bf16.mxu1 %v4513_v27  ;;  %v4589_v27 = vld [vmem:[%s5811_s5] ss:$8 sps:$4 sm:$0xff]  }
 0x1e9   :  { %3425 = vmatpush1.bf16.msra.mxu0 %v4589_v27 }
 0x1eb   :  { %2914 = vmatpush1.bf16.msra.mxu1 %v4511_v28  ;;  %v4592_v28 = vld [vmem:[%s5811_s5 + $0x100] ss:$8 sps:$4 sm:$0xff]  }
 0x1ec   :  { %2915 = vmatprep.subr.bf16.mxu1 %v4516_v29  ;;  %v4597_v29 = vld [vmem:[%s5811_s5 + $0xf4] ss:$8 sps:$4 sm:$0xff]  }
 0x1ed   :  { %3426 = vmatprep.subr.bf16.mxu0 %v4597_v29 }
 0x1ef   :  { %2916 = vmatpush1.bf16.msra.mxu1 %v4514_v30  ;;  %v4600_v30 = vld [vmem:[%s5811_s5 + $0x1f4] ss:$8 sps:$4 sm:$0xff]  }
 0x1f0   :  { %2917 = vmatprep.subr.bf16.mxu1 %v4519_v31  ;;  %v4595_v31 = vld [vmem:[%s5811_s5 + $0xf0] ss:$8 sps:$4 sm:$0xff]  }
 0x1f1   :  { %3427 = vmatpush2.bf16.msra.mxu0 %v4595_v31 }
 0x1f3   :  { %2918 = vmatpush1.bf16.msra.mxu1 %v4517_v34  ;;  %v4598_v34 = vld [vmem:[%s5811_s5 + $0x1f0] ss:$8 sps:$4 sm:$0xff]  }
 0x1f4   :  { %2919 = vmatprep.subr.bf16.mxu1 %v4522_v35  ;;  %v4603_v35 = vld [vmem:[%s5811_s5 + $0xe4] ss:$8 sps:$4 sm:$0xff]  }
 0x1f5   :  { %3428 = vmatprep.subr.bf16.mxu0 %v4603_v35 }
 0x1f7   :  { %2920 = vmatpush1.bf16.msra.mxu1 %v4520_v36  ;;  %v4601_v36 = vld [vmem:[%s5811_s5 + $0xe0] ss:$8 sps:$4 sm:$0xff]  }
 0x1f8   :  { %2921 = vmatprep.subr.bf16.mxu1 %v4525_v37  ;;  %3429 = vmatpush2.bf16.msra.mxu0 %v4601_v36  ;;  %v4606_v37 = vld [vmem:[%s5811_s5 + $0x1e4] ss:$8 sps:$4 sm:$0xff]  }
 0x1fb   :  { %2922 = vmatpush2.bf16.msra.mxu1 %v4523_v38  ;;  %v4604_v38 = vld [vmem:[%s5811_s5 + $0x1e0] ss:$8 sps:$4 sm:$0xff]  }
 0x1fc   :  { %2923 = vmatprep.subr.bf16.mxu1 %v4528_v39 }
 0x1ff   :  { %2924 = vmatpush2.bf16.msra.mxu1 %v4526_v40  ;;  %v4609_v40 = vld [vmem:[%s5811_s5 + $0xd4] ss:$8 sps:$4 sm:$0xff]  }
 0x200   :  { %2925 = vmatprep.subr.bf16.mxu1 %v4531_v41  ;;  %v4607_v41 = vld [vmem:[%s5811_s5 + $0xd0] ss:$8 sps:$4 sm:$0xff]   ;;  %3430 = vmatprep.subr.bf16.mxu0 %v4609_v40 }
 0x201   :  { %3431 = vmatpush2.bf16.msra.mxu0 %v4607_v41 }
 0x203   :  { %2926 = vmatpush2.bf16.msra.mxu1 %v4529_v45 }
 0x204   :  { %2927 = vmatprep.subr.bf16.mxu1 %v4534_v3  ;;  %v4612_v3 = vld [vmem:[%s5811_s5 + $0x1d4] ss:$8 sps:$4 sm:$0xff]  }
 0x207   :  { %2928 = vmatpush2.bf16.msra.mxu1 %v4532_v48  ;;  %v4610_v48 = vld [vmem:[%s5811_s5 + $0x1d0] ss:$8 sps:$4 sm:$0xff]  }
 0x208   :  { %2929 = vmatprep.subr.bf16.mxu1 %v4537_v17 }
 0x20b   :  { %2930 = vmatpush2.bf16.msra.mxu1 %v4535_v51  ;;  %v4615_v51 = vld [vmem:[%s5811_s5 + $0xc4] ss:$8 sps:$4 sm:$0xff]  }
 0x20c   :  { %2931 = vmatprep.subr.bf16.mxu1 %v4540_v52  ;;  %v4613_v52 = vld [vmem:[%s5811_s5 + $0xc0] ss:$8 sps:$4 sm:$0xff]   ;;  %3432 = vmatprep.subr.bf16.mxu0 %v4615_v51 }
 0x20d   :  { %3433 = vmatpush2.bf16.msra.mxu0 %v4613_v52 }
 0x20f   :  { %2932 = vmatpush2.bf16.msra.mxu1 %v4538_v53 }
 0x210   :  { %2933 = vmatprep.subr.bf16.mxu1 %v4543_v57  ;;  %v4618_v57 = vld [vmem:[%s5811_s5 + $0x1c4] ss:$8 sps:$4 sm:$0xff]  }
 0x213   :  { %2934 = vmatpush2.bf16.msra.mxu1 %v4541_v54  ;;  %v4616_v54 = vld [vmem:[%s5811_s5 + $0x1c0] ss:$8 sps:$4 sm:$0xff]  }
 0x214   :  { %2935 = vmatprep.subr.bf16.mxu1 %v4546_v55  ;;  %v4621_v55 = vld [vmem:[%s5811_s5 + $0xb4] ss:$8 sps:$4 sm:$0xff]  }
 0x215   :  { %3434 = vmatprep.subr.bf16.mxu0 %v4621_v55 }
 0x217   :  { %2936 = vmatpush2.bf16.msra.mxu1 %v4544_v32  ;;  %v4619_v32 = vld [vmem:[%s5811_s5 + $0xb0] ss:$8 sps:$4 sm:$0xff]  }
 0x218   :  { %3451 = vmatprep.subr.bf16.mxu1 %v4552_v2  ;;  %3435 = vmatpush2.bf16.msra.mxu0 %v4619_v32  ;;  %v4630_v2 = vld [vmem:[%s5811_s5 + $0x1a4] ss:$8 sps:$4 sm:$0xff]  }
 0x219   :  { %3436 = vmatprep.subr.bf16.mxu0 %v4627_v60 }
 0x21a   :  { %2938 = vmatmul.mubr.bf16.vlgmr.msra.gmra.mxu1 %v5579_v20  ;;  %v5583_v56 = vpop.f32.mrf.mxu0  ;;  %v4580_v20 = vld [vmem:[%s5811_s5 + $0x120] ss:$8 sps:$4 sm:$0xff]  }
 0x21b   :  { %3452 = vmatpush1.bf16.msra.mxu1 %v4550_v1  ;;  %v4628_v1 = vld [vmem:[%s5811_s5 + $0x1a0] ss:$8 sps:$4 sm:$0xff]  }
 0x21c   :  { %v5585_v33 = vpop.f32.mrf.mxu0  ;;  %3453 = vmatprep.subr.bf16.mxu1 %v4558_v46  ;;  %3437 = vmatpush2.bf16.msra.mxu0 %v4625_v0  ;;  %v4631_v46 = vld [vmem:[%s5811_s5 + $0x90] ss:$8 sps:$4 sm:$0xff]  }
 0x21d   :  { %3438 = vmatprep.subr.bf16.mxu0 %v4633_v4 }
 0x21e   :  { %v2820_v58 = vpop.f32.mrf.mxu0 }
 0x21f   :  { %3454 = vmatpush1.bf16.msra.mxu1 %v4556_v6  ;;  %v4624_v58 = vld [vmem:[%s5811_s5 + $0x1b4] ss:$8 sps:$4 sm:$0xff]   ;;  %v4639_v6 = vld [vmem:[%s5811_s5 + $0x84] ss:$8 sps:$4 sm:$0xff]  }
 0x220   :  { %v2821_v59 = vpop.f32.mrf.mxu0  ;;  %3455 = vmatprep.subr.bf16.mxu1 %v4564_v50  ;;  %v4642_v50 = vld [vmem:[%s5811_s5 + $0x184] ss:$8 sps:$4 sm:$0xff]   ;;  %3439 = vmatpush2.bf16.msra.mxu0 %v4631_v46 }
 0x221   :  { %v4622_v59 = vld [vmem:[%s5811_s5 + $0x1b0] ss:$8 sps:$4 sm:$0xff]   ;;  %3440 = vmatprep.subr.bf16.mxu0 %v4639_v6 }
 0x223   :  { %3456 = vmatpush1.bf16.msra.mxu1 %v4562_v9  ;;  %v4640_v9 = vld [vmem:[%s5811_s5 + $0x180] ss:$8 sps:$4 sm:$0xff]  }
 0x224   :  { %3457 = vmatprep.subr.bf16.mxu1 %v4570_v10  ;;  %3441 = vmatpush2.bf16.msra.mxu0 %v4637_v8  ;;  %v2125_v10 = vrot.slane %v2120_v47, %v5549_v42 }
 0x227   :  { %3458 = vmatpush1.bf16.msra.mxu1 %v4568_v12  ;;  %v2817_v12 = vadd.f32 %v5583_v56, %v2125_v10 }
 0x228   :  { %3459 = vmatprep.subr.bf16.mxu1 %v4576_v13  ;;  %v2819_v13 = vadd.f32 %v5585_v33, %v2129_v11 }
 0x22b   :  { %3460 = vmatpush1.bf16.msra.mxu1 %v4574_v15 }
 0x22c   :  { %3461 = vmatprep.subr.bf16.mxu1 %v4582_v19 }
 0x22f   :  { %3462 = vmatpush1.bf16.msra.mxu1 %v4580_v20 }
 0x230   :  { %3463 = vmatprep.subr.bf16.mxu1 %v4588_v22 }
 0x233   :  { %3464 = vmatpush1.bf16.msra.mxu1 %v4586_v24  ;;  %v2137_v24 = vrot.slane %v2120_v47, %v370_v63 }
 0x234   :  { %3465 = vmatprep.subr.bf16.mxu1 %v4594_v26  ;;  %v2961_v26 = vunpack.c.l.s4 %v4669_v25 }
 0x237   :  { %3466 = vmatpush1.bf16.msra.mxu1 %v4592_v28  ;;  %v2962_v28 = vunpack.c.0.s8 %v2961_v26 }
 0x238   :  { %3467 = vmatprep.subr.bf16.mxu1 %v4600_v30 }
 0x239   :  { %v2965_v35 = vsub.s32 %v2962_v28, %v4830_v43  ;;  %v3049_v43 = vld [vmem:[%s5812_s6] sm:$0x3] }
 0x23a   :  { %v3054_v52 = vrot.slane %v3049_v43, %v5549_v42 }
 0x23b   :  { %3468 = vmatpush2.bf16.msra.mxu1 %v4598_v34 }
 0x23c   :  { %3469 = vmatprep.subr.bf16.mxu1 %v4606_v37 }
 0x23f   :  { %3470 = vmatpush2.bf16.msra.mxu1 %v4604_v38 }
 0x240   :  { %3471 = vmatprep.subr.bf16.mxu1 %v4612_v3 }
 0x243   :  { %3472 = vmatpush2.bf16.msra.mxu1 %v4610_v48 }
 0x244   :  { %3473 = vmatprep.subr.bf16.mxu1 %v4618_v57 }
 0x247   :  { %3474 = vmatpush2.bf16.msra.mxu1 %v4616_v54 }
 0x248   :  { %3475 = vmatprep.subr.bf16.mxu1 %v4624_v58 }
 0x24b   :  { %3476 = vmatpush2.bf16.msra.mxu1 %v4622_v59 }
 0x24c   :  { %3477 = vmatprep.subr.bf16.mxu1 %v4630_v2 }
 0x24f   :  { %3478 = vmatpush2.bf16.msra.mxu1 %v4628_v1 }
 0x250   :  { %3479 = vmatprep.subr.bf16.mxu1 %v4636_v5 }
 0x253   :  { %3480 = vmatpush2.bf16.msra.mxu1 %v4634_v7 }
 0x254   :  { %3481 = vmatprep.subr.bf16.mxu1 %v4642_v50 }
 0x257   :  { %3482 = vmatpush2.bf16.msra.mxu1 %v4640_v9 }
 0x25a   :  { %v5707_v39 = vpop.f32.mrf.mxu0 }
 0x25b   :  { %v2899_v56 = vadd.f32 %v5707_v39, %v2133_v23 }
 0x25c   :  { %v5715_v45 = vpop.f32.mrf.mxu0 }
 0x25d   :  { %v2901_v33 = vadd.f32 %v5715_v45, %v2137_v24 }
 0x25e   :  { %v2902_v17 = vpop.f32.mrf.mxu0 }
 0x260   :  { %v2903_v53 = vpop.f32.mrf.mxu0 }
 0x261   :  { %v3058_v53 = vrot.slane %v3049_v43, %v5557_v62 }
 0x29a   :  { %v2857_v16 = vpop.f32.mrf.mxu1 }
 0x29b   :  { %v2858_v14 = vadd.f32 %v2857_v16, %v2817_v12 }
 0x29c   :  { %v2859_v15 = vpop.f32.mrf.mxu1 }
 0x29d   :  { %v2860_v18 = vadd.f32 %v2859_v15, %v2819_v13  ;;  %v2946_v44 = vmax.f32 %v2858_v14, 0.0 }
 0x29e   :  { %v2861_v19 = vpop.f32.mrf.mxu1 }
 0x29f   :  { %v2947_v20 = vmax.f32 %v2860_v18, 0.0 }
 0x2a0   :  { %v2862_v21 = vpop.f32.mrf.mxu1 }
 0x2a1   :  { %v3896_v22 = vpack.c.bf16 %v2947_v20, %v2946_v44 }
 0x2a3   :  { %v2966_v40 = vrot.slane %v3896_v22, %v2965_v35 }
 0x2da   :  { %v2939_v27 = vpop.f32.mrf.mxu1 }
 0x2db   :  { %v2940_v29 = vadd.f32 %v2939_v27, %v2899_v56 }
 0x2dc   :  { %v2941_v30 = vpop.f32.mrf.mxu1 }
 0x2dd   :  { %v2942_v31 = vadd.f32 %v2941_v30, %v2901_v33  ;;  %v2948_v36 = vmax.f32 %v2940_v29, 0.0 }
 0x2de   :  { %v2943_v34 = vpop.f32.mrf.mxu1 }
 0x2df   :  { %v2949_v37 = vmax.f32 %v2942_v31, 0.0 }
 0x2e0   :  { %v2944_v61 = vpop.f32.mrf.mxu1 }
 0x2e1   :  { %v3897_v38 = vpack.c.bf16 %v2949_v37, %v2948_v36 }
 0x2e3   :  { %v2973_v63 = vrot.slane %v3897_v38, %v2965_v35 }
 0x2e5   :  { %v2974_v41 = vcombine.low %v2966_v40, %v2973_v63 }
 0x2e7   :  { %3898 = vst.sshfl [vmem:[#allocation2] sm:$0x55 pattern:$0x73625140] %v2974_v41 }
 0x2ee   :  { %v3899_v3 = vld.sshfl [vmem:[#allocation2] sm:$0x33 pattern:$0x75316420] }
 0x2ef   :  { %v3069_v39 = vcombine.high %v3899_v3, %v3899_v3  ;;  %v3076_v48 = vrot.slane %v3899_v3, %v2965_v35 }
 0x2f1   :  { %v3083_v17 = vrot.slane %v3069_v39, %v2965_v35  ;;  %v3084_v51 = vcombine.high %v3076_v48, %v3076_v48 }
 0x2f3   :  { %3442 = vmatprep.mubr.bf16.mxu0 %v3083_v17  ;;  %v3085_v45 = vcombine.high %v3083_v17, %v3083_v17 }
 0x2f4   :  { %3443 = vmatmul.mubr.bf16.vlgmr.msra.gmra.mxu0 %v3076_v48 }
 0x2f5   :  { %3483 = vmatprep.mubr.bf16.mxu1 %v3085_v45 }
 0x2f6   :  { %3484 = vmatmul.mubr.bf16.vlgmr.msra.gmra.mxu1 %v3084_v51 }
 0x3b4   :  { %v3444_v57 = vpop.f32.mrf.mxu0 }
 0x3b5   :  { %v3445_v54 = vadd.f32 %v3444_v57, %v3054_v52 }
 0x3b6   :  { %v3446_v55 = vpop.f32.mrf.mxu0  ;;  %v3485_v32 = vpop.f32.mrf.mxu1 }
 0x3b7   :  { %v3447_v58 = vadd.f32 %v3446_v55, %v3058_v53  ;;  %v3486_v0 = vadd.f32 %v3485_v32, %v3445_v54 }
 0x3b8   :  { %v3448_v59 = vpop.f32.mrf.mxu0  ;;  %v3487_v60 = vpop.f32.mrf.mxu1 }
 0x3b9   :  { %v3488_v1 = vadd.f32 %v3487_v60, %v3447_v58 }
 0x3ba   :  { %v3449_v2 = vpop.f32.mrf.mxu0  ;;  %v3489_v4 = vpop.f32.mrf.mxu1 }
 0x3bb   :  { %v3494_v46 = vcombine.low %v3486_v0, %v3488_v1 }
 0x3bc   :  { %v3490_v5 = vpop.f32.mrf.mxu1 }
 0x3bd   :  { %v3501_v42 = vrot.slane %v3494_v46, %v4848_v49 }
 0x3bf   :  { %3506 = vst.msk [vmem:[%s5813_s7] sm:$0xf] %vm3505_vm2, %v3501_v42 }
 0x3c0   :  { %3511 = vsyncpa [#allocation4], 1 }

// kernel: labelled_pointnet_ae.5
= control target key start
LH: loop header
LB: loop body
LE: loop exit
PB: predicated region body
PF: predicated region fallthrough
CT: control target
= control target key end

     0   :  { %19 = vsyncpa [#allocation3], 0  ;;  %s10252_s0 = inlined_call_operand.vmem [shape: f32[2,3,64], index: 0, kind: input, shape index: {}]   ;;  %s10253_s1 = inlined_call_operand.vmem [shape: bf16[64,3], index: 1, kind: input, shape index: {}]   ;;  %s10254_s2 = inlined_call_operand.vmem [shape: f32[64,1], index: 2, kind: input, shape index: {}]   ;;  %s10255_s3 = inlined_call_operand.vmem [shape: bf16[128,64], index: 3, kind: input, shape index: {}]   ;;  %s10256_s4 = inlined_call_operand.vmem [shape: f32[128,1], index: 4, kind: input, shape index: {}]   ;;  %s10257_s5 = inlined_call_operand.vmem [shape: bf16[1024,128], index: 5, kind: input, shape index: {}]   ;;  %s10258_s6 = inlined_call_operand.vmem [shape: f32[1024,1], index: 6, kind: input, shape index: {}]   ;;  %s10259_s7 = inlined_call_operand.vmem [shape: bf16[256,1024], index: 7, kind: input, shape index: {}]   ;;  %s10260_s8 = inlined_call_operand.vmem [shape: bf16[256,64], index: 8, kind: input, shape index: {}]   ;;  %s10261_s9 = inlined_call_operand.vmem [shape: f32[256,1], index: 9, kind: input, shape index: {}]   ;;  %s10262_s10 = inlined_call_operand.vmem [shape: bf16[128,256], index: 10, kind: input, shape index: {}]   ;;  %s10263_s11 = inlined_call_operand.vmem [shape: f32[128,1], index: 11, kind: input, shape index: {}]   ;;  %s10264_s12 = inlined_call_operand.vmem [shape: bf16[4,128], index: 12, kind: input, shape index: {}]   ;;  %s10265_s13 = inlined_call_operand.vmem [shape: f32[4,1], index: 13, kind: input, shape index: {}]   ;;  %s10266_s14 = inlined_call_operand.hbm [shape: f32[2,4,64], index: 14, kind: output, shape index: {}]  }
   0x1   :  { %21 = vsyncpa [#allocation3 + $0x1], 0  ;;  %s7255_s29 = smov 0   ;;  %s7257_s30 = smov 0  }
   0x2   :  { %s7259_s15 = smov 0   ;;  %s7261_s16 = smov 0  }
   0x3 LB: > { %10281 = sst [smem:[#allocation5_spill]] %s7169_s15  ;;  %s7276_s17 = sadd.s32 4294967295, %s7173_s16   ;;  %s7173_s16 = sphi %s7261_s16, %s10499_s16   ;;  %s7169_s15 = sphi %s7259_s15, %s10501_s15   ;;  %s7165_s30 = sphi %s7257_s30, %s10503_s30   ;;  %s7161_s29 = sphi %s7255_s29, %s10502_s29  }
   0x4   : > { %s5810_s18 = sadd.s32 4294967294, %s7173_s16   ;;  %s7280_s19 = sadd.s32 1, %s7173_s16  }
   0x5   : > { %10282 = sst [smem:[#allocation6_spill]] %s7280_s19  ;;  %s333_s20 = sadd.s32 1, %s7169_s15 }
   0x6   : > { %s330_s21 = ssub.s32 %s7173_s16, %s7280_s19  ;;  %p343_p0 = scmp.ne.s32.totalorder %s7169_s15, %s7165_s30 }
   0x7   : > { %p331_p1 = scmp.eq.s32.totalorder %s330_s21, 0  ;;  %p344_p2 = scmp.eq.s32.totalorder %s7276_s17, 1 }
   0x8   : > { %p349_p3 = scmp.ne.s32.totalorder %s7165_s30, %s7161_s29  ;;  %p350_p4 = scmp.eq.s32.totalorder %s5810_s18, 1 }
   0x9   : > { %s7291_s22 = scalar_select %p331_p1, %s7169_s15, %s333_s20  }
   0xa   : > { %p7293_p5 = por %p344_p2, %p343_p0  ;;  %p7297_p6 = por %p350_p4, %p349_p3 }
   0xb   : > { %10283 = sst [smem:[#allocation7_spill]] %s7291_s22  ;;  %p5813_p7 = scmp.ge.s32.totalorder %s7173_s16, 1 }
   0xc   : > { %s10285_s24 = scalar_select %p7297_p6, 1, 0 }
   0xd   : > { %p414_p8 = scmp.lt.s32.totalorder %s7173_s16, 3 }
   0xe   : > { %10286 = sst [smem:[#allocation8_spill]] %s10285_s24 }
   0xf   : > { %p415_p9 = pnand %p5813_p7, %p414_p8 }
  0x11   : > { %418 = sbr.rel (%p415_p9) target bundleno = 2220 (0x8ac), region = 76 }
  0x16   : > { %v480_v0 = vld [vmem:[%s10254_s2 + $0x30] sm:$0xff]  ;;  %v478_v1 = vld [vmem:[%s10254_s2 + $0x20] sm:$0xff]  ;;  %p459_p10 = scmp.lt.s32.totalorder %s7276_s17, 1  ;;  %vm555_vm0 = vcmask 1040384   ;;  %v7175_v2 = vmov 0   ;;  %v481_v3 = vld [vmem:[%s10254_s2 + $0x38] sm:$0xff] }
  0x17   : > { %6996 = vset.pattern.permute.xlu1 %v7175_v2  ;;  %6995 = vset.pattern.permute.xlu0 %v7175_v2  ;;  %v479_v4 = vld [vmem:[%s10254_s2 + $0x28] sm:$0xff]  ;;  %vm556_vm1 = vcmask 1041408   ;;  %v7176_v5 = vmov 65535   ;;  %vm542_vm2 = vcmask 23552   ;;  %v6997_v7 = vld [vmem:[%s10253_s1] sm:$0xff]   ;;  %v477_v8 = vld [vmem:[%s10254_s2 + $0x18] sm:$0xff] }
  0x18   : > { %514 = vperm.xlu0 %6995, %v480_v0   ;;  %504 = vperm.xlu1 %6996, %v478_v1   ;;  %s460_s25 = scalar_select %p459_p10, %s7276_s17, 1  ;;  %v557_v6 = vsel %vm555_vm0, 4294967295, %v7176_v5  ;;  %v476_v11 = vld [vmem:[%s10254_s2 + $0x10] sm:$0xff]  ;;  %v475_v14 = vld [vmem:[%s10254_s2 + $0x8] sm:$0xff]  ;;  %v474_v15 = vld [vmem:[%s10254_s2] sm:$0xff]  ;;  %vm791_vm3 = vcmask 523264  }
  0x19   : > { %v558_v9 = vsel %vm556_vm1, %v557_v6, 0  ;;  %6716 = vmatprep.mubr.msk.bf16.mxu0 %vm542_vm2, %v6997_v7  ;;  %v6998_v16 = vld [vmem:[%s10253_s1 + $0x8] sm:$0xff]   ;;  %v6999_v17 = vld [vmem:[%s10253_s1 + $0x10] sm:$0xff]   ;;  %v670_v18 = vld [vmem:[%s10256_s4 + $0x78] sm:$0xff]  ;;  %vm7178_vm4 = vmmov 0   ;;  %s456_s27 = sand.u32 1, %s7165_s30  }
  0x1a   : > { %s5815_s28 = sshll.u32 %s460_s25, 2  ;;  %v669_v19 = vld [vmem:[%s10256_s4 + $0x70] sm:$0xff]  ;;  %v668_v20 = vld [vmem:[%s10256_s4 + $0x68] sm:$0xff]  ;;  %v667_v21 = vld [vmem:[%s10256_s4 + $0x60] sm:$0xff]  ;;  %s6081_s24 = sshll.u32 %s7276_s17, 6  ;;  %vm5735_vm5 = vcmask 519168  }
  0x1b   : > { %s462_s22 = scalar_lea.vmem %s10252_s0, %s5815_s28  ;;  %v7000_v22 = vld [vmem:[%s10253_s1 + $0x18] sm:$0xff]   ;;  %v665_v24 = vld [vmem:[%s10256_s4 + $0x50] sm:$0xff]  ;;  %v664_v25 = vld [vmem:[%s10256_s4 + $0x48] sm:$0xff]  ;;  %s5814_s28 = sshll.u32 %s456_s27, 2 }
  0x1c   : > { %519 = vperm.xlu0 %6995, %v481_v3   ;;  %509 = vperm.xlu1 %6996, %v479_v4   ;;  %v464_v10 = vld [vmem:[%s462_s22] sm:$0x7]  ;;  %v666_v23 = vld [vmem:[%s10256_s4 + $0x58] sm:$0xff]  ;;  %v661_v28 = vld [vmem:[%s10256_s4 + $0x30] sm:$0xff]  ;;  %s458_s18 = scalar_lea.vmem [#allocation2], %s5814_s28  ;;  %s10211_s15 = scalar_lea.hbm %s10266_s14, %s6081_s24 }
  0x1d   : > { %v465_v12 = vpack.c.bf16 %v464_v10, %v464_v10  ;;  %v663_v26 = vld [vmem:[%s10256_s4 + $0x40] sm:$0xff]  ;;  %v662_v27 = vld [vmem:[%s10256_s4 + $0x38] sm:$0xff]  ;;  %v660_v29 = vld [vmem:[%s10256_s4 + $0x28] sm:$0xff]  ;;  %s5751_s20 = sshll.u32 %s458_s18, 4  ;;  %s5738_s17 = scalar_lea.sflag [#allocation3], %s456_s27  ;;  %s10213_s20 = int_to_ptr.vmem [resolvable:$true] %s5751_s20 }
  0x1e   : > { %v659_v30 = vld [vmem:[%s10256_s4 + $0x20] sm:$0xff]  ;;  %v658_v31 = vld [vmem:[%s10256_s4 + $0x18] sm:$0xff]  ;;  %v657_v32 = vld [vmem:[%s10256_s4 + $0x10] sm:$0xff]  ;;  %s7113_s19 = scalar_lea.vmem %s10213_s20, 64  ;;  %s7179_s25 = smov [#allocation2]  }
  0x1f   : > { %v560_v13 = vand.u32 %v558_v9, %v465_v12  ;;  %v656_v33 = vld [vmem:[%s10256_s4 + $0x8] sm:$0xff]  ;;  %v655_v34 = vld [vmem:[%s10256_s4] sm:$0xff]  ;;  %v1096_v35 = vld [vmem:[%s10258_s6 + $0xf8] sm:$0xff]  ;;  %p7114_p11 = scmp.ne.s32.totalorder %s10213_s20, %s7113_s19  ;;  %s7117_s26 = sshll.u32 %s7179_s25, 4  ;;  %s7118_s26 = int_to_ptr.vmem [resolvable:$false] %s7117_s26 }
  0x20   : > { %499 = vperm.xlu1 %6996, %v477_v8   ;;  %494 = vperm.xlu0 %6995, %v476_v11   ;;  %v1095_v36 = vld [vmem:[%s10258_s6 + $0xf0] sm:$0xff]  ;;  %v1080_v37 = vld [vmem:[%s10258_s6 + $0x78] sm:$0xff]  ;;  %v1094_v39 = vld [vmem:[%s10258_s6 + $0xe8] sm:$0xff]  ;;  %s7119_s28 = scalar_lea.vmem %s7118_s26, 128  ;;  %p7120_p0 = scmp.lt.s32.totalorder %s10213_s20, %s7118_s26 }
  0x21   : > { %6714 = vmatprep.subr.bf16.mxu0 %v560_v13  ;;  %v1079_v38 = vld [vmem:[%s10258_s6 + $0x70] sm:$0xff]  ;;  %v1093_v40 = vld [vmem:[%s10258_s6 + $0xe0] sm:$0xff]  ;;  %v1078_v41 = vld [vmem:[%s10258_s6 + $0x68] sm:$0xff]  ;;  %p7115_p12 = pnand %p7114_p11, %p7293_p5  ;;  %p7121_p1 = scmp.lt.s32.totalorder %s7119_s28, %s7113_s19 }
  0x22   : > { %6715 = vmatpush3.bf16.msra.mxu0 %v560_v13  ;;  %v1077_v42 = vld [vmem:[%s10258_s6 + $0x60] sm:$0xff]  ;;  %v1092_v43 = vld [vmem:[%s10258_s6 + $0xd8] sm:$0xff]  ;;  %v1091_v44 = vld [vmem:[%s10258_s6 + $0xd0] sm:$0xff] }
  0x23   : > { %v1076_v45 = vld [vmem:[%s10258_s6 + $0x58] sm:$0xff]  ;;  %v1075_v46 = vld [vmem:[%s10258_s6 + $0x50] sm:$0xff]  ;;  %v1090_v47 = vld [vmem:[%s10258_s6 + $0xc8] sm:$0xff]  ;;  %p7116_p13 = pneg %p7115_p12  ;;  %p7122_p2 = por %p7121_p1, %p7120_p0 }
  0x24   : > { %489 = vperm.xlu1 %6996, %v475_v14   ;;  %484 = vperm.xlu0 %6995, %v474_v15   ;;  %v1089_v48 = vld [vmem:[%s10258_s6 + $0xc0] sm:$0xff]  ;;  %v1074_v49 = vld [vmem:[%s10258_s6 + $0x48] sm:$0xff]  ;;  %v1088_v51 = vld [vmem:[%s10258_s6 + $0xb8] sm:$0xff] }
  0x25   : > { %6717 = vmatmul.mubr.msk.bf16.vlgmr.msra.gmra.mxu0 %vm542_vm2, %v6998_v16  ;;  %v1073_v50 = vld [vmem:[%s10258_s6 + $0x40] sm:$0xff]  ;;  %v1087_v52 = vld [vmem:[%s10258_s6 + $0xb0] sm:$0xff]  ;;  %v1072_v53 = vld [vmem:[%s10258_s6 + $0x38] sm:$0xff]  ;;  %p7123_p3 = pnand %p7122_p2, %p7116_p13 }
  0x26   : > { %6720 = vmatprep.mubr.msk.bf16.mxu0 %vm542_vm2, %v6999_v17  ;;  %v1071_v54 = vld [vmem:[%s10258_s6 + $0x30] sm:$0xff]  ;;  %v1086_v55 = vld [vmem:[%s10258_s6 + $0xa8] sm:$0xff]  ;;  %v1085_v56 = vld [vmem:[%s10258_s6 + $0xa0] sm:$0xff] }
  0x27   : > { %v1070_v57 = vld [vmem:[%s10258_s6 + $0x28] sm:$0xff]  ;;  %v1069_v58 = vld [vmem:[%s10258_s6 + $0x20] sm:$0xff]  ;;  %v1084_v59 = vld [vmem:[%s10258_s6 + $0x98] sm:$0xff] }
  0x28   : > { %748 = vperm.xlu1 %6996, %v670_v18   ;;  %743 = vperm.xlu0 %6995, %v669_v19   ;;  %v1083_v60 = vld [vmem:[%s10258_s6 + $0x90] sm:$0xff]  ;;  %v1068_v61 = vld [vmem:[%s10258_s6 + $0x18] sm:$0xff]  ;;  %v1082_v63 = vld [vmem:[%s10258_s6 + $0x88] sm:$0xff] }
  0x29   : > { %v1067_v62 = vld [vmem:[%s10258_s6 + $0x10] sm:$0xff]  ;;  %v1081_v0 = vld [vmem:[%s10258_s6 + $0x80] sm:$0xff]  ;;  %v1066_v1 = vld [vmem:[%s10258_s6 + $0x8] sm:$0xff] }
  0x2a   : > { %v1065_v2 = vld [vmem:[%s10258_s6] sm:$0xff]  ;;  %v1127_v3 = vld [vmem:[%s10258_s6 + $0x1f0] sm:$0xff]  ;;  %v1128_v4 = vld [vmem:[%s10258_s6 + $0x1f8] sm:$0xff] }
  0x2b   : > { %v7001_v5 = vld [vmem:[%s10255_s3] sm:$0xff]   ;;  %v1111_v6 = vld [vmem:[%s10258_s6 + $0x170] sm:$0xff]  ;;  %v1112_v8 = vld [vmem:[%s10258_s6 + $0x178] sm:$0xff] }
  0x2c   : > { %738 = vperm.xlu1 %6996, %v668_v20   ;;  %733 = vperm.xlu0 %6995, %v667_v21   ;;  %v1125_v7 = vld [vmem:[%s10258_s6 + $0x1e0] sm:$0xff]  ;;  %v1126_v10 = vld [vmem:[%s10258_s6 + $0x1e8] sm:$0xff]  ;;  %v1123_v11 = vld [vmem:[%s10258_s6 + $0x1d0] sm:$0xff] }
  0x2d   : > { %6721 = vmatmul.mubr.msk.bf16.gmra.mxu0 %vm542_vm2, %v7000_v22  ;;  %6732 = vmatprep.mubr.msk.bf16.mxu1 %vm791_vm3, %v7001_v5  ;;  %v1109_v9 = vld [vmem:[%s10258_s6 + $0x160] sm:$0xff]  ;;  %v1110_v12 = vld [vmem:[%s10258_s6 + $0x168] sm:$0xff]  ;;  %v1107_v13 = vld [vmem:[%s10258_s6 + $0x150] sm:$0xff] }
  0x2e   : > { %v1124_v14 = vld [vmem:[%s10258_s6 + $0x1d8] sm:$0xff]  ;;  %v1121_v15 = vld [vmem:[%s10258_s6 + $0x1c0] sm:$0xff]  ;;  %v1122_v18 = vld [vmem:[%s10258_s6 + $0x1c8] sm:$0xff] }
  0x2f   : > { %v1108_v16 = vld [vmem:[%s10258_s6 + $0x158] sm:$0xff]  ;;  %v1105_v17 = vld [vmem:[%s10258_s6 + $0x140] sm:$0xff]  ;;  %v1119_v19 = vld [vmem:[%s10258_s6 + $0x1b0] sm:$0xff] }
  0x30   : > { %728 = vperm.xlu1 %6996, %v666_v23   ;;  %723 = vperm.xlu0 %6995, %v665_v24   ;;  %v1106_v20 = vld [vmem:[%s10258_s6 + $0x148] sm:$0xff]  ;;  %v1103_v21 = vld [vmem:[%s10258_s6 + $0x130] sm:$0xff]  ;;  %v1120_v22 = vld [vmem:[%s10258_s6 + $0x1b8] sm:$0xff] }
  0x31   : > { %v1117_v23 = vld [vmem:[%s10258_s6 + $0x1a0] sm:$0xff]  ;;  %v1142_v5 = vld [vmem:[%s10258_s6 + $0x268] sm:$0xff] }
  0x34   : > { %718 = vperm.xlu1 %6996, %v664_v25   ;;  %713 = vperm.xlu0 %6995, %v663_v26   ;;  %v1104_v25 = vld [vmem:[%s10258_s6 + $0x138] sm:$0xff]  ;;  %v1101_v26 = vld [vmem:[%s10258_s6 + $0x120] sm:$0xff] }
  0x38   : > { %708 = vperm.xlu1 %6996, %v662_v27   ;;  %703 = vperm.xlu0 %6995, %v661_v28  }
  0x3c   : > { %698 = vperm.xlu1 %6996, %v660_v29   ;;  %693 = vperm.xlu0 %6995, %v659_v30   ;;  %v1118_v29 = vld [vmem:[%s10258_s6 + $0x1a8] sm:$0xff]  ;;  %v1115_v30 = vld [vmem:[%s10258_s6 + $0x190] sm:$0xff] }
  0x40   : > { %688 = vperm.xlu1 %6996, %v658_v31   ;;  %683 = vperm.xlu0 %6995, %v657_v32   ;;  %v1102_v32 = vld [vmem:[%s10258_s6 + $0x128] sm:$0xff] }
  0x44   : > { %678 = vperm.xlu1 %6996, %v656_v33   ;;  %673 = vperm.xlu0 %6995, %v655_v34   ;;  %v1099_v33 = vld [vmem:[%s10258_s6 + $0x110] sm:$0xff] }
  0x48   : > { %1350 = vperm.xlu1 %6996, %v1096_v35   ;;  %1345 = vperm.xlu0 %6995, %v1095_v36   ;;  %v1116_v35 = vld [vmem:[%s10258_s6 + $0x198] sm:$0xff]  ;;  %v1113_v36 = vld [vmem:[%s10258_s6 + $0x180] sm:$0xff] }
  0x4c   : > { %1270 = vperm.xlu1 %6996, %v1080_v37   ;;  %1265 = vperm.xlu0 %6995, %v1079_v38  }
  0x50   : > { %1340 = vperm.xlu1 %6996, %v1094_v39   ;;  %1335 = vperm.xlu0 %6995, %v1093_v40   ;;  %v1100_v39 = vld [vmem:[%s10258_s6 + $0x118] sm:$0xff]  ;;  %v1097_v40 = vld [vmem:[%s10258_s6 + $0x100] sm:$0xff] }
  0x54   : > { %1260 = vperm.xlu1 %6996, %v1078_v41   ;;  %1255 = vperm.xlu0 %6995, %v1077_v42   ;;  %v1114_v42 = vld [vmem:[%s10258_s6 + $0x188] sm:$0xff] }
  0x58   : > { %1330 = vperm.xlu1 %6996, %v1092_v43   ;;  %1325 = vperm.xlu0 %6995, %v1091_v44   ;;  %v1160_v43 = vld [vmem:[%s10258_s6 + $0x2f8] sm:$0xff] }
  0x5c   : > { %1250 = vperm.xlu1 %6996, %v1076_v45   ;;  %1245 = vperm.xlu0 %6995, %v1075_v46   ;;  %v1098_v45 = vld [vmem:[%s10258_s6 + $0x108] sm:$0xff]  ;;  %v1191_v46 = vld [vmem:[%s10258_s6 + $0x3f0] sm:$0xff] }
  0x60   : > { %1320 = vperm.xlu1 %6996, %v1090_v47   ;;  %1315 = vperm.xlu0 %6995, %v1089_v48  }
  0x64   : > { %1240 = vperm.xlu1 %6996, %v1074_v49   ;;  %1235 = vperm.xlu0 %6995, %v1073_v50   ;;  %v1159_v49 = vld [vmem:[%s10258_s6 + $0x2f0] sm:$0xff] }
  0x65   : > { %v1175_v50 = vld [vmem:[%s10258_s6 + $0x370] sm:$0xff] }
  0x68   : > { %1310 = vperm.xlu1 %6996, %v1088_v51   ;;  %1305 = vperm.xlu0 %6995, %v1087_v52   ;;  %v1143_v52 = vld [vmem:[%s10258_s6 + $0x270] sm:$0xff] }
  0x6c   : > { %1230 = vperm.xlu1 %6996, %v1072_v53   ;;  %1225 = vperm.xlu0 %6995, %v1071_v54   ;;  %v1157_v53 = vld [vmem:[%s10258_s6 + $0x2e0] sm:$0xff] }
  0x70   : > { %1300 = vperm.xlu1 %6996, %v1086_v55   ;;  %1295 = vperm.xlu0 %6995, %v1085_v56   ;;  %v1144_v55 = vld [vmem:[%s10258_s6 + $0x278] sm:$0xff]  ;;  %v1141_v56 = vld [vmem:[%s10258_s6 + $0x260] sm:$0xff] }
  0x74   : > { %1220 = vperm.xlu1 %6996, %v1070_v57   ;;  %1215 = vperm.xlu0 %6995, %v1069_v58  }
  0x78   : > { %1290 = vperm.xlu1 %6996, %v1084_v59   ;;  %1285 = vperm.xlu0 %6995, %v1083_v60   ;;  %v1192_v59 = vld [vmem:[%s10258_s6 + $0x3f8] sm:$0xff]  ;;  %v1189_v60 = vld [vmem:[%s10258_s6 + $0x3e0] sm:$0xff] }
  0x7c   : > { %1210 = vperm.xlu1 %6996, %v1068_v61   ;;  %1205 = vperm.xlu0 %6995, %v1067_v62   ;;  %v1176_v62 = vld [vmem:[%s10258_s6 + $0x378] sm:$0xff] }
  0x80   : > { %1280 = vperm.xlu1 %6996, %v1082_v63   ;;  %1275 = vperm.xlu0 %6995, %v1081_v0   ;;  %v1173_v63 = vld [vmem:[%s10258_s6 + $0x360] sm:$0xff] }
  0x84   : > { %1200 = vperm.xlu1 %6996, %v1066_v1   ;;  %1195 = vperm.xlu0 %6995, %v1065_v2   ;;  %v1158_v1 = vld [vmem:[%s10258_s6 + $0x2e8] sm:$0xff]  ;;  %v1155_v2 = vld [vmem:[%s10258_s6 + $0x2d0] sm:$0xff] }
  0x88   : > { %1505 = vperm.xlu1 %6996, %v1127_v3   ;;  %1510 = vperm.xlu0 %6995, %v1128_v4  }
  0x8c   : > { %1425 = vperm.xlu1 %6996, %v1111_v6   ;;  %1495 = vperm.xlu0 %6995, %v1125_v7   ;;  %v1139_v6 = vld [vmem:[%s10258_s6 + $0x250] sm:$0xff] }
  0x90   : > { %1430 = vperm.xlu1 %6996, %v1112_v8   ;;  %1415 = vperm.xlu0 %6995, %v1109_v9   ;;  %v1190_v9 = vld [vmem:[%s10258_s6 + $0x3e8] sm:$0xff] }
  0x93   : > { %v7556_v24 = vpop.permute.xlu1 %504  ;;  %v7564_v27 = vpop.permute.xlu0 %514 }
  0x94   : > { %1500 = vperm.xlu1 %6996, %v1126_v10   ;;  %1485 = vperm.xlu0 %6995, %v1123_v11   ;;  %v1187_v10 = vld [vmem:[%s10258_s6 + $0x3d0] sm:$0xff] }
  0x97   : > { %v7566_v28 = vpop.permute.xlu1 %509  ;;  %v7574_v31 = vpop.permute.xlu0 %519 }
  0x98   : > { %1420 = vperm.xlu1 %6996, %v1110_v12   ;;  %1405 = vperm.xlu0 %6995, %v1107_v13   ;;  %v1174_v13 = vld [vmem:[%s10258_s6 + $0x368] sm:$0xff] }
  0x9b   : > { %v7582_v34 = vpop.permute.xlu1 %499  ;;  %v7590_v37 = vpop.permute.xlu0 %494 }
  0x9c   : > { %1490 = vperm.xlu1 %6996, %v1124_v14   ;;  %1475 = vperm.xlu0 %6995, %v1121_v15   ;;  %v1171_v14 = vld [vmem:[%s10258_s6 + $0x350] sm:$0xff] }
  0x9f   : > { %v7592_v38 = vpop.permute.xlu1 %489  ;;  %v7600_v41 = vpop.permute.xlu0 %484 }
  0xa0   : > { %1410 = vperm.xlu1 %6996, %v1108_v16   ;;  %1395 = vperm.xlu0 %6995, %v1105_v17  }
  0xa3   : > { %v7608_v44 = vpop.permute.xlu1 %748  ;;  %v7616_v47 = vpop.permute.xlu0 %743 }
  0xa4   : > { %1480 = vperm.xlu1 %6996, %v1122_v18   ;;  %1465 = vperm.xlu0 %6995, %v1119_v19   ;;  %v1156_v19 = vld [vmem:[%s10258_s6 + $0x2d8] sm:$0xff] }
  0xa7   : > { %v7618_v48 = vpop.permute.xlu1 %738  ;;  %v7626_v51 = vpop.permute.xlu0 %733 }
  0xa8   : > { %1400 = vperm.xlu1 %6996, %v1106_v20   ;;  %1385 = vperm.xlu0 %6995, %v1103_v21   ;;  %v1153_v20 = vld [vmem:[%s10258_s6 + $0x2c0] sm:$0xff] }
  0xab   : > { %v7634_v54 = vpop.permute.xlu1 %728  ;;  %v7642_v57 = vpop.permute.xlu0 %723 }
  0xac   : > { %1470 = vperm.xlu1 %6996, %v1120_v22   ;;  %1455 = vperm.xlu0 %6995, %v1117_v23  }
  0xaf   : > { %v7644_v58 = vpop.permute.xlu1 %718  ;;  %v7652_v61 = vpop.permute.xlu0 %713 }
  0xb0   : > { %1390 = vperm.xlu1 %6996, %v1104_v25   ;;  %1375 = vperm.xlu0 %6995, %v1101_v26   ;;  %v1140_v26 = vld [vmem:[%s10258_s6 + $0x258] sm:$0xff] }
  0xb3   : > { %v7660_v0 = vpop.permute.xlu1 %708  ;;  %v7668_v3 = vpop.permute.xlu0 %703 }
  0xb4   : > { %1460 = vperm.xlu1 %6996, %v1118_v29   ;;  %1445 = vperm.xlu0 %6995, %v1115_v30   ;;  %v1137_v29 = vld [vmem:[%s10258_s6 + $0x240] sm:$0xff] }
  0xb7   : > { %v7670_v4 = vpop.permute.xlu1 %698  ;;  %v7678_v7 = vpop.permute.xlu0 %693 }
  0xb8   : > { %1380 = vperm.xlu1 %6996, %v1102_v32   ;;  %1365 = vperm.xlu0 %6995, %v1099_v33  }
  0xbb   : > { %v7686_v11 = vpop.permute.xlu1 %688  ;;  %v7694_v16 = vpop.permute.xlu0 %683 }
  0xbc   : > { %1450 = vperm.xlu1 %6996, %v1116_v35   ;;  %1435 = vperm.xlu0 %6995, %v1113_v36  }
  0xbf   : > { %v7696_v17 = vpop.permute.xlu1 %678  ;;  %v7704_v23 = vpop.permute.xlu0 %673 }
  0xc0   : > { %1370 = vperm.xlu1 %6996, %v1100_v39   ;;  %1355 = vperm.xlu0 %6995, %v1097_v40  }
  0xc3   : > { %v7713_v30 = vpop.permute.xlu1 %1350 }
  0xc4   : > { %1440 = vperm.xlu1 %6996, %v1114_v42   ;;  %1670 = vperm.xlu0 %6995, %v1160_v43   ;;  %10287 = vst [vmem:[#allocation9_spill] sm:$0xff] %v7713_v30  ;;  %v1188_v43 = vld [vmem:[%s10258_s6 + $0x3d8] sm:$0xff] }
  0xc8   : > { %1360 = vperm.xlu1 %6996, %v1098_v45   ;;  %1825 = vperm.xlu0 %6995, %v1191_v46   ;;  %v1185_v45 = vld [vmem:[%s10258_s6 + $0x3c0] sm:$0xff] }
  0xcc   : > { %1665 = vperm.xlu1 %6996, %v1159_v49   ;;  %1745 = vperm.xlu0 %6995, %v1175_v50   ;;  %v7728_v50 = vpop.permute.xlu0 %1345 }
  0xcd   : > { %10289 = vst [vmem:[#allocation11_spill] sm:$0xff] %v7728_v50 }
  0xd0   : > { %1585 = vperm.xlu1 %6996, %v1143_v52   ;;  %1655 = vperm.xlu0 %6995, %v1157_v53  }
  0xd4   : > { %1590 = vperm.xlu1 %6996, %v1144_v55   ;;  %1575 = vperm.xlu0 %6995, %v1141_v56   ;;  %v1169_v55 = vld [vmem:[%s10258_s6 + $0x340] sm:$0xff] }
  0xd8   : > { %1830 = vperm.xlu1 %6996, %v1192_v59   ;;  %1815 = vperm.xlu0 %6995, %v1189_v60  }
  0xdc   : > { %1750 = vperm.xlu1 %6996, %v1176_v62   ;;  %1735 = vperm.xlu0 %6995, %v1173_v63   ;;  %v1154_v62 = vld [vmem:[%s10258_s6 + $0x2c8] sm:$0xff]  ;;  %v1151_v63 = vld [vmem:[%s10258_s6 + $0x2b0] sm:$0xff] }
  0xe0   : > { %1660 = vperm.xlu1 %6996, %v1158_v1   ;;  %1645 = vperm.xlu0 %6995, %v1155_v2   ;;  %v7753_v1 = vpop.permute.xlu0 %1265 }
  0xe4   : > { %1580 = vperm.xlu1 %6996, %v1142_v5   ;;  %1565 = vperm.xlu0 %6995, %v1139_v6   ;;  %v1138_v6 = vld [vmem:[%s10258_s6 + $0x248] sm:$0xff] }
  0xe5   : > { %v6718_v8 = vpop.f32.mrf.mxu0 }
  0xe7   : > { %v596_v12 = vpop.f32.mrf.mxu0 }
  0xe8   : > { %1820 = vperm.xlu1 %6996, %v1190_v9   ;;  %1805 = vperm.xlu0 %6995, %v1187_v10   ;;  %v597_v59 = vadd.f32 %v596_v12, %v7600_v41  ;;  %v7769_v9 = vpop.permute.xlu0 %1335  ;;  %v1186_v12 = vld [vmem:[%s10258_s6 + $0x3c8] sm:$0xff] }
  0xe9   : > { %v6719_v15 = vpop.f32.mrf.mxu0  ;;  %10294 = vst [vmem:[#allocation16_spill] sm:$0xff] %v7769_v9 }
  0xea   : > { %v627_v41 = vmax.f32 %v597_v59, 0.0  ;;  %v1131_v59 = vld [vmem:[%s10258_s6 + $0x210] sm:$0xff] }
  0xeb   : > { %v599_v18 = vpop.f32.mrf.mxu0 }
  0xec   : > { %1740 = vperm.xlu1 %6996, %v1174_v13   ;;  %1725 = vperm.xlu0 %6995, %v1171_v14   ;;  %v600_v52 = vadd.f32 %v599_v18, %v7592_v38  ;;  %v1183_v13 = vld [vmem:[%s10258_s6 + $0x3b0] sm:$0xff]  ;;  %v7002_v14 = vld [vmem:[%s10255_s3 + $0x8] sm:$0xff]  }
  0xed   : > { %v6722_v21 = vpop.f32.mrf.mxu0  ;;  %v1170_v18 = vld [vmem:[%s10258_s6 + $0x348] sm:$0xff] }
  0xee   : > { %v621_v25 = vadd.f32 %v6722_v21, %v7564_v27  ;;  %v608_v27 = vadd.f32 %v6719_v15, %v7582_v34  ;;  %v7730_v34 = vpop.permute.xlu1 %1270  ;;  %v628_v60 = vmax.f32 %v600_v52, 0.0  ;;  %v7003_v15 = vld [vmem:[%s10255_s3 + $0x10] sm:$0xff]   ;;  %v1150_v52 = vld [vmem:[%s10258_s6 + $0x2a8] sm:$0xff] }
  0xef   : > { %v612_v22 = vpop.f32.mrf.mxu0 }
  0xf0   : > { %1650 = vperm.xlu1 %6996, %v1156_v19   ;;  %1635 = vperm.xlu0 %6995, %v1153_v20   ;;  %v613_v33 = vadd.f32 %v612_v22, %v7556_v24  ;;  %v633_v39 = vmax.f32 %v621_v25, 0.0  ;;  %v605_v24 = vadd.f32 %v6718_v8, %v7590_v37  ;;  %v1172_v37 = vld [vmem:[%s10258_s6 + $0x358] sm:$0xff]  ;;  %v7759_v5 = vpack.c.bf16 %v628_v60, %v627_v41  ;;  %v1135_v8 = vld [vmem:[%s10258_s6 + $0x230] sm:$0xff]  ;;  %v7793_v20 = vpop.permute.xlu0 %1255  ;;  %v1149_v25 = vld [vmem:[%s10258_s6 + $0x2a0] sm:$0xff] }
  0xf1   : > { %v6723_v32 = vpop.f32.mrf.mxu0  ;;  %v1167_v19 = vld [vmem:[%s10258_s6 + $0x330] sm:$0xff]  ;;  %v1152_v22 = vld [vmem:[%s10258_s6 + $0x2b8] sm:$0xff] }
  0xf2   : > { %v624_v35 = vadd.f32 %v6723_v32, %v7574_v31  ;;  %v631_v31 = vmax.f32 %v613_v33, 0.0  ;;  %v629_v56 = vmax.f32 %v605_v24, 0.0  ;;  %v7755_v2 = vpop.permute.xlu1 %1340  ;;  %10293 = vst [vmem:[#allocation15_spill] sm:$0xff] %v7759_v5  ;;  %v1168_v24 = vld [vmem:[%s10258_s6 + $0x338] sm:$0xff]  ;;  %v1179_v41 = vld [vmem:[%s10258_s6 + $0x390] sm:$0xff] }
  0xf3   : > { %v615_v36 = vpop.f32.mrf.mxu0  ;;  %10292 = vst [vmem:[#allocation14_spill] sm:$0xff] %v7755_v2 }
  0xf4   : > { %1570 = vperm.xlu1 %6996, %v1140_v26   ;;  %1555 = vperm.xlu0 %6995, %v1137_v29   ;;  %v634_v40 = vmax.f32 %v624_v35, 0.0  ;;  %v616_v42 = vadd.f32 %v615_v36, %v7566_v28  ;;  %v630_v28 = vmax.f32 %v608_v27, 0.0  ;;  %v7004_v26 = vld [vmem:[%s10255_s3 + $0x18] sm:$0xff]   ;;  %v7005_v29 = vld [vmem:[%s10255_s3 + $0x20] sm:$0xff]   ;;  %v7810_v32 = vpop.permute.xlu0 %1325 }
  0xf5   : > { %v1136_v35 = vld [vmem:[%s10258_s6 + $0x238] sm:$0xff]  ;;  %v1133_v36 = vld [vmem:[%s10258_s6 + $0x220] sm:$0xff] }
  0xf6   : > { %v7726_v46 = vpack.c.bf16 %v634_v40, %v633_v39  ;;  %v632_v49 = vmax.f32 %v616_v42, 0.0  ;;  %v7745_v38 = vpack.c.bf16 %v630_v28, %v629_v56  ;;  %v7771_v10 = vpop.permute.xlu1 %1260  ;;  %v1184_v27 = vld [vmem:[%s10258_s6 + $0x3b8] sm:$0xff]  ;;  %v1181_v39 = vld [vmem:[%s10258_s6 + $0x3a0] sm:$0xff]  ;;  %v7006_v40 = vld [vmem:[%s10255_s3 + $0x28] sm:$0xff]  }
  0xf7   : > { %v1134_v56 = vld [vmem:[%s10258_s6 + $0x228] sm:$0xff] }
  0xf8   : > { %10288 = vst [vmem:[#allocation10_spill] sm:$0xff] %v7726_v46  ;;  %1810 = vperm.xlu1 %6996, %v1188_v43   ;;  %1795 = vperm.xlu0 %6995, %v1185_v45   ;;  %v7733_v53 = vpack.c.bf16 %v632_v49, %v631_v31  ;;  %10291 = vst [vmem:[#allocation13_spill] sm:$0xff] %v7745_v38  ;;  %v7831_v42 = vpop.permute.xlu0 %1245  ;;  %v7007_v45 = vld [vmem:[%s10255_s3 + $0x30] sm:$0xff]   ;;  %v1165_v31 = vld [vmem:[%s10258_s6 + $0x320] sm:$0xff] }
  0xf9   : > { %6724 = vmatprep.subr.bf16.mxu1 %v7726_v46 }
  0xfa   : > { %10290 = vst [vmem:[#allocation12_spill] sm:$0xff] %v7733_v53  ;;  %6725 = vmatpush3.bf16.msra.mxu1 %v7726_v46  ;;  %v7795_v21 = vpop.permute.xlu1 %1330 }
  0xfb   : > { %6726 = vmatprep.subr.bf16.mxu1 %v7733_v53 }
  0xfc   : > { %1730 = vperm.xlu1 %6996, %v1172_v37   ;;  %1715 = vperm.xlu0 %6995, %v1169_v55   ;;  %v7846_v49 = vpop.permute.xlu0 %1315  ;;  %v1147_v37 = vld [vmem:[%s10258_s6 + $0x290] sm:$0xff]  ;;  %v7008_v55 = vld [vmem:[%s10255_s3 + $0x38] sm:$0xff]  }
  0xfe   : > { %6727 = vmatpush3.bf16.msra.mxu1 %v7733_v53  ;;  %v7812_v33 = vpop.permute.xlu1 %1250 }
  0xff   : > { %6728 = vmatprep.subr.bf16.mxu1 %v7745_v38 }
 0x100   : > { %1640 = vperm.xlu1 %6996, %v1154_v62   ;;  %1625 = vperm.xlu0 %6995, %v1151_v63   ;;  %v7866_v60 = vpop.permute.xlu0 %1235  ;;  %v1182_v63 = vld [vmem:[%s10258_s6 + $0x3a8] sm:$0xff] }
 0x102   : > { %6729 = vmatpush3.bf16.msra.mxu1 %v7745_v38  ;;  %v7833_v43 = vpop.permute.xlu1 %1320 }
 0x103   : > { %6730 = vmatprep.subr.bf16.mxu1 %v7759_v5  ;;  %10295 = vst [vmem:[#allocation17_spill] sm:$0xff] %v7833_v43 }
 0x104   : > { %1560 = vperm.xlu1 %6996, %v1138_v6   ;;  %1545 = vperm.xlu0 %6995, %v1135_v8   ;;  %v7876_v6 = vpop.permute.xlu0 %1305 }
 0x106   : > { %6731 = vmatpush3.bf16.msra.mxu1 %v7759_v5  ;;  %v7848_v28 = vpop.permute.xlu1 %1240 }
 0x108   : > { %1800 = vperm.xlu1 %6996, %v1186_v12   ;;  %1785 = vperm.xlu0 %6995, %v1183_v13   ;;  %v1166_v12 = vld [vmem:[%s10258_s6 + $0x328] sm:$0xff]  ;;  %v1163_v13 = vld [vmem:[%s10258_s6 + $0x310] sm:$0xff] }
 0x109   : > { %6733 = vmatmul.mubr.msk.bf16.vlgmr.msra.gmra.mxu1 %vm791_vm3, %v7002_v14  ;;  %v1148_v14 = vld [vmem:[%s10258_s6 + $0x298] sm:$0xff] }
 0x10a   : > { %6736 = vmatprep.mubr.msk.bf16.mxu1 %vm791_vm3, %v7003_v15  ;;  %v7868_v62 = vpop.permute.xlu1 %1310  ;;  %v1145_v15 = vld [vmem:[%s10258_s6 + $0x280] sm:$0xff] }
 0x10c   : > { %1720 = vperm.xlu1 %6996, %v1170_v18   ;;  %1705 = vperm.xlu0 %6995, %v1167_v19   ;;  %v7892_v18 = vpop.permute.xlu0 %1225 }
 0x10e   : > { %v7878_v8 = vpop.permute.xlu1 %1230 }
 0x110   : > { %1630 = vperm.xlu1 %6996, %v1152_v22   ;;  %1615 = vperm.xlu0 %6995, %v1149_v25   ;;  %v1132_v22 = vld [vmem:[%s10258_s6 + $0x218] sm:$0xff]  ;;  %v1129_v25 = vld [vmem:[%s10258_s6 + $0x200] sm:$0xff] }
 0x111   : > { %6737 = vmatmul.mubr.msk.bf16.gmra.mxu1 %vm791_vm3, %v7004_v26  ;;  %v7902_v26 = vpop.permute.xlu0 %1295 }
 0x112   : > { %6740 = vmatprep.mubr.msk.bf16.mxu1 %vm791_vm3, %v7005_v29  ;;  %v7894_v19 = vpop.permute.xlu1 %1300 }
 0x114   : > { %1550 = vperm.xlu1 %6996, %v1136_v35   ;;  %1535 = vperm.xlu0 %6995, %v1133_v36   ;;  %v1180_v35 = vld [vmem:[%s10258_s6 + $0x398] sm:$0xff] }
 0x115   : > { %v1164_v36 = vld [vmem:[%s10258_s6 + $0x318] sm:$0xff] }
 0x116   : > { %v7904_v29 = vpop.permute.xlu1 %1220 }
 0x118   : > { %1790 = vperm.xlu1 %6996, %v1184_v27   ;;  %1775 = vperm.xlu0 %6995, %v1181_v39   ;;  %v1146_v39 = vld [vmem:[%s10258_s6 + $0x288] sm:$0xff] }
 0x119   : > { %6741 = vmatmul.mubr.msk.bf16.gmra.mxu1 %vm791_vm3, %v7006_v40 }
 0x11a   : > { %6744 = vmatprep.mubr.msk.bf16.mxu1 %vm791_vm3, %v7007_v45  ;;  %v7912_v27 = vpop.permute.xlu1 %1290  ;;  %v7009_v45 = vld [vmem:[%s10257_s5] sm:$0xff]  }
 0x11b   : > { %6764 = vmatprep.mubr.bf16.mxu0 %v7009_v45 }
 0x11c   : > { %1710 = vperm.xlu1 %6996, %v1168_v24   ;;  %1695 = vperm.xlu0 %6995, %v1165_v31  }
 0x11e   : > { %v7917_v40 = vpop.permute.xlu1 %1210 }
 0x120   : > { %1620 = vperm.xlu1 %6996, %v1150_v52   ;;  %1605 = vperm.xlu0 %6995, %v1147_v37  }
 0x121   : > { %6745 = vmatmul.mubr.msk.bf16.gmra.mxu1 %vm791_vm3, %v7008_v55 }
 0x124   : > { %1540 = vperm.xlu1 %6996, %v1134_v56   ;;  %1525 = vperm.xlu0 %6995, %v1131_v59  }
 0x128   : > { %1780 = vperm.xlu1 %6996, %v1182_v63   ;;  %1765 = vperm.xlu0 %6995, %v1179_v41  }
 0x12c   : > { %1700 = vperm.xlu1 %6996, %v1166_v12   ;;  %1685 = vperm.xlu0 %6995, %v1163_v13  }
 0x130   : > { %1610 = vperm.xlu1 %6996, %v1148_v14   ;;  %1595 = vperm.xlu0 %6995, %v1145_v15  }
 0x134   : > { %1530 = vperm.xlu1 %6996, %v1132_v22   ;;  %1515 = vperm.xlu0 %6995, %v1129_v25  }
 0x138   : > { %1770 = vperm.xlu1 %6996, %v1180_v35  }
 0x13c   : > { %1690 = vperm.xlu1 %6996, %v1164_v36  }
 0x140   : > { %1600 = vperm.xlu1 %6996, %v1146_v39  }
 0x1c9   : > { %v6734_v24 = vpop.f32.mrf.mxu1 }
 0x1cb   : > { %v850_v31 = vpop.f32.mrf.mxu1 }
 0x1cd   : > { %v6735_v52 = vpop.f32.mrf.mxu1 }
 0x1cf   : > { %v853_v37 = vpop.f32.mrf.mxu1 }
 0x1d1   : > { %v6738_v55 = vpop.f32.mrf.mxu1 }
 0x1d3   : > { %v866_v56 = vpop.f32.mrf.mxu1 }
 0x1d5   : > { %v6739_v59 = vpop.f32.mrf.mxu1 }
 0x1d7   : > { %v869_v63 = vpop.f32.mrf.mxu1 }
 0x1d9   : > { %v6742_v41 = vpop.f32.mrf.mxu1 }
 0x1da   : > { %v891_v2 = vadd.f32 %v6742_v41, %v7642_v57  ;;  %v7018_v41 = vld [vmem:[%s10257_s5 + $0x48] sm:$0xff]  }
 0x1db   : > { %v882_v12 = vpop.f32.mrf.mxu1 }
 0x1dd   : > { %v6743_v13 = vpop.f32.mrf.mxu1 }
 0x1de   : > { %v894_v5 = vadd.f32 %v6743_v13, %v7634_v54  ;;  %v878_v54 = vadd.f32 %v6739_v59, %v7660_v0  ;;  %v7016_v59 = vld [vmem:[%s10257_s5 + $0x38] sm:$0xff]  }
 0x1df   : > { %v885_v14 = vpop.f32.mrf.mxu1 }
 0x1e0   : > { %v924_v43 = vmax.f32 %v894_v5, 0.0 }
 0x1e1   : > { %v6746_v15 = vpop.f32.mrf.mxu1 }
 0x1e2   : > { %v907_v25 = vadd.f32 %v6746_v15, %v7616_v47  ;;  %v886_v47 = vadd.f32 %v885_v14, %v7644_v58  ;;  %v7020_v14 = vld [vmem:[%s10257_s5 + $0x58] sm:$0xff]  }
 0x1e3   : > { %v898_v22 = vpop.f32.mrf.mxu1 }
 0x1e4   : > { %v899_v36 = vadd.f32 %v898_v22, %v7626_v51  ;;  %v927_v38 = vmax.f32 %v907_v25, 0.0  ;;  %v923_v51 = vmax.f32 %v891_v2, 0.0  ;;  %v922_v22 = vmax.f32 %v886_v47, 0.0  ;;  %v7021_v25 = vld [vmem:[%s10257_s5 + $0x60] sm:$0xff]  }
 0x1e5   : > { %v6747_v35 = vpop.f32.mrf.mxu1  ;;  %v859_v2 = vadd.f32 %v6734_v24, %v7694_v16  ;;  %v7010_v16 = vld [vmem:[%s10257_s5 + $0x8] sm:$0xff]   ;;  %v7013_v24 = vld [vmem:[%s10257_s5 + $0x20] sm:$0xff]  }
 0x1e6   : > { %v910_v39 = vadd.f32 %v6747_v35, %v7608_v44  ;;  %v925_v50 = vmax.f32 %v899_v36, 0.0  ;;  %v883_v44 = vadd.f32 %v882_v12, %v7652_v61  ;;  %v1062_v13 = vpack.c.bf16 %v924_v43, %v923_v51  ;;  %v7019_v12 = vld [vmem:[%s10257_s5 + $0x50] sm:$0xff]   ;;  %v7974_v35 = vpop.permute.xlu1 %1280  ;;  %v7022_v36 = vld [vmem:[%s10257_s5 + $0x68] sm:$0xff]   ;;  %v7024_v51 = vld [vmem:[%s10257_s5 + $0x78] sm:$0xff]  }
 0x1e7   : > { %v901_v45 = vpop.f32.mrf.mxu1  ;;  %v862_v61 = vadd.f32 %v6735_v52, %v7686_v11 }
 0x1e8   : > { %v928_v53 = vmax.f32 %v910_v39, 0.0  ;;  %v902_v46 = vadd.f32 %v901_v45, %v7618_v48  ;;  %v875_v48 = vadd.f32 %v6738_v55, %v7668_v3  ;;  %v921_v57 = vmax.f32 %v883_v44, 0.0  ;;  %v7979_v39 = vpop.permute.xlu0 %1215  ;;  %v7023_v45 = vld [vmem:[%s10257_s5 + $0x70] sm:$0xff]  }
 0x1e9   : > { %v916_v3 = vmax.f32 %v862_v61, 0.0  ;;  %v851_v55 = vadd.f32 %v850_v31, %v7704_v23  ;;  %v7012_v23 = vld [vmem:[%s10257_s5 + $0x18] sm:$0xff]   ;;  %v7014_v31 = vld [vmem:[%s10257_s5 + $0x28] sm:$0xff]  }
 0x1ea   : > { %v1064_v30 = vpack.c.bf16 %v928_v53, %v927_v38  ;;  %v926_v9 = vmax.f32 %v902_v46, 0.0  ;;  %v920_v46 = vmax.f32 %v878_v54, 0.0  ;;  %v870_v53 = vadd.f32 %v869_v63, %v7670_v4  ;;  %v7017_v63 = vld [vmem:[%s10257_s5 + $0x40] sm:$0xff]   ;;  %v7984_v47 = vpop.permute.xlu1 %1200 }
 0x1eb   : > { %v1061_v58 = vpack.c.bf16 %v922_v22, %v921_v57  ;;  %v915_v4 = vmax.f32 %v859_v2, 0.0  ;;  %v913_v11 = vmax.f32 %v851_v55, 0.0  ;;  %v7025_v54 = vld [vmem:[%s10257_s5 + $0x80] sm:$0xff]   ;;  %v7027_v57 = vld [vmem:[%s10257_s5 + $0x90] sm:$0xff]  }
 0x1ec   : > { %6748 = vmatprep.subr.bf16.mxu0 %v1064_v30  ;;  %v1063_v15 = vpack.c.bf16 %v926_v9, %v925_v50  ;;  %v919_v50 = vmax.f32 %v875_v48, 0.0  ;;  %v918_v0 = vmax.f32 %v870_v53, 0.0  ;;  %v854_v9 = vadd.f32 %v853_v37, %v7696_v17  ;;  %v7011_v17 = vld [vmem:[%s10257_s5 + $0x10] sm:$0xff]   ;;  %v7026_v48 = vld [vmem:[%s10257_s5 + $0x88] sm:$0xff]  }
 0x1ed   : > { %6749 = vmatpush3.bf16.msra.mxu0 %v1064_v30  ;;  %v867_v30 = vadd.f32 %v866_v56, %v7678_v7  ;;  %v1058_v7 = vpack.c.bf16 %v916_v3, %v915_v4  ;;  %v7015_v37 = vld [vmem:[%s10257_s5 + $0x30] sm:$0xff]   ;;  %v7033_v4 = vld [vmem:[%s10257_s5 + $0xc0] sm:$0xff]  }
 0x1ee   : > { %6750 = vmatprep.subr.bf16.mxu0 %v1063_v15  ;;  %v1060_v38 = vpack.c.bf16 %v920_v46, %v919_v50  ;;  %v914_v56 = vmax.f32 %v854_v9, 0.0  ;;  %v7991_v44 = vpop.permute.xlu1 %1505 }
 0x1ef   : > { %v917_v5 = vmax.f32 %v867_v30, 0.0  ;;  %10296 = vst [vmem:[#allocation18_spill] sm:$0xff] %v7991_v44  ;;  %v7029_v30 = vld [vmem:[%s10257_s5 + $0xa0] sm:$0xff]  }
 0x1f0   : > { %v1057_v52 = vpack.c.bf16 %v914_v56, %v913_v11  ;;  %v7034_v56 = vld [vmem:[%s10257_s5 + $0xc8] sm:$0xff]  }
 0x1f1   : > { %6751 = vmatpush3.bf16.msra.mxu0 %v1063_v15  ;;  %v1059_v43 = vpack.c.bf16 %v918_v0, %v917_v5  ;;  %v7986_v15 = vpop.permute.xlu0 %1285  ;;  %v7030_v0 = vld [vmem:[%s10257_s5 + $0xa8] sm:$0xff]   ;;  %v7031_v5 = vld [vmem:[%s10257_s5 + $0xb0] sm:$0xff]  }
 0x1f2   : > { %6752 = vmatprep.subr.bf16.mxu0 %v1062_v13  ;;  %v7998_v22 = vpop.permute.xlu1 %1425 }
 0x1f5   : > { %6753 = vmatpush3.bf16.msra.mxu0 %v1062_v13  ;;  %v7996_v13 = vpop.permute.xlu0 %1205 }
 0x1f6   : > { %6754 = vmatprep.subr.bf16.mxu0 %v1061_v58  ;;  %v8008_v53 = vpop.permute.xlu1 %1430 }
 0x1f9   : > { %6755 = vmatpush3.bf16.msra.mxu0 %v1061_v58  ;;  %v8006_v46 = vpop.permute.xlu0 %1275  ;;  %v7028_v58 = vld [vmem:[%s10257_s5 + $0x98] sm:$0xff]  }
 0x1fa   : > { %6756 = vmatprep.subr.bf16.mxu0 %v1060_v38  ;;  %v8018_v61 = vpop.permute.xlu1 %1500 }
 0x1fb   : > { %10297 = vst [vmem:[#allocation19_spill] sm:$0xff] %v8018_v61 }
 0x1fd   : > { %6757 = vmatpush3.bf16.msra.mxu0 %v1060_v38  ;;  %v8013_v50 = vpop.permute.xlu0 %1195 }
 0x1fe   : > { %6758 = vmatprep.subr.bf16.mxu0 %v1059_v43  ;;  %v8025_v2 = vpop.permute.xlu1 %1420 }
 0x201   : > { %6759 = vmatpush3.bf16.msra.mxu0 %v1059_v43  ;;  %v8020_v38 = vpop.permute.xlu0 %1510  ;;  %v7032_v43 = vld [vmem:[%s10257_s5 + $0xb8] sm:$0xff]  }
 0x202   : > { %6760 = vmatprep.subr.bf16.mxu0 %v1058_v7  ;;  %10298 = vst [vmem:[#allocation20_spill] sm:$0xff] %v8020_v38  ;;  %v8032_v9 = vpop.permute.xlu1 %1490 }
 0x203   : > { %10300 = vst [vmem:[#allocation22_spill] sm:$0xff] %v8032_v9 }
 0x205   : > { %6761 = vmatpush3.bf16.msra.mxu0 %v1058_v7  ;;  %v8030_v3 = vpop.permute.xlu0 %1495 }
 0x206   : > { %6762 = vmatprep.subr.bf16.mxu0 %v1057_v52  ;;  %10299 = vst [vmem:[#allocation21_spill] sm:$0xff] %v8030_v3  ;;  %v8042_v7 = vpop.permute.xlu1 %1410  ;;  %v7060_v3 = vld [vmem:[%s10257_s5 + $0x198] sm:$0xff]  }
 0x209   : > { %6763 = vmatpush3.bf16.msra.mxu0 %v1057_v52  ;;  %v8040_v55 = vpop.permute.xlu0 %1415  ;;  %v7035_v52 = vld [vmem:[%s10257_s5 + $0xd0] sm:$0xff]  }
 0x20c   : > { %6765 = vmatmul.mubr.bf16.vlgmr.msra.gmra.mxu0 %v7010_v16  ;;  %v8052_v16 = vpop.permute.xlu1 %1480 }
 0x20d   : > { %6768 = vmatprep.mubr.bf16.mxu0 %v7011_v17  ;;  %v8047_v11 = vpop.permute.xlu0 %1485  ;;  %10301 = vst [vmem:[#allocation23_spill] sm:$0xff] %v8052_v16 }
 0x211   : > { %v8054_v17 = vpop.permute.xlu0 %1405 }
 0x214   : > { %6769 = vmatmul.mubr.bf16.gmra.mxu0 %v7012_v23  ;;  %v7036_v23 = vld [vmem:[%s10257_s5 + $0xd8] sm:$0xff]  }
 0x215   : > { %6772 = vmatprep.mubr.bf16.mxu0 %v7013_v24  ;;  %v8059_v24 = vpop.permute.xlu1 %1400 }
 0x21c   : > { %6773 = vmatmul.mubr.bf16.gmra.mxu0 %v7014_v31  ;;  %v7037_v31 = vld [vmem:[%s10257_s5 + $0xe0] sm:$0xff]  }
 0x21d   : > { %6776 = vmatprep.mubr.bf16.mxu0 %v7015_v37  ;;  %v8064_v37 = vpop.permute.xlu0 %1475 }
 0x224   : > { %6777 = vmatmul.mubr.bf16.gmra.mxu0 %v7016_v59  ;;  %v8066_v59 = vpop.permute.xlu1 %1470 }
 0x225   : > { %6780 = vmatprep.mubr.bf16.mxu0 %v7017_v63  ;;  %v7038_v63 = vld [vmem:[%s10257_s5 + $0xe8] sm:$0xff]  }
 0x22c   : > { %6781 = vmatmul.mubr.bf16.gmra.mxu0 %v7018_v41  ;;  %v7039_v41 = vld [vmem:[%s10257_s5 + $0xf0] sm:$0xff]  }
 0x22d   : > { %6784 = vmatprep.mubr.bf16.mxu0 %v7019_v12  ;;  %v8074_v12 = vpop.permute.xlu0 %1395 }
 0x234   : > { %6785 = vmatmul.mubr.bf16.gmra.mxu0 %v7020_v14  ;;  %v8076_v14 = vpop.permute.xlu1 %1390 }
 0x235   : > { %6788 = vmatprep.mubr.bf16.mxu0 %v7021_v25  ;;  %v7040_v25 = vld [vmem:[%s10257_s5 + $0xf8] sm:$0xff]  }
 0x23c   : > { %6789 = vmatmul.mubr.bf16.gmra.mxu0 %v7022_v36  ;;  %v8081_v36 = vpop.permute.xlu0 %1465 }
 0x23d   : > { %6792 = vmatprep.mubr.bf16.mxu0 %v7023_v45  ;;  %v7041_v45 = vld [vmem:[%s10257_s5 + $0x100] sm:$0xff]  }
 0x244   : > { %6793 = vmatmul.mubr.bf16.gmra.mxu0 %v7024_v51  ;;  %v8086_v51 = vpop.permute.xlu1 %1460 }
 0x245   : > { %6796 = vmatprep.mubr.bf16.mxu0 %v7025_v54  ;;  %10302 = vst [vmem:[#allocation24_spill] sm:$0xff] %v8086_v51  ;;  %v8088_v54 = vpop.permute.xlu0 %1385 }
 0x24c   : > { %6797 = vmatmul.mubr.bf16.gmra.mxu0 %v7026_v48  ;;  %v7042_v48 = vld [vmem:[%s10257_s5 + $0x108] sm:$0xff]  }
 0x24d   : > { %6800 = vmatprep.mubr.bf16.mxu0 %v7027_v57  ;;  %v8093_v57 = vpop.permute.xlu1 %1380 }
 0x254   : > { %6801 = vmatmul.mubr.bf16.gmra.mxu0 %v7028_v58  ;;  %v7043_v58 = vld [vmem:[%s10257_s5 + $0x110] sm:$0xff]  }
 0x255   : > { %6804 = vmatprep.mubr.bf16.mxu0 %v7029_v30  ;;  %v8098_v30 = vpop.permute.xlu0 %1455 }
 0x25c   : > { %6805 = vmatmul.mubr.bf16.gmra.mxu0 %v7030_v0  ;;  %v8100_v0 = vpop.permute.xlu1 %1450 }
 0x25d   : > { %6808 = vmatprep.mubr.bf16.mxu0 %v7031_v5  ;;  %v7044_v5 = vld [vmem:[%s10257_s5 + $0x118] sm:$0xff]  }
 0x264   : > { %6809 = vmatmul.mubr.bf16.gmra.mxu0 %v7032_v43  ;;  %v7045_v43 = vld [vmem:[%s10257_s5 + $0x120] sm:$0xff]  }
 0x265   : > { %6812 = vmatprep.mubr.bf16.mxu0 %v7033_v4  ;;  %v8108_v4 = vpop.permute.xlu0 %1375 }
 0x26c   : > { %6813 = vmatmul.mubr.bf16.gmra.mxu0 %v7034_v56  ;;  %v8110_v56 = vpop.permute.xlu1 %1370 }
 0x26d   : > { %6816 = vmatprep.mubr.bf16.mxu0 %v7035_v52  ;;  %v7046_v52 = vld [vmem:[%s10257_s5 + $0x128] sm:$0xff]  }
 0x274   : > { %6817 = vmatmul.mubr.bf16.gmra.mxu0 %v7036_v23  ;;  %v8115_v23 = vpop.permute.xlu0 %1445 }
 0x275   : > { %6820 = vmatprep.mubr.bf16.mxu0 %v7037_v31  ;;  %v7047_v31 = vld [vmem:[%s10257_s5 + $0x130] sm:$0xff]  }
 0x27c   : > { %6821 = vmatmul.mubr.bf16.gmra.mxu0 %v7038_v63  ;;  %v8120_v63 = vpop.permute.xlu1 %1440 }
 0x27d   : > { %6824 = vmatprep.mubr.bf16.mxu0 %v7039_v41  ;;  %v8122_v41 = vpop.permute.xlu0 %1365 }
 0x284   : > { %6825 = vmatmul.mubr.bf16.gmra.mxu0 %v7040_v25  ;;  %v7048_v25 = vld [vmem:[%s10257_s5 + $0x138] sm:$0xff]  }
 0x285   : > { %6828 = vmatprep.mubr.bf16.mxu0 %v7041_v45  ;;  %v8127_v45 = vpop.permute.xlu1 %1360 }
 0x28c   : > { %6829 = vmatmul.mubr.bf16.gmra.mxu0 %v7042_v48  ;;  %v7049_v48 = vld [vmem:[%s10257_s5 + $0x140] sm:$0xff]  }
 0x28d   : > { %6832 = vmatprep.mubr.bf16.mxu0 %v7043_v58  ;;  %v8132_v58 = vpop.permute.xlu0 %1435 }
 0x294   : > { %6833 = vmatmul.mubr.bf16.gmra.mxu0 %v7044_v5  ;;  %v8134_v5 = vpop.permute.xlu1 %1665 }
 0x295   : > { %6836 = vmatprep.mubr.bf16.mxu0 %v7045_v43  ;;  %10303 = vst [vmem:[#allocation25_spill] sm:$0xff] %v8134_v5  ;;  %v7050_v43 = vld [vmem:[%s10257_s5 + $0x148] sm:$0xff]   ;;  %v7053_v5 = vld [vmem:[%s10257_s5 + $0x160] sm:$0xff]  }
 0x298   : > { %v8144_v61 = vpop.permute.xlu1 %1585 }
 0x299   : > { %10304 = vst [vmem:[#allocation26_spill] sm:$0xff] %v8144_v61 }
 0x29c   : > { %6837 = vmatmul.mubr.bf16.gmra.mxu0 %v7046_v52  ;;  %v7051_v52 = vld [vmem:[%s10257_s5 + $0x150] sm:$0xff]   ;;  %v8154_v44 = vpop.permute.xlu1 %1590 }
 0x29d   : > { %6840 = vmatprep.mubr.bf16.mxu0 %v7047_v31  ;;  %v8142_v31 = vpop.permute.xlu0 %1355  ;;  %10306 = vst [vmem:[#allocation28_spill] sm:$0xff] %v8154_v44 }
 0x2a4   : > { %6841 = vmatmul.mubr.bf16.gmra.mxu0 %v7048_v25  ;;  %v7052_v25 = vld [vmem:[%s10257_s5 + $0x158] sm:$0xff]  }
 0x2a5   : > { %6844 = vmatprep.mubr.bf16.mxu0 %v7049_v48  ;;  %v8149_v48 = vpop.permute.xlu0 %1670 }
 0x2a6   : > { %10305 = vst [vmem:[#allocation27_spill] sm:$0xff] %v8149_v48  ;;  %v7055_v48 = vld [vmem:[%s10257_s5 + $0x170] sm:$0xff]  }
 0x2a9   : > { %v8156_v16 = vpop.permute.xlu0 %1825 }
 0x2aa   : > { %10307 = vst [vmem:[#allocation29_spill] sm:$0xff] %v8156_v16 }
 0x2ac   : > { %6845 = vmatmul.mubr.bf16.gmra.mxu0 %v7050_v43  ;;  %v7054_v43 = vld [vmem:[%s10257_s5 + $0x168] sm:$0xff]  }
 0x2ad   : > { %6848 = vmatprep.mubr.bf16.mxu0 %v7051_v52  ;;  %v8161_v52 = vpop.permute.xlu1 %1830  ;;  %v8166_v61 = vpop.permute.xlu0 %1745 }
 0x2ae   : > { %10308 = vst [vmem:[#allocation30_spill] sm:$0xff] %v8161_v52  ;;  %10309 = vst [vmem:[#allocation31_spill] sm:$0xff] %v8166_v61 }
 0x2b1   : > { %v8168_v38 = vpop.permute.xlu1 %1750  ;;  %v8176_v16 = vpop.permute.xlu0 %1655 }
 0x2b2   : > { %10310 = vst [vmem:[#allocation32_spill] sm:$0xff] %v8168_v38  ;;  %10311 = vst [vmem:[#allocation33_spill] sm:$0xff] %v8176_v16  ;;  %v7059_v38 = vld [vmem:[%s10257_s5 + $0x190] sm:$0xff]  }
 0x2b4   : > { %6849 = vmatmul.mubr.bf16.gmra.mxu0 %v7052_v25  ;;  %v7057_v25 = vld [vmem:[%s10257_s5 + $0x180] sm:$0xff]  }
 0x2b5   : > { %6852 = vmatprep.mubr.bf16.mxu0 %v7053_v5  ;;  %v7056_v5 = vld [vmem:[%s10257_s5 + $0x178] sm:$0xff]   ;;  %v8178_v52 = vpop.permute.xlu1 %1660 }
 0x2b6   : > { %10312 = vst [vmem:[#allocation34_spill] sm:$0xff] %v8178_v52 }
 0x2b9   : > { %v8188_v61 = vpop.permute.xlu1 %1580 }
 0x2ba   : > { %10314 = vst [vmem:[#allocation36_spill] sm:$0xff] %v8188_v61 }
 0x2bc   : > { %6853 = vmatmul.mubr.bf16.gmra.mxu0 %v7054_v43  ;;  %v8183_v43 = vpop.permute.xlu0 %1575 }
 0x2bd   : > { %6856 = vmatprep.mubr.bf16.mxu0 %v7055_v48  ;;  %v7058_v48 = vld [vmem:[%s10257_s5 + $0x188] sm:$0xff]   ;;  %10313 = vst [vmem:[#allocation35_spill] sm:$0xff] %v8183_v43  ;;  %v8198_v51 = vpop.permute.xlu1 %1820 }
 0x2be   : > { %10316 = vst [vmem:[#allocation38_spill] sm:$0xff] %v8198_v51 }
 0x2c0   : > { %v8191_v52 = vpop.permute.xlu0 %1815 }
 0x2c1   : > { %10315 = vst [vmem:[#allocation37_spill] sm:$0xff] %v8191_v52 }
 0x2c4   : > { %6857 = vmatmul.mubr.bf16.gmra.mxu0 %v7056_v5 }
 0x2c5   : > { %6860 = vmatprep.mubr.bf16.mxu0 %v7057_v25 }
 0x2cc   : > { %v6766_v44 = vpop.f32.mrf.mxu0  ;;  %6861 = vmatmul.mubr.bf16.gmra.mxu0 %v7058_v48 }
 0x2cd   : > { %v2260_v16 = vadd.f32 %v6766_v44, %v7996_v13  ;;  %6864 = vmatprep.mubr.bf16.mxu0 %v7059_v38  ;;  %v7061_v44 = vld [vmem:[%s10257_s5 + $0x1a0] sm:$0xff]  }
 0x2ce   : > { %v2251_v5 = vpop.f32.mrf.mxu0 }
 0x2cf   : > { %v2768_v25 = vsel %vm791_vm3, %v2260_v16, -inf  ;;  %v2252_v9 = vadd.f32 %v2251_v5, %v8013_v50 }
 0x2d0   : > { %2769 = vmax.xlane.f32.xlu1 %v2768_v25  ;;  %v6767_v43 = vpop.f32.mrf.mxu0  ;;  %v8207_v25 = vpop.permute.xlu0 %1735 }
 0x2d1   : > { %v2263_v48 = vadd.f32 %v6767_v43, %v7917_v40  ;;  %v2762_v5 = vsel %vm791_vm3, %v2252_v9, -inf  ;;  %10317 = vst [vmem:[#allocation39_spill] sm:$0xff] %v8207_v25  ;;  %v8210_v43 = vpop.permute.xlu1 %1740  ;;  %v7062_v9 = vld [vmem:[%s10257_s5 + $0x1a8] sm:$0xff]  }
 0x2d2   : > { %v2254_v13 = vpop.f32.mrf.mxu0  ;;  %10318 = vst [vmem:[#allocation40_spill] sm:$0xff] %v8210_v43 }
 0x2d3   : > { %v2255_v38 = vadd.f32 %v2254_v13, %v7984_v47  ;;  %v2771_v16 = vsel %vm791_vm3, %v2263_v48, -inf }
 0x2d4   : > { %6865 = vmatmul.mubr.bf16.gmra.mxu0 %v7060_v3  ;;  %2772 = vmax.xlane.f32.xlu0 %v2771_v16  ;;  %v6770_v50 = vpop.f32.mrf.mxu0  ;;  %v8222_v16 = vpop.permute.xlu0 %1645 }
 0x2d5   : > { %v2276_v51 = vadd.f32 %v6770_v50, %v7892_v18  ;;  %2763 = vmax.xlane.f32.xlu1 %v2762_v5  ;;  %6868 = vmatprep.mubr.bf16.mxu0 %v7061_v44  ;;  %v2765_v52 = vsel %vm791_vm3, %v2255_v38, -inf  ;;  %v7063_v18 = vld [vmem:[%s10257_s5 + $0x1b0] sm:$0xff]   ;;  %10319 = vst [vmem:[#allocation41_spill] sm:$0xff] %v8222_v16  ;;  %v8227_v50 = vpop.permute.xlu1 %1650 }
 0x2d6   : > { %v2267_v40 = vpop.f32.mrf.mxu0  ;;  %10320 = vst [vmem:[#allocation42_spill] sm:$0xff] %v8227_v50 }
 0x2d7   : > { %v2780_v47 = vsel %vm791_vm3, %v2276_v51, -inf  ;;  %v2268_v48 = vadd.f32 %v2267_v40, %v7979_v39 }
 0x2d8   : > { %v6771_v3 = vpop.f32.mrf.mxu0  ;;  %2766 = vmax.xlane.f32.xlu0 %v2765_v52 }
 0x2d9   : > { %v2279_v13 = vadd.f32 %v6771_v3, %v7878_v8  ;;  %2781 = vmax.xlane.f32.xlu1 %v2780_v47  ;;  %v2774_v52 = vsel %vm791_vm3, %v2268_v48, -inf  ;;  %v8236_v48 = vpop.permute.xlu0 %1565 }
 0x2da   : > { %v2270_v44 = vpop.f32.mrf.mxu0  ;;  %10321 = vst [vmem:[#allocation43_spill] sm:$0xff] %v8236_v48 }
 0x2db   : > { %v2271_v51 = vadd.f32 %v2270_v44, %v7904_v29  ;;  %v2783_v39 = vsel %vm791_vm3, %v2279_v13, -inf  ;;  %v8242_v44 = vpop.permute.xlu1 %1570 }
 0x2dc   : > { %v6774_v38 = vpop.f32.mrf.mxu0  ;;  %6869 = vmatmul.mubr.bf16.gmra.mxu0 %v7062_v9  ;;  %2784 = vmax.xlane.f32.xlu0 %v2783_v39  ;;  %v7064_v9 = vld [vmem:[%s10257_s5 + $0x1b8] sm:$0xff]   ;;  %10322 = vst [vmem:[#allocation44_spill] sm:$0xff] %v8242_v44 }
 0x2dd   : > { %v2292_v8 = vadd.f32 %v6774_v38, %v7831_v42  ;;  %2775 = vmax.xlane.f32.xlu1 %v2774_v52  ;;  %6872 = vmatprep.mubr.bf16.mxu0 %v7063_v18  ;;  %v2777_v40 = vsel %vm791_vm3, %v2271_v51, -inf  ;;  %v7065_v42 = vld [vmem:[%s10257_s5 + $0x1c0] sm:$0xff]   ;;  %v8247_v52 = vpop.permute.xlu0 %1805 }
 0x2de   : > { %v2283_v5 = vpop.f32.mrf.mxu0  ;;  %10323 = vst [vmem:[#allocation45_spill] sm:$0xff] %v8247_v52 }
 0x2df   : > { %v2792_v47 = vsel %vm791_vm3, %v2292_v8, -inf  ;;  %v2284_v29 = vadd.f32 %v2283_v5, %v7866_v60 }
 0x2e0   : > { %v6775_v3 = vpop.f32.mrf.mxu0  ;;  %2778 = vmax.xlane.f32.xlu0 %v2777_v40 }
 0x2e1   : > { %v2295_v13 = vadd.f32 %v6775_v3, %v7812_v33  ;;  %2793 = vmax.xlane.f32.xlu1 %v2792_v47  ;;  %v2786_v38 = vsel %vm791_vm3, %v2284_v29, -inf  ;;  %v8255_v3 = vpop.permute.xlu1 %1810 }
 0x2e2   : > { %v2286_v18 = vpop.f32.mrf.mxu0  ;;  %10324 = vst [vmem:[#allocation46_spill] sm:$0xff] %v8255_v3 }
 0x2e3   : > { %v2287_v60 = vadd.f32 %v2286_v18, %v7848_v28  ;;  %v2795_v51 = vsel %vm791_vm3, %v2295_v13, -inf  ;;  %v7066_v28 = vld [vmem:[%s10257_s5 + $0x1c8] sm:$0xff]   ;;  %v8263_v18 = vpop.permute.xlu0 %1725 }
 0x2e4   : > { %v6778_v39 = vpop.f32.mrf.mxu0  ;;  %6873 = vmatmul.mubr.bf16.gmra.mxu0 %v7064_v9  ;;  %2796 = vmax.xlane.f32.xlu0 %v2795_v51  ;;  %v7067_v9 = vld [vmem:[%s10257_s5 + $0x1d0] sm:$0xff]   ;;  %10325 = vst [vmem:[#allocation47_spill] sm:$0xff] %v8263_v18 }
 0x2e5   : > { %2787 = vmax.xlane.f32.xlu1 %v2786_v38  ;;  %6876 = vmatprep.mubr.bf16.mxu0 %v7065_v42  ;;  %v2308_v8 = vadd.f32 %v6778_v39, %v7753_v1  ;;  %v2789_v40 = vsel %vm791_vm3, %v2287_v60, -inf  ;;  %v8266_v39 = vpop.permute.xlu1 %1730 }
 0x2e6   : > { %v2299_v33 = vpop.f32.mrf.mxu0  ;;  %10326 = vst [vmem:[#allocation48_spill] sm:$0xff] %v8266_v39 }
 0x2e7   : > { %v2300_v5 = vadd.f32 %v2299_v33, %v7793_v20  ;;  %v2804_v20 = vsel %vm791_vm3, %v2308_v8, -inf }
 0x2e8   : > { %v6779_v47 = vpop.f32.mrf.mxu0  ;;  %2790 = vmax.xlane.f32.xlu0 %v2789_v40  ;;  %v7068_v40 = vld [vmem:[%s10257_s5 + $0x1d8] sm:$0xff]  }
 0x2e9   : > { %v2798_v29 = vsel %vm791_vm3, %v2300_v5, -inf  ;;  %v2311_v1 = vadd.f32 %v6779_v47, %v7730_v34 }
 0x2ea   : > { %v2302_v13 = vpop.f32.mrf.mxu0  ;;  %2799 = vmax.xlane.f32.xlu1 %v2798_v29 }
 0x2eb   : > { %v2303_v38 = vadd.f32 %v2302_v13, %v7771_v10  ;;  %v2807_v33 = vsel %vm791_vm3, %v2311_v1, -inf  ;;  %v8283_v13 = vpop.permute.xlu1 %1640 }
 0x2ec   : > { %v6782_v42 = vpop.f32.mrf.mxu0  ;;  %6877 = vmatmul.mubr.bf16.gmra.mxu0 %v7066_v28  ;;  %2805 = vmax.xlane.f32.xlu0 %v2804_v20  ;;  %v8278_v28 = vpop.permute.xlu0 %1635  ;;  %10328 = vst [vmem:[#allocation50_spill] sm:$0xff] %v8283_v13 }
 0x2ed   : > { %v2324_v60 = vadd.f32 %v6782_v42, %v7986_v15  ;;  %6880 = vmatprep.mubr.bf16.mxu0 %v7067_v9  ;;  %v7069_v15 = vld [vmem:[%s10257_s5 + $0x1e0] sm:$0xff]   ;;  %10327 = vst [vmem:[#allocation49_spill] sm:$0xff] %v8278_v28  ;;  %v2801_v29 = vsel %vm791_vm3, %v2303_v38, -inf }
 0x2ee   : > { %v2315_v51 = vpop.f32.mrf.mxu0 }
 0x2ef   : > { %v2816_v5 = vsel %vm791_vm3, %v2324_v60, -inf  ;;  %v2316_v34 = vadd.f32 %v2315_v51, %v8006_v46 }
 0x2f0   : > { %v6783_v8 = vpop.f32.mrf.mxu0  ;;  %2808 = vmax.xlane.f32.xlu0 %v2807_v33  ;;  %2817 = vmax.xlane.f32.xlu1 %v2816_v5  ;;  %v7070_v33 = vld [vmem:[%s10257_s5 + $0x1e8] sm:$0xff]   ;;  %v8293_v5 = vpop.permute.xlu0 %1555 }
 0x2f1   : > { %v2327_v10 = vadd.f32 %v6783_v8, %v7912_v27  ;;  %v2810_v46 = vsel %vm791_vm3, %v2316_v34, -inf  ;;  %10329 = vst [vmem:[#allocation51_spill] sm:$0xff] %v8293_v5  ;;  %v8298_v34 = vpop.permute.xlu1 %1560 }
 0x2f2   : > { %v2318_v47 = vpop.f32.mrf.mxu0  ;;  %10330 = vst [vmem:[#allocation52_spill] sm:$0xff] %v8298_v34 }
 0x2f3   : > { %v2319_v42 = vadd.f32 %v2318_v47, %v7974_v35  ;;  %v2819_v60 = vsel %vm791_vm3, %v2327_v10, -inf }
 0x2f4   : > { %v6786_v9 = vpop.f32.mrf.mxu0  ;;  %6881 = vmatmul.mubr.bf16.gmra.mxu0 %v7068_v40  ;;  %2802 = vmax.xlane.f32.xlu0 %v2801_v29  ;;  %v8304_v29 = vpop.permute.xlu0 %1795 }
 0x2f5   : > { %v2340_v1 = vadd.f32 %v6786_v9, %v7876_v6  ;;  %2811 = vmax.xlane.f32.xlu1 %v2810_v46  ;;  %6884 = vmatprep.mubr.bf16.mxu0 %v7069_v15  ;;  %v7071_v6 = vld [vmem:[%s10257_s5 + $0x1f0] sm:$0xff]   ;;  %10331 = vst [vmem:[#allocation53_spill] sm:$0xff] %v8304_v29 }
 0x2f6   : > { %v2331_v20 = vpop.f32.mrf.mxu0 }
 0x2f7   : > { %v2828_v27 = vsel %vm791_vm3, %v2340_v1, -inf  ;;  %v2332_v51 = vadd.f32 %v2331_v20, %v7902_v26  ;;  %v2813_v26 = vsel %vm791_vm3, %v2319_v42, -inf  ;;  %v7072_v42 = vld [vmem:[%s10257_s5 + $0x1f8] sm:$0xff]  }
 0x2f8   : > { %v6787_v38 = vpop.f32.mrf.mxu0  ;;  %2820 = vmax.xlane.f32.xlu0 %v2819_v60 }
 0x2f9   : > { %2829 = vmax.xlane.f32.xlu1 %v2828_v27  ;;  %v2343_v8 = vadd.f32 %v6787_v38, %v7868_v62  ;;  %v2822_v15 = vsel %vm791_vm3, %v2332_v51, -inf }
 0x2fa   : > { %v2334_v35 = vpop.f32.mrf.mxu0 }
 0x2fb   : > { %v2335_v9 = vadd.f32 %v2334_v35, %v7894_v19  ;;  %v2831_v46 = vsel %vm791_vm3, %v2343_v8, -inf  ;;  %v10335_v35 = vld [vmem:[#allocation17_spill] sm:$0xff] }
 0x2fc   : > { %v6790_v40 = vpop.f32.mrf.mxu0  ;;  %6885 = vmatmul.mubr.bf16.gmra.mxu0 %v7070_v33  ;;  %2814 = vmax.xlane.f32.xlu0 %v2813_v26  ;;  %v10336_v26 = vld [vmem:[#allocation16_spill] sm:$0xff] }
 0x2fd   : > { %v2356_v47 = vadd.f32 %v6790_v40, %v7810_v32  ;;  %2823 = vmax.xlane.f32.xlu1 %v2822_v15  ;;  %6888 = vmatprep.mubr.bf16.mxu0 %v7071_v6  ;;  %v8313_v32 = vpop.permute.xlu1 %1800  ;;  %v2825_v19 = vsel %vm791_vm3, %v2335_v9, -inf }
 0x2fe   : > { %v2347_v10 = vpop.f32.mrf.mxu0  ;;  %10332 = vst [vmem:[#allocation54_spill] sm:$0xff] %v8313_v32  ;;  %v1178_v32 = vld [vmem:[%s10258_s6 + $0x388] sm:$0xff] }
 0x2ff   : > { %v2840_v62 = vsel %vm791_vm3, %v2356_v47, -inf  ;;  %v2348_v1 = vadd.f32 %v2347_v10, %v7846_v49  ;;  %v8318_v49 = vpop.permute.xlu0 %1715  ;;  %v10337_v47 = vld [vmem:[#allocation9_spill] sm:$0xff] }
 0x300   : > { %v6791_v20 = vpop.f32.mrf.mxu0  ;;  %2832 = vmax.xlane.f32.xlu0 %v2831_v46  ;;  %10333 = vst [vmem:[#allocation55_spill] sm:$0xff] %v8318_v49 }
 0x301   : > { %2841 = vmax.xlane.f32.xlu1 %v2840_v62  ;;  %v2359_v27 = vadd.f32 %v6791_v20, %v7795_v21  ;;  %v2834_v38 = vsel %vm791_vm3, %v2348_v1, -inf  ;;  %v8320_v6 = vpop.permute.xlu1 %1720  ;;  %v10339_v1 = vld [vmem:[#allocation11_spill] sm:$0xff] }
 0x302   : > { %v2350_v60 = vpop.f32.mrf.mxu0  ;;  %10334 = vst [vmem:[#allocation56_spill] sm:$0xff] %v8320_v6 }
 0x303   : > { %v2351_v8 = vadd.f32 %v2350_v60, %v10335_v35  ;;  %v2843_v15 = vsel %vm791_vm3, %v2359_v27, -inf  ;;  %v8327_v62 = vpop.permute.xlu0 %1625 }
 0x304   : > { %v6794_v51 = vpop.f32.mrf.mxu0  ;;  %6889 = vmatmul.mubr.bf16.gmra.mxu0 %v7072_v42  ;;  %2826 = vmax.xlane.f32.xlu0 %v2825_v19  ;;  %10338 = vst [vmem:[#allocation17_spill] sm:$0xff] %v8327_v62 }
 0x305   : > { %2835 = vmax.xlane.f32.xlu1 %v2834_v38  ;;  %v2372_v20 = vadd.f32 %v6794_v51, %v10339_v1  ;;  %v2837_v42 = vsel %vm791_vm3, %v2351_v8, -inf  ;;  %v8333_v60 = vpop.permute.xlu1 %1630 }
 0x306   : > { %v2363_v33 = vpop.f32.mrf.mxu0  ;;  %10340 = vst [vmem:[#allocation16_spill] sm:$0xff] %v8333_v60 }
 0x307   : > { %v2364_v40 = vadd.f32 %v2363_v33, %v10336_v26  ;;  %v10341_v33 = vld [vmem:[#allocation14_spill] sm:$0xff]  ;;  %v2852_v26 = vsel %vm791_vm3, %v2372_v20, -inf }
 0x308   : > { %v6795_v21 = vpop.f32.mrf.mxu0  ;;  %2844 = vmax.xlane.f32.xlu0 %v2843_v15  ;;  %v8340_v15 = vpop.permute.xlu0 %1545 }
 0x309   : > { %v2375_v10 = vadd.f32 %v6795_v21, %v10337_v47  ;;  %v2846_v9 = vsel %vm791_vm3, %v2364_v40, -inf  ;;  %v8344_v8 = vpop.permute.xlu1 %1550 }
 0x30a   : > { %v2366_v46 = vpop.f32.mrf.mxu0  ;;  %2847 = vmax.xlane.f32.xlu1 %v2846_v9  ;;  %10342 = vst [vmem:[#allocation9_spill] sm:$0xff] %v8344_v8 }
 0x30b   : > { %v2855_v27 = vsel %vm791_vm3, %v2375_v10, -inf  ;;  %v2367_v35 = vadd.f32 %v2366_v46, %v10341_v33 }
 0x30c   : > { %v8331_v19 = vpop.f32.mrf.mxu0  ;;  %2838 = vmax.xlane.f32.xlu0 %v2837_v42  ;;  %v8351_v9 = vpop.permute.xlu0 %1785 }
 0x30d   : > { %v2849_v21 = vsel %vm791_vm3, %v2367_v35, -inf  ;;  %10343 = vst [vmem:[#allocation11_spill] sm:$0xff] %v8351_v9  ;;  %v8355_v1 = vpop.permute.xlu1 %1790  ;;  %v2388_v5 = vadd.f32 %v8331_v19, %v8122_v41 }
 0x30e   : > { %v8336_v38 = vpop.f32.mrf.mxu0  ;;  %2856 = vmax.xlane.f32.xlu1 %v2855_v27  ;;  %10344 = vst [vmem:[#allocation14_spill] sm:$0xff] %v8355_v1  ;;  %v1130_v27 = vld [vmem:[%s10258_s6 + $0x208] sm:$0xff] }
 0x310   : > { %v6799_v40 = vpop.f32.mrf.mxu0  ;;  %2853 = vmax.xlane.f32.xlu0 %v2852_v26  ;;  %v8364_v33 = vpop.permute.xlu0 %1705 }
 0x311   : > { %10345 = vst [vmem:[#allocation57_spill] sm:$0xff] %v8364_v33  ;;  %v8368_v26 = vpop.permute.xlu1 %1710 }
 0x312   : > { %v8342_v51 = vpop.f32.mrf.mxu0  ;;  %10346 = vst [vmem:[#allocation58_spill] sm:$0xff] %v8368_v26 }
 0x313   : > { %v2383_v41 = vadd.f32 %v8342_v51, %v8127_v45 }
 0x314   : > { %v8347_v47 = vpop.f32.mrf.mxu0  ;;  %2850 = vmax.xlane.f32.xlu0 %v2849_v21  ;;  %v8377_v1 = vpop.permute.xlu0 %1615 }
 0x315   : > { %10347 = vst [vmem:[#allocation59_spill] sm:$0xff] %v8377_v1  ;;  %v8381_v29 = vpop.permute.xlu1 %1620  ;;  %v2861_v45 = vsel %vm791_vm3, %v2383_v41, -inf }
 0x316   : > { %v8349_v10 = vpop.f32.mrf.mxu0  ;;  %10348 = vst [vmem:[#allocation60_spill] sm:$0xff] %v8381_v29 }
 0x318   : > { %v8353_v46 = vpop.f32.mrf.mxu0  ;;  %v8390_v39 = vpop.permute.xlu0 %1535 }
 0x319   : > { %v8394_v25 = vpop.permute.xlu1 %1540 }
 0x31a   : > { %v8357_v20 = vpop.f32.mrf.mxu0  ;;  %10349 = vst [vmem:[#allocation61_spill] sm:$0xff] %v8394_v25 }
 0x31c   : > { %v8359_v42 = vpop.f32.mrf.mxu0  ;;  %v8400_v49 = vpop.permute.xlu0 %1775 }
 0x31d   : > { %10350 = vst [vmem:[#allocation62_spill] sm:$0xff] %v8400_v49  ;;  %v8404_v13 = vpop.permute.xlu1 %1780  ;;  %v8421_v49 = vld [vmem:[%s10259_s7] sm:$0xff]  ;;  %v2420_v41 = vadd.f32 %v8359_v42, %v8054_v17 }
 0x31e   : > { %v8366_v35 = vpop.f32.mrf.mxu0  ;;  %10351 = vst [vmem:[#allocation63_spill] sm:$0xff] %v8404_v13  ;;  %10354 = vst [vmem:[#allocation66_spill] sm:$0xff] %v8421_v49  ;;  %v8426_v13 = vld [vmem:[%s10259_s7 + $0x20] sm:$0xff] }
 0x31f   : > { %1520 = vperm.xlu1 %6996, %v1130_v27   ;;  %v1177_v27 = vld [vmem:[%s10258_s6 + $0x380] sm:$0xff]  ;;  %10355 = vst [vmem:[#allocation67_spill] sm:$0xff] %v8426_v13  ;;  %v2412_v17 = vadd.f32 %v8366_v35, %v8074_v12 }
 0x320   : > { %v8370_v21 = vpop.f32.mrf.mxu0  ;;  %v8410_v29 = vpop.permute.xlu0 %1695 }
 0x321   : > { %10352 = vst [vmem:[#allocation64_spill] sm:$0xff] %v8410_v29  ;;  %v5905_v29 = vcombine.high %v8421_v49, %v8426_v13  ;;  %v2864_v49 = vsel %vm791_vm3, %v2388_v5, -inf }
 0x322   : > { %v8375_v3 = vpop.f32.mrf.mxu0 }
 0x323   : > { %1760 = vperm.xlu1 %6996, %v1178_v32   ;;  %4042 = vmatprep.mubr.bf16.mxu1 %v5905_v29  ;;  %v2380_v29 = vadd.f32 %v8336_v38, %v8142_v31  ;;  %v2404_v31 = vadd.f32 %v8347_v47, %v8088_v54 }
 0x324   : > { %v8379_v43 = vpop.f32.mrf.mxu0  ;;  %v8432_v16 = vpop.permute.xlu0 %1605 }
 0x325   : > { %10356 = vst [vmem:[#allocation68_spill] sm:$0xff] %v8432_v16  ;;  %v2858_v5 = vsel %vm791_vm3, %v2380_v29, -inf  ;;  %v2876_v54 = vsel %vm791_vm3, %v2404_v31, -inf  ;;  %v2423_v31 = vadd.f32 %v8370_v21, %v8042_v7 }
 0x326   : > { %v8383_v52 = vpop.f32.mrf.mxu0 }
 0x327   : > { %v2891_v7 = vsel %vm791_vm3, %v2423_v31, -inf  ;;  %v2428_v12 = vadd.f32 %v8383_v52, %v8040_v55 }
 0x328   : > { %v8388_v6 = vpop.f32.mrf.mxu0  ;;  %v8444_v25 = vpop.permute.xlu0 %1525 }
 0x329   : > { %10358 = vst [vmem:[#allocation70_spill] sm:$0xff] %v8444_v25  ;;  %v2894_v52 = vsel %vm791_vm3, %v2428_v12, -inf }
 0x32a   : > { %v8392_v9 = vpop.f32.mrf.mxu0  ;;  %1755 = vperm.xlu0 %6995, %v1177_v27   ;;  %v8414_v27 = vpop.permute.xlu1 %1700 }
 0x32b   : > { %10353 = vst [vmem:[#allocation65_spill] sm:$0xff] %v8414_v27  ;;  %v2391_v27 = vadd.f32 %v6799_v40, %v8110_v56 }
 0x32c   : > { %v8396_v32 = vpop.f32.mrf.mxu0  ;;  %v8460_v48 = vpop.permute.xlu0 %1765 }
 0x32d   : > { %10360 = vst [vmem:[#allocation72_spill] sm:$0xff] %v8460_v48  ;;  %v2452_v31 = vadd.f32 %v8396_v32, %v8115_v23 }
 0x32e   : > { %v8398_v26 = vpop.f32.mrf.mxu0  ;;  %v8438_v62 = vpop.permute.xlu1 %1610 }
 0x32f   : > { %10357 = vst [vmem:[#allocation69_spill] sm:$0xff] %v8438_v62  ;;  %v2444_v23 = vadd.f32 %v8398_v26, %v8132_v58 }
 0x330   : > { %v8402_v18 = vpop.f32.mrf.mxu0  ;;  %v8479_v51 = vpop.permute.xlu0 %1685 }
 0x331   : > { %10363 = vst [vmem:[#allocation75_spill] sm:$0xff] %v8479_v51 }
 0x332   : > { %v8406_v50 = vpop.f32.mrf.mxu0  ;;  %v8450_v16 = vpop.permute.xlu1 %1530 }
 0x333   : > { %10359 = vst [vmem:[#allocation71_spill] sm:$0xff] %v8450_v16  ;;  %v2867_v16 = vsel %vm791_vm3, %v2391_v27, -inf }
 0x334   : > { %v8408_v33 = vpop.f32.mrf.mxu0 }
 0x335   : > { %v2468_v58 = vadd.f32 %v8408_v33, %v8081_v36 }
 0x336   : > { %v8412_v60 = vpop.f32.mrf.mxu0  ;;  %v8467_v56 = vpop.permute.xlu1 %1770 }
 0x337   : > { %10361 = vst [vmem:[#allocation73_spill] sm:$0xff] %v8467_v56  ;;  %v2460_v36 = vadd.f32 %v8412_v60, %v8098_v30 }
 0x338   : > { %v8416_v28 = vpop.f32.mrf.mxu0 }
 0x33a   : > { %v8428_v61 = vpop.f32.mrf.mxu0  ;;  %v8486_v47 = vpop.permute.xlu1 %1690 }
 0x33b   : > { %10365 = vst [vmem:[#allocation77_spill] sm:$0xff] %v8486_v47 }
 0x33c   : > { %v8436_v1 = vpop.f32.mrf.mxu0 }
 0x33d   : > { %v2484_v30 = vadd.f32 %v8436_v1, %v8047_v11 }
 0x33e   : > { %v8440_v34 = vpop.f32.mrf.mxu0 }
 0x33f   : > { %v2476_v11 = vadd.f32 %v8440_v34, %v8064_v37 }
 0x340   : > { %v8442_v44 = vpop.f32.mrf.mxu0 }
 0x341   : > { %v2930_v34 = vsel %vm791_vm3, %v2476_v11, -inf  ;;  %v10378_v11 = vld [vmem:[#allocation23_spill] sm:$0xff] }
 0x342   : > { %v8448_v8 = vpop.f32.mrf.mxu0 }
 0x344   : > { %v8453_v13 = vpop.f32.mrf.mxu0 }
 0x346   : > { %v8457_v62 = vpop.f32.mrf.mxu0 }
 0x347   : > { %2865 = vmax.xlane.f32.xlu1 %v2864_v49  ;;  %v2407_v49 = vadd.f32 %v8353_v46, %v8076_v14  ;;  %v2399_v14 = vadd.f32 %v8357_v20, %v8093_v57  ;;  %v8505_v20 = vpop.permute.xlu1 %1600 }
 0x348   : > { %v8464_v19 = vpop.f32.mrf.mxu0  ;;  %10369 = vst [vmem:[#allocation81_spill] sm:$0xff] %v8505_v20 }
 0x349   : > { %2868 = vmax.xlane.f32.xlu0 %v2867_v16  ;;  %v2396_v16 = vadd.f32 %v8349_v10, %v8108_v4  ;;  %v2879_v29 = vsel %vm791_vm3, %v2407_v49, -inf  ;;  %v8498_v10 = vpop.permute.xlu0 %1595  ;;  %v2873_v57 = vsel %vm791_vm3, %v2399_v14, -inf  ;;  %v2888_v49 = vsel %vm791_vm3, %v2420_v41, -inf }
 0x34a   : > { %v8471_v38 = vpop.f32.mrf.mxu0  ;;  %10368 = vst [vmem:[#allocation80_spill] sm:$0xff] %v8498_v10 }
 0x34b   : > { %2859 = vmax.xlane.f32.xlu1 %v2858_v5  ;;  %v2870_v4 = vsel %vm791_vm3, %v2396_v16, -inf  ;;  %v2415_v16 = vadd.f32 %v8375_v3, %v8059_v24  ;;  %v2436_v24 = vadd.f32 %v8379_v43, %v7998_v22  ;;  %v2439_v22 = vadd.f32 %v8388_v6, %v8008_v53 }
 0x34c   : > { %v8476_v40 = vpop.f32.mrf.mxu0  ;;  %v2431_v53 = vadd.f32 %v8392_v9, %v8025_v2  ;;  %v2455_v2 = vadd.f32 %v8402_v18, %v8100_v0  ;;  %v2447_v0 = vadd.f32 %v8406_v50, %v8120_v63 }
 0x34d   : > { %10362 = vst [vmem:[#allocation74_spill] sm:$0xff] %v8476_v40  ;;  %2862 = vmax.xlane.f32.xlu0 %v2861_v45  ;;  %v8517_v21 = vpop.permute.xlu0 %1515  ;;  %v2885_v41 = vsel %vm791_vm3, %v2415_v16, -inf  ;;  %v2903_v12 = vsel %vm791_vm3, %v2439_v22, -inf  ;;  %v2924_v22 = vsel %vm791_vm3, %v2468_v58, -inf }
 0x34e   : > { %v8483_v27 = vpop.f32.mrf.mxu0  ;;  %10370 = vst [vmem:[#allocation82_spill] sm:$0xff] %v8517_v21  ;;  %v2909_v63 = vsel %vm791_vm3, %v2447_v0, -inf }
 0x34f   : > { %10364 = vst [vmem:[#allocation76_spill] sm:$0xff] %v8483_v27  ;;  %2877 = vmax.xlane.f32.xlu1 %v2876_v54 }
 0x350   : > { %v8490_v46 = vpop.f32.mrf.mxu0 }
 0x351   : > { %10366 = vst [vmem:[#allocation78_spill] sm:$0xff] %v8490_v46  ;;  %2880 = vmax.xlane.f32.xlu0 %v2879_v29  ;;  %v2882_v29 = vsel %vm791_vm3, %v2412_v17, -inf  ;;  %v2900_v17 = vsel %vm791_vm3, %v2436_v24, -inf }
 0x352   : > { %v8495_v5 = vpop.f32.mrf.mxu0 }
 0x353   : > { %10367 = vst [vmem:[#allocation79_spill] sm:$0xff] %v8495_v5  ;;  %2871 = vmax.xlane.f32.xlu1 %v2870_v4 }
 0x354   : > { %v8502_v45 = vpop.f32.mrf.mxu0 }
 0x355   : > { %2874 = vmax.xlane.f32.xlu0 %v2873_v57 }
 0x356   : > { %v8509_v42 = vpop.f32.mrf.mxu0 }
 0x357   : > { %2889 = vmax.xlane.f32.xlu1 %v2888_v49 }
 0x358   : > { %v8514_v54 = vpop.f32.mrf.mxu0 }
 0x359   : > { %v8519_v14 = vpop.xlane.xlu1 %2769  ;;  %2892 = vmax.xlane.f32.xlu0 %v2891_v7  ;;  %v2912_v7 = vsel %vm791_vm3, %v2452_v31, -inf  ;;  %v2897_v31 = vsel %vm791_vm3, %v2431_v53, -inf  ;;  %v2918_v53 = vsel %vm791_vm3, %v2460_v36, -inf }
 0x35a   : > { %v8523_v35 = vpop.f32.mrf.mxu0 }
 0x35b   : > { %2883 = vmax.xlane.f32.xlu1 %v2882_v29 }
 0x35c   : > { %v8528_v3 = vpop.f32.mrf.mxu0 }
 0x35d   : > { %v8531_v4 = vpop.xlane.xlu0 %2772  ;;  %2886 = vmax.xlane.f32.xlu0 %v2885_v41  ;;  %v2906_v41 = vsel %vm791_vm3, %v2444_v23, -inf  ;;  %v2915_v23 = vsel %vm791_vm3, %v2455_v2, -inf  ;;  %v2936_v2 = vsel %vm791_vm3, %v2484_v30, -inf  ;;  %v10375_v30 = vld [vmem:[#allocation22_spill] sm:$0xff] }
 0x35e   : > { %v8535_v57 = vpop.xlane.xlu1 %2763  ;;  %v8537_v55 = vpop.f32.mrf.mxu0 }
 0x35f   : > { %2895 = vmax.xlane.f32.xlu1 %v2894_v52 }
 0x360   : > { %v8542_v43 = vpop.f32.mrf.mxu0 }
 0x361   : > { %2901 = vmax.xlane.f32.xlu0 %v2900_v17  ;;  %v8545_v49 = vpop.xlane.xlu0 %2766 }
 0x362   : > { %v8549_v32 = vpop.xlane.xlu1 %2781  ;;  %v8551_v16 = vpop.f32.mrf.mxu0 }
 0x363   : > { %2913 = vmax.xlane.f32.xlu1 %v2912_v7 }
 0x364   : > { %v8556_v6 = vpop.f32.mrf.mxu0 }
 0x365   : > { %2904 = vmax.xlane.f32.xlu0 %v2903_v12  ;;  %v8559_v29 = vpop.xlane.xlu0 %2784  ;;  %v2471_v12 = vadd.f32 %v8416_v28, %v8066_v59 }
 0x366   : > { %v8563_v26 = vpop.xlane.xlu1 %2775  ;;  %v8565_v24 = vpop.f32.mrf.mxu0 }
 0x367   : > { %2907 = vmax.xlane.f32.xlu1 %v2906_v41  ;;  %v2927_v36 = vsel %vm791_vm3, %v2471_v12, -inf }
 0x368   : > { %v8570_v9 = vpop.f32.mrf.mxu0 }
 0x369   : > { %2898 = vmax.xlane.f32.xlu0 %v2897_v31  ;;  %v8573_v52 = vpop.xlane.xlu0 %2778  ;;  %v10373_v31 = vld [vmem:[#allocation24_spill] sm:$0xff] }
 0x36a   : > { %v8577_v33 = vpop.f32.mrf.mxu0  ;;  %v8580_v17 = vpop.xlane.xlu1 %2793  ;;  %v2463_v59 = vadd.f32 %v8428_v61, %v10373_v31 }
 0x36b   : > { %2925 = vmax.xlane.f32.xlu1 %v2924_v22 }
 0x36c   : > { %v8584_v18 = vpop.f32.mrf.mxu0 }
 0x36d   : > { %2916 = vmax.xlane.f32.xlu0 %v2915_v23  ;;  %v8587_v7 = vpop.xlane.xlu0 %2796  ;;  %v10374_v23 = vld [vmem:[#allocation21_spill] sm:$0xff] }
 0x36e   : > { %v8591_v60 = vpop.f32.mrf.mxu0  ;;  %v8599_v50 = vpop.xlane.xlu1 %2787 }
 0x36f   : > { %10371 = vst [vmem:[#allocation83_spill] sm:$0xff] %v8591_v60  ;;  %2919 = vmax.xlane.f32.xlu1 %v2918_v53  ;;  %v2492_v53 = vadd.f32 %v8457_v62, %v10374_v23 }
 0x370   : > { %v8596_v58 = vpop.f32.mrf.mxu0 }
 0x371   : > { %2910 = vmax.xlane.f32.xlu0 %v2909_v63  ;;  %v8601_v41 = vpop.xlane.xlu0 %2790  ;;  %v2487_v63 = vadd.f32 %v8442_v44, %v10375_v30  ;;  %v2942_v23 = vsel %vm791_vm3, %v2492_v53, -inf }
 0x372   : > { %v8605_v1 = vpop.f32.mrf.mxu0 }
 0x373   : > { %10372 = vst [vmem:[#allocation84_spill] sm:$0xff] %v8605_v1  ;;  %2937 = vmax.xlane.f32.xlu1 %v2936_v2  ;;  %v8613_v22 = vpop.xlane.xlu1 %2799  ;;  %v2921_v2 = vsel %vm791_vm3, %v2463_v59, -inf  ;;  %v2939_v30 = vsel %vm791_vm3, %v2487_v63, -inf }
 0x374   : > { %v8610_v28 = vpop.f32.mrf.mxu0 }
 0x375   : > { %2928 = vmax.xlane.f32.xlu0 %v2927_v36  ;;  %v2806_v0 = vpop.xlane.xlu0 %2805  ;;  %v10376_v36 = vld [vmem:[#allocation20_spill] sm:$0xff] }
 0x376   : > { %v8617_v37 = vpop.f32.mrf.mxu0  ;;  %v2503_v5 = vadd.f32 %v8464_v19, %v10376_v36  ;;  %v10379_v36 = vld [vmem:[#allocation18_spill] sm:$0xff] }
 0x377   : > { %2931 = vmax.xlane.f32.xlu1 %v2930_v34  ;;  %v2479_v34 = vadd.f32 %v8448_v8, %v10378_v11  ;;  %v2500_v53 = vadd.f32 %v8453_v13, %v10379_v36 }
 0x378   : > { %v8622_v61 = vpop.f32.mrf.mxu0  ;;  %v2951_v19 = vsel %vm791_vm3, %v2503_v5, -inf }
 0x379   : > { %2922 = vmax.xlane.f32.xlu0 %v2921_v2  ;;  %v2809_v12 = vpop.xlane.xlu0 %2808  ;;  %v8625_v31 = vpop.xlane.xlu1 %2817  ;;  %v2933_v8 = vsel %vm791_vm3, %v2479_v34, -inf  ;;  %v2948_v5 = vsel %vm791_vm3, %v2500_v53, -inf }
 0x37a   : > { %v8629_v62 = vpop.f32.mrf.mxu0  ;;  %v3313_v25 = vpack.c.bf16 %v2809_v12, %v2806_v0 }
 0x37b   : > { %10377 = vst [vmem:[#allocation24_spill] sm:$0xff] %v8629_v62  ;;  %2943 = vmax.xlane.f32.xlu1 %v2942_v23 }
 0x37c   : > { %v8634_v44 = vpop.f32.mrf.mxu0 }
 0x37d   : > { %2940 = vmax.xlane.f32.xlu0 %v2939_v30  ;;  %v2803_v59 = vpop.xlane.xlu0 %2802  ;;  %v10382_v30 = vld [vmem:[#allocation19_spill] sm:$0xff] }
 0x37e   : > { %v8637_v2 = vpop.xlane.xlu1 %2811  ;;  %v8639_v1 = vpop.f32.mrf.mxu0  ;;  %v2495_v47 = vadd.f32 %v8471_v38, %v10382_v30  ;;  %v1162_v38 = vld [vmem:[%s10258_s6 + $0x308] sm:$0xff] }
 0x37f   : > { %2952 = vmax.xlane.f32.xlu1 %v2951_v19 }
 0x380   : > { %v8644_v23 = vpop.f32.mrf.mxu0  ;;  %v2945_v34 = vsel %vm791_vm3, %v2495_v47, -inf }
 0x381   : > { %10380 = vst [vmem:[#allocation21_spill] sm:$0xff] %v8644_v23  ;;  %2934 = vmax.xlane.f32.xlu0 %v2933_v8  ;;  %v2821_v11 = vpop.xlane.xlu0 %2820  ;;  %v3312_v23 = vpack.c.bf16 %v2803_v59, %v8613_v22 }
 0x382   : > { %v2830_v20 = vpop.xlane.xlu1 %2829  ;;  %v8647_v63 = vpop.f32.mrf.mxu0 }
 0x383   : > { %10381 = vst [vmem:[#allocation22_spill] sm:$0xff] %v8647_v63  ;;  %v1161_v63 = vld [vmem:[%s10258_s6 + $0x300] sm:$0xff] }
 0x384   : > { %v8651_v56 = vpop.f32.mrf.mxu0 }
 0x385   : > { %10383 = vst [vmem:[#allocation20_spill] sm:$0xff] %v8651_v56  ;;  %2949 = vmax.xlane.f32.xlu0 %v2948_v5  ;;  %v8654_v19 = vpop.xlane.xlu0 %2814 }
 0x386   : > { %v2824_v13 = vpop.xlane.xlu1 %2823  ;;  %v8656_v36 = vpop.f32.mrf.mxu0 }
 0x388   : > { %v8659_v27 = vpop.f32.mrf.mxu0 }
 0x389   : > { %2946 = vmax.xlane.f32.xlu0 %v2945_v34  ;;  %v2833_v8 = vpop.xlane.xlu0 %2832 }
 0x38a   : > { %v2842_v46 = vpop.xlane.xlu1 %2841  ;;  %v8664_v53 = vpop.f32.mrf.mxu0 }
 0x38b   : > { %10384 = vst [vmem:[#allocation23_spill] sm:$0xff] %v8664_v53 }
 0x38c   : > { %v8666_v10 = vpop.f32.mrf.mxu0 }
 0x38d   : > { %v2827_v21 = vpop.xlane.xlu0 %2826  ;;  %10385 = vst [vmem:[#allocation18_spill] sm:$0xff] %v8666_v10 }
 0x38e   : > { %v2836_v30 = vpop.xlane.xlu1 %2835  ;;  %v8668_v47 = vpop.f32.mrf.mxu0 }
 0x390   : > { %1680 = vperm.xlu1 %6996, %v1162_v38   ;;  %v8670_v56 = vpop.f32.mrf.mxu0 }
 0x391   : > { %v2845_v5 = vpop.xlane.xlu0 %2844 }
 0x392   : > { %v3319_v10 = vpack.c.bf16 %v2845_v5, %v2842_v46  ;;  %v8676_v62 = vpop.f32.mrf.mxu0  ;;  %v3309_v46 = vpack.c.bf16 %v8559_v29, %v8549_v32  ;;  %v2524_v32 = vadd.f32 %v8509_v42, %v8390_v39  ;;  %v3190_v39 = vld [vmem:[%s10259_s7 + $0x60] sm:$0xff]  ;;  %v10386_v42 = vld [vmem:[#allocation43_spill] sm:$0xff] }
 0x393   : > { %v2848_v60 = vpop.xlane.xlu1 %2847 }
 0x395   : > { %v2839_v51 = vpop.xlane.xlu0 %2838 }
 0x396   : > { %v3318_v0 = vpack.c.bf16 %v2839_v51, %v2836_v30  ;;  %v2532_v51 = vadd.f32 %v8502_v45, %v8340_v15  ;;  %v3314_v15 = vpack.c.bf16 %v8654_v19, %v8637_v2  ;;  %v10388_v2 = vld [vmem:[#allocation51_spill] sm:$0xff]  ;;  %v10392_v19 = vld [vmem:[#allocation61_spill] sm:$0xff] }
 0x397   : > { %v2857_v34 = vpop.xlane.xlu1 %2856  ;;  %v10393_v30 = vld [vmem:[#allocation35_spill] sm:$0xff] }
 0x398   : > { %v2972_v29 = vsel %vm791_vm3, %v2532_v51, -inf }
 0x399   : > { %v2854_v48 = vpop.xlane.xlu0 %2853 }
 0x39a   : > { %v3321_v40 = vpack.c.bf16 %v2857_v34, %v2854_v48  ;;  %v3311_v48 = vpack.c.bf16 %v8587_v7, %v8580_v17  ;;  %v3308_v17 = vpack.c.bf16 %v8573_v52, %v8563_v26  ;;  %v3186_v26 = vld [vmem:[%s10259_s7 + $0x40] sm:$0xff]  ;;  %v2966_v52 = vsel %vm791_vm3, %v2524_v32, -inf }
 0x39b   : > { %v5913_v59 = vcombine.high %v3186_v26, %v3190_v39  ;;  %v3202_v32 = vld [vmem:[%s10259_s7 + $0xc0] sm:$0xff] }
 0x39c   : > { %6173 = vmatprep.subr.bf16.mxu1 %v3321_v40  ;;  %v8680_v40 = vpop.f32.mrf.mxu0 }
 0x39d   : > { %v2851_v53 = vpop.xlane.xlu0 %2850  ;;  %6174 = vmatpush3.bf16.msra.mxu1 %v3313_v25  ;;  %v3310_v25 = vpack.c.bf16 %v8601_v41, %v8599_v50  ;;  %v10387_v41 = vld [vmem:[#allocation9_spill] sm:$0xff] }
 0x39e   : > { %v3320_v38 = vpack.c.bf16 %v2851_v53, %v2848_v60  ;;  %v3317_v60 = vpack.c.bf16 %v2833_v8, %v2830_v20  ;;  %v8684_v22 = vpop.f32.mrf.mxu0  ;;  %v3315_v20 = vpack.c.bf16 %v2821_v11, %v8625_v31  ;;  %v2535_v31 = vadd.f32 %v8514_v54, %v10387_v41  ;;  %v3194_v54 = vld [vmem:[%s10259_s7 + $0x80] sm:$0xff] }
 0x39f   : > { %1675 = vperm.xlu0 %6995, %v1161_v63   ;;  %v2556_v53 = vadd.f32 %v8565_v24, %v10393_v30  ;;  %v10396_v24 = vld [vmem:[#allocation52_spill] sm:$0xff] }
 0x3a0   : > { %6175 = vmatprep.subr.bf16.mxu1 %v3320_v38  ;;  %v8688_v12 = vpop.f32.mrf.mxu0  ;;  %v2975_v8 = vsel %vm791_vm3, %v2535_v31, -inf  ;;  %v10394_v38 = vld [vmem:[#allocation44_spill] sm:$0xff] }
 0x3a1   : > { %6176 = vmatpush3.bf16.msra.mxu1 %v3312_v23  ;;  %v2540_v23 = vadd.f32 %v8537_v55, %v10388_v2  ;;  %v3198_v55 = vld [vmem:[%s10259_s7 + $0xa0] sm:$0xff] }
 0x3a2   : > { %6177 = vmatprep.subr.bf16.mxu1 %v3319_v10  ;;  %v3316_v10 = vpack.c.bf16 %v2827_v21, %v2824_v13  ;;  %v8695_v7 = vpop.f32.mrf.mxu0  ;;  %v3307_v21 = vpack.c.bf16 %v8531_v4, %v8519_v14  ;;  %v2548_v14 = vadd.f32 %v8528_v3, %v10386_v42  ;;  %v3306_v4 = vpack.c.bf16 %v8545_v49, %v8535_v57  ;;  %v10389_v3 = vld [vmem:[#allocation66_spill] sm:$0xff]  ;;  %v10390_v57 = vld [vmem:[#allocation67_spill] sm:$0xff]  ;;  %v10400_v2 = vld [vmem:[#allocation28_spill] sm:$0xff] }
 0x3a3   : > { %v10391_v49 = vcombine.low %v10389_v3, %v10390_v57  ;;  %v2527_v13 = vadd.f32 %v8523_v35, %v10392_v19  ;;  %v2978_v5 = vsel %vm791_vm3, %v2540_v23, -inf  ;;  %v5912_v35 = vcombine.low %v3186_v26, %v3190_v39  ;;  %v10398_v39 = vld [vmem:[#allocation26_spill] sm:$0xff]  ;;  %v3214_v3 = vld [vmem:[%s10259_s7 + $0x120] sm:$0xff]  ;;  %v10401_v57 = vld [vmem:[#allocation41_spill] sm:$0xff] }
 0x3a4   : > { %v8704_v45 = vpop.f32.mrf.mxu0  ;;  %v2984_v11 = vsel %vm791_vm3, %v2548_v14, -inf  ;;  %v5920_v26 = vcombine.low %v3194_v54, %v3198_v55  ;;  %v2564_v42 = vadd.f32 %v8556_v6, %v10398_v39  ;;  %v2567_v23 = vadd.f32 %v8570_v9, %v10400_v2 }
 0x3a5   : > { %6178 = vmatpush3.bf16.msra.mxu1 %v3311_v48  ;;  %v2551_v48 = vadd.f32 %v8542_v43, %v10394_v38  ;;  %v8754_v43 = vpop.permute.xlu1 %1520 }
 0x3a6   : > { %6179 = vmatprep.subr.bf16.mxu1 %v3318_v0  ;;  %v8717_v50 = vpop.f32.mrf.mxu0  ;;  %v2969_v0 = vsel %vm791_vm3, %v2527_v13, -inf  ;;  %v2996_v6 = vsel %vm791_vm3, %v2564_v42, -inf  ;;  %v2999_v30 = vsel %vm791_vm3, %v2567_v23, -inf  ;;  %v10407_v42 = vld [vmem:[#allocation27_spill] sm:$0xff] }
 0x3a8   : > { %v8724_v63 = vpop.f32.mrf.mxu0 }
 0x3a9   : > { %6180 = vmatpush3.bf16.msra.mxu1 %v3310_v25  ;;  %v5921_v25 = vcombine.high %v3194_v54, %v3198_v55  ;;  %v10402_v54 = vld [vmem:[#allocation36_spill] sm:$0xff] }
 0x3aa   : > { %6181 = vmatprep.subr.bf16.mxu1 %v3317_v60  ;;  %v8741_v34 = vpop.f32.mrf.mxu0  ;;  %v10395_v60 = vld [vmem:[#allocation68_spill] sm:$0xff]  ;;  %v2559_v55 = vadd.f32 %v8577_v33, %v10402_v54  ;;  %v10411_v54 = vld [vmem:[#allocation42_spill] sm:$0xff] }
 0x3ac   : > { %v8749_v51 = vpop.f32.mrf.mxu0 }
 0x3ad   : > { %6182 = vmatpush3.bf16.msra.mxu1 %v3309_v46  ;;  %v2580_v46 = vadd.f32 %v8584_v18, %v10395_v60  ;;  %v3206_v18 = vld [vmem:[%s10259_s7 + $0xe0] sm:$0xff]  ;;  %v2993_v60 = vsel %vm791_vm3, %v2559_v55, -inf  ;;  %v10412_v55 = vld [vmem:[#allocation21_spill] sm:$0xff] }
 0x3ae   : > { %6183 = vmatprep.subr.bf16.mxu1 %v3316_v10  ;;  %v2990_v10 = vsel %vm791_vm3, %v2556_v53, -inf }
 0x3b1   : > { %6184 = vmatpush3.bf16.msra.mxu1 %v3308_v17  ;;  %v2543_v17 = vadd.f32 %v8551_v16, %v10396_v24  ;;  %v8765_v16 = vpop.f32.mrf.mxu0  ;;  %v10405_v24 = vld [vmem:[#allocation33_spill] sm:$0xff] }
 0x3b2   : > { %6185 = vmatprep.subr.bf16.mxu1 %v3315_v20  ;;  %v2987_v20 = vsel %vm791_vm3, %v2551_v48, -inf }
 0x3b3   : > { %v2981_v14 = vsel %vm791_vm3, %v2543_v17, -inf  ;;  %v2620_v17 = vadd.f32 %v8656_v36, %v10405_v24  ;;  %v2631_v36 = vadd.f32 %v8659_v27, %v10407_v42  ;;  %v3226_v27 = vld [vmem:[%s10259_s7 + $0x180] sm:$0xff] }
 0x3b4   : > { %2973 = vmax.xlane.f32.xlu1 %v2972_v29 }
 0x3b5   : > { %6186 = vmatpush3.bf16.msra.mxu1 %v3307_v21  ;;  %v10397_v21 = vld [vmem:[#allocation17_spill] sm:$0xff] }
 0x3b6   : > { %6187 = vmatprep.subr.bf16.mxu1 %v3314_v15  ;;  %v2596_v29 = vadd.f32 %v8610_v28, %v10397_v21  ;;  %v3008_v15 = vsel %vm791_vm3, %v2580_v46, -inf  ;;  %v8775_v28 = vpop.f32.mrf.mxu0  ;;  %v10406_v21 = vld [vmem:[#allocation16_spill] sm:$0xff] }
 0x3b8   : > { %2967 = vmax.xlane.f32.xlu1 %v2966_v52  ;;  %v10399_v52 = vld [vmem:[#allocation59_spill] sm:$0xff]  ;;  %v3020_v31 = vsel %vm791_vm3, %v2596_v29, -inf  ;;  %v8791_v9 = vpop.f32.mrf.mxu0  ;;  %v2599_v29 = vadd.f32 %v8622_v61, %v10406_v21 }
 0x3b9   : > { %6188 = vmatpush3.bf16.msra.mxu1 %v3306_v4  ;;  %v5929_v4 = vcombine.high %v3202_v32, %v3206_v18  ;;  %v2588_v41 = vadd.f32 %v8617_v37, %v10399_v52  ;;  %v3210_v37 = vld [vmem:[%s10259_s7 + $0x100] sm:$0xff]  ;;  %v10416_v21 = vld [vmem:[#allocation47_spill] sm:$0xff] }
 0x3ba   : > { %v5937_v53 = vcombine.high %v3210_v37, %v3214_v3  ;;  %v8803_v48 = vpop.f32.mrf.mxu0  ;;  %v3023_v2 = vsel %vm791_vm3, %v2599_v29, -inf  ;;  %v2676_v29 = vadd.f32 %v8704_v45, %v10416_v21 }
 0x3bb   : > { %v3014_v19 = vsel %vm791_vm3, %v2588_v41, -inf  ;;  %v10408_v41 = vld [vmem:[#allocation60_spill] sm:$0xff] }
 0x3bc   : > { %2985 = vmax.xlane.f32.xlu1 %v2984_v11  ;;  %4043 = vmatmul.mubr.bf16.vlgmr.msra.gmra.mxu1 %v10391_v49  ;;  %v8780_v11 = vpop.permute.xlu0 %1755  ;;  %v2612_v49 = vadd.f32 %v8634_v44, %v10401_v57  ;;  %v3047_v57 = vsel %vm791_vm3, %v2631_v36, -inf  ;;  %v3080_v45 = vsel %vm791_vm3, %v2676_v29, -inf }
 0x3bd   : > { %4050 = vmatprep.mubr.bf16.mxu1 %v5913_v59  ;;  %v8773_v59 = vpop.permute.xlu1 %1760 }
 0x3be   : > { %2976 = vmax.xlane.f32.xlu0 %v2975_v8  ;;  %v5928_v8 = vcombine.low %v3202_v32, %v3206_v18  ;;  %v3032_v38 = vsel %vm791_vm3, %v2612_v49, -inf  ;;  %v5936_v18 = vcombine.low %v3210_v37, %v3214_v3  ;;  %v10410_v37 = vld [vmem:[#allocation57_spill] sm:$0xff] }
 0x3bf   : > { %v2660_v3 = vadd.f32 %v8680_v40, %v10410_v37 }
 0x3c0   : > { %2979 = vmax.xlane.f32.xlu1 %v2978_v5 }
 0x3c2   : > { %2970 = vmax.xlane.f32.xlu0 %v2969_v0 }
 0x3c4   : > { %2991 = vmax.xlane.f32.xlu1 %v2990_v10  ;;  %4051 = vmatmul.mubr.bf16.gmra.mxu1 %v5912_v35  ;;  %v10403_v35 = vld [vmem:[#allocation49_spill] sm:$0xff]  ;;  %v3222_v10 = vld [vmem:[%s10259_s7 + $0x160] sm:$0xff] }
 0x3c5   : > { %4058 = vmatprep.mubr.bf16.mxu1 %v5921_v25  ;;  %v2604_v44 = vadd.f32 %v8639_v1, %v10403_v35  ;;  %v10404_v25 = vld [vmem:[#allocation69_spill] sm:$0xff]  ;;  %v3218_v1 = vld [vmem:[%s10259_s7 + $0x140] sm:$0xff] }
 0x3c6   : > { %2988 = vmax.xlane.f32.xlu0 %v2987_v20  ;;  %v2583_v33 = vadd.f32 %v8596_v58, %v10404_v25  ;;  %v8821_v58 = vpop.f32.mrf.mxu0  ;;  %v3068_v25 = vsel %vm791_vm3, %v2660_v3, -inf  ;;  %v10419_v3 = vld [vmem:[#allocation55_spill] sm:$0xff] }
 0x3c7   : > { %v3026_v20 = vsel %vm791_vm3, %v2604_v44, -inf }
 0x3c8   : > { %3009 = vmax.xlane.f32.xlu1 %v3008_v15  ;;  %v3011_v15 = vsel %vm791_vm3, %v2583_v33, -inf }
 0x3ca   : > { %2982 = vmax.xlane.f32.xlu0 %v2981_v14  ;;  %v3038_v14 = vsel %vm791_vm3, %v2620_v17, -inf }
 0x3cc   : > { %3021 = vmax.xlane.f32.xlu1 %v3020_v31  ;;  %4059 = vmatmul.mubr.bf16.gmra.mxu1 %v5920_v26  ;;  %v5945_v26 = vcombine.high %v3218_v1, %v3222_v10  ;;  %v10409_v31 = vld [vmem:[#allocation24_spill] sm:$0xff] }
 0x3cd   : > { %4066 = vmatprep.mubr.bf16.mxu1 %v5929_v4  ;;  %v8833_v4 = vpop.f32.mrf.mxu0  ;;  %v2591_v61 = vadd.f32 %v10409_v31, %v10408_v41  ;;  %v10418_v41 = vld [vmem:[#allocation20_spill] sm:$0xff] }
 0x3ce   : > { %2997 = vmax.xlane.f32.xlu0 %v2996_v6  ;;  %v3230_v6 = vld [vmem:[%s10259_s7 + $0x1a0] sm:$0xff] }
 0x3cf   : > { %v8851_v49 = vpop.f32.mrf.mxu0  ;;  %v5953_v35 = vcombine.high %v3226_v27, %v3230_v6  ;;  %v5952_v36 = vcombine.low %v3226_v27, %v3230_v6  ;;  %v10420_v27 = vld [vmem:[#allocation34_spill] sm:$0xff]  ;;  %v10421_v6 = vld [vmem:[#allocation23_spill] sm:$0xff] }
 0x3d0   : > { %3015 = vmax.xlane.f32.xlu1 %v3014_v19  ;;  %v8793_v13 = vpop.xlane.xlu1 %2865 }
 0x3d1   : > { %v6882_v33 = vpop.f32.mrf.mxu0 }
 0x3d2   : > { %3000 = vmax.xlane.f32.xlu0 %v2999_v30  ;;  %v8798_v5 = vpop.xlane.xlu0 %2868  ;;  %v2615_v30 = vadd.f32 %v10412_v55, %v10411_v54  ;;  %v2623_v55 = vadd.f32 %v10421_v6, %v10420_v27 }
 0x3d4   : > { %3033 = vmax.xlane.f32.xlu1 %v3032_v38  ;;  %4067 = vmatmul.mubr.bf16.gmra.mxu1 %v5928_v8  ;;  %v8805_v0 = vpop.xlane.xlu1 %2859  ;;  %v5944_v8 = vcombine.low %v3218_v1, %v3222_v10  ;;  %v10413_v38 = vld [vmem:[#allocation64_spill] sm:$0xff]  ;;  %v10414_v1 = vld [vmem:[#allocation50_spill] sm:$0xff]  ;;  %v3035_v17 = vsel %vm791_vm3, %v2615_v30, -inf  ;;  %v3041_v29 = vsel %vm791_vm3, %v2623_v55, -inf }
 0x3d5   : > { %4074 = vmatprep.mubr.bf16.mxu1 %v5937_v53  ;;  %v3017_v53 = vsel %vm791_vm3, %v2591_v61, -inf  ;;  %v2652_v40 = vadd.f32 %v8684_v22, %v10413_v38  ;;  %v10415_v10 = vld [vmem:[#allocation22_spill] sm:$0xff]  ;;  %v3234_v22 = vld [vmem:[%s10259_s7 + $0x1c0] sm:$0xff]  ;;  %v10422_v38 = vld [vmem:[#allocation31_spill] sm:$0xff] }
 0x3d6   : > { %2994 = vmax.xlane.f32.xlu0 %v2993_v60  ;;  %v8810_v46 = vpop.xlane.xlu0 %2862  ;;  %v2607_v24 = vadd.f32 %v10415_v10, %v10414_v1 }
 0x3d8   : > { %3027 = vmax.xlane.f32.xlu1 %v3026_v20  ;;  %v8823_v32 = vpop.xlane.xlu1 %2877  ;;  %v3029_v61 = vsel %vm791_vm3, %v2607_v24, -inf }
 0x3da   : > { %3012 = vmax.xlane.f32.xlu0 %v3011_v15  ;;  %v8828_v39 = vpop.xlane.xlu0 %2880  ;;  %v3062_v15 = vsel %vm791_vm3, %v2652_v40, -inf  ;;  %v2692_v40 = vadd.f32 %v8749_v51, %v10422_v38 }
 0x3dc   : > { %3039 = vmax.xlane.f32.xlu1 %v3038_v14  ;;  %4075 = vmatmul.mubr.bf16.gmra.mxu1 %v5936_v18  ;;  %v8835_v52 = vpop.xlane.xlu1 %2871  ;;  %v3238_v18 = vld [vmem:[%s10259_s7 + $0x1e0] sm:$0xff]  ;;  %v10417_v14 = vld [vmem:[#allocation25_spill] sm:$0xff] }
 0x3dd   : > { %4082 = vmatprep.mubr.bf16.mxu1 %v5945_v26  ;;  %v2715_v26 = vpop.f32.mrf.mxu0  ;;  %v2628_v31 = vadd.f32 %v10418_v41, %v10417_v14  ;;  %v5960_v24 = vcombine.low %v3234_v22, %v3238_v18  ;;  %v10424_v14 = vld [vmem:[#allocation39_spill] sm:$0xff]  ;;  %v3092_v41 = vsel %vm791_vm3, %v2692_v40, -inf }
 0x3de   : > { %3024 = vmax.xlane.f32.xlu0 %v3023_v2  ;;  %v8840_v23 = vpop.xlane.xlu0 %2874  ;;  %v5961_v2 = vcombine.high %v3234_v22, %v3238_v18  ;;  %v2684_v51 = vadd.f32 %v8765_v16, %v10424_v14  ;;  %v10425_v22 = vld [vmem:[#allocation65_spill] sm:$0xff]  ;;  %v3250_v16 = vld [vmem:[%s10259_s7 + $0x240] sm:$0xff] }
 0x3df   : > { %v3044_v30 = vsel %vm791_vm3, %v2628_v31, -inf  ;;  %v2655_v18 = vadd.f32 %v8695_v7, %v10425_v22 }
 0x3e0   : > { %3048 = vmax.xlane.f32.xlu1 %v3047_v57  ;;  %v8853_v19 = vpop.xlane.xlu1 %2889  ;;  %v2668_v57 = vadd.f32 %v8717_v50, %v10419_v3  ;;  %v3242_v50 = vld [vmem:[%s10259_s7 + $0x200] sm:$0xff]  ;;  %v3086_v27 = vsel %vm791_vm3, %v2684_v51, -inf }
 0x3e1   : > { %v3254_v3 = vld [vmem:[%s10259_s7 + $0x260] sm:$0xff]  ;;  %v3065_v40 = vsel %vm791_vm3, %v2655_v18, -inf }
 0x3e2   : > { %3018 = vmax.xlane.f32.xlu0 %v3017_v53  ;;  %v8858_v44 = vpop.xlane.xlu0 %2892  ;;  %v3262_v51 = vld [vmem:[%s10259_s7 + $0x2a0] sm:$0xff] }
 0x3e4   : > { %3069 = vmax.xlane.f32.xlu1 %v3068_v25  ;;  %4083 = vmatmul.mubr.bf16.gmra.mxu1 %v5944_v8  ;;  %v8863_v60 = vpop.xlane.xlu1 %2883  ;;  %v8889_v8 = vpop.f32.mrf.mxu0  ;;  %v3074_v25 = vsel %vm791_vm3, %v2668_v57, -inf  ;;  %v10426_v57 = vld [vmem:[#allocation11_spill] sm:$0xff] }
 0x3e5   : > { %4090 = vmatprep.mubr.bf16.mxu1 %v5953_v35  ;;  %v3246_v35 = vld [vmem:[%s10259_s7 + $0x220] sm:$0xff] }
 0x3e6   : > { %3036 = vmax.xlane.f32.xlu0 %v3035_v17  ;;  %v8868_v20 = vpop.xlane.xlu0 %2886  ;;  %v8907_v1 = vpop.f32.mrf.mxu0  ;;  %v10423_v17 = vld [vmem:[#allocation58_spill] sm:$0xff]  ;;  %v5968_v55 = vcombine.low %v3242_v50, %v3246_v35 }
 0x3e7   : > { %v2663_v21 = vadd.f32 %v8688_v12, %v10423_v17  ;;  %v10428_v17 = vld [vmem:[#allocation62_spill] sm:$0xff] }
 0x3e8   : > { %3063 = vmax.xlane.f32.xlu1 %v3062_v15  ;;  %v8879_v42 = vpop.xlane.xlu1 %2895  ;;  %v5969_v15 = vcombine.high %v3242_v50, %v3246_v35  ;;  %v6886_v31 = vpop.f32.mrf.mxu0  ;;  %v10429_v50 = vld [vmem:[#allocation56_spill] sm:$0xff] }
 0x3e9   : > { %v3071_v12 = vsel %vm791_vm3, %v2663_v21, -inf  ;;  %v2716_v21 = vadd.f32 %v2715_v26, %v10428_v17  ;;  %v2671_v35 = vadd.f32 %v8741_v34, %v10429_v50  ;;  %v3258_v26 = vld [vmem:[%s10259_s7 + $0x280] sm:$0xff]  ;;  %v5976_v34 = vcombine.low %v3250_v16, %v3254_v3  ;;  %v10434_v50 = vld [vmem:[#allocation29_spill] sm:$0xff] }
 0x3ea   : > { %3030 = vmax.xlane.f32.xlu0 %v3029_v61  ;;  %v8884_v37 = vpop.xlane.xlu0 %2901  ;;  %v2731_v6 = vpop.f32.mrf.mxu0 }
 0x3eb   : > { %v3110_v18 = vsel %vm791_vm3, %v2716_v21, -inf  ;;  %v10433_v21 = vld [vmem:[#allocation40_spill] sm:$0xff] }
 0x3ec   : > { %3081 = vmax.xlane.f32.xlu1 %v3080_v45  ;;  %4091 = vmatmul.mubr.bf16.gmra.mxu1 %v5952_v36  ;;  %v8891_v54 = vpop.xlane.xlu1 %2913  ;;  %v2724_v45 = vadd.f32 %v6882_v33, %v10426_v57  ;;  %v10431_v57 = vld [vmem:[#allocation32_spill] sm:$0xff] }
 0x3ed   : > { %4098 = vmatprep.mubr.bf16.mxu1 %v5961_v2 }
 0x3ee   : > { %3045 = vmax.xlane.f32.xlu0 %v3044_v30  ;;  %v8896_v53 = vpop.xlane.xlu0 %2904  ;;  %v10427_v30 = vld [vmem:[#allocation48_spill] sm:$0xff]  ;;  %v3116_v33 = vsel %vm791_vm3, %v2724_v45, -inf  ;;  %v2695_v45 = vadd.f32 %v8775_v28, %v10431_v57 }
 0x3ef   : > { %v2679_v38 = vadd.f32 %v8724_v63, %v10427_v30 }
 0x3f0   : > { %3075 = vmax.xlane.f32.xlu1 %v3074_v25  ;;  %v8909_v10 = vpop.xlane.xlu1 %2907  ;;  %v5977_v25 = vcombine.high %v3250_v16, %v3254_v3  ;;  %v2687_v16 = vadd.f32 %v8791_v9, %v10433_v21  ;;  %v3095_v28 = vsel %vm791_vm3, %v2695_v45, -inf  ;;  %v5984_v9 = vcombine.low %v3258_v26, %v3262_v51 }
 0x3f1   : > { %v3083_v63 = vsel %vm791_vm3, %v2679_v38, -inf }
 0x3f2   : > { %3042 = vmax.xlane.f32.xlu0 %v3041_v29  ;;  %v8914_v36 = vpop.xlane.xlu0 %2898  ;;  %v8943_v29 = vpop.f32.mrf.mxu0  ;;  %v3089_v57 = vsel %vm791_vm3, %v2687_v16, -inf  ;;  %v3278_v16 = vld [vmem:[%s10259_s7 + $0x320] sm:$0xff] }
 0x3f4   : > { %3093 = vmax.xlane.f32.xlu1 %v3092_v41  ;;  %4099 = vmatmul.mubr.bf16.gmra.mxu1 %v5960_v24  ;;  %v8919_v61 = vpop.xlane.xlu1 %2925  ;;  %v10430_v41 = vld [vmem:[#allocation45_spill] sm:$0xff] }
 0x3f5   : > { %4106 = vmatprep.mubr.bf16.mxu1 %v5969_v15  ;;  %v2740_v22 = vadd.f32 %v6886_v31, %v10430_v41 }
 0x3f6   : > { %3072 = vmax.xlane.f32.xlu0 %v3071_v12  ;;  %v8924_v2 = vpop.xlane.xlu0 %2916  ;;  %v8960_v12 = vpop.f32.mrf.mxu0 }
 0x3f7   : > { %v3128_v31 = vsel %vm791_vm3, %v2740_v22, -inf }
 0x3f8   : > { %3087 = vmax.xlane.f32.xlu1 %v3086_v27  ;;  %v8934_v7 = vpop.xlane.xlu1 %2919  ;;  %v3077_v27 = vsel %vm791_vm3, %v2671_v35, -inf  ;;  %v6890_v17 = vpop.f32.mrf.mxu0 }
 0x3f9   : > { %v2756_v35 = vadd.f32 %v6890_v17, %v10434_v50  ;;  %v10437_v17 = vld [vmem:[#allocation63_spill] sm:$0xff]  ;;  %v10439_v50 = vld [vmem:[#allocation74_spill] sm:$0xff] }
 0x3fa   : > { %3066 = vmax.xlane.f32.xlu0 %v3065_v40  ;;  %v8939_v24 = vpop.xlane.xlu0 %2910  ;;  %v10432_v40 = vld [vmem:[#allocation53_spill] sm:$0xff]  ;;  %v2747_v41 = vpop.f32.mrf.mxu0 }
 0x3fc   : > { %3117 = vmax.xlane.f32.xlu1 %v3116_v33  ;;  %4107 = vmatmul.mubr.bf16.gmra.mxu1 %v5968_v55  ;;  %v8945_v15 = vpop.xlane.xlu1 %2937  ;;  %v5985_v55 = vcombine.high %v3258_v26, %v3262_v51  ;;  %v3266_v33 = vld [vmem:[%s10259_s7 + $0x2c0] sm:$0xff] }
 0x3fd   : > { %4114 = vmatprep.mubr.bf16.mxu1 %v5977_v25  ;;  %v2732_v25 = vadd.f32 %v2731_v6, %v10432_v40  ;;  %v3270_v6 = vld [vmem:[%s10259_s7 + $0x2e0] sm:$0xff] }
 0x3fe   : > { %3084 = vmax.xlane.f32.xlu0 %v3083_v63  ;;  %v8950_v14 = vpop.xlane.xlu0 %2928  ;;  %v5993_v45 = vcombine.high %v3266_v33, %v3270_v6  ;;  %v3274_v51 = vld [vmem:[%s10259_s7 + $0x300] sm:$0xff] }
 0x3ff   : > { %v3122_v63 = vsel %vm791_vm3, %v2732_v25, -inf  ;;  %v2719_v25 = vadd.f32 %v8907_v1, %v10437_v17 }
 0x400   : > { %3111 = vmax.xlane.f32.xlu1 %v3110_v18  ;;  %v8965_v30 = vpop.xlane.xlu1 %2931  ;;  %v10435_v18 = vld [vmem:[#allocation14_spill] sm:$0xff] }
 0x402   : > { %3078 = vmax.xlane.f32.xlu0 %v3077_v27  ;;  %v8967_v38 = vpop.xlane.xlu0 %2922 }
 0x404   : > { %3129 = vmax.xlane.f32.xlu1 %v3128_v31  ;;  %4115 = vmatmul.mubr.bf16.gmra.mxu1 %v5976_v34  ;;  %v2944_v22 = vpop.xlane.xlu1 %2943  ;;  %v2727_v34 = vadd.f32 %v8889_v8, %v10435_v18  ;;  %v3140_v31 = vsel %vm791_vm3, %v2756_v35, -inf  ;;  %v10440_v18 = vld [vmem:[#allocation46_spill] sm:$0xff] }
 0x405   : > { %4122 = vmatprep.mubr.bf16.mxu1 %v5985_v55  ;;  %v10436_v55 = vld [vmem:[#allocation37_spill] sm:$0xff] }
 0x406   : > { %3096 = vmax.xlane.f32.xlu0 %v3095_v28  ;;  %v2941_v3 = vpop.xlane.xlu0 %2940  ;;  %v2748_v40 = vadd.f32 %v2747_v41, %v10436_v55  ;;  %v3119_v21 = vsel %vm791_vm3, %v2727_v34, -inf  ;;  %v10438_v28 = vld [vmem:[#allocation70_spill] sm:$0xff]  ;;  %v3329_v41 = vpack.c.bf16 %v8896_v53, %v8884_v37  ;;  %v2743_v34 = vadd.f32 %v8943_v29, %v10440_v18 }
 0x407   : > { %v2516_v35 = vadd.f32 %v10439_v50, %v10438_v28  ;;  %v3328_v37 = vpack.c.bf16 %v8914_v36, %v8879_v42  ;;  %v10442_v53 = vld [vmem:[#allocation54_spill] sm:$0xff]  ;;  %v3286_v42 = vld [vmem:[%s10259_s7 + $0x360] sm:$0xff]  ;;  %v10443_v36 = vld [vmem:[#allocation75_spill] sm:$0xff] }
 0x408   : > { %3123 = vmax.xlane.f32.xlu1 %v3122_v63  ;;  %v2953_v26 = vpop.xlane.xlu1 %2952  ;;  %v3134_v1 = vsel %vm791_vm3, %v2748_v40, -inf  ;;  %v2735_v29 = vadd.f32 %v8960_v12, %v10442_v53 }
 0x409   : > { %v2960_v40 = vsel %vm791_vm3, %v2516_v35, -inf }
 0x40a   : > { %3090 = vmax.xlane.f32.xlu0 %v3089_v57  ;;  %v2935_v27 = vpop.xlane.xlu0 %2934  ;;  %v3113_v57 = vsel %vm791_vm3, %v2719_v25, -inf  ;;  %v6891_v25 = vpop.f32.mrf.mxu0  ;;  %v3125_v35 = vsel %vm791_vm3, %v2735_v29, -inf  ;;  %v2700_v29 = vadd.f32 %v8821_v58, %v8780_v11  ;;  %v3298_v11 = vld [vmem:[%s10259_s7 + $0x3c0] sm:$0xff] }
 0x40b   : > { %v3334_v50 = vpack.c.bf16 %v2935_v27, %v8965_v30  ;;  %v3333_v30 = vpack.c.bf16 %v8950_v14, %v8919_v61  ;;  %v3325_v61 = vpack.c.bf16 %v8828_v39, %v8823_v32  ;;  %v3324_v32 = vpack.c.bf16 %v8840_v23, %v8835_v52  ;;  %v3302_v58 = vld [vmem:[%s10259_s7 + $0x3e0] sm:$0xff] }
 0x40c   : > { %3141 = vmax.xlane.f32.xlu1 %v3140_v31  ;;  %4123 = vmatmul.mubr.bf16.gmra.mxu1 %v5984_v9  ;;  %v5992_v9 = vcombine.low %v3266_v33, %v3270_v6  ;;  %v10441_v31 = vld [vmem:[#allocation72_spill] sm:$0xff]  ;;  %v3335_v33 = vpack.c.bf16 %v2941_v3, %v8945_v15  ;;  %v3131_v6 = vsel %vm791_vm3, %v2743_v34, -inf  ;;  %v3327_v3 = vpack.c.bf16 %v8858_v44, %v8853_v19  ;;  %v10448_v44 = vld [vmem:[#allocation38_spill] sm:$0xff] }
 0x40d   : > { %4130 = vmatprep.mubr.bf16.mxu1 %v5993_v45  ;;  %v6001_v45 = vcombine.high %v3274_v51, %v3278_v16  ;;  %v2708_v17 = vadd.f32 %v8803_v48, %v10441_v31  ;;  %v3282_v48 = vld [vmem:[%s10259_s7 + $0x340] sm:$0xff]  ;;  %v3326_v19 = vpack.c.bf16 %v8868_v20, %v8863_v60  ;;  %v10449_v20 = vld [vmem:[#allocation82_spill] sm:$0xff]  ;;  %v10451_v31 = vld [vmem:[#allocation71_spill] sm:$0xff]  ;;  %v3323_v23 = vpack.c.bf16 %v8798_v5, %v8793_v13 }
 0x40e   : > { %3120 = vmax.xlane.f32.xlu0 %v3119_v21  ;;  %v2950_v8 = vpop.xlane.xlu0 %2949  ;;  %v3294_v60 = vld [vmem:[%s10259_s7 + $0x3a0] sm:$0xff]  ;;  %v6008_v14 = vcombine.low %v3282_v48, %v3286_v42  ;;  %v10455_v13 = vld [vmem:[#allocation81_spill] sm:$0xff] }
 0x40f   : > { %v3337_v63 = vpack.c.bf16 %v2953_v26, %v2950_v8  ;;  %v3104_v15 = vsel %vm791_vm3, %v2708_v17, -inf  ;;  %v6000_v26 = vcombine.low %v3274_v51, %v3278_v16  ;;  %v10445_v8 = vld [vmem:[#allocation30_spill] sm:$0xff]  ;;  %v3290_v16 = vld [vmem:[%s10259_s7 + $0x380] sm:$0xff] }
 0x410   : > { %3135 = vmax.xlane.f32.xlu1 %v3134_v1  ;;  %v2759_v28 = vadd.f32 %v6891_v25, %v10445_v8  ;;  %v2750_v1 = vpop.f32.mrf.mxu0  ;;  %v10452_v17 = vld [vmem:[#allocation78_spill] sm:$0xff]  ;;  %v6017_v53 = vcombine.high %v3290_v16, %v3294_v60  ;;  %v10456_v5 = vld [vmem:[#allocation84_spill] sm:$0xff] }
 0x411   : > { %6285 = vmatprep.subr.bf16.mxu1 %v3337_v63  ;;  %v6009_v63 = vcombine.high %v3282_v48, %v3286_v42  ;;  %v2751_v51 = vadd.f32 %v2750_v1, %v10448_v44  ;;  %v3330_v42 = vpack.c.bf16 %v8939_v24, %v8909_v10  ;;  %v3179_v10 = vld [vmem:[%s10259_s7 + $0x8] sm:$0xff] }
 0x412   : > { %3114 = vmax.xlane.f32.xlu0 %v3113_v57  ;;  %v2947_v55 = vpop.xlane.xlu0 %2946  ;;  %6286 = vmatpush3.bf16.msra.mxu1 %v3329_v41  ;;  %v10446_v41 = vld [vmem:[#allocation80_spill] sm:$0xff]  ;;  %v3143_v27 = vsel %vm791_vm3, %v2759_v28, -inf  ;;  %v3183_v24 = vld [vmem:[%s10259_s7 + $0x28] sm:$0xff]  ;;  %v2703_v28 = vadd.f32 %v8851_v49, %v8773_v59  ;;  %v5134_v59 = vld [vmem:[%s10261_s9 + $0xf8] sm:$0xff] }
 0x413   : > { %v3336_v21 = vpack.c.bf16 %v2947_v55, %v2944_v22  ;;  %v10444_v22 = vld [vmem:[#allocation18_spill] sm:$0xff]  ;;  %v10450_v57 = vld [vmem:[#allocation76_spill] sm:$0xff]  ;;  %v5907_v8 = vcombine.high %v3179_v10, %v3183_v24  ;;  %v5906_v1 = vcombine.low %v3179_v10, %v3183_v24  ;;  %v3199_v44 = vld [vmem:[%s10259_s7 + $0xa8] sm:$0xff] }
 0x414   : > { %2961 = vmax.xlane.f32.xlu1 %v2960_v40  ;;  %4131 = vmatmul.mubr.bf16.gmra.mxu1 %v5992_v9  ;;  %v2644_v12 = vadd.f32 %v10444_v22, %v10443_v36  ;;  %v10447_v9 = vld [vmem:[#allocation83_spill] sm:$0xff]  ;;  %v3332_v40 = vpack.c.bf16 %v8967_v38, %v8934_v7  ;;  %v3331_v38 = vpack.c.bf16 %v8924_v2, %v8891_v54  ;;  %v10454_v2 = vld [vmem:[#allocation77_spill] sm:$0xff]  ;;  %v5115_v10 = vld [vmem:[%s10261_s9 + $0x60] sm:$0xff] }
 0x415   : > { %6287 = vmatprep.subr.bf16.mxu1 %v3336_v21  ;;  %4138 = vmatprep.mubr.bf16.mxu1 %v6001_v45  ;;  %v2572_v18 = vadd.f32 %v10447_v9, %v10446_v41  ;;  %v2508_v45 = vadd.f32 %v10450_v57, %v10449_v20  ;;  %v2519_v21 = vadd.f32 %v10452_v17, %v10451_v31  ;;  %v3101_v9 = vsel %vm791_vm3, %v2703_v28, -inf  ;;  %v9131_v20 = vld [vmem:[%s10259_s7 + $0x30] sm:$0xff]  ;;  %v3207_v31 = vld [vmem:[%s10259_s7 + $0xe8] sm:$0xff]  ;;  %v5110_v24 = vld [vmem:[%s10261_s9 + $0x38] sm:$0xff] }
 0x416   : > { %3132 = vmax.xlane.f32.xlu0 %v3131_v6  ;;  %6288 = vmatpush3.bf16.msra.mxu1 %v3328_v37  ;;  %v3056_v34 = vsel %vm791_vm3, %v2644_v12, -inf  ;;  %v3137_v37 = vsel %vm791_vm3, %v2751_v51, -inf  ;;  %v10453_v6 = vld [vmem:[#allocation73_spill] sm:$0xff]  ;;  %v6016_v54 = vcombine.low %v3290_v16, %v3294_v60  ;;  %v2647_v48 = vadd.f32 %v8670_v56, %v10454_v2  ;;  %v9126_v60 = vld [vmem:[%s10259_s7 + $0x10] sm:$0xff] }
 0x417   : > { %6289 = vmatprep.subr.bf16.mxu1 %v3335_v33  ;;  %v3002_v55 = vsel %vm791_vm3, %v2572_v18, -inf  ;;  %v2954_v33 = vsel %vm791_vm3, %v2508_v45, -inf  ;;  %v2711_v7 = vadd.f32 %v8833_v4, %v10453_v6  ;;  %v2963_v25 = vsel %vm791_vm3, %v2519_v21, -inf  ;;  %v5132_v16 = vld [vmem:[%s10261_s9 + $0xe8] sm:$0xff]  ;;  %v5129_v28 = vld [vmem:[%s10261_s9 + $0xd0] sm:$0xff] }
 0x418   : > { %3105 = vmax.xlane.f32.xlu1 %v3104_v15  ;;  %v3098_v4 = vsel %vm791_vm3, %v2700_v29, -inf  ;;  %v6025_v22 = vcombine.high %v3298_v11, %v3302_v58  ;;  %v3322_v12 = vpack.c.bf16 %v8810_v46, %v8805_v0  ;;  %v2575_v15 = vadd.f32 %v10456_v5, %v10455_v13  ;;  %v10457_v0 = vld [vmem:[#allocation79_spill] sm:$0xff]  ;;  %v3215_v6 = vld [vmem:[%s10259_s7 + $0x128] sm:$0xff] }
 0x419   : > { %v3107_v36 = vsel %vm791_vm3, %v2711_v7, -inf  ;;  %v3059_v56 = vsel %vm791_vm3, %v2647_v48, -inf  ;;  %v2511_v46 = vadd.f32 %v10457_v0, %v8754_v43  ;;  %v3191_v43 = vld [vmem:[%s10259_s7 + $0x68] sm:$0xff]  ;;  %v5909_v57 = vcombine.high %v9126_v60, %v9131_v20  ;;  %v5126_v5 = vld [vmem:[%s10261_s9 + $0xb8] sm:$0xff] }
 0x41a   : > { %3126 = vmax.xlane.f32.xlu0 %v3125_v35  ;;  %6290 = vmatpush3.bf16.msra.mxu1 %v3327_v3  ;;  %v1676_v39 = vpop.permute.xlu0 %1675  ;;  %v6024_v3 = vcombine.low %v3298_v11, %v3302_v58  ;;  %v1681_v35 = vpop.permute.xlu1 %1680  ;;  %v5908_v45 = vcombine.low %v9126_v60, %v9131_v20  ;;  %v5133_v11 = vld [vmem:[%s10261_s9 + $0xf0] sm:$0xff]  ;;  %v5112_v2 = vld [vmem:[%s10261_s9 + $0x48] sm:$0xff] }
 0x41b   : > { %6291 = vmatprep.subr.bf16.mxu1 %v3334_v50  ;;  %v2636_v52 = vadd.f32 %v8668_v47, %v1676_v39  ;;  %v2957_v50 = vsel %vm791_vm3, %v2511_v46, -inf  ;;  %v2639_v41 = vadd.f32 %v8676_v62, %v1681_v35  ;;  %v5118_v62 = vld [vmem:[%s10261_s9 + $0x78] sm:$0xff]  ;;  %4364 = vmatprep.mubr.bf16.mxu0 %v5909_v57  ;;  %v3211_v39 = vld [vmem:[%s10259_s7 + $0x108] sm:$0xff]  ;;  %v3200_v60 = vld [vmem:[%s10259_s7 + $0xb0] sm:$0xff] }
 0x41c   : > { %3057 = vmax.xlane.f32.xlu1 %v3056_v34  ;;  %4139 = vmatmul.mubr.bf16.gmra.mxu1 %v6000_v26  ;;  %v3005_v26 = vsel %vm791_vm3, %v2575_v15, -inf  ;;  %v5939_v58 = vcombine.high %v3211_v39, %v3215_v6  ;;  %v3219_v48 = vld [vmem:[%s10259_s7 + $0x148] sm:$0xff] }
 0x41d   : > { %4146 = vmatprep.mubr.bf16.mxu1 %v6009_v63  ;;  %v3050_v47 = vsel %vm791_vm3, %v2636_v52, -inf  ;;  %v3187_v63 = vld [vmem:[%s10259_s7 + $0x48] sm:$0xff]  ;;  %v3053_v34 = vsel %vm791_vm3, %v2639_v41, -inf }
 0x41e   : > { %3144 = vmax.xlane.f32.xlu0 %v3143_v27  ;;  %6292 = vmatpush3.bf16.msra.mxu1 %v3326_v19  ;;  %v5915_v18 = vcombine.high %v3187_v63, %v3191_v43  ;;  %v3195_v19 = vld [vmem:[%s10259_s7 + $0x88] sm:$0xff]  ;;  %v5914_v51 = vcombine.low %v3187_v63, %v3191_v43 }
 0x41f   : > { %6293 = vmatprep.subr.bf16.mxu1 %v3333_v30  ;;  %v5923_v27 = vcombine.high %v3195_v19, %v3199_v44  ;;  %v5922_v21 = vcombine.low %v3195_v19, %v3199_v44  ;;  %v5128_v52 = vld [vmem:[%s10261_s9 + $0xc8] sm:$0xff]  ;;  %v5127_v19 = vld [vmem:[%s10261_s9 + $0xc0] sm:$0xff] }
 0x420   : > { %3003 = vmax.xlane.f32.xlu1 %v3002_v55  ;;  %v3231_v0 = vld [vmem:[%s10259_s7 + $0x1a8] sm:$0xff] }
 0x421   : > { %v5124_v35 = vld [vmem:[%s10261_s9 + $0xa8] sm:$0xff] }
 0x422   : > { %3138 = vmax.xlane.f32.xlu0 %v3137_v37  ;;  %6294 = vmatpush3.bf16.msra.mxu1 %v3325_v61  ;;  %v5116_v61 = vld [vmem:[%s10261_s9 + $0x68] sm:$0xff] }
 0x423   : > { %6295 = vmatprep.subr.bf16.mxu1 %v3332_v40  ;;  %v5108_v41 = vld [vmem:[%s10261_s9 + $0x28] sm:$0xff] }
 0x424   : > { %2955 = vmax.xlane.f32.xlu1 %v2954_v33  ;;  %4147 = vmatmul.mubr.bf16.gmra.mxu1 %v6008_v14  ;;  %v3203_v14 = vld [vmem:[%s10259_s7 + $0xc8] sm:$0xff] }
 0x425   : > { %4154 = vmatprep.mubr.bf16.mxu1 %v6017_v53  ;;  %v5931_v37 = vcombine.high %v3203_v14, %v3207_v31  ;;  %v5130_v53 = vld [vmem:[%s10261_s9 + $0xd8] sm:$0xff]  ;;  %v3243_v57 = vld [vmem:[%s10259_s7 + $0x208] sm:$0xff] }
 0x426   : > { %2964 = vmax.xlane.f32.xlu0 %v2963_v25  ;;  %6296 = vmatpush3.bf16.msra.mxu1 %v3324_v32  ;;  %v5114_v32 = vld [vmem:[%s10261_s9 + $0x58] sm:$0xff] }
 0x427   : > { %6297 = vmatprep.subr.bf16.mxu1 %v3331_v38  ;;  %v5930_v38 = vcombine.low %v3203_v14, %v3207_v31 }
 0x428   : > { %3099 = vmax.xlane.f32.xlu1 %v3098_v4 }
 0x42a   : > { %3108 = vmax.xlane.f32.xlu0 %v3107_v36  ;;  %6298 = vmatpush3.bf16.msra.mxu1 %v3323_v23 }
 0x42b   : > { %6299 = vmatprep.subr.bf16.mxu1 %v3330_v42  ;;  %v3223_v42 = vld [vmem:[%s10259_s7 + $0x168] sm:$0xff] }
 0x42c   : > { %4155 = vmatmul.mubr.bf16.gmra.mxu1 %v6016_v54  ;;  %3051 = vmax.xlane.f32.xlu1 %v3050_v47  ;;  %v5117_v54 = vld [vmem:[%s10261_s9 + $0x70] sm:$0xff]  ;;  %v5947_v13 = vcombine.high %v3219_v48, %v3223_v42 }
 0x42d   : > { %4162 = vmatprep.mubr.bf16.mxu1 %v6025_v22  ;;  %v5938_v22 = vcombine.low %v3211_v39, %v3215_v6  ;;  %v5109_v6 = vld [vmem:[%s10261_s9 + $0x30] sm:$0xff] }
 0x42e   : > { %3060 = vmax.xlane.f32.xlu0 %v3059_v56  ;;  %6300 = vmatpush3.bf16.msra.mxu1 %v3322_v12  ;;  %v5131_v12 = vld [vmem:[%s10261_s9 + $0xe0] sm:$0xff] }
 0x432   : > { %3006 = vmax.xlane.f32.xlu0 %v3005_v26  ;;  %v5946_v26 = vcombine.low %v3219_v48, %v3223_v42  ;;  %v5123_v42 = vld [vmem:[%s10261_s9 + $0xa0] sm:$0xff] }
 0x434   : > { %4163 = vmatmul.mubr.bf16.gmra.mxu1 %v6024_v3  ;;  %v3227_v3 = vld [vmem:[%s10259_s7 + $0x188] sm:$0xff] }
 0x435   : > { %4203 = vmatprep.mubr.bf16.mxu1 %v5907_v8 }
 0x436   : > { %2958 = vmax.xlane.f32.xlu0 %v2957_v50  ;;  %v5955_v50 = vcombine.high %v3227_v3, %v3231_v0 }
 0x43a   : > { %3102 = vmax.xlane.f32.xlu0 %v3101_v9  ;;  %v3235_v9 = vld [vmem:[%s10259_s7 + $0x1c8] sm:$0xff] }
 0x43c   : > { %4204 = vmatmul.mubr.bf16.vlgmr.msra.gmra.mxu1 %v5906_v1  ;;  %v5113_v1 = vld [vmem:[%s10261_s9 + $0x50] sm:$0xff] }
 0x43d   : > { %5292 = vperm.xlu1 %6996, %v5134_v59   ;;  %v9106_v49 = vpop.xlane.xlu1 %2973  ;;  %4211 = vmatprep.mubr.bf16.mxu1 %v5915_v18  ;;  %v3239_v18 = vld [vmem:[%s10259_s7 + $0x1e8] sm:$0xff] }
 0x43e   : > { %3054 = vmax.xlane.f32.xlu0 %v3053_v34  ;;  %v5954_v34 = vcombine.low %v3227_v3, %v3231_v0  ;;  %v5963_v44 = vcombine.high %v3235_v9, %v3239_v18  ;;  %v5962_v31 = vcombine.low %v3235_v9, %v3239_v18  ;;  %v3259_v0 = vld [vmem:[%s10259_s7 + $0x288] sm:$0xff] }
 0x441   : > { %5212 = vperm.xlu1 %6996, %v5118_v62   ;;  %v9118_v30 = vpop.xlane.xlu1 %2967 }
 0x444   : > { %4212 = vmatmul.mubr.bf16.gmra.mxu1 %v5914_v51 }
 0x445   : > { %5282 = vperm.xlu1 %6996, %v5132_v16   ;;  %v9137_v55 = vpop.xlane.xlu1 %2985  ;;  %4219 = vmatprep.mubr.bf16.mxu1 %v5923_v27  ;;  %v5111_v16 = vld [vmem:[%s10261_s9 + $0x40] sm:$0xff] }
 0x447   : > { %v9148_v17 = vpop.xlane.xlu0 %2976 }
 0x449   : > { %5202 = vperm.xlu1 %6996, %v5116_v61   ;;  %v9150_v40 = vpop.xlane.xlu1 %2979  ;;  %v3247_v61 = vld [vmem:[%s10259_s7 + $0x228] sm:$0xff] }
 0x44b   : > { %v9155_v29 = vpop.xlane.xlu0 %2970 }
 0x44c   : > { %4220 = vmatmul.mubr.bf16.gmra.mxu1 %v5922_v21 }
 0x44d   : > { %5272 = vperm.xlu1 %6996, %v5130_v53   ;;  %v9157_v33 = vpop.xlane.xlu1 %2991  ;;  %4227 = vmatprep.mubr.bf16.mxu1 %v5931_v37  ;;  %v5125_v37 = vld [vmem:[%s10261_s9 + $0xb0] sm:$0xff]  ;;  %v5971_v53 = vcombine.high %v3243_v57, %v3247_v61 }
 0x44f   : > { %v9168_v7 = vpop.xlane.xlu0 %2988 }
 0x451   : > { %5192 = vperm.xlu1 %6996, %v5114_v32   ;;  %v9170_v25 = vpop.xlane.xlu1 %3009 }
 0x453   : > { %v9178_v4 = vpop.xlane.xlu0 %2982 }
 0x454   : > { %4228 = vmatmul.mubr.bf16.gmra.mxu1 %v5930_v38  ;;  %5287 = vperm.xlu0 %6995, %v5133_v11   ;;  %v3251_v38 = vld [vmem:[%s10259_s7 + $0x248] sm:$0xff] }
 0x455   : > { %5262 = vperm.xlu1 %6996, %v5128_v52   ;;  %v9180_v23 = vpop.xlane.xlu1 %3021  ;;  %4235 = vmatprep.mubr.bf16.mxu1 %v5939_v58  ;;  %v3255_v11 = vld [vmem:[%s10259_s7 + $0x268] sm:$0xff] }
 0x457   : > { %v9194_v36 = vpop.xlane.xlu0 %2997 }
 0x458   : > { %5207 = vperm.xlu0 %6995, %v5117_v54   ;;  %v5970_v54 = vcombine.low %v3243_v57, %v3247_v61 }
 0x459   : > { %5182 = vperm.xlu1 %6996, %v5112_v2   ;;  %v9196_v47 = vpop.xlane.xlu1 %3015 }
 0x45b   : > { %v9204_v15 = vpop.xlane.xlu0 %3000 }
 0x45c   : > { %4236 = vmatmul.mubr.bf16.gmra.mxu1 %v5938_v22  ;;  %5277 = vperm.xlu0 %6995, %v5131_v12   ;;  %v3345_v2 = vpack.c.bf16 %v9204_v15, %v9194_v36  ;;  %v5979_v22 = vcombine.high %v3251_v38, %v3255_v11  ;;  %v5107_v36 = vld [vmem:[%s10261_s9 + $0x20] sm:$0xff] }
 0x45d   : > { %5252 = vperm.xlu1 %6996, %v5126_v5   ;;  %v9206_v56 = vpop.xlane.xlu1 %3033  ;;  %4243 = vmatprep.mubr.bf16.mxu1 %v5947_v13 }
 0x45f   : > { %v9220_v46 = vpop.xlane.xlu0 %2994 }
 0x460   : > { %5197 = vperm.xlu0 %6995, %v5115_v10   ;;  %v3344_v10 = vpack.c.bf16 %v9220_v46, %v9157_v33 }
 0x461   : > { %5172 = vperm.xlu1 %6996, %v5110_v24   ;;  %v9222_v8 = vpop.xlane.xlu1 %3027 }
 0x463   : > { %v9230_v63 = vpop.xlane.xlu0 %3012 }
 0x464   : > { %4244 = vmatmul.mubr.bf16.gmra.mxu1 %v5946_v26  ;;  %5267 = vperm.xlu0 %6995, %v5129_v28   ;;  %v3263_v26 = vld [vmem:[%s10259_s7 + $0x2a8] sm:$0xff] }
 0x465   : > { %5242 = vperm.xlu1 %6996, %v5124_v35   ;;  %v3040_v43 = vpop.xlane.xlu1 %3039  ;;  %4251 = vmatprep.mubr.bf16.mxu1 %v5955_v50  ;;  %v5978_v50 = vcombine.low %v3251_v38, %v3255_v11 }
 0x467   : > { %v9244_v59 = vpop.xlane.xlu0 %3024 }
 0x468   : > { %5187 = vperm.xlu0 %6995, %v5113_v1  }
 0x469   : > { %5162 = vperm.xlu1 %6996, %v5108_v41   ;;  %v3049_v62 = vpop.xlane.xlu1 %3048 }
 0x46b   : > { %v9249_v51 = vpop.xlane.xlu0 %3018 }
 0x46c   : > { %4252 = vmatmul.mubr.bf16.gmra.mxu1 %v5954_v34  ;;  %5257 = vperm.xlu0 %6995, %v5127_v19  }
 0x46d   : > { %v9251_v27 = vpop.xlane.xlu1 %3069  ;;  %4259 = vmatprep.mubr.bf16.mxu1 %v5963_v44  ;;  %v3271_v44 = vld [vmem:[%s10259_s7 + $0x2e8] sm:$0xff] }
 0x46f   : > { %v3037_v14 = vpop.xlane.xlu0 %3036 }
 0x470   : > { %5177 = vperm.xlu0 %6995, %v5111_v16   ;;  %v3351_v15 = vpack.c.bf16 %v3037_v14, %v9206_v56  ;;  %v3343_v56 = vpack.c.bf16 %v9168_v7, %v9137_v55  ;;  %v3349_v55 = vpack.c.bf16 %v9244_v59, %v9180_v23  ;;  %v3341_v23 = vpack.c.bf16 %v9148_v17, %v9106_v49 }
 0x471   : > { %v9262_v21 = vpop.xlane.xlu1 %3063  ;;  %v3348_v14 = vpack.c.bf16 %v9249_v51, %v9196_v47  ;;  %v3347_v49 = vpack.c.bf16 %v9230_v63, %v9170_v25  ;;  %v3275_v47 = vld [vmem:[%s10259_s7 + $0x308] sm:$0xff] }
 0x472   : > { %v3279_v51 = vld [vmem:[%s10259_s7 + $0x328] sm:$0xff] }
 0x473   : > { %v3031_v32 = vpop.xlane.xlu0 %3030 }
 0x474   : > { %4260 = vmatmul.mubr.bf16.gmra.mxu1 %v5962_v31  ;;  %5247 = vperm.xlu0 %6995, %v5125_v37   ;;  %v3350_v1 = vpack.c.bf16 %v3031_v32, %v9222_v8  ;;  %v3267_v8 = vld [vmem:[%s10259_s7 + $0x2c8] sm:$0xff] }
 0x475   : > { %v9267_v39 = vpop.xlane.xlu1 %3081  ;;  %4267 = vmatprep.mubr.bf16.mxu1 %v5971_v53  ;;  %v5995_v61 = vcombine.high %v3267_v8, %v3271_v44 }
 0x477   : > { %v3046_v58 = vpop.xlane.xlu0 %3045 }
 0x478   : > { %v3353_v52 = vpack.c.bf16 %v3049_v62, %v3046_v58  ;;  %5167 = vperm.xlu0 %6995, %v5109_v6   ;;  %v3342_v62 = vpack.c.bf16 %v9178_v4, %v9150_v40  ;;  %v5986_v4 = vcombine.low %v3259_v0, %v3263_v26  ;;  %v3340_v6 = vpack.c.bf16 %v9155_v29, %v9118_v30 }
 0x479   : > { %v9280_v48 = vpop.xlane.xlu1 %3075  ;;  %v5994_v29 = vcombine.low %v3267_v8, %v3271_v44 }
 0x47a   : > { %6397 = vmatprep.subr.bf16.mxu0 %v3353_v52 }
 0x47b   : > { %v3043_v12 = vpop.xlane.xlu0 %3042  ;;  %6398 = vmatpush3.bf16.msra.mxu0 %v3345_v2 }
 0x47c   : > { %v3352_v13 = vpack.c.bf16 %v3043_v12, %v3040_v43  ;;  %v6189_v5 = vpop.f32.mrf.mxu1  ;;  %4268 = vmatmul.mubr.bf16.gmra.mxu1 %v5970_v54  ;;  %5237 = vperm.xlu0 %6995, %v5123_v42   ;;  %v5987_v43 = vcombine.high %v3259_v0, %v3263_v26  ;;  %v6003_v54 = vcombine.high %v3275_v47, %v3279_v51  ;;  %v3283_v12 = vld [vmem:[%s10259_s7 + $0x348] sm:$0xff] }
 0x47d   : > { %v9287_v24 = vpop.xlane.xlu1 %3093  ;;  %4275 = vmatprep.mubr.bf16.mxu1 %v5979_v22 }
 0x47e   : > { %v6190_v3 = vpop.f32.mrf.mxu1  ;;  %6399 = vmatprep.subr.bf16.mxu0 %v3352_v13  ;;  %v3287_v13 = vld [vmem:[%s10259_s7 + $0x368] sm:$0xff] }
 0x47f   : > { %v9299_v33 = vadd.f32 %v6190_v3, %v6189_v5  ;;  %v9301_v46 = vpop.xlane.xlu0 %3072  ;;  %6400 = vmatpush3.bf16.msra.mxu0 %v3344_v10  ;;  %v6002_v3 = vcombine.low %v3275_v47, %v3279_v51  ;;  %v6011_v0 = vcombine.high %v3283_v12, %v3287_v13  ;;  %v6010_v8 = vcombine.low %v3283_v12, %v3287_v13 }
 0x480   : > { %v6192_v28 = vpop.f32.mrf.mxu1  ;;  %5157 = vperm.xlu0 %6995, %v5107_v36   ;;  %6401 = vmatprep.subr.bf16.mxu0 %v3351_v15 }
 0x481   : > { %v9305_v35 = vpop.xlane.xlu1 %3087 }
 0x482   : > { %v6193_v41 = vpop.f32.mrf.mxu1 }
 0x483   : > { %v9308_v9 = vadd.f32 %v6193_v41, %v6192_v28  ;;  %v9310_v18 = vpop.xlane.xlu0 %3066  ;;  %6402 = vmatpush3.bf16.msra.mxu0 %v3343_v56  ;;  %v3291_v41 = vld [vmem:[%s10259_s7 + $0x388] sm:$0xff] }
 0x484   : > { %v6195_v34 = vpop.f32.mrf.mxu1  ;;  %4276 = vmatmul.mubr.bf16.gmra.mxu1 %v5978_v50  ;;  %6403 = vmatprep.subr.bf16.mxu0 %v3350_v1 }
 0x485   : > { %v9314_v19 = vpop.xlane.xlu1 %3117  ;;  %4283 = vmatprep.mubr.bf16.mxu1 %v5987_v43 }
 0x486   : > { %v6196_v7 = vpop.f32.mrf.mxu1 }
 0x487   : > { %v9324_v16 = vadd.f32 %v6196_v7, %v6195_v34  ;;  %v9326_v57 = vpop.xlane.xlu0 %3084  ;;  %6404 = vmatpush3.bf16.msra.mxu0 %v3342_v62  ;;  %v3295_v34 = vld [vmem:[%s10259_s7 + $0x3a8] sm:$0xff] }
 0x488   : > { %v6198_v40 = vpop.f32.mrf.mxu1  ;;  %6405 = vmatprep.subr.bf16.mxu0 %v3349_v55  ;;  %v6019_v44 = vcombine.high %v3291_v41, %v3295_v34 }
 0x489   : > { %v9330_v59 = vpop.xlane.xlu1 %3111 }
 0x48a   : > { %v6199_v31 = vpop.f32.mrf.mxu1 }
 0x48b   : > { %v9334_v37 = vadd.f32 %v6199_v31, %v6198_v40  ;;  %v9336_v53 = vpop.xlane.xlu0 %3078  ;;  %6406 = vmatpush3.bf16.msra.mxu0 %v3341_v23 }
 0x48c   : > { %v6201_v32 = vpop.f32.mrf.mxu1  ;;  %4284 = vmatmul.mubr.bf16.gmra.mxu1 %v5986_v4  ;;  %6407 = vmatprep.subr.bf16.mxu0 %v3348_v14 }
 0x48d   : > { %v9340_v38 = vpop.xlane.xlu1 %3129  ;;  %4291 = vmatprep.mubr.bf16.mxu1 %v5995_v61 }
 0x48e   : > { %v6202_v17 = vpop.f32.mrf.mxu1 }
 0x48f   : > { %v9350_v11 = vadd.f32 %v6202_v17, %v6201_v32  ;;  %v3097_v58 = vpop.xlane.xlu0 %3096  ;;  %6408 = vmatpush3.bf16.msra.mxu0 %v3340_v6  ;;  %v3299_v32 = vld [vmem:[%s10259_s7 + $0x3c8] sm:$0xff] }
 0x490   : > { %v6204_v30 = vpop.f32.mrf.mxu1  ;;  %6409 = vmatprep.subr.bf16.mxu0 %v3347_v49  ;;  %v3303_v6 = vld [vmem:[%s10259_s7 + $0x3e8] sm:$0xff] }
 0x491   : > { %v9352_v52 = vpop.xlane.xlu1 %3123 }
 0x492   : > { %v6205_v25 = vpop.f32.mrf.mxu1 }
 0x493   : > { %v9354_v63 = vadd.f32 %v6205_v25, %v6204_v30  ;;  %v9356_v2 = vpop.xlane.xlu0 %3090  ;;  %v6018_v30 = vcombine.low %v3291_v41, %v3295_v34  ;;  %v6027_v25 = vcombine.high %v3299_v32, %v3303_v6 }
 0x494   : > { %v6207_v42 = vpop.f32.mrf.mxu1  ;;  %4292 = vmatmul.mubr.bf16.gmra.mxu1 %v5994_v29  ;;  %v3361_v29 = vpack.c.bf16 %v3097_v58, %v9287_v24  ;;  %v9401_v24 = vld [vmem:[%s10259_s7 + $0x18] sm:$0xff] }
 0x495   : > { %4299 = vmatprep.mubr.bf16.mxu1 %v6003_v54  ;;  %v3142_v5 = vpop.xlane.xlu1 %3141  ;;  %v9406_v58 = vld [vmem:[%s10259_s7 + $0x38] sm:$0xff] }
 0x496   : > { %v6208_v22 = vpop.f32.mrf.mxu1  ;;  %v5911_v41 = vcombine.high %v9401_v24, %v9406_v58 }
 0x497   : > { %v9364_v10 = vadd.f32 %v6208_v22, %v6207_v42  ;;  %v9366_v36 = vpop.xlane.xlu0 %3120 }
 0x498   : > { %v6210_v15 = vpop.f32.mrf.mxu1 }
 0x499   : > { %v3136_v43 = vpop.xlane.xlu1 %3135 }
 0x49a   : > { %v6211_v26 = vpop.f32.mrf.mxu1 }
 0x49b   : > { %v9368_v28 = vadd.f32 %v6211_v26, %v6210_v15  ;;  %v9370_v50 = vpop.xlane.xlu0 %3114 }
 0x49c   : > { %v6213_v56 = vpop.f32.mrf.mxu1  ;;  %4300 = vmatmul.mubr.bf16.gmra.mxu1 %v6002_v3  ;;  %v3360_v3 = vpack.c.bf16 %v9356_v2, %v9305_v35 }
 0x49d   : > { %4307 = vmatprep.mubr.bf16.mxu1 %v6011_v0  ;;  %v2962_v4 = vpop.xlane.xlu1 %2961 }
 0x49e   : > { %v6214_v1 = vpop.f32.mrf.mxu1 }
 0x49f   : > { %v9378_v62 = vadd.f32 %v6214_v1, %v6213_v56  ;;  %v3133_v55 = vpop.xlane.xlu0 %3132  ;;  %v3359_v1 = vpack.c.bf16 %v9326_v57, %v9267_v39  ;;  %v3365_v39 = vpack.c.bf16 %v9366_v36, %v9314_v19 }
 0x4a0   : > { %v6216_v7 = vpop.f32.mrf.mxu1 }
 0x4a1   : > { %v9391_v54 = vpop.xlane.xlu1 %3105 }
 0x4a2   : > { %v6217_v40 = vpop.f32.mrf.mxu1 }
 0x4a3   : > { %v9380_v23 = vadd.f32 %v6217_v40, %v6216_v7  ;;  %v3127_v61 = vpop.xlane.xlu0 %3126  ;;  %v3358_v40 = vpack.c.bf16 %v9336_v53, %v9280_v48 }
 0x4a4   : > { %v6219_v14 = vpop.f32.mrf.mxu1  ;;  %4308 = vmatmul.mubr.bf16.gmra.mxu1 %v6010_v8  ;;  %v3366_v34 = vpack.c.bf16 %v3127_v61, %v9352_v52 }
 0x4a5   : > { %4315 = vmatprep.mubr.bf16.mxu1 %v6019_v44  ;;  %v3058_v26 = vpop.xlane.xlu1 %3057 }
 0x4a6   : > { %v6220_v31 = vpop.f32.mrf.mxu1 }
 0x4a7   : > { %v9388_v49 = vadd.f32 %v6220_v31, %v6219_v14  ;;  %v3145_v17 = vpop.xlane.xlu0 %3144  ;;  %v3357_v31 = vpack.c.bf16 %v9301_v46, %v9251_v27 }
 0x4a8   : > { %v3369_v47 = vpack.c.bf16 %v3145_v17, %v3142_v5  ;;  %v6222_v51 = vpop.f32.mrf.mxu1  ;;  %v3367_v5 = vpack.c.bf16 %v3133_v55, %v9340_v38  ;;  %v6026_v38 = vcombine.low %v3299_v32, %v3303_v6  ;;  %v3364_v32 = vpack.c.bf16 %v9370_v50, %v9330_v59 }
 0x4aa   : > { %v6223_v42 = vpop.f32.mrf.mxu1  ;;  %6509 = vmatprep.subr.bf16.mxu1 %v3369_v47  ;;  %v3356_v47 = vpack.c.bf16 %v9310_v18, %v9262_v21 }
 0x4ab   : > { %v9393_v22 = vadd.f32 %v6223_v42, %v6222_v51  ;;  %v3139_v12 = vpop.xlane.xlu0 %3138  ;;  %6510 = vmatpush3.bf16.msra.mxu1 %v3361_v29  ;;  %v3188_v29 = vld [vmem:[%s10259_s7 + $0x50] sm:$0xff] }
 0x4ac   : > { %v3368_v13 = vpack.c.bf16 %v3139_v12, %v3136_v43  ;;  %v6225_v15 = vpop.f32.mrf.mxu1  ;;  %4316 = vmatmul.mubr.bf16.gmra.mxu1 %v6018_v30 }
 0x4ad   : > { %4323 = vmatprep.mubr.bf16.mxu1 %v6027_v25  ;;  %v3192_v25 = vld [vmem:[%s10259_s7 + $0x70] sm:$0xff] }
 0x4ae   : > { %v6226_v0 = vpop.f32.mrf.mxu1  ;;  %6511 = vmatprep.subr.bf16.mxu1 %v3368_v13  ;;  %v10458_v13 = vld [vmem:[#allocation10_spill] sm:$0xff] }
 0x4af   : > { %v9408_v56 = vadd.f32 %v6226_v0, %v6225_v15  ;;  %v2965_v43 = vpop.xlane.xlu0 %2964  ;;  %6512 = vmatpush3.bf16.msra.mxu1 %v3360_v3  ;;  %v5917_v15 = vcombine.high %v3188_v29, %v3192_v25 }
 0x4b0   : > { %v3339_v35 = vpack.c.bf16 %v2965_v43, %v2962_v4  ;;  %v6228_v2 = vpop.f32.mrf.mxu1  ;;  %6513 = vmatprep.subr.bf16.mxu1 %v3367_v5  ;;  %v3004_v4 = vpop.xlane.xlu1 %3003 }
 0x4b2   : > { %v6229_v55 = vpop.f32.mrf.mxu1  ;;  %6410 = vmatpush3.bf16.msra.mxu0 %v3339_v35 }
 0x4b3   : > { %v9415_v7 = vadd.f32 %v6229_v55, %v6228_v2  ;;  %v3109_v8 = vpop.xlane.xlu0 %3108  ;;  %6514 = vmatpush3.bf16.msra.mxu1 %v3359_v1  ;;  %v10459_v2 = vld [vmem:[#allocation12_spill] sm:$0xff]  ;;  %v3189_v1 = vld [vmem:[%s10259_s7 + $0x58] sm:$0xff]  ;;  %v5910_v55 = vcombine.low %v9401_v24, %v9406_v58  ;;  %v3204_v24 = vld [vmem:[%s10259_s7 + $0xd0] sm:$0xff] }
 0x4b4   : > { %v6231_v44 = vpop.f32.mrf.mxu1  ;;  %4324 = vmatmul.mubr.bf16.gmra.mxu1 %v6026_v38  ;;  %6515 = vmatprep.subr.bf16.mxu1 %v3366_v34  ;;  %v2956_v48 = vpop.xlane.xlu1 %2955  ;;  %v3363_v51 = vpack.c.bf16 %v3109_v8, %v9391_v54  ;;  %v3196_v38 = vld [vmem:[%s10259_s7 + $0x90] sm:$0xff]  ;;  %v5916_v34 = vcombine.low %v3188_v29, %v3192_v25 }
 0x4b5   : > { %4525 = vmatprep.mubr.bf16.mxu1 %v5911_v41  ;;  %v3193_v41 = vld [vmem:[%s10259_s7 + $0x78] sm:$0xff]  ;;  %v3216_v25 = vld [vmem:[%s10259_s7 + $0x130] sm:$0xff] }
 0x4b6   : > { %v6232_v57 = vpop.f32.mrf.mxu1 }
 0x4b7   : > { %v9421_v14 = vadd.f32 %v6232_v57, %v6231_v44  ;;  %v3061_v52 = vpop.xlane.xlu0 %3060  ;;  %6516 = vmatpush3.bf16.msra.mxu1 %v3358_v40  ;;  %v5925_v44 = vcombine.high %v3196_v38, %v3200_v60 }
 0x4b8   : > { %v6234_v61 = vpop.f32.mrf.mxu1  ;;  %6517 = vmatprep.subr.bf16.mxu1 %v3365_v39  ;;  %v3100_v21 = vpop.xlane.xlu1 %3099  ;;  %v3355_v18 = vpack.c.bf16 %v3061_v52, %v3058_v26  ;;  %v5919_v39 = vcombine.high %v3189_v1, %v3193_v41 }
 0x4ba   : > { %v6235_v6 = vpop.f32.mrf.mxu1 }
 0x4bb   : > { %v9427_v53 = vadd.f32 %v6235_v6, %v6234_v61  ;;  %v3007_v17 = vpop.xlane.xlu0 %3006  ;;  %6518 = vmatpush3.bf16.msra.mxu1 %v3357_v31  ;;  %v10461_v61 = vld [vmem:[#allocation15_spill] sm:$0xff]  ;;  %v3208_v31 = vld [vmem:[%s10259_s7 + $0xf0] sm:$0xff] }
 0x4bc   : > { %v3346_v19 = vpack.c.bf16 %v3007_v17, %v3004_v4  ;;  %v6237_v36 = vpop.f32.mrf.mxu1  ;;  %6519 = vmatprep.subr.bf16.mxu1 %v3364_v32  ;;  %v3052_v26 = vpop.xlane.xlu1 %3051  ;;  %v10460_v4 = vld [vmem:[#allocation13_spill] sm:$0xff]  ;;  %v3197_v32 = vld [vmem:[%s10259_s7 + $0x98] sm:$0xff]  ;;  %v5924_v17 = vcombine.low %v3196_v38, %v3200_v60  ;;  %v3224_v60 = vld [vmem:[%s10259_s7 + $0x170] sm:$0xff] }
 0x4bd   : > { %v3201_v6 = vld [vmem:[%s10259_s7 + $0xb8] sm:$0xff] }
 0x4be   : > { %v6238_v30 = vpop.f32.mrf.mxu1  ;;  %6411 = vmatprep.subr.bf16.mxu0 %v3346_v19  ;;  %v5918_v19 = vcombine.low %v3189_v1, %v3193_v41 }
 0x4bf   : > { %v9432_v27 = vadd.f32 %v6238_v30, %v6237_v36  ;;  %v2959_v46 = vpop.xlane.xlu0 %2958  ;;  %6520 = vmatpush3.bf16.msra.mxu1 %v3356_v47  ;;  %v5933_v47 = vcombine.high %v3204_v24, %v3208_v31 }
 0x4c0   : > { %v3338_v59 = vpack.c.bf16 %v2959_v46, %v2956_v48  ;;  %v6240_v50 = vpop.f32.mrf.mxu1  ;;  %6521 = vmatprep.subr.bf16.mxu1 %v3363_v51  ;;  %v5927_v51 = vcombine.high %v3197_v32, %v3201_v6 }
 0x4c2   : > { %v6241_v54 = vpop.f32.mrf.mxu1  ;;  %6412 = vmatpush3.bf16.msra.mxu0 %v3338_v59 }
 0x4c3   : > { %v9440_v42 = vadd.f32 %v6241_v54, %v6240_v50  ;;  %v3103_v12 = vpop.xlane.xlu0 %3102  ;;  %6522 = vmatpush3.bf16.msra.mxu1 %v3355_v18  ;;  %6892 = vmatprep.subr.bf16.mxu0 %v10458_v13  ;;  %v3212_v50 = vld [vmem:[%s10259_s7 + $0x110] sm:$0xff]  ;;  %v3209_v18 = vld [vmem:[%s10259_s7 + $0xf8] sm:$0xff] }
 0x4c4   : > { %v3362_v3 = vpack.c.bf16 %v3103_v12, %v3100_v21  ;;  %v6243_v5 = vpop.f32.mrf.mxu1  ;;  %v3205_v21 = vld [vmem:[%s10259_s7 + $0xd8] sm:$0xff]  ;;  %v5932_v12 = vcombine.low %v3204_v24, %v3208_v31  ;;  %v5940_v41 = vcombine.low %v3212_v50, %v3216_v25 }
 0x4c5   : > { %4365 = vmatmul.mubr.bf16.vlgmr.msra.gmra.mxu0 %v5908_v45  ;;  %v3221_v31 = vld [vmem:[%s10259_s7 + $0x158] sm:$0xff] }
 0x4c6   : > { %v6244_v0 = vpop.f32.mrf.mxu1  ;;  %6523 = vmatprep.subr.bf16.mxu1 %v3362_v3  ;;  %6893 = vmatpush3.bf16.msra.mxu0 %v10458_v13  ;;  %v5926_v13 = vcombine.low %v3197_v32, %v3201_v6  ;;  %v5941_v3 = vcombine.high %v3212_v50, %v3216_v25  ;;  %v3225_v32 = vld [vmem:[%s10259_s7 + $0x178] sm:$0xff]  ;;  %v3236_v50 = vld [vmem:[%s10259_s7 + $0x1d0] sm:$0xff] }
 0x4c7   : > { %v9447_v43 = vadd.f32 %v6244_v0, %v6243_v5  ;;  %v3055_v35 = vpop.xlane.xlu0 %3054  ;;  %6894 = vmatprep.subr.bf16.mxu0 %v10459_v2  ;;  %4372 = vmatprep.mubr.bf16.mxu0 %v5917_v15  ;;  %v5935_v5 = vcombine.high %v3205_v21, %v3209_v18 }
 0x4c8   : > { %v3354_v20 = vpack.c.bf16 %v3055_v35, %v3052_v26  ;;  %v6246_v45 = vpop.f32.mrf.mxu1 }
 0x4ca   : > { %v6247_v8 = vpop.f32.mrf.mxu1  ;;  %6524 = vmatpush3.bf16.msra.mxu1 %v3354_v20  ;;  %6895 = vmatpush3.bf16.msra.mxu0 %v10459_v2  ;;  %v3220_v2 = vld [vmem:[%s10259_s7 + $0x150] sm:$0xff]  ;;  %v3213_v20 = vld [vmem:[%s10259_s7 + $0x118] sm:$0xff] }
 0x4cb   : > { %v9465_v40 = vadd.f32 %v6247_v8, %v6246_v45  ;;  %6896 = vmatprep.subr.bf16.mxu0 %v10460_v4  ;;  %v3217_v45 = vld [vmem:[%s10259_s7 + $0x138] sm:$0xff]  ;;  %v5949_v8 = vcombine.high %v3220_v2, %v3224_v60 }
 0x4cc   : > { %v6249_v57 = vpop.f32.mrf.mxu1 }
 0x4cd   : > { %4373 = vmatmul.mubr.bf16.gmra.mxu0 %v5916_v34  ;;  %4526 = vmatmul.mubr.bf16.vlgmr.msra.gmra.mxu1 %v5910_v55  ;;  %v5934_v34 = vcombine.low %v3205_v21, %v3209_v18  ;;  %v3240_v21 = vld [vmem:[%s10259_s7 + $0x1f0] sm:$0xff]  ;;  %v3229_v18 = vld [vmem:[%s10259_s7 + $0x198] sm:$0xff] }
 0x4ce   : > { %v6250_v52 = vpop.f32.mrf.mxu1  ;;  %6897 = vmatpush3.bf16.msra.mxu0 %v10460_v4  ;;  %4380 = vmatprep.mubr.bf16.mxu0 %v5925_v44  ;;  %v5943_v44 = vcombine.high %v3213_v20, %v3217_v45 }
 0x4cf   : > { %v9472_v58 = vadd.f32 %v6250_v52, %v6249_v57  ;;  %6898 = vmatprep.subr.bf16.mxu0 %v10461_v61  ;;  %4533 = vmatprep.mubr.bf16.mxu1 %v5919_v39  ;;  %v3228_v52 = vld [vmem:[%s10259_s7 + $0x190] sm:$0xff] }
 0x4d0   : > { %v6252_v48 = vpop.f32.mrf.mxu1 }
 0x4d2   : > { %v6253_v36 = vpop.f32.mrf.mxu1  ;;  %6899 = vmatpush3.bf16.msra.mxu0 %v10461_v61  ;;  %v3232_v61 = vld [vmem:[%s10259_s7 + $0x1b0] sm:$0xff] }
 0x4d3   : > { %v9485_v30 = vadd.f32 %v6253_v36, %v6252_v48  ;;  %v5948_v48 = vcombine.low %v3220_v2, %v3224_v60  ;;  %v5957_v36 = vcombine.high %v3228_v52, %v3232_v61 }
 0x4d4   : > { %v6255_v46 = vpop.f32.mrf.mxu1 }
 0x4d5   : > { %4381 = vmatmul.mubr.bf16.gmra.mxu0 %v5924_v17  ;;  %4534 = vmatmul.mubr.bf16.gmra.mxu1 %v5918_v19  ;;  %v5942_v17 = vcombine.low %v3213_v20, %v3217_v45  ;;  %v3244_v20 = vld [vmem:[%s10259_s7 + $0x210] sm:$0xff] }
 0x4d6   : > { %v6256_v59 = vpop.f32.mrf.mxu1  ;;  %4388 = vmatprep.mubr.bf16.mxu0 %v5933_v47  ;;  %4541 = vmatprep.mubr.bf16.mxu1 %v5927_v51  ;;  %v5951_v47 = vcombine.high %v3221_v31, %v3225_v32 }
 0x4d7   : > { %v9490_v29 = vadd.f32 %v6256_v59, %v6255_v46 }
 0x4d8   : > { %v6258_v54 = vpop.f32.mrf.mxu1 }
 0x4da   : > { %v6259_v15 = vpop.f32.mrf.mxu1 }
 0x4db   : > { %v9501_v0 = vadd.f32 %v6259_v15, %v6258_v54  ;;  %v3233_v54 = vld [vmem:[%s10259_s7 + $0x1b8] sm:$0xff]  ;;  %v5950_v15 = vcombine.low %v3221_v31, %v3225_v32 }
 0x4dc   : > { %v6261_v26 = vpop.f32.mrf.mxu1 }
 0x4dd   : > { %4389 = vmatmul.mubr.bf16.gmra.mxu0 %v5932_v12  ;;  %4542 = vmatmul.mubr.bf16.gmra.mxu1 %v5926_v13  ;;  %v5956_v13 = vcombine.low %v3228_v52, %v3232_v61 }
 0x4de   : > { %v6262_v35 = vpop.f32.mrf.mxu1  ;;  %4396 = vmatprep.mubr.bf16.mxu0 %v5941_v3  ;;  %4549 = vmatprep.mubr.bf16.mxu1 %v5935_v5  ;;  %v5965_v5 = vcombine.high %v3236_v50, %v3240_v21 }
 0x4df   : > { %v9506_v38 = vadd.f32 %v6262_v35, %v6261_v26  ;;  %v5959_v26 = vcombine.high %v3229_v18, %v3233_v54 }
 0x4e0   : > { %v6264_v1 = vpop.f32.mrf.mxu1 }
 0x4e2   : > { %v6265_v55 = vpop.f32.mrf.mxu1 }
 0x4e3   : > { %v9517_v4 = vadd.f32 %v6265_v55, %v6264_v1  ;;  %v3248_v1 = vld [vmem:[%s10259_s7 + $0x230] sm:$0xff] }
 0x4e4   : > { %v6267_v39 = vpop.f32.mrf.mxu1 }
 0x4e5   : > { %4397 = vmatmul.mubr.bf16.gmra.mxu0 %v5940_v41  ;;  %4550 = vmatmul.mubr.bf16.gmra.mxu1 %v5934_v34  ;;  %v3237_v41 = vld [vmem:[%s10259_s7 + $0x1d8] sm:$0xff] }
 0x4e6   : > { %v6268_v57 = vpop.f32.mrf.mxu1  ;;  %4404 = vmatprep.mubr.bf16.mxu0 %v5949_v8  ;;  %4557 = vmatprep.mubr.bf16.mxu1 %v5943_v44  ;;  %v3241_v34 = vld [vmem:[%s10259_s7 + $0x1f8] sm:$0xff]  ;;  %v5964_v8 = vcombine.low %v3236_v50, %v3240_v21  ;;  %v5958_v44 = vcombine.low %v3229_v18, %v3233_v54 }
 0x4e7   : > { %v9522_v24 = vadd.f32 %v6268_v57, %v6267_v39  ;;  %v5973_v57 = vcombine.high %v3244_v20, %v3248_v1  ;;  %v5967_v52 = vcombine.high %v3237_v41, %v3241_v34  ;;  %v5966_v50 = vcombine.low %v3237_v41, %v3241_v34 }
 0x4e8   : > { %v6270_v6 = vpop.f32.mrf.mxu1 }
 0x4ea   : > { %v6271_v19 = vpop.f32.mrf.mxu1 }
 0x4eb   : > { %v9533_v51 = vadd.f32 %v6271_v19, %v6270_v6  ;;  %v3252_v6 = vld [vmem:[%s10259_s7 + $0x250] sm:$0xff]  ;;  %v3245_v19 = vld [vmem:[%s10259_s7 + $0x218] sm:$0xff] }
 0x4ec   : > { %v6273_v46 = vpop.f32.mrf.mxu1 }
 0x4ed   : > { %4405 = vmatmul.mubr.bf16.gmra.mxu0 %v5948_v48  ;;  %4558 = vmatmul.mubr.bf16.gmra.mxu1 %v5942_v17  ;;  %v3256_v17 = vld [vmem:[%s10259_s7 + $0x270] sm:$0xff] }
 0x4ee   : > { %v6274_v59 = vpop.f32.mrf.mxu1  ;;  %4412 = vmatprep.mubr.bf16.mxu0 %v5957_v36  ;;  %4565 = vmatprep.mubr.bf16.mxu1 %v5951_v47  ;;  %v3249_v36 = vld [vmem:[%s10259_s7 + $0x238] sm:$0xff]  ;;  %v5981_v18 = vcombine.high %v3252_v6, %v3256_v17 }
 0x4ef   : > { %v9538_v25 = vadd.f32 %v6274_v59, %v6273_v46  ;;  %v5972_v59 = vcombine.low %v3244_v20, %v3248_v1  ;;  %v5975_v54 = vcombine.high %v3245_v19, %v3249_v36  ;;  %v5980_v1 = vcombine.low %v3252_v6, %v3256_v17  ;;  %v3261_v6 = vld [vmem:[%s10259_s7 + $0x298] sm:$0xff] }
 0x4f0   : > { %v6276_v12 = vpop.f32.mrf.mxu1  ;;  %v5974_v41 = vcombine.low %v3245_v19, %v3249_v36 }
 0x4f2   : > { %v6277_v3 = vpop.f32.mrf.mxu1 }
 0x4f3   : > { %v9549_v35 = vadd.f32 %v6277_v3, %v6276_v12 }
 0x4f4   : > { %v6279_v2 = vpop.f32.mrf.mxu1 }
 0x4f5   : > { %4413 = vmatmul.mubr.bf16.gmra.mxu0 %v5956_v13  ;;  %4566 = vmatmul.mubr.bf16.gmra.mxu1 %v5950_v15 }
 0x4f6   : > { %v6280_v60 = vpop.f32.mrf.mxu1  ;;  %4420 = vmatprep.mubr.bf16.mxu0 %v5965_v5  ;;  %4573 = vmatprep.mubr.bf16.mxu1 %v5959_v26  ;;  %v3264_v26 = vld [vmem:[%s10259_s7 + $0x2b0] sm:$0xff] }
 0x4f7   : > { %v9554_v45 = vadd.f32 %v6280_v60, %v6279_v2  ;;  %v3253_v2 = vld [vmem:[%s10259_s7 + $0x258] sm:$0xff] }
 0x4f8   : > { %v6282_v55 = vpop.f32.mrf.mxu1 }
 0x4fa   : > { %v6283_v39 = vpop.f32.mrf.mxu1 }
 0x4fb   : > { %v9565_v61 = vadd.f32 %v6283_v39, %v6282_v55 }
 0x4fc   : > { %v6301_v31 = vpop.f32.mrf.mxu1 }
 0x4fd   : > { %4421 = vmatmul.mubr.bf16.gmra.mxu0 %v5964_v8  ;;  %4574 = vmatmul.mubr.bf16.gmra.mxu1 %v5958_v44 }
 0x4fe   : > { %v6302_v32 = vpop.f32.mrf.mxu1  ;;  %4428 = vmatprep.mubr.bf16.mxu0 %v5973_v57  ;;  %4581 = vmatprep.mubr.bf16.mxu1 %v5967_v52 }
 0x4ff   : > { %v6303_v48 = vadd.f32 %v6302_v32, %v6301_v31  ;;  %v3272_v32 = vld [vmem:[%s10259_s7 + $0x2f0] sm:$0xff] }
 0x500   : > { %v6304_v47 = vpop.f32.mrf.mxu1 }
 0x501   : > { %v9580_v46 = vadd.f32 %v6303_v48, %v9299_v33  ;;  %v3260_v33 = vld [vmem:[%s10259_s7 + $0x290] sm:$0xff] }
 0x502   : > { %v6305_v21 = vpop.f32.mrf.mxu1  ;;  %v5989_v55 = vcombine.high %v3260_v33, %v3264_v26  ;;  %v5988_v19 = vcombine.low %v3260_v33, %v3264_v26  ;;  %v3269_v33 = vld [vmem:[%s10259_s7 + $0x2d8] sm:$0xff] }
 0x503   : > { %v6306_v12 = vadd.f32 %v6305_v21, %v6304_v47 }
 0x504   : > { %v6307_v13 = vpop.f32.mrf.mxu1 }
 0x505   : > { %v9583_v15 = vadd.f32 %v6306_v12, %v9308_v9  ;;  %4429 = vmatmul.mubr.bf16.gmra.mxu0 %v5972_v59  ;;  %4582 = vmatmul.mubr.bf16.gmra.mxu1 %v5966_v50  ;;  %v3257_v9 = vld [vmem:[%s10259_s7 + $0x278] sm:$0xff] }
 0x506   : > { %v6308_v3 = vpop.f32.mrf.mxu1  ;;  %4436 = vmatprep.mubr.bf16.mxu0 %v5981_v18  ;;  %4589 = vmatprep.mubr.bf16.mxu1 %v5975_v54  ;;  %v5983_v8 = vcombine.high %v3253_v2, %v3257_v9  ;;  %v5982_v36 = vcombine.low %v3253_v2, %v3257_v9 }
 0x507   : > { %v6309_v5 = vadd.f32 %v6308_v3, %v6307_v13  ;;  %v3280_v3 = vld [vmem:[%s10259_s7 + $0x330] sm:$0xff] }
 0x508   : > { %v6310_v60 = vpop.f32.mrf.mxu1 }
 0x509   : > { %v9598_v20 = vadd.f32 %v6309_v5, %v9324_v16  ;;  %v3268_v16 = vld [vmem:[%s10259_s7 + $0x2d0] sm:$0xff] }
 0x50a   : > { %v6311_v34 = vpop.f32.mrf.mxu1  ;;  %v5997_v59 = vcombine.high %v3268_v16, %v3272_v32  ;;  %v5996_v2 = vcombine.low %v3268_v16, %v3272_v32  ;;  %v3277_v16 = vld [vmem:[%s10259_s7 + $0x318] sm:$0xff] }
 0x50b   : > { %v6312_v44 = vadd.f32 %v6311_v34, %v6310_v60 }
 0x50c   : > { %v6313_v39 = vpop.f32.mrf.mxu1 }
 0x50d   : > { %v9601_v57 = vadd.f32 %v6312_v44, %v9334_v37  ;;  %4437 = vmatmul.mubr.bf16.gmra.mxu0 %v5980_v1  ;;  %4590 = vmatmul.mubr.bf16.gmra.mxu1 %v5974_v41  ;;  %v3265_v37 = vld [vmem:[%s10259_s7 + $0x2b8] sm:$0xff] }
 0x50e   : > { %v6314_v52 = vpop.f32.mrf.mxu1  ;;  %4444 = vmatprep.mubr.bf16.mxu0 %v5989_v55  ;;  %4597 = vmatprep.mubr.bf16.mxu1 %v5983_v8  ;;  %v5991_v50 = vcombine.high %v3261_v6, %v3265_v37  ;;  %v5990_v9 = vcombine.low %v3261_v6, %v3265_v37 }
 0x50f   : > { %v6315_v31 = vadd.f32 %v6314_v52, %v6313_v39  ;;  %v3288_v52 = vld [vmem:[%s10259_s7 + $0x370] sm:$0xff] }
 0x510   : > { %v6316_v48 = vpop.f32.mrf.mxu1 }
 0x511   : > { %v9616_v17 = vadd.f32 %v6315_v31, %v9350_v11  ;;  %v3276_v11 = vld [vmem:[%s10259_s7 + $0x310] sm:$0xff] }
 0x512   : > { %v6317_v47 = vpop.f32.mrf.mxu1  ;;  %v6005_v1 = vcombine.high %v3276_v11, %v3280_v3  ;;  %v6004_v6 = vcombine.low %v3276_v11, %v3280_v3  ;;  %v3285_v11 = vld [vmem:[%s10259_s7 + $0x358] sm:$0xff] }
 0x513   : > { %v6318_v21 = vadd.f32 %v6317_v47, %v6316_v48 }
 0x514   : > { %v6319_v18 = vpop.f32.mrf.mxu1 }
 0x515   : > { %v9619_v54 = vadd.f32 %v6318_v21, %v9354_v63  ;;  %4445 = vmatmul.mubr.bf16.gmra.mxu0 %v5988_v19  ;;  %4598 = vmatmul.mubr.bf16.gmra.mxu1 %v5982_v36  ;;  %v3273_v63 = vld [vmem:[%s10259_s7 + $0x2f8] sm:$0xff] }
 0x516   : > { %v6320_v12 = vpop.f32.mrf.mxu1  ;;  %4452 = vmatprep.mubr.bf16.mxu0 %v5997_v59  ;;  %4605 = vmatprep.mubr.bf16.mxu1 %v5991_v50  ;;  %v5999_v41 = vcombine.high %v3269_v33, %v3273_v63  ;;  %v5998_v37 = vcombine.low %v3269_v33, %v3273_v63 }
 0x517   : > { %v6321_v13 = vadd.f32 %v6320_v12, %v6319_v18  ;;  %v3296_v12 = vld [vmem:[%s10259_s7 + $0x3b0] sm:$0xff] }
 0x518   : > { %v6322_v5 = vpop.f32.mrf.mxu1 }
 0x519   : > { %v9634_v26 = vadd.f32 %v6321_v13, %v9364_v10  ;;  %v3284_v10 = vld [vmem:[%s10259_s7 + $0x350] sm:$0xff] }
 0x51a   : > { %v6323_v60 = vpop.f32.mrf.mxu1  ;;  %v6013_v19 = vcombine.high %v3284_v10, %v3288_v52  ;;  %v6012_v33 = vcombine.low %v3284_v10, %v3288_v52  ;;  %v3293_v10 = vld [vmem:[%s10259_s7 + $0x398] sm:$0xff] }
 0x51b   : > { %v6324_v34 = vadd.f32 %v6323_v60, %v6322_v5 }
 0x51c   : > { %v6325_v55 = vpop.f32.mrf.mxu1 }
 0x51d   : > { %v9637_v8 = vadd.f32 %v6324_v34, %v9368_v28  ;;  %4453 = vmatmul.mubr.bf16.gmra.mxu0 %v5996_v2  ;;  %4606 = vmatmul.mubr.bf16.gmra.mxu1 %v5990_v9  ;;  %v3281_v28 = vld [vmem:[%s10259_s7 + $0x338] sm:$0xff] }
 0x51e   : > { %v6326_v44 = vpop.f32.mrf.mxu1  ;;  %4460 = vmatprep.mubr.bf16.mxu0 %v6005_v1  ;;  %4613 = vmatprep.mubr.bf16.mxu1 %v5999_v41  ;;  %v6007_v36 = vcombine.high %v3277_v16, %v3281_v28  ;;  %v6006_v63 = vcombine.low %v3277_v16, %v3281_v28 }
 0x51f   : > { %v6327_v39 = vadd.f32 %v6326_v44, %v6325_v55  ;;  %v3304_v44 = vld [vmem:[%s10259_s7 + $0x3f0] sm:$0xff] }
 0x520   : > { %v6328_v31 = vpop.f32.mrf.mxu1 }
 0x521   : > { %v9652_v32 = vadd.f32 %v6327_v39, %v9378_v62  ;;  %v3292_v62 = vld [vmem:[%s10259_s7 + $0x390] sm:$0xff] }
 0x522   : > { %v6329_v48 = vpop.f32.mrf.mxu1  ;;  %v6021_v2 = vcombine.high %v3292_v62, %v3296_v12  ;;  %v6020_v16 = vcombine.low %v3292_v62, %v3296_v12 }
 0x523   : > { %v6330_v47 = vadd.f32 %v6329_v48, %v6328_v31 }
 0x524   : > { %v6331_v59 = vpop.f32.mrf.mxu1 }
 0x525   : > { %v9655_v50 = vadd.f32 %v6330_v47, %v9380_v23  ;;  %4461 = vmatmul.mubr.bf16.gmra.mxu0 %v6004_v6  ;;  %4614 = vmatmul.mubr.bf16.gmra.mxu1 %v5998_v37  ;;  %v3289_v23 = vld [vmem:[%s10259_s7 + $0x378] sm:$0xff] }
 0x526   : > { %v6332_v21 = vpop.f32.mrf.mxu1  ;;  %4468 = vmatprep.mubr.bf16.mxu0 %v6013_v19  ;;  %4621 = vmatprep.mubr.bf16.mxu1 %v6007_v36  ;;  %v6015_v9 = vcombine.high %v3285_v11, %v3289_v23  ;;  %v6014_v28 = vcombine.low %v3285_v11, %v3289_v23 }
 0x527   : > { %v6333_v18 = vadd.f32 %v6332_v21, %v6331_v59  ;;  %v3305_v21 = vld [vmem:[%s10259_s7 + $0x3f8] sm:$0xff] }
 0x528   : > { %v6334_v13 = vpop.f32.mrf.mxu1 }
 0x529   : > { %v9670_v3 = vadd.f32 %v6333_v18, %v9388_v49  ;;  %v3300_v49 = vld [vmem:[%s10259_s7 + $0x3d0] sm:$0xff] }
 0x52a   : > { %v6335_v5 = vpop.f32.mrf.mxu1  ;;  %v6029_v6 = vcombine.high %v3300_v49, %v3304_v44 }
 0x52b   : > { %v6336_v60 = vadd.f32 %v6335_v5, %v6334_v13  ;;  %v7073_v13 = vld [vmem:[%s10260_s8] sm:$0xff]  }
 0x52c   : > { %v6337_v1 = vpop.f32.mrf.mxu1 }
 0x52d   : > { %v9673_v41 = vadd.f32 %v6336_v60, %v9393_v22  ;;  %4469 = vmatmul.mubr.bf16.gmra.mxu0 %v6012_v33  ;;  %4622 = vmatmul.mubr.bf16.gmra.mxu1 %v6006_v63  ;;  %v3297_v22 = vld [vmem:[%s10259_s7 + $0x3b8] sm:$0xff] }
 0x52e   : > { %v6338_v34 = vpop.f32.mrf.mxu1  ;;  %4476 = vmatprep.mubr.bf16.mxu0 %v6021_v2  ;;  %4629 = vmatprep.mubr.bf16.mxu1 %v6015_v9  ;;  %v6023_v37 = vcombine.high %v3293_v10, %v3297_v22  ;;  %v6022_v12 = vcombine.low %v3293_v10, %v3297_v22 }
 0x52f   : > { %v6339_v55 = vadd.f32 %v6338_v34, %v6337_v1  ;;  %v7074_v34 = vld [vmem:[%s10260_s8 + $0x8] sm:$0xff]  }
 0x530   : > { %v6340_v39 = vpop.f32.mrf.mxu1 }
 0x531   : > { %v9688_v52 = vadd.f32 %v6339_v55, %v9408_v56  ;;  %v3301_v56 = vld [vmem:[%s10259_s7 + $0x3d8] sm:$0xff] }
 0x532   : > { %v6341_v31 = vpop.f32.mrf.mxu1  ;;  %v6031_v23 = vcombine.high %v3301_v56, %v3305_v21  ;;  %v6030_v1 = vcombine.low %v3301_v56, %v3305_v21  ;;  %v7078_v56 = vld [vmem:[%s10260_s8 + $0x28] sm:$0xff]  }
 0x533   : > { %v6342_v48 = vadd.f32 %v6341_v31, %v6340_v39 }
 0x534   : > { %v6343_v19 = vpop.f32.mrf.mxu1 }
 0x535   : > { %v9691_v36 = vadd.f32 %v6342_v48, %v9415_v7  ;;  %4477 = vmatmul.mubr.bf16.gmra.mxu0 %v6020_v16  ;;  %4630 = vmatmul.mubr.bf16.gmra.mxu1 %v6014_v28  ;;  %v6028_v7 = vcombine.low %v3300_v49, %v3304_v44  ;;  %v7076_v28 = vld [vmem:[%s10260_s8 + $0x18] sm:$0xff]  }
 0x536   : > { %v6344_v47 = vpop.f32.mrf.mxu1  ;;  %4484 = vmatprep.mubr.bf16.mxu0 %v6029_v6  ;;  %4637 = vmatprep.mubr.bf16.mxu1 %v6023_v37 }
 0x537   : > { %v6345_v59 = vadd.f32 %v6344_v47, %v6343_v19 }
 0x538   : > { %v6346_v62 = vpop.f32.mrf.mxu1 }
 0x539   : > { %v9700_v18 = vadd.f32 %v6345_v59, %v9421_v14 }
 0x53a   : > { %v6347_v11 = vpop.f32.mrf.mxu1 }
 0x53b   : > { %v6348_v33 = vadd.f32 %v6347_v11, %v6346_v62 }
 0x53c   : > { %v6349_v63 = vpop.f32.mrf.mxu1 }
 0x53d   : > { %v9706_v5 = vadd.f32 %v6348_v33, %v9427_v53  ;;  %4485 = vmatmul.mubr.bf16.gmra.mxu0 %v6028_v7  ;;  %4638 = vmatmul.mubr.bf16.gmra.mxu1 %v6022_v12  ;;  %v7075_v53 = vld [vmem:[%s10260_s8 + $0x10] sm:$0xff]   ;;  %v7080_v33 = vld [vmem:[%s10260_s8 + $0x38] sm:$0xff]  }
 0x53e   : > { %v6350_v2 = vpop.f32.mrf.mxu1  ;;  %4645 = vmatprep.mubr.bf16.mxu1 %v6031_v23  ;;  %6900 = vmatprep.mubr.msk.bf16.mxu0 %vm791_vm3, %v7073_v13 }
 0x53f   : > { %v6351_v14 = vadd.f32 %v6350_v2, %v6349_v63 }
 0x540   : > { %v6352_v9 = vpop.f32.mrf.mxu1 }
 0x541   : > { %v9710_v60 = vadd.f32 %v6351_v14, %v9432_v27 }
 0x542   : > { %v6353_v49 = vpop.f32.mrf.mxu1 }
 0x543   : > { %v6354_v55 = vadd.f32 %v6353_v49, %v6352_v9 }
 0x544   : > { %v6355_v44 = vpop.f32.mrf.mxu1 }
 0x545   : > { %v9719_v10 = vadd.f32 %v6354_v55, %v9440_v42  ;;  %4646 = vmatmul.mubr.bf16.gmra.mxu1 %v6030_v1  ;;  %6901 = vmatmul.mubr.msk.bf16.vlgmr.msra.gmra.mxu0 %vm791_vm3, %v7074_v34  ;;  %v7077_v42 = vld [vmem:[%s10260_s8 + $0x20] sm:$0xff]  }
 0x546   : > { %v6356_v27 = vpop.f32.mrf.mxu1  ;;  %6904 = vmatprep.mubr.msk.bf16.mxu0 %vm791_vm3, %v7075_v53  ;;  %v7082_v53 = vld [vmem:[%s10260_s8 + $0x48] sm:$0xff]  }
 0x547   : > { %v6357_v22 = vadd.f32 %v6356_v27, %v6355_v44 }
 0x548   : > { %v6358_v39 = vpop.f32.mrf.mxu1 }
 0x549   : > { %v9724_v16 = vadd.f32 %v6357_v22, %v9447_v43 }
 0x54a   : > { %v6359_v31 = vpop.f32.mrf.mxu1 }
 0x54b   : > { %v6360_v6 = vadd.f32 %v6359_v31, %v6358_v39 }
 0x54c   : > { %v6361_v37 = vpop.f32.mrf.mxu1 }
 0x54d   : > { %v9733_v48 = vadd.f32 %v6360_v6, %v9465_v40  ;;  %6905 = vmatmul.mubr.msk.bf16.gmra.mxu0 %vm791_vm3, %v7076_v28  ;;  %v7079_v40 = vld [vmem:[%s10260_s8 + $0x30] sm:$0xff]  }
 0x54e   : > { %v6362_v19 = vpop.f32.mrf.mxu1  ;;  %6908 = vmatprep.mubr.msk.bf16.mxu0 %vm791_vm3, %v7077_v42  ;;  %v7084_v42 = vld [vmem:[%s10260_s8 + $0x58] sm:$0xff]  }
 0x54f   : > { %v6363_v43 = vadd.f32 %v6362_v19, %v6361_v37 }
 0x550   : > { %v6364_v47 = vpop.f32.mrf.mxu1 }
 0x551   : > { %v9738_v59 = vadd.f32 %v6363_v43, %v9472_v58 }
 0x552   : > { %v6365_v21 = vpop.f32.mrf.mxu1 }
 0x553   : > { %v6366_v62 = vadd.f32 %v6365_v21, %v6364_v47 }
 0x554   : > { %v6367_v7 = vpop.f32.mrf.mxu1 }
 0x555   : > { %v9747_v12 = vadd.f32 %v6366_v62, %v9485_v30  ;;  %6909 = vmatmul.mubr.msk.bf16.gmra.mxu0 %vm791_vm3, %v7078_v56  ;;  %v7081_v30 = vld [vmem:[%s10260_s8 + $0x40] sm:$0xff]  }
 0x556   : > { %v6368_v11 = vpop.f32.mrf.mxu1  ;;  %6912 = vmatprep.mubr.msk.bf16.mxu0 %vm791_vm3, %v7079_v40  ;;  %v7086_v40 = vld [vmem:[%s10260_s8 + $0x68] sm:$0xff]  }
 0x557   : > { %v6369_v58 = vadd.f32 %v6368_v11, %v6367_v7 }
 0x558   : > { %v6370_v23 = vpop.f32.mrf.mxu1 }
 0x559   : > { %v9752_v13 = vadd.f32 %v6369_v58, %v9490_v29 }
 0x55a   : > { %v6371_v63 = vpop.f32.mrf.mxu1 }
 0x55b   : > { %v6372_v2 = vadd.f32 %v6371_v63, %v6370_v23 }
 0x55c   : > { %v6373_v14 = vpop.f32.mrf.mxu1 }
 0x55d   : > { %v9761_v9 = vadd.f32 %v6372_v2, %v9501_v0  ;;  %6913 = vmatmul.mubr.msk.bf16.gmra.mxu0 %vm791_vm3, %v7080_v33  ;;  %v7083_v0 = vld [vmem:[%s10260_s8 + $0x50] sm:$0xff]  }
 0x55e   : > { %v6374_v1 = vpop.f32.mrf.mxu1  ;;  %6916 = vmatprep.mubr.msk.bf16.mxu0 %vm791_vm3, %v7081_v30  ;;  %v7088_v30 = vld [vmem:[%s10260_s8 + $0x78] sm:$0xff]  }
 0x55f   : > { %v6375_v29 = vadd.f32 %v6374_v1, %v6373_v14 }
 0x560   : > { %v6376_v34 = vpop.f32.mrf.mxu1 }
 0x561   : > { %v9766_v49 = vadd.f32 %v6375_v29, %v9506_v38 }
 0x562   : > { %v6377_v55 = vpop.f32.mrf.mxu1 }
 0x563   : > { %v6378_v44 = vadd.f32 %v6377_v55, %v6376_v34 }
 0x564   : > { %v6379_v27 = vpop.f32.mrf.mxu1 }
 0x565   : > { %v9775_v22 = vadd.f32 %v6378_v44, %v9517_v4  ;;  %6917 = vmatmul.mubr.msk.bf16.gmra.mxu0 %vm791_vm3, %v7082_v53  ;;  %v7085_v4 = vld [vmem:[%s10260_s8 + $0x60] sm:$0xff]  }
 0x566   : > { %v6380_v39 = vpop.f32.mrf.mxu1  ;;  %6920 = vmatprep.mubr.msk.bf16.mxu0 %vm791_vm3, %v7083_v0 }
 0x567   : > { %v6381_v38 = vadd.f32 %v6380_v39, %v6379_v27 }
 0x568   : > { %v6382_v28 = vpop.f32.mrf.mxu1 }
 0x569   : > { %v9780_v31 = vadd.f32 %v6381_v38, %v9522_v24 }
 0x56a   : > { %v6383_v6 = vpop.f32.mrf.mxu1 }
 0x56b   : > { %v6384_v37 = vadd.f32 %v6383_v6, %v6382_v28 }
 0x56c   : > { %v6385_v19 = vpop.f32.mrf.mxu1 }
 0x56d   : > { %v9789_v43 = vadd.f32 %v6384_v37, %v9533_v51  ;;  %6921 = vmatmul.mubr.msk.bf16.gmra.mxu0 %vm791_vm3, %v7084_v42  ;;  %v7087_v51 = vld [vmem:[%s10260_s8 + $0x70] sm:$0xff]  }
 0x56e   : > { %v6386_v47 = vpop.f32.mrf.mxu1  ;;  %6924 = vmatprep.mubr.msk.bf16.mxu0 %vm791_vm3, %v7085_v4 }
 0x56f   : > { %v6387_v24 = vadd.f32 %v6386_v47, %v6385_v19 }
 0x570   : > { %v6388_v56 = vpop.f32.mrf.mxu1 }
 0x571   : > { %v9794_v21 = vadd.f32 %v6387_v24, %v9538_v25 }
 0x572   : > { %v6389_v62 = vpop.f32.mrf.mxu1 }
 0x573   : > { %v6390_v7 = vadd.f32 %v6389_v62, %v6388_v56 }
 0x574   : > { %v6391_v11 = vpop.f32.mrf.mxu1 }
 0x575   : > { %v9803_v58 = vadd.f32 %v6390_v7, %v9549_v35  ;;  %6925 = vmatmul.mubr.msk.bf16.gmra.mxu0 %vm791_vm3, %v7086_v40 }
 0x576   : > { %v6392_v23 = vpop.f32.mrf.mxu1  ;;  %6928 = vmatprep.mubr.msk.bf16.mxu0 %vm791_vm3, %v7087_v51 }
 0x577   : > { %v6393_v25 = vadd.f32 %v6392_v23, %v6391_v11 }
 0x578   : > { %v6394_v33 = vpop.f32.mrf.mxu1 }
 0x579   : > { %v9808_v63 = vadd.f32 %v6393_v25, %v9554_v45 }
 0x57a   : > { %v6395_v2 = vpop.f32.mrf.mxu1 }
 0x57b   : > { %v6396_v14 = vadd.f32 %v6395_v2, %v6394_v33 }
 0x57d   : > { %v9814_v1 = vadd.f32 %v6396_v14, %v9565_v61  ;;  %6929 = vmatmul.mubr.msk.bf16.gmra.mxu0 %vm791_vm3, %v7088_v30 }
 0x585   : > { %v6413_v35 = vpop.f32.mrf.mxu0 }
 0x587   : > { %v6414_v29 = vpop.f32.mrf.mxu0 }
 0x588   : > { %v6415_v34 = vadd.f32 %v6414_v29, %v6413_v35 }
 0x589   : > { %v6416_v53 = vpop.f32.mrf.mxu0 }
 0x58a   : > { %v4367_v55 = vadd.f32 %v6415_v34, %v9580_v46 }
 0x58b   : > { %v6417_v0 = vpop.f32.mrf.mxu0 }
 0x58c   : > { %v6418_v45 = vadd.f32 %v6417_v0, %v6416_v53 }
 0x58d   : > { %v6419_v44 = vpop.f32.mrf.mxu0  ;;  %v6525_v27 = vpop.f32.mrf.mxu1 }
 0x58e   : > { %v4370_v39 = vadd.f32 %v6418_v45, %v9583_v15 }
 0x58f   : > { %v6420_v38 = vpop.f32.mrf.mxu0  ;;  %v6526_v28 = vpop.f32.mrf.mxu1 }
 0x590   : > { %v6421_v42 = vadd.f32 %v6420_v38, %v6419_v44  ;;  %v6527_v6 = vadd.f32 %v6526_v28, %v6525_v27 }
 0x591   : > { %v6422_v61 = vpop.f32.mrf.mxu0  ;;  %v6528_v4 = vpop.f32.mrf.mxu1 }
 0x592   : > { %v4375_v37 = vadd.f32 %v6421_v42, %v9598_v20  ;;  %v9820_v19 = vadd.f32 %v6527_v6, %v4367_v55 }
 0x593   : > { %v6423_v47 = vpop.f32.mrf.mxu0  ;;  %v6529_v24 = vpop.f32.mrf.mxu1 }
 0x594   : > { %v6424_v56 = vadd.f32 %v6423_v47, %v6422_v61  ;;  %v6530_v46 = vadd.f32 %v6529_v24, %v6528_v4 }
 0x595   : > { %v6425_v40 = vpop.f32.mrf.mxu0  ;;  %v6531_v62 = vpop.f32.mrf.mxu1 }
 0x596   : > { %v4378_v51 = vadd.f32 %v6424_v56, %v9601_v57  ;;  %v9823_v7 = vadd.f32 %v6530_v46, %v4370_v39 }
 0x597   : > { %v6426_v15 = vpop.f32.mrf.mxu0  ;;  %v6532_v11 = vpop.f32.mrf.mxu1 }
 0x598   : > { %v6533_v23 = vadd.f32 %v6532_v11, %v6531_v62  ;;  %v6427_v14 = vadd.f32 %v6426_v15, %v6425_v40 }
 0x599   : > { %v6428_v25 = vpop.f32.mrf.mxu0  ;;  %v6534_v33 = vpop.f32.mrf.mxu1 }
 0x59a   : > { %v9825_v30 = vadd.f32 %v6533_v23, %v4375_v37  ;;  %v4383_v57 = vadd.f32 %v6427_v14, %v9616_v17 }
 0x59b   : > { %v6429_v20 = vpop.f32.mrf.mxu0  ;;  %v6535_v2 = vpop.f32.mrf.mxu1 }
 0x59c   : > { %v6536_v35 = vadd.f32 %v6535_v2, %v6534_v33  ;;  %v6430_v45 = vadd.f32 %v6429_v20, %v6428_v25 }
 0x59d   : > { %v6431_v29 = vpop.f32.mrf.mxu0  ;;  %v6537_v34 = vpop.f32.mrf.mxu1 }
 0x59e   : > { %v9827_v53 = vadd.f32 %v6536_v35, %v4378_v51  ;;  %v4386_v6 = vadd.f32 %v6430_v45, %v9619_v54 }
 0x59f   : > { %v6432_v55 = vpop.f32.mrf.mxu0  ;;  %v6538_v0 = vpop.f32.mrf.mxu1 }
 0x5a0   : > { %v6539_v44 = vadd.f32 %v6538_v0, %v6537_v34  ;;  %v6433_v61 = vadd.f32 %v6432_v55, %v6431_v29 }
 0x5a1   : > { %v6434_v27 = vpop.f32.mrf.mxu0  ;;  %v6540_v39 = vpop.f32.mrf.mxu1 }
 0x5a2   : > { %v4544_v38 = vadd.f32 %v6539_v44, %v4383_v57  ;;  %v4391_v40 = vadd.f32 %v6433_v61, %v9634_v26 }
 0x5a3   : > { %v6435_v28 = vpop.f32.mrf.mxu0  ;;  %v6541_v42 = vpop.f32.mrf.mxu1 }
 0x5a4   : > { %v6542_v4 = vadd.f32 %v6541_v42, %v6540_v39  ;;  %4676 = vperm.xlu0 %6995, %v4544_v38   ;;  %v6436_v17 = vadd.f32 %v6435_v28, %v6434_v27 }
 0x5a5   : > { %v6437_v37 = vpop.f32.mrf.mxu0  ;;  %v6543_v47 = vpop.f32.mrf.mxu1 }
 0x5a6   : > { %v4547_v24 = vadd.f32 %v6542_v4, %v4386_v6  ;;  %v4394_v54 = vadd.f32 %v6436_v17, %v9637_v8 }
 0x5a7   : > { %v6438_v56 = vpop.f32.mrf.mxu0  ;;  %v6544_v46 = vpop.f32.mrf.mxu1 }
 0x5a8   : > { %v6545_v62 = vadd.f32 %v6544_v46, %v6543_v47  ;;  %4681 = vperm.xlu1 %6996, %v4547_v24   ;;  %v6439_v33 = vadd.f32 %v6438_v56, %v6437_v37 }
 0x5a9   : > { %v6440_v51 = vpop.f32.mrf.mxu0  ;;  %v6546_v15 = vpop.f32.mrf.mxu1 }
 0x5aa   : > { %v4552_v11 = vadd.f32 %v6545_v62, %v4391_v40  ;;  %v4399_v26 = vadd.f32 %v6439_v33, %v9652_v32 }
 0x5ab   : > { %v6441_v23 = vpop.f32.mrf.mxu0  ;;  %v6547_v25 = vpop.f32.mrf.mxu1 }
 0x5ac   : > { %v6548_v20 = vadd.f32 %v6547_v25, %v6546_v15  ;;  %4686 = vperm.xlu0 %6995, %v4552_v11   ;;  %v6442_v55 = vadd.f32 %v6441_v23, %v6440_v51 }
 0x5ad   : > { %v6443_v2 = vpop.f32.mrf.mxu0  ;;  %v6549_v14 = vpop.f32.mrf.mxu1 }
 0x5ae   : > { %v4555_v35 = vadd.f32 %v6548_v20, %v4394_v54  ;;  %v4402_v8 = vadd.f32 %v6442_v55, %v9655_v50 }
 0x5af   : > { %v6444_v29 = vpop.f32.mrf.mxu0  ;;  %v6550_v34 = vpop.f32.mrf.mxu1 }
 0x5b0   : > { %v6551_v0 = vadd.f32 %v6550_v34, %v6549_v14  ;;  %4691 = vperm.xlu1 %6996, %v4555_v35   ;;  %v6445_v38 = vadd.f32 %v6444_v29, %v6443_v2 }
 0x5b1   : > { %v6446_v57 = vpop.f32.mrf.mxu0  ;;  %v6552_v45 = vpop.f32.mrf.mxu1 }
 0x5b2   : > { %v4560_v44 = vadd.f32 %v6551_v0, %v4399_v26  ;;  %v4407_v32 = vadd.f32 %v6445_v38, %v9670_v3 }
 0x5b3   : > { %v6447_v27 = vpop.f32.mrf.mxu0  ;;  %v6553_v39 = vpop.f32.mrf.mxu1 }
 0x5b4   : > { %v6554_v28 = vadd.f32 %v6553_v39, %v6552_v45  ;;  %4696 = vperm.xlu0 %6995, %v4560_v44   ;;  %v6448_v47 = vadd.f32 %v6447_v27, %v6446_v57 }
 0x5b5   : > { %v6449_v42 = vpop.f32.mrf.mxu0  ;;  %v6555_v6 = vpop.f32.mrf.mxu1 }
 0x5b6   : > { %v4563_v61 = vadd.f32 %v6554_v28, %v4402_v8  ;;  %v4410_v50 = vadd.f32 %v6448_v47, %v9673_v41 }
 0x5b7   : > { %v6450_v4 = vpop.f32.mrf.mxu0  ;;  %v6556_v37 = vpop.f32.mrf.mxu1 }
 0x5b8   : > { %v6557_v24 = vadd.f32 %v6556_v37, %v6555_v6  ;;  %4701 = vperm.xlu1 %6996, %v4563_v61   ;;  %v6451_v51 = vadd.f32 %v6450_v4, %v6449_v42 }
 0x5b9   : > { %v6452_v56 = vpop.f32.mrf.mxu0  ;;  %v6558_v46 = vpop.f32.mrf.mxu1 }
 0x5ba   : > { %v4568_v40 = vadd.f32 %v6557_v24, %v4407_v32  ;;  %v4415_v3 = vadd.f32 %v6451_v51, %v9688_v52 }
 0x5bb   : > { %v6453_v17 = vpop.f32.mrf.mxu0  ;;  %v6559_v62 = vpop.f32.mrf.mxu1 }
 0x5bc   : > { %v6560_v15 = vadd.f32 %v6559_v62, %v6558_v46  ;;  %4706 = vperm.xlu0 %6995, %v4568_v40   ;;  %v6454_v20 = vadd.f32 %v6453_v17, %v6452_v56 }
 0x5bd   : > { %v6455_v11 = vpop.f32.mrf.mxu0  ;;  %v6561_v23 = vpop.f32.mrf.mxu1 }
 0x5be   : > { %v4571_v25 = vadd.f32 %v6560_v15, %v4410_v50  ;;  %v4418_v41 = vadd.f32 %v6454_v20, %v9691_v36  ;;  %v9859_v20 = vpop.permute.xlu0 %5287 }
 0x5bf   : > { %v6456_v54 = vpop.f32.mrf.mxu0  ;;  %v6562_v33 = vpop.f32.mrf.mxu1 }
 0x5c0   : > { %v6563_v2 = vadd.f32 %v6562_v33, %v6561_v23  ;;  %4711 = vperm.xlu1 %6996, %v4571_v25   ;;  %v6457_v55 = vadd.f32 %v6456_v54, %v6455_v11 }
 0x5c1   : > { %v6458_v14 = vpop.f32.mrf.mxu0  ;;  %v6564_v35 = vpop.f32.mrf.mxu1 }
 0x5c2   : > { %v4576_v29 = vadd.f32 %v6563_v2, %v4415_v3  ;;  %v4423_v52 = vadd.f32 %v6457_v55, %v9700_v18 }
 0x5c3   : > { %v6459_v34 = vpop.f32.mrf.mxu0  ;;  %v6565_v26 = vpop.f32.mrf.mxu1 }
 0x5c4   : > { %v6566_v0 = vadd.f32 %v6565_v26, %v6564_v35  ;;  %4716 = vperm.xlu0 %6995, %v4576_v29   ;;  %v6460_v8 = vadd.f32 %v6459_v34, %v6458_v14  ;;  %v9865_v34 = vpop.permute.xlu1 %5292 }
 0x5c5   : > { %v6461_v57 = vpop.f32.mrf.mxu0  ;;  %v6567_v45 = vpop.f32.mrf.mxu1 }
 0x5c6   : > { %v4579_v44 = vadd.f32 %v6566_v0, %v4418_v41  ;;  %v4426_v32 = vadd.f32 %v6460_v8, %v9706_v5  ;;  %v9867_v0 = vpop.permute.xlu0 %5207 }
 0x5c7   : > { %v6462_v27 = vpop.f32.mrf.mxu0  ;;  %v6568_v39 = vpop.f32.mrf.mxu1 }
 0x5c8   : > { %v6463_v38 = vadd.f32 %v6462_v27, %v6461_v57  ;;  %v6569_v28 = vadd.f32 %v6568_v39, %v6567_v45  ;;  %4721 = vperm.xlu1 %6996, %v4579_v44  }
 0x5c9   : > { %v6464_v42 = vpop.f32.mrf.mxu0  ;;  %v6570_v6 = vpop.f32.mrf.mxu1 }
 0x5ca   : > { %v4431_v61 = vadd.f32 %v6463_v38, %v9710_v60  ;;  %v4584_v4 = vadd.f32 %v6569_v28, %v4423_v52  ;;  %v9870_v38 = vpop.permute.xlu1 %5212 }
 0x5cb   : > { %v6465_v36 = vpop.f32.mrf.mxu0  ;;  %v6571_v37 = vpop.f32.mrf.mxu1 }
 0x5cc   : > { %v6466_v47 = vadd.f32 %v6465_v36, %v6464_v42  ;;  %v6572_v24 = vadd.f32 %v6571_v37, %v6570_v6  ;;  %4726 = vperm.xlu1 %6996, %v4584_v4  }
 0x5cd   : > { %v9842_v56 = vpop.f32.mrf.mxu0  ;;  %v6573_v46 = vpop.f32.mrf.mxu1 }
 0x5ce   : > { %v4434_v18 = vadd.f32 %v6466_v47, %v9719_v10  ;;  %v4587_v40 = vadd.f32 %v6572_v24, %v4426_v32 }
 0x5cf   : > { %v9845_v17 = vpop.f32.mrf.mxu0  ;;  %v6574_v62 = vpop.f32.mrf.mxu1 }
 0x5d0   : > { %v6575_v50 = vadd.f32 %v6574_v62, %v6573_v46  ;;  %4731 = vperm.xlu1 %6996, %v4587_v40  }
 0x5d1   : > { %v9847_v60 = vpop.f32.mrf.mxu0  ;;  %v6576_v51 = vpop.f32.mrf.mxu1 }
 0x5d2   : > { %v9849_v15 = vadd.f32 %v6575_v50, %v4431_v61  ;;  %v9872_v61 = vpop.permute.xlu0 %5277 }
 0x5d3   : > { %v9851_v5 = vpop.f32.mrf.mxu0  ;;  %v6577_v11 = vpop.f32.mrf.mxu1 }
 0x5d4   : > { %v6578_v23 = vadd.f32 %v6577_v11, %v6576_v51 }
 0x5d5   : > { %v6473_v25 = vpop.f32.mrf.mxu0  ;;  %v9853_v54 = vpop.f32.mrf.mxu1 }
 0x5d6   : > { %v9855_v33 = vadd.f32 %v6578_v23, %v4434_v18  ;;  %v9875_v18 = vpop.permute.xlu1 %5282  ;;  %v9878_v23 = vpop.permute.xlu0 %5197 }
 0x5d7   : > { %v6474_v10 = vpop.f32.mrf.mxu0  ;;  %v9857_v3 = vpop.f32.mrf.mxu1 }
 0x5d8   : > { %v6475_v26 = vadd.f32 %v6474_v10, %v6473_v25 }
 0x5d9   : > { %v6476_v2 = vpop.f32.mrf.mxu0  ;;  %v9861_v14 = vpop.f32.mrf.mxu1 }
 0x5da   : > { %v4447_v44 = vadd.f32 %v6475_v26, %v9738_v59 }
 0x5db   : > { %v6477_v35 = vpop.f32.mrf.mxu0  ;;  %v9863_v29 = vpop.f32.mrf.mxu1 }
 0x5dc   : > { %v6478_v27 = vadd.f32 %v6477_v35, %v6476_v2 }
 0x5dd   : > { %v6479_v41 = vpop.f32.mrf.mxu0  ;;  %v6585_v55 = vpop.f32.mrf.mxu1 }
 0x5de   : > { %v4450_v4 = vadd.f32 %v6478_v27, %v9747_v12  ;;  %v9883_v27 = vpop.permute.xlu0 %5267 }
 0x5df   : > { %v6480_v57 = vpop.f32.mrf.mxu0  ;;  %v6586_v45 = vpop.f32.mrf.mxu1 }
 0x5e0   : > { %v6587_v39 = vadd.f32 %v6586_v45, %v6585_v55  ;;  %v6481_v36 = vadd.f32 %v6480_v57, %v6479_v41  ;;  %v9881_v57 = vpop.permute.xlu1 %5202 }
 0x5e1   : > { %v6482_v52 = vpop.f32.mrf.mxu0  ;;  %v6588_v8 = vpop.f32.mrf.mxu1 }
 0x5e2   : > { %v4608_v28 = vadd.f32 %v6587_v39, %v4447_v44  ;;  %v4455_v40 = vadd.f32 %v6481_v36, %v9752_v13 }
 0x5e3   : > { %v6483_v42 = vpop.f32.mrf.mxu0  ;;  %v6589_v6 = vpop.f32.mrf.mxu1 }
 0x5e4   : > { %v6590_v37 = vadd.f32 %v6589_v6, %v6588_v8  ;;  %4756 = vperm.xlu0 %6995, %v4608_v28   ;;  %v6484_v62 = vadd.f32 %v6483_v42, %v6482_v52  ;;  %v9886_v36 = vpop.permute.xlu1 %5272 }
 0x5e5   : > { %v6485_v32 = vpop.f32.mrf.mxu0  ;;  %v6591_v47 = vpop.f32.mrf.mxu1 }
 0x5e6   : > { %v4611_v24 = vadd.f32 %v6590_v37, %v4450_v4  ;;  %v4458_v2 = vadd.f32 %v6484_v62, %v9761_v9 }
 0x5e7   : > { %v6486_v59 = vpop.f32.mrf.mxu0  ;;  %v6592_v46 = vpop.f32.mrf.mxu1 }
 0x5e8   : > { %v6593_v50 = vadd.f32 %v6592_v46, %v6591_v47  ;;  %4761 = vperm.xlu1 %6996, %v4611_v24   ;;  %v6487_v35 = vadd.f32 %v6486_v59, %v6485_v32  ;;  %v9889_v46 = vpop.permute.xlu0 %5187 }
 0x5e9   : > { %v6488_v51 = vpop.f32.mrf.mxu0  ;;  %v6594_v11 = vpop.f32.mrf.mxu1 }
 0x5ea   : > { %v4616_v12 = vadd.f32 %v6593_v50, %v4455_v40  ;;  %v4463_v39 = vadd.f32 %v6487_v35, %v9766_v49 }
 0x5eb   : > { %v6489_v25 = vpop.f32.mrf.mxu0  ;;  %v6595_v10 = vpop.f32.mrf.mxu1 }
 0x5ec   : > { %v6596_v26 = vadd.f32 %v6595_v10, %v6594_v11  ;;  %4766 = vperm.xlu0 %6995, %v4616_v12   ;;  %v6490_v52 = vadd.f32 %v6489_v25, %v6488_v51  ;;  %v9892_v10 = vpop.permute.xlu1 %5192 }
 0x5ed   : > { %v6491_v41 = vpop.f32.mrf.mxu0  ;;  %v6597_v55 = vpop.f32.mrf.mxu1 }
 0x5ee   : > { %v4619_v13 = vadd.f32 %v6596_v26, %v4458_v2  ;;  %v4466_v37 = vadd.f32 %v6490_v52, %v9775_v22  ;;  %v9894_v26 = vpop.permute.xlu0 %5257 }
 0x5ef   : > { %v6492_v45 = vpop.f32.mrf.mxu0  ;;  %v6598_v44 = vpop.f32.mrf.mxu1 }
 0x5f0   : > { %v6599_v8 = vadd.f32 %v6598_v44, %v6597_v55  ;;  %4771 = vperm.xlu1 %6996, %v4619_v13   ;;  %v6493_v32 = vadd.f32 %v6492_v45, %v6491_v41 }
 0x5f1   : > { %v6494_v28 = vpop.f32.mrf.mxu0  ;;  %v6600_v42 = vpop.f32.mrf.mxu1 }
 0x5f2   : > { %v4624_v9 = vadd.f32 %v6599_v8, %v4463_v39  ;;  %v4471_v50 = vadd.f32 %v6493_v32, %v9780_v31  ;;  %v9897_v8 = vpop.permute.xlu1 %5262 }
 0x5f3   : > { %v6495_v6 = vpop.f32.mrf.mxu0  ;;  %v6601_v4 = vpop.f32.mrf.mxu1 }
 0x5f4   : > { %v6602_v47 = vadd.f32 %v6601_v4, %v6600_v42  ;;  %4776 = vperm.xlu0 %6995, %v4624_v9   ;;  %v6496_v51 = vadd.f32 %v6495_v6, %v6494_v28 }
 0x5f5   : > { %v6497_v24 = vpop.f32.mrf.mxu0  ;;  %v6603_v59 = vpop.f32.mrf.mxu1 }
 0x5f6   : > { %v4627_v49 = vadd.f32 %v6602_v47, %v4466_v37  ;;  %v4474_v41 = vadd.f32 %v6496_v51, %v9789_v43  ;;  %v9900_v37 = vpop.permute.xlu0 %5177 }
 0x5f7   : > { %v6498_v40 = vpop.f32.mrf.mxu0  ;;  %v6604_v62 = vpop.f32.mrf.mxu1  ;;  %10462 = vst [vmem:[#allocation19_spill] sm:$0xff] %v9900_v37 }
 0x5f8   : > { %v6605_v11 = vadd.f32 %v6604_v62, %v6603_v59  ;;  %4781 = vperm.xlu1 %6996, %v4627_v49   ;;  %v6499_v55 = vadd.f32 %v6498_v40, %v6497_v24 }
 0x5f9   : > { %v6500_v12 = vpop.f32.mrf.mxu0  ;;  %v6606_v25 = vpop.f32.mrf.mxu1 }
 0x5fa   : > { %v4632_v22 = vadd.f32 %v6605_v11, %v4471_v50  ;;  %v4479_v28 = vadd.f32 %v6499_v55, %v9794_v21  ;;  %v9905_v21 = vpop.permute.xlu1 %5182  ;;  %v9907_v11 = vpop.permute.xlu0 %5247 }
 0x5fb   : > { %v6501_v2 = vpop.f32.mrf.mxu0  ;;  %v6607_v35 = vpop.f32.mrf.mxu1  ;;  %10464 = vst [vmem:[#allocation9_spill] sm:$0xff] %v9907_v11 }
 0x5fc   : > { %v6608_v13 = vadd.f32 %v6607_v35, %v6606_v25  ;;  %4786 = vperm.xlu0 %6995, %v4632_v22   ;;  %v6502_v42 = vadd.f32 %v6501_v2, %v6500_v12  ;;  %v6472_v12 = vadd.f32 %v9851_v5, %v9847_v60 }
 0x5fd   : > { %v6503_v45 = vpop.f32.mrf.mxu0  ;;  %v6609_v44 = vpop.f32.mrf.mxu1 }
 0x5fe   : > { %v4635_v31 = vadd.f32 %v6608_v13, %v4474_v41  ;;  %v4482_v24 = vadd.f32 %v6502_v42, %v9803_v58  ;;  %v6584_v41 = vadd.f32 %v9863_v29, %v9861_v14  ;;  %v5168_v29 = vpop.permute.xlu0 %5167  ;;  %v5106_v42 = vld [vmem:[%s10261_s9 + $0x18] sm:$0xff] }
 0x5ff   : > { %v6504_v39 = vpop.f32.mrf.mxu0  ;;  %v6610_v52 = vpop.f32.mrf.mxu1 }
 0x600   : > { %v6611_v9 = vadd.f32 %v6610_v52, %v6609_v44  ;;  %4791 = vperm.xlu1 %6996, %v4635_v31   ;;  %v6505_v59 = vadd.f32 %v6504_v39, %v6503_v45  ;;  %v6469_v45 = vadd.f32 %v9845_v17, %v9842_v56  ;;  %v4442_v44 = vadd.f32 %v6472_v12, %v9733_v48 }
 0x601   : > { %v6506_v6 = vpop.f32.mrf.mxu0  ;;  %v6612_v4 = vpop.f32.mrf.mxu1  ;;  %v6581_v39 = vadd.f32 %v9857_v3, %v9853_v54  ;;  %v5122_v54 = vld [vmem:[%s10261_s9 + $0x98] sm:$0xff] }
 0x602   : > { %v4640_v43 = vadd.f32 %v6611_v9, %v4479_v28  ;;  %v4487_v25 = vadd.f32 %v6505_v59, %v9808_v63  ;;  %v9920_v63 = vpop.permute.xlu1 %5252  ;;  %v4603_v52 = vadd.f32 %v6584_v41, %v4442_v44  ;;  %v4439_v28 = vadd.f32 %v6469_v45, %v9724_v16  ;;  %v9930_v17 = vpop.permute.xlu0 %5237 }
 0x603   : > { %v6507_v32 = vpop.f32.mrf.mxu0  ;;  %v6613_v47 = vpop.f32.mrf.mxu1  ;;  %10466 = vst [vmem:[#allocation66_spill] sm:$0xff] %v9920_v63  ;;  %10469 = vst [vmem:[#allocation35_spill] sm:$0xff] %v9930_v17 }
 0x604   : > { %v6614_v49 = vadd.f32 %v6613_v47, %v6612_v4  ;;  %4796 = vperm.xlu0 %6995, %v4640_v43   ;;  %v6508_v22 = vadd.f32 %v6507_v32, %v6506_v6  ;;  %v4600_v48 = vadd.f32 %v6581_v39, %v4439_v28  ;;  %v5105_v4 = vld [vmem:[%s10261_s9 + $0x10] sm:$0xff]  ;;  %v5404_v39 = vld [vmem:[%s10263_s11 + $0x68] sm:$0xff] }
 0x605   : > { %v6615_v40 = vpop.f32.mrf.mxu1  ;;  %v9903_v62 = vpop.f32.mrf.mxu0 }
 0x606   : > { %10463 = vst [vmem:[#allocation43_spill] sm:$0xff] %v9903_v62  ;;  %v4643_v50 = vadd.f32 %v6614_v49, %v4482_v24  ;;  %v4490_v60 = vadd.f32 %v6508_v22, %v9814_v1  ;;  %v5173_v1 = vpop.permute.xlu1 %5172  ;;  %v5158_v6 = vpop.permute.xlu0 %5157 }
 0x607   : > { %v6616_v51 = vpop.f32.mrf.mxu1  ;;  %v9912_v35 = vpop.f32.mrf.mxu0 }
 0x608   : > { %v6617_v2 = vadd.f32 %v6616_v51, %v6615_v40  ;;  %4801 = vperm.xlu1 %6996, %v4643_v50   ;;  %10465 = vst [vmem:[#allocation51_spill] sm:$0xff] %v9912_v35  ;;  %v5120_v50 = vld [vmem:[%s10261_s9 + $0x88] sm:$0xff] }
 0x609   : > { %v6618_v58 = vpop.f32.mrf.mxu1  ;;  %v9922_v31 = vpop.f32.mrf.mxu0 }
 0x60a   : > { %v4648_v55 = vadd.f32 %v6617_v2, %v4487_v25  ;;  %10467 = vst [vmem:[#allocation67_spill] sm:$0xff] %v9922_v31  ;;  %v9936_v16 = vpop.permute.xlu1 %5242 }
 0x60b   : > { %v6619_v13 = vpop.f32.mrf.mxu1  ;;  %v9927_v56 = vpop.f32.mrf.mxu0  ;;  %10470 = vst [vmem:[#allocation44_spill] sm:$0xff] %v9936_v16 }
 0x60c   : > { %v6620_v5 = vadd.f32 %v6619_v13, %v6618_v58  ;;  %4806 = vperm.xlu1 %6996, %v4648_v55   ;;  %10468 = vst [vmem:[#allocation61_spill] sm:$0xff] %v9927_v56  ;;  %v5406_v13 = vld [vmem:[%s10263_s11 + $0x78] sm:$0xff] }
 0x60d   : > { %v6906_v3 = vpop.f32.mrf.mxu0 }
 0x60e   : > { %v4651_v14 = vadd.f32 %v6620_v5, %v4490_v60 }
 0x60f   : > { %v4992_v9 = vpop.f32.mrf.mxu0 }
 0x610   : > { %4751 = vperm.xlu1 %6996, %v4603_v52   ;;  %4811 = vperm.xlu0 %6995, %v4651_v14   ;;  %v5405_v52 = vld [vmem:[%s10263_s11 + $0x70] sm:$0xff] }
 0x611   : > { %v6907_v43 = vpop.f32.mrf.mxu0 }
 0x613   : > { %v4995_v24 = vpop.f32.mrf.mxu0 }
 0x614   : > { %4746 = vperm.xlu0 %6995, %v4600_v48   ;;  %4671 = vperm.xlu1 %6996, %v9827_v53   ;;  %v5121_v53 = vld [vmem:[%s10261_s9 + $0x90] sm:$0xff]  ;;  %v5402_v48 = vld [vmem:[%s10263_s11 + $0x58] sm:$0xff] }
 0x615   : > { %v9968_v5 = vpop.f32.mrf.mxu0 }
 0x617   : > { %v9981_v28 = vpop.f32.mrf.mxu0 }
 0x618   : > { %5232 = vperm.xlu1 %6996, %v5122_v54   ;;  %4666 = vperm.xlu0 %6995, %v9825_v30   ;;  %v5163_v30 = vpop.permute.xlu1 %5162 }
 0x619   : > { %v9989_v54 = vpop.f32.mrf.mxu0 }
 0x61c   : > { %5152 = vperm.xlu1 %6996, %v5106_v42   ;;  %5227 = vperm.xlu0 %6995, %v5121_v53   ;;  %v5401_v42 = vld [vmem:[%s10263_s11 + $0x50] sm:$0xff]  ;;  %v9997_v53 = vpop.f32.mrf.mxu0 }
 0x61f   : > { %v4677_v32 = vpop.permute.xlu0 %4676 }
 0x620   : > { %v4993_v47 = vadd.f32 %v4992_v9, %v4677_v32  ;;  %4741 = vperm.xlu1 %6996, %v9855_v33   ;;  %5147 = vperm.xlu0 %6995, %v5105_v4   ;;  %v5104_v33 = vld [vmem:[%s10261_s9 + $0x8] sm:$0xff]  ;;  %v5398_v9 = vld [vmem:[%s10263_s11 + $0x38] sm:$0xff]  ;;  %v6914_v4 = vpop.f32.mrf.mxu0 }
 0x622   : > { %v5299_v59 = vadd.f32 %v5158_v6, %v4993_v47  ;;  %v5399_v6 = vld [vmem:[%s10263_s11 + $0x40] sm:$0xff]  ;;  %v10011_v32 = vpop.f32.mrf.mxu0  ;;  %v5394_v47 = vld [vmem:[%s10263_s11 + $0x18] sm:$0xff] }
 0x623   : > { %v4682_v49 = vpop.permute.xlu1 %4681 }
 0x624   : > { %v4996_v40 = vadd.f32 %v4995_v24, %v4682_v49  ;;  %4736 = vperm.xlu0 %6995, %v9849_v15   ;;  %4661 = vperm.xlu1 %6996, %v9823_v7   ;;  %v5331_v25 = vmax.f32 %v5299_v59, 0.0  ;;  %v5119_v7 = vld [vmem:[%s10261_s9 + $0x80] sm:$0xff]  ;;  %v6915_v59 = vpop.f32.mrf.mxu0  ;;  %v5392_v49 = vld [vmem:[%s10263_s11 + $0x8] sm:$0xff] }
 0x625   : > { %v5395_v24 = vld [vmem:[%s10263_s11 + $0x20] sm:$0xff] }
 0x626   : > { %v5300_v51 = vadd.f32 %v5163_v30, %v4996_v40  ;;  %v5397_v30 = vld [vmem:[%s10263_s11 + $0x30] sm:$0xff] }
 0x627   : > { %v4687_v12 = vpop.permute.xlu0 %4686  ;;  %v5393_v40 = vld [vmem:[%s10263_s11 + $0x10] sm:$0xff] }
 0x628   : > { %v5332_v22 = vmax.f32 %v5300_v51, 0.0  ;;  %v5001_v2 = vadd.f32 %v6906_v3, %v4687_v12  ;;  %5222 = vperm.xlu1 %6996, %v5120_v50   ;;  %4656 = vperm.xlu0 %6995, %v9820_v19   ;;  %v5103_v19 = vld [vmem:[%s10261_s9] sm:$0xff]  ;;  %v5400_v3 = vld [vmem:[%s10263_s11 + $0x48] sm:$0xff]  ;;  %v5027_v50 = vpop.f32.mrf.mxu0 }
 0x629   : > { %v5391_v12 = vld [vmem:[%s10263_s11] sm:$0xff] }
 0x62a   : > { %v9960_v15 = vpack.c.bf16 %v5332_v22, %v5331_v25  ;;  %v5301_v41 = vadd.f32 %v5168_v29, %v5001_v2  ;;  %v7091_v29 = vld [vmem:[%s10262_s10 + $0x4] ss:$8 sps:$4 sm:$0xff]   ;;  %v10025_v51 = vpop.f32.mrf.mxu0  ;;  %v5689_v22 = vld [vmem:[%s10265_s13] sm:$0xf] }
 0x62b   : > { %v4692_v58 = vpop.permute.xlu1 %4691  ;;  %5599 = vmatprep.mubr.bf16.mxu1 %v7091_v29  ;;  %10473 = vst [vmem:[#allocation17_spill] sm:$0xff] %v10025_v51 }
 0x62c   : > { %10471 = vst [vmem:[#allocation68_spill] sm:$0xff] %v9960_v15  ;;  %v5004_v55 = vadd.f32 %v6907_v43, %v4692_v58  ;;  %5142 = vperm.xlu1 %6996, %v5104_v33   ;;  %5217 = vperm.xlu0 %6995, %v5119_v7   ;;  %v5333_v44 = vmax.f32 %v5301_v41, 0.0  ;;  %v5396_v43 = vld [vmem:[%s10263_s11 + $0x28] sm:$0xff]  ;;  %v10030_v25 = vpop.f32.mrf.mxu0 }
 0x62d   : > { %10474 = vst [vmem:[#allocation26_spill] sm:$0xff] %v10030_v25 }
 0x62e   : > { %v5302_v45 = vadd.f32 %v5173_v1, %v5004_v55  ;;  %v5403_v1 = vld [vmem:[%s10263_s11 + $0x60] sm:$0xff]  ;;  %v10035_v2 = vpop.f32.mrf.mxu0 }
 0x62f   : > { %10475 = vst [vmem:[#allocation59_spill] sm:$0xff] %v10035_v2 }
 0x630   : > { %v5334_v60 = vmax.f32 %v5302_v45, 0.0  ;;  %5484 = vperm.xlu1 %6996, %v5406_v13   ;;  %5137 = vperm.xlu0 %6995, %v5103_v19   ;;  %v10037_v33 = vpop.f32.mrf.mxu0 }
 0x631   : > { %10476 = vst [vmem:[#allocation28_spill] sm:$0xff] %v10037_v33 }
 0x632   : > { %v9976_v14 = vpack.c.bf16 %v5334_v60, %v5333_v44  ;;  %v10041_v58 = vpop.f32.mrf.mxu0 }
 0x633   : > { %v10039_v7 = vpop.permute.xlu1 %4701 }
 0x634   : > { %10472 = vst [vmem:[#allocation52_spill] sm:$0xff] %v9976_v14  ;;  %5474 = vperm.xlu1 %6996, %v5404_v39   ;;  %5479 = vperm.xlu0 %6995, %v5405_v52   ;;  %v10043_v55 = vpop.f32.mrf.mxu0  ;;  %v10049_v39 = vpop.permute.xlu0 %4696 }
 0x635   : > { %10477 = vst [vmem:[#allocation41_spill] sm:$0xff] %v10043_v55 }
 0x636   : > { %v10045_v19 = vpop.f32.mrf.mxu0 }
 0x638   : > { %5464 = vperm.xlu1 %6996, %v5402_v48   ;;  %5469 = vperm.xlu0 %6995, %v5403_v1   ;;  %v10047_v45 = vpop.f32.mrf.mxu0  ;;  %v4707_v29 = vpop.permute.xlu0 %4706 }
 0x639   : > { %10478 = vst [vmem:[#allocation36_spill] sm:$0xff] %v10047_v45 }
 0x63a   : > { %v6926_v60 = vpop.f32.mrf.mxu0 }
 0x63b   : > { %v4712_v41 = vpop.permute.xlu1 %4711 }
 0x63c   : > { %5454 = vperm.xlu1 %6996, %v5400_v3   ;;  %5459 = vperm.xlu0 %6995, %v5401_v42   ;;  %v5072_v52 = vpop.f32.mrf.mxu0 }
 0x63e   : > { %v6927_v1 = vpop.f32.mrf.mxu0 }
 0x63f   : > { %v4717_v3 = vpop.permute.xlu0 %4716 }
 0x640   : > { %5444 = vperm.xlu1 %6996, %v5398_v9   ;;  %5449 = vperm.xlu0 %6995, %v5399_v6   ;;  %v5075_v9 = vpop.f32.mrf.mxu0 }
 0x643   : > { %v4722_v13 = vpop.permute.xlu1 %4721 }
 0x644   : > { %5434 = vperm.xlu1 %6996, %v5396_v43   ;;  %5439 = vperm.xlu0 %6995, %v5397_v30   ;;  %v6930_v30 = vpop.f32.mrf.mxu0  ;;  %v5028_v17 = vadd.f32 %v5027_v50, %v4722_v13 }
 0x647   : > { %v4727_v44 = vpop.permute.xlu1 %4726 }
 0x648   : > { %5424 = vperm.xlu1 %6996, %v5394_v47   ;;  %5429 = vperm.xlu0 %6995, %v5395_v24   ;;  %v5033_v2 = vadd.f32 %v6914_v4, %v4727_v44  ;;  %v5308_v4 = vadd.f32 %v9881_v57, %v5028_v17  ;;  %v5012_v17 = vadd.f32 %v9997_v53, %v10039_v7 }
 0x64b   : > { %v4732_v48 = vpop.permute.xlu1 %4731 }
 0x64c   : > { %5414 = vperm.xlu1 %6996, %v5392_v49   ;;  %5419 = vperm.xlu0 %6995, %v5393_v40   ;;  %v5088_v49 = vpop.f32.mrf.mxu0  ;;  %v5036_v25 = vadd.f32 %v6915_v59, %v4732_v48  ;;  %v5025_v59 = vadd.f32 %v10011_v32, %v4717_v3  ;;  %v5309_v48 = vadd.f32 %v9867_v0, %v5033_v2 }
 0x64d   : > { %v5017_v0 = vadd.f32 %v9968_v5, %v4707_v29  ;;  %v10480_v29 = vld [vmem:[#allocation36_spill] sm:$0xff] }
 0x64e   : > { %v5310_v16 = vadd.f32 %v9870_v38, %v5036_v25  ;;  %v5020_v38 = vadd.f32 %v9989_v54, %v4712_v41 }
 0x64f   : > { %v5305_v13 = vadd.f32 %v9889_v46, %v5017_v0  ;;  %v10489_v0 = vld [vmem:[#allocation59_spill] sm:$0xff] }
 0x650   : > { %5409 = vperm.xlu0 %6995, %v5391_v12   ;;  %v5342_v50 = vmax.f32 %v5310_v16, 0.0  ;;  %v5306_v16 = vadd.f32 %v9892_v10, %v5020_v38 }
 0x652   : > { %v5338_v44 = vmax.f32 %v5306_v16, 0.0  ;;  %v10491_v16 = vld [vmem:[#allocation67_spill] sm:$0xff] }
 0x654   : > { %5692 = vperm.xlu0 %6995, %v5689_v22   ;;  %v6931_v22 = vpop.f32.mrf.mxu0 }
 0x656   : > { %v5091_v56 = vpop.f32.mrf.mxu0 }
 0x65f   : > { %v10053_v6 = vpop.permute.xlu0 %4756 }
 0x660   : > { %10479 = vst [vmem:[#allocation49_spill] sm:$0xff] %v10053_v6 }
 0x663   : > { %v10051_v42 = vpop.permute.xlu1 %4761 }
 0x667   : > { %v4767_v47 = vpop.permute.xlu0 %4766 }
 0x668   : > { %v5065_v10 = vadd.f32 %v10041_v58, %v4767_v47  ;;  %v5337_v58 = vmax.f32 %v5305_v13, 0.0  ;;  %v10485_v47 = vld [vmem:[#allocation9_spill] sm:$0xff] }
 0x66b   : > { %v4772_v43 = vpop.permute.xlu1 %4771 }
 0x66c   : > { %v5068_v2 = vadd.f32 %v10045_v19, %v4772_v43  ;;  %v5304_v19 = vadd.f32 %v9905_v21, %v5012_v17  ;;  %v10484_v43 = vld [vmem:[#allocation41_spill] sm:$0xff]  ;;  %v5317_v21 = vadd.f32 %v10485_v47, %v5065_v10  ;;  %v10494_v10 = vld [vmem:[#allocation26_spill] sm:$0xff] }
 0x66f   : > { %v4777_v40 = vpop.permute.xlu0 %4776 }
 0x673   : > { %v4782_v24 = vpop.permute.xlu1 %4781 }
 0x674   : > { %v5076_v25 = vadd.f32 %v5075_v9, %v4782_v24  ;;  %v10482_v9 = vld [vmem:[#allocation19_spill] sm:$0xff] }
 0x676   : > { %v5320_v5 = vadd.f32 %v9897_v8, %v5076_v25 }
 0x677   : > { %v4787_v35 = vpop.permute.xlu0 %4786 }
 0x678   : > { %v5352_v46 = vmax.f32 %v5320_v5, 0.0 }
 0x67b   : > { %v4792_v12 = vpop.permute.xlu1 %4791 }
 0x67c   : > { %v5084_v6 = vadd.f32 %v6927_v1, %v4792_v12  ;;  %v5060_v1 = vadd.f32 %v10480_v29, %v10051_v42  ;;  %v10486_v42 = vld [vmem:[#allocation44_spill] sm:$0xff] }
 0x67f   : > { %v4797_v14 = vpop.permute.xlu0 %4796 }
 0x680   : > { %v5089_v51 = vadd.f32 %v5088_v49, %v4797_v14  ;;  %v5336_v49 = vmax.f32 %v5304_v19, 0.0 }
 0x683   : > { %v4802_v15 = vpop.permute.xlu1 %4801 }
 0x684   : > { %v5092_v31 = vadd.f32 %v5091_v56, %v4802_v15  ;;  %v5081_v56 = vadd.f32 %v6926_v60, %v4787_v35  ;;  %v5323_v15 = vadd.f32 %v9872_v61, %v5089_v51  ;;  %v5307_v61 = vadd.f32 %v9878_v23, %v5025_v59 }
 0x685   : > { %v5341_v35 = vmax.f32 %v5309_v48, 0.0  ;;  %v5340_v51 = vmax.f32 %v5308_v4, 0.0  ;;  %v5316_v59 = vadd.f32 %v10486_v42, %v5060_v1  ;;  %v5349_v4 = vmax.f32 %v5317_v21, 0.0  ;;  %v10496_v1 = vld [vmem:[#allocation68_spill] sm:$0xff]  ;;  %v7098_v42 = vld [vmem:[%s10262_s10 + $0x30] ss:$8 sps:$4 sm:$0xff]  }
 0x686   : > { %v5324_v37 = vadd.f32 %v9875_v18, %v5092_v31  ;;  %v5321_v54 = vadd.f32 %v9883_v27, %v5081_v56  ;;  %v5355_v32 = vmax.f32 %v5323_v15, 0.0  ;;  %v5009_v27 = vadd.f32 %v9981_v28, %v10049_v39  ;;  %v10481_v28 = vld [vmem:[#allocation66_spill] sm:$0xff]  ;;  %v7089_v21 = vld [vmem:[%s10262_s10] ss:$8 sps:$4 sm:$0xff]  }
 0x687   : > { %v4807_v33 = vpop.permute.xlu1 %4806  ;;  %v5318_v39 = vadd.f32 %v10481_v28, %v5068_v2  ;;  %v10497_v28 = vld [vmem:[#allocation51_spill] sm:$0xff] }
 0x688   : > { %v5097_v62 = vadd.f32 %v6930_v30, %v4807_v33  ;;  %v5353_v7 = vmax.f32 %v5321_v54, 0.0  ;;  %v10490_v54 = vld [vmem:[#allocation43_spill] sm:$0xff] }
 0x689   : > { %v5350_v48 = vmax.f32 %v5318_v39, 0.0 }
 0x68a   : > { %v5325_v63 = vadd.f32 %v9859_v20, %v5097_v62  ;;  %v5322_v20 = vadd.f32 %v9886_v36, %v5084_v6  ;;  %v5356_v62 = vmax.f32 %v5324_v37, 0.0  ;;  %v5382_v36 = vpack.c.bf16 %v5342_v50, %v5341_v35  ;;  %v10488_v50 = vld [vmem:[#allocation17_spill] sm:$0xff] }
 0x68b   : > { %v4812_v11 = vpop.permute.xlu0 %4811  ;;  %v10056_v55 = vpop.permute.xlu1 %4751  ;;  %v5303_v6 = vadd.f32 %v10482_v9, %v5009_v27 }
 0x68c   : > { %v5100_v45 = vadd.f32 %v6931_v22, %v4812_v11  ;;  %v5357_v11 = vmax.f32 %v5325_v63, 0.0  ;;  %v5354_v23 = vmax.f32 %v5322_v20, 0.0  ;;  %v5389_v41 = vpack.c.bf16 %v5356_v62, %v5355_v32 }
 0x68d   : > { %v5335_v15 = vmax.f32 %v5303_v6, 0.0 }
 0x68e   : > { %v5326_v14 = vadd.f32 %v9865_v34, %v5100_v45  ;;  %v5073_v34 = vadd.f32 %v5072_v52, %v4777_v40  ;;  %v5339_v45 = vmax.f32 %v5307_v61, 0.0  ;;  %v5388_v3 = vpack.c.bf16 %v5354_v23, %v5353_v7  ;;  %v10492_v23 = vld [vmem:[#allocation28_spill] sm:$0xff] }
 0x68f   : > { %v4747_v33 = vpop.permute.xlu0 %4746  ;;  %v10066_v18 = vpop.permute.xlu1 %4671  ;;  %v5380_v40 = vpack.c.bf16 %v5338_v44, %v5337_v58  ;;  %v5379_v20 = vpack.c.bf16 %v5336_v49, %v5335_v15  ;;  %v5052_v61 = vadd.f32 %v10489_v0, %v10056_v55  ;;  %v10493_v55 = vld [vmem:[#allocation52_spill] sm:$0xff]  ;;  %v7092_v49 = vld [vmem:[%s10262_s10 + $0x10] ss:$8 sps:$4 sm:$0xff]  }
 0x690   : > { %v5358_v31 = vmax.f32 %v5326_v14, 0.0  ;;  %v5319_v53 = vadd.f32 %v9894_v26, %v5073_v34  ;;  %v5381_v8 = vpack.c.bf16 %v5340_v51, %v5339_v45  ;;  %v10483_v26 = vld [vmem:[#allocation49_spill] sm:$0xff]  ;;  %v10487_v14 = vld [vmem:[#allocation35_spill] sm:$0xff]  ;;  %v5049_v25 = vadd.f32 %v10488_v50, %v4747_v33 }
 0x691   : > { %v5057_v30 = vadd.f32 %v10484_v43, %v10483_v26  ;;  %v5386_v34 = vpack.c.bf16 %v5350_v48, %v5349_v4  ;;  %v4988_v51 = vadd.f32 %v10491_v16, %v10066_v18  ;;  %v10495_v18 = vld [vmem:[#allocation61_spill] sm:$0xff]  ;;  %v7104_v15 = vld [vmem:[%s10262_s10 + $0x50] ss:$8 sps:$4 sm:$0xff]   ;;  %v7112_v4 = vld [vmem:[%s10262_s10 + $0x74] ss:$8 sps:$4 sm:$0xff]  }
 0x692   : > { %v5390_v57 = vpack.c.bf16 %v5358_v31, %v5357_v11  ;;  %v5351_v24 = vmax.f32 %v5319_v53, 0.0  ;;  %v5348_v31 = vmax.f32 %v5316_v59, 0.0  ;;  %v7103_v59 = vld [vmem:[%s10262_s10 + $0x44] ss:$8 sps:$4 sm:$0xff]   ;;  %v7101_v48 = vld [vmem:[%s10262_s10 + $0x40] ss:$8 sps:$4 sm:$0xff]  }
 0x693   : > { %v4667_v37 = vpop.permute.xlu0 %4666  ;;  %v5233_v63 = vpop.permute.xlu1 %5232  ;;  %v5315_v38 = vadd.f32 %v10487_v14, %v5057_v30  ;;  %v7109_v14 = vld [vmem:[%s10262_s10 + $0x64] ss:$8 sps:$4 sm:$0xff]   ;;  %v7110_v50 = vld [vmem:[%s10262_s10 + $0x70] ss:$8 sps:$4 sm:$0xff]  }
 0x694   : > { %6641 = vmatprep.subr.bf16.mxu1 %v5390_v57  ;;  %v5387_v56 = vpack.c.bf16 %v5352_v46, %v5351_v24  ;;  %v4985_v32 = vadd.f32 %v10490_v54, %v4667_v37  ;;  %v5314_v17 = vadd.f32 %v5233_v63, %v5052_v61  ;;  %v7094_v24 = vld [vmem:[%s10262_s10 + $0x14] ss:$8 sps:$4 sm:$0xff]  }
 0x695   : > { %6642 = vmatpush3.bf16.msra.mxu1 %v5382_v36  ;;  %v5347_v57 = vmax.f32 %v5315_v38, 0.0  ;;  %v7107_v38 = vld [vmem:[%s10262_s10 + $0x60] ss:$8 sps:$4 sm:$0xff]  }
 0x696   : > { %6643 = vmatprep.subr.bf16.mxu1 %v5389_v41  ;;  %v5346_v45 = vmax.f32 %v5314_v17, 0.0 }
 0x697   : > { %v5228_v60 = vpop.permute.xlu0 %5227  ;;  %v5153_v52 = vpop.permute.xlu1 %5152  ;;  %v5385_v27 = vpack.c.bf16 %v5348_v31, %v5347_v57 }
 0x698   : > { %v5313_v35 = vadd.f32 %v5228_v60, %v5049_v25  ;;  %v5298_v13 = vadd.f32 %v5153_v52, %v4988_v51  ;;  %v7177_v25 = vmov 0.0  }
 0x699   : > { %6644 = vmatpush3.bf16.msra.mxu1 %v5381_v8  ;;  %6932 = vmatprep.subr.bf16.mxu0 %v7177_v25 }
 0x69a   : > { %6645 = vmatprep.subr.bf16.mxu1 %v5388_v3  ;;  %v5345_v5 = vmax.f32 %v5313_v35, 0.0  ;;  %v5330_v29 = vmax.f32 %v5298_v13, 0.0  ;;  %6948 = vmatprep.mubr.msk.bf16.mxu0 %vm7178_vm4, %v7177_v25 }
 0x69b   : > { %v5148_v12 = vpop.permute.xlu0 %5147  ;;  %v4742_v22 = vpop.permute.xlu1 %4741 }
 0x69c   : > { %v5297_v33 = vadd.f32 %v5148_v12, %v4985_v32  ;;  %v5044_v41 = vadd.f32 %v10492_v23, %v4742_v22  ;;  %v5384_v44 = vpack.c.bf16 %v5346_v45, %v5345_v5  ;;  %v7095_v12 = vld [vmem:[%s10262_s10 + $0x20] ss:$8 sps:$4 sm:$0xff]   ;;  %v7100_v22 = vld [vmem:[%s10262_s10 + $0x34] ss:$8 sps:$4 sm:$0xff]  }
 0x69d   : > { %6646 = vmatpush3.bf16.msra.mxu1 %v5380_v40  ;;  %v7097_v40 = vld [vmem:[%s10262_s10 + $0x24] ss:$8 sps:$4 sm:$0xff]  }
 0x69e   : > { %6647 = vmatprep.subr.bf16.mxu1 %v5387_v56  ;;  %v5329_v63 = vmax.f32 %v5297_v33, 0.0  ;;  %v7106_v56 = vld [vmem:[%s10262_s10 + $0x54] ss:$8 sps:$4 sm:$0xff]  }
 0x69f   : > { %v4737_v62 = vpop.permute.xlu0 %4736  ;;  %v4662_v11 = vpop.permute.xlu1 %4661 }
 0x6a0   : > { %v5041_v37 = vadd.f32 %v10494_v10, %v4737_v62  ;;  %v4980_v8 = vadd.f32 %v10495_v18, %v4662_v11  ;;  %v5376_v9 = vpack.c.bf16 %v5330_v29, %v5329_v63 }
 0x6a1   : > { %6648 = vmatpush3.bf16.msra.mxu1 %v5379_v20 }
 0x6a2   : > { %6649 = vmatprep.subr.bf16.mxu1 %v5386_v34 }
 0x6a3   : > { %v4657_v36 = vpop.permute.xlu0 %4656  ;;  %v5223_v2 = vpop.permute.xlu1 %5222 }
 0x6a4   : > { %v5312_v53 = vadd.f32 %v5223_v2, %v5044_v41  ;;  %v4977_v39 = vadd.f32 %v10497_v28, %v4657_v36 }
 0x6a5   : > { %6650 = vmatpush3.bf16.msra.mxu1 %v10493_v55 }
 0x6a6   : > { %6651 = vmatprep.subr.bf16.mxu1 %v5385_v27  ;;  %v5344_v52 = vmax.f32 %v5312_v53, 0.0 }
 0x6a7   : > { %v5218_v7 = vpop.permute.xlu0 %5217  ;;  %v5143_v19 = vpop.permute.xlu1 %5142 }
 0x6a8   : > { %v5311_v60 = vadd.f32 %v5218_v7, %v5041_v37  ;;  %v5296_v3 = vadd.f32 %v5143_v19, %v4980_v8 }
 0x6a9   : > { %6652 = vmatpush3.bf16.msra.mxu1 %v10496_v1 }
 0x6aa   : > { %v5343_v46 = vmax.f32 %v5311_v60, 0.0  ;;  %6653 = vmatprep.subr.bf16.mxu1 %v5384_v44  ;;  %v5328_v43 = vmax.f32 %v5296_v3, 0.0 }
 0x6ab   : > { %v5138_v6 = vpop.permute.xlu0 %5137  ;;  %v10152_v62 = vpop.permute.xlu1 %5484 }
 0x6ac   : > { %v5383_v58 = vpack.c.bf16 %v5344_v52, %v5343_v46  ;;  %v5295_v26 = vadd.f32 %v5138_v6, %v4977_v39 }
 0x6ad   : > { %6654 = vmatpush3.bf16.msra.mxu1 %v5376_v9 }
 0x6ae   : > { %v5327_v30 = vmax.f32 %v5295_v26, 0.0  ;;  %6655 = vmatprep.subr.bf16.mxu1 %v5383_v58 }
 0x6af   : > { %v10150_v20 = vpop.permute.xlu0 %5479  ;;  %v10156_v31 = vpop.permute.xlu1 %5474 }
 0x6b0   : > { %v5375_v47 = vpack.c.bf16 %v5328_v43, %v5327_v30 }
 0x6b2   : > { %6656 = vmatpush3.bf16.msra.mxu1 %v5375_v47 }
 0x6b3   : > { %v10154_v11 = vpop.permute.xlu0 %5469  ;;  %v10161_v61 = vpop.permute.xlu1 %5464 }
 0x6b5   : > { %5600 = vmatmul.mubr.bf16.vlgmr.msra.gmra.mxu1 %v7089_v21 }
 0x6b6   : > { %5607 = vmatprep.mubr.bf16.mxu1 %v7094_v24 }
 0x6b7   : > { %v10159_v0 = vpop.permute.xlu0 %5459  ;;  %v10165_v34 = vpop.permute.xlu1 %5454 }
 0x6bb   : > { %v10163_v35 = vpop.permute.xlu0 %5449  ;;  %v10169_v32 = vpop.permute.xlu1 %5444 }
 0x6bd   : > { %5608 = vmatmul.mubr.bf16.gmra.mxu1 %v7092_v49 }
 0x6be   : > { %5615 = vmatprep.mubr.bf16.mxu1 %v7097_v40 }
 0x6bf   : > { %v10167_v54 = vpop.permute.xlu0 %5439  ;;  %v10173_v17 = vpop.permute.xlu1 %5434 }
 0x6c3   : > { %v10171_v57 = vpop.permute.xlu0 %5429  ;;  %v5425_v33 = vpop.permute.xlu1 %5424 }
 0x6c5   : > { %5616 = vmatmul.mubr.bf16.gmra.mxu1 %v7095_v12 }
 0x6c6   : > { %5623 = vmatprep.mubr.bf16.mxu1 %v7100_v22 }
 0x6c7   : > { %v5420_v16 = vpop.permute.xlu0 %5419  ;;  %v5415_v55 = vpop.permute.xlu1 %5414 }
 0x6cb   : > { %v5410_v23 = vpop.permute.xlu0 %5409 }
 0x6cd   : > { %5624 = vmatmul.mubr.bf16.gmra.mxu1 %v7098_v42 }
 0x6ce   : > { %5631 = vmatprep.mubr.bf16.mxu1 %v7103_v59 }
 0x6d5   : > { %5632 = vmatmul.mubr.bf16.gmra.mxu1 %v7101_v48 }
 0x6d6   : > { %5639 = vmatprep.mubr.bf16.mxu1 %v7106_v56 }
 0x6dd   : > { %5640 = vmatmul.mubr.bf16.gmra.mxu1 %v7104_v15 }
 0x6de   : > { %5647 = vmatprep.mubr.bf16.mxu1 %v7109_v14 }
 0x6e5   : > { %5648 = vmatmul.mubr.bf16.gmra.mxu1 %v7107_v38 }
 0x6e6   : > { %5655 = vmatprep.mubr.bf16.mxu1 %v7112_v4 }
 0x6ed   : > { %5656 = vmatmul.mubr.bf16.gmra.mxu1 %v7110_v50 }
 0x775   : > { %v6657_v51 = vpop.f32.mrf.mxu1 }
 0x777   : > { %v6658_v36 = vpop.f32.mrf.mxu1 }
 0x778   : > { %v6659_v2 = vadd.f32 %v6658_v36, %v6657_v51 }
 0x779   : > { %v6660_v5 = vpop.f32.mrf.mxu1 }
 0x77a   : > { %v5602_v27 = vadd.f32 %v6659_v2, %v5410_v23 }
 0x77b   : > { %v6661_v41 = vpop.f32.mrf.mxu1 }
 0x77c   : > { %v6662_v13 = vadd.f32 %v6661_v41, %v6660_v5  ;;  %v5664_v53 = vmax.f32 %v5602_v27, 0.0 }
 0x77d   : > { %v6663_v45 = vpop.f32.mrf.mxu1 }
 0x77e   : > { %v5605_v10 = vadd.f32 %v6662_v13, %v5415_v55 }
 0x77f   : > { %v6664_v37 = vpop.f32.mrf.mxu1 }
 0x780   : > { %v5665_v63 = vmax.f32 %v5605_v10, 0.0  ;;  %v6665_v7 = vadd.f32 %v6664_v37, %v6663_v45 }
 0x781   : > { %v6666_v19 = vpop.f32.mrf.mxu1 }
 0x782   : > { %v10175_v44 = vpack.c.bf16 %v5665_v63, %v5664_v53  ;;  %v5610_v8 = vadd.f32 %v6665_v7, %v5420_v16 }
 0x783   : > { %v6667_v18 = vpop.f32.mrf.mxu1 }
 0x784   : > { %v6668_v60 = vadd.f32 %v6667_v18, %v6666_v19  ;;  %v5666_v39 = vmax.f32 %v5610_v8, 0.0 }
 0x785   : > { %v6669_v29 = vpop.f32.mrf.mxu1 }
 0x786   : > { %v5613_v1 = vadd.f32 %v6668_v60, %v5425_v33 }
 0x787   : > { %v6670_v28 = vpop.f32.mrf.mxu1 }
 0x788   : > { %v5667_v52 = vmax.f32 %v5613_v1, 0.0  ;;  %v10177_v46 = vadd.f32 %v6670_v28, %v6669_v29 }
 0x789   : > { %v6672_v3 = vpop.f32.mrf.mxu1 }
 0x78a   : > { %v10179_v9 = vpack.c.bf16 %v5667_v52, %v5666_v39 }
 0x78b   : > { %v6673_v6 = vpop.f32.mrf.mxu1 }
 0x78d   : > { %v6675_v58 = vpop.f32.mrf.mxu1 }
 0x78f   : > { %v6676_v26 = vpop.f32.mrf.mxu1 }
 0x791   : > { %v6678_v43 = vpop.f32.mrf.mxu1 }
 0x793   : > { %v6679_v30 = vpop.f32.mrf.mxu1 }
 0x795   : > { %v6681_v47 = vpop.f32.mrf.mxu1 }
 0x797   : > { %v6682_v21 = vpop.f32.mrf.mxu1 }
 0x798   : > { %v6683_v7 = vadd.f32 %v6682_v21, %v6681_v47 }
 0x799   : > { %v6684_v24 = vpop.f32.mrf.mxu1 }
 0x79a   : > { %v5634_v60 = vadd.f32 %v6683_v7, %v10163_v35  ;;  %v5618_v35 = vadd.f32 %v10177_v46, %v10171_v57  ;;  %v5680_v57 = vld [vmem:[%s10264_s12] sm:$0x3] }
 0x79b   : > { %v6685_v49 = vpop.f32.mrf.mxu1 }
 0x79c   : > { %v6686_v10 = vadd.f32 %v6685_v49, %v6684_v24  ;;  %v5672_v52 = vmax.f32 %v5634_v60, 0.0 }
 0x79d   : > { %v6687_v40 = vpop.f32.mrf.mxu1 }
 0x79f   : > { %v6688_v12 = vpop.f32.mrf.mxu1 }
 0x7a0   : > { %v6689_v27 = vadd.f32 %v6688_v12, %v6687_v40 }
 0x7a1   : > { %v6690_v22 = vpop.f32.mrf.mxu1 }
 0x7a2   : > { %v5642_v19 = vadd.f32 %v6689_v27, %v10159_v0 }
 0x7a3   : > { %v6691_v42 = vpop.f32.mrf.mxu1 }
 0x7a4   : > { %v6692_v5 = vadd.f32 %v6691_v42, %v6690_v22  ;;  %v5674_v29 = vmax.f32 %v5642_v19, 0.0 }
 0x7a5   : > { %v6693_v59 = vpop.f32.mrf.mxu1 }
 0x7a6   : > { %v5645_v37 = vadd.f32 %v6692_v5, %v10161_v61  ;;  %v6674_v61 = vadd.f32 %v6673_v6, %v6672_v3 }
 0x7a7   : > { %v6694_v48 = vpop.f32.mrf.mxu1 }
 0x7a8   : > { %v6695_v33 = vadd.f32 %v6694_v48, %v6693_v59  ;;  %v5675_v18 = vmax.f32 %v5645_v37, 0.0 }
 0x7a9   : > { %v6696_v56 = vpop.f32.mrf.mxu1 }
 0x7aa   : > { %v5650_v13 = vadd.f32 %v6695_v33, %v10154_v11  ;;  %v6677_v11 = vadd.f32 %v6676_v26, %v6675_v58  ;;  %v5686_v28 = vpack.c.bf16 %v5675_v18, %v5674_v29 }
 0x7ab   : > { %v6697_v15 = vpop.f32.mrf.mxu1 }
 0x7ac   : > { %v6698_v16 = vadd.f32 %v6697_v15, %v6696_v56  ;;  %v5626_v39 = vadd.f32 %v6677_v11, %v10167_v54  ;;  %v5668_v54 = vmax.f32 %v5618_v35, 0.0 }
 0x7ad   : > { %v6699_v14 = vpop.f32.mrf.mxu1 }
 0x7ae   : > { %v5653_v23 = vadd.f32 %v6698_v16, %v10156_v31  ;;  %v6680_v31 = vadd.f32 %v6679_v30, %v6678_v43  ;;  %v5670_v43 = vmax.f32 %v5626_v39, 0.0 }
 0x7af   : > { %v6700_v38 = vpop.f32.mrf.mxu1 }
 0x7b0   : > { %v6701_v4 = vadd.f32 %v6700_v38, %v6699_v14  ;;  %v5677_v53 = vmax.f32 %v5653_v23, 0.0  ;;  %v5629_v1 = vadd.f32 %v6680_v31, %v10169_v32 }
 0x7b1   : > { %v6702_v50 = vpop.f32.mrf.mxu1 }
 0x7b2   : > { %v5658_v36 = vadd.f32 %v6701_v4, %v10150_v20  ;;  %v5676_v20 = vmax.f32 %v5650_v13, 0.0  ;;  %v5671_v58 = vmax.f32 %v5629_v1, 0.0 }
 0x7b3   : > { %v6703_v51 = vpop.f32.mrf.mxu1 }
 0x7b4   : > { %v6704_v2 = vadd.f32 %v6703_v51, %v6702_v50  ;;  %v5678_v55 = vmax.f32 %v5658_v36, 0.0  ;;  %v5687_v8 = vpack.c.bf16 %v5677_v53, %v5676_v20  ;;  %v5684_v3 = vpack.c.bf16 %v5671_v58, %v5670_v43 }
 0x7b6   : > { %v5661_v41 = vadd.f32 %v6704_v2, %v10152_v62  ;;  %v5637_v62 = vadd.f32 %v6686_v10, %v10165_v34  ;;  %v5621_v34 = vadd.f32 %v6674_v61, %v10173_v17  ;;  %v5693_v17 = vpop.permute.xlu0 %5692 }
 0x7b8   : > { %v5679_v45 = vmax.f32 %v5661_v41, 0.0  ;;  %v5673_v0 = vmax.f32 %v5637_v62, 0.0  ;;  %v5669_v32 = vmax.f32 %v5621_v34, 0.0 }
 0x7ba   : > { %v5688_v63 = vpack.c.bf16 %v5679_v45, %v5678_v55  ;;  %v5685_v26 = vpack.c.bf16 %v5673_v0, %v5672_v52  ;;  %v5683_v6 = vpack.c.bf16 %v5669_v32, %v5668_v54 }
 0x7bc   : > { %6933 = vmatpush3.bf16.msra.mxu0 %v5688_v63 }
 0x7bd   : > { %6934 = vmatprep.subr.bf16.mxu0 %v7177_v25 }
 0x7c0   : > { %6935 = vmatpush3.bf16.msra.mxu0 %v5687_v8 }
 0x7c1   : > { %6936 = vmatprep.subr.bf16.mxu0 %v7177_v25 }
 0x7c4   : > { %6937 = vmatpush3.bf16.msra.mxu0 %v5686_v28 }
 0x7c5   : > { %6938 = vmatprep.subr.bf16.mxu0 %v7177_v25 }
 0x7c8   : > { %6939 = vmatpush3.bf16.msra.mxu0 %v5685_v26 }
 0x7c9   : > { %6940 = vmatprep.subr.bf16.mxu0 %v7177_v25 }
 0x7cc   : > { %6941 = vmatpush3.bf16.msra.mxu0 %v5684_v3 }
 0x7cd   : > { %6942 = vmatprep.subr.bf16.mxu0 %v7177_v25 }
 0x7d0   : > { %6943 = vmatpush3.bf16.msra.mxu0 %v5683_v6 }
 0x7d1   : > { %6944 = vmatprep.subr.bf16.mxu0 %v7177_v25 }
 0x7d4   : > { %6945 = vmatpush3.bf16.msra.mxu0 %v10179_v9 }
 0x7d5   : > { %6946 = vmatprep.subr.bf16.mxu0 %v7177_v25 }
 0x7d8   : > { %6947 = vmatpush3.bf16.msra.mxu0 %v10175_v44 }
 0x7db   : > { %6949 = vmatmul.mubr.bf16.vlgmr.msra.gmra.mxu0 %v5680_v57 }
 0x89b   : > { %v5729_v46 = vpop.f32.mrf.mxu0 }
 0x89c   : > { %v5730_v30 = vadd.f32 %v5729_v46, %v5693_v17 }
 0x89d   : > { %v6950_v25 = vpop.f32.mrf.mxu0 }
 0x89e   : > { %5736 = vst.msk [vmem:[%s458_s18] sm:$0xf] %vm5735_vm5, %v5730_v30 }
 0x89f   : > { %v5732_v44 = vpop.f32.mrf.mxu0 }
 0x8a0   : > { %7126 = shalt.err (!%p7123_p3)
}
 0x8a1   : > { %s7127_s24 = scalar_lea.hbm %s10211_s15, 64  ;;  %s7131_s22 = scalar_lea.hbm %s10266_s14, 128 }
 0x8a2   : > { %p7128_p4 = scmp.ne.s32.totalorder %s10211_s15, %s7127_s24  ;;  %p7132_p9 = scmp.lt.s32.totalorder %s10211_s15, %s10266_s14 }
 0x8a3   : > { %p7133_p10 = scmp.lt.s32.totalorder %s7131_s22, %s7127_s24 }
 0x8a4   : > { %p7129_p7 = pnand %p7128_p4, %p7293_p5 }
 0x8a5   : > { %p7134_p11 = por %p7133_p10, %p7132_p9 }
 0x8a6   : > { %p7130_p8 = pneg %p7129_p7 }
 0x8a8   : > { %p7135_p12 = pnand %p7134_p11, %p7130_p8 }
 0x8aa   : > { %7138 = shalt.err (!%p7135_p12)
}
 0x8ab   : > { %6952 = dma.vmem_to_hbm [thread:$0]  (%p7293_p5), %s10213_s20, 64, %s10211_s15, %s5738_s17   ;;  %v6951_v9 = vpop.f32.mrf.mxu0 }
 0x8ac PF: > { %p6958_p13 = scmp.ge.s32.totalorder %s7173_s16, 2  ;;  %s5763_s26 = sand.u32 1, %s7161_s29  }
 0x8ad   : > { %s5764_s28 = scalar_lea.sflag [#allocation3], %s5763_s26 }
 0x8ae   : > { %p6955_p0 = pnand %p6958_p13, %p7297_p6 }
 0x8b0   : > { %p6956_p1 = pneg %p6955_p0 }
 0x8b2   : > { %7156 = dma.done.wait (%p6956_p1), %s5764_s28, 64  }
 0x8b3   : > { %7158 = vsyncadd (%p6956_p1), %s5764_s28, 4294967232  ;;  %s10499_s16 = sld [smem:[#allocation6_spill]]  ;;  %s10502_s29 = smov %s7165_s30 }
 0x8b4   : > { %s10500_s24 = sld [smem:[#allocation5_spill]] }
 0x8b5   : > { %s10501_s15 = sld [smem:[#allocation7_spill]] }
 0x8b9   : > { %p24_p2 = scmp.ge.s32.totalorder %s10499_s16, 4  }
 0x8ba   : > { %s10503_s30 = smov %s10500_s24 }
 0x8bb   :  { %26 = sbr.rel (!%p24_p2) target bundleno = 3 (0x3), region = 111 }
 0x8c0   :  { %5769 = vsyncpa [#allocation3], 1 }
 0x8c1   :  { %5771 = vsyncpa [#allocation3 + $0x1], 1 }

</bundles_post_ra>
